<compile_context>
chip_gen: v7x
topology: tpu7x:2x2x1
jax: 0.10.0
libtpu: 0.0.40
codegen_flags: <defaults>
</compile_context>

<pallas_src>
import functools

import jax
import jax.numpy as jnp
from jax.experimental import pallas as pl
from jax.experimental.pallas import tpu as pltpu

LANES = 128  # lane-dense width for conv outputs / intermediate activations


def _down_kernel(x_ref, mask_ref, w1_ref, g1_ref, be1_ref,
                 w2_ref, g2_ref, be2_ref,
                 o_ref, p2_ref, *, H, W, NB, inv_count):
    WP = W + 2                       # padded width
    WN = WP * NB                     # flat rows per padded image row
    M1 = H * WN                      # conv-output rows (incl. garbage cols / pad batch)
    C = o_ref.shape[1]               # lane-padded channel count (128)
    Mp = p2_ref.shape[0]
    head = WN + NB                   # zero halo rows before the conv2 interior
    tail = Mp - head - M1            # zero halo rows after it
    eps = 1e-5

    # (M1, 1) validity column: 1.0 where pw < W and n < N, else 0.0.
    # Broadcast along lanes on use.
    mask = mask_ref[...]

    def conv3x3(src_ref, w_ref):
        # 3x3 conv = 9 accumulating MXU matmuls over row-shifted, 8-aligned slices.
        # TODO(synk): on v7x, accumulate into a VMEM f32 accumulator ref so the
        # MRB in-place accumulate absorbs the 8 VPU adds (neutral on v5e/v6e).
        acc = None
        for dh in range(3):
            for dw in range(3):
                off = dh * WN + dw * NB                     # static, sublane-aligned
                part = jnp.dot(src_ref[pl.ds(off, M1), :], w_ref[dh * 3 + dw],
                               preferred_element_type=jnp.float32)
                acc = part if acc is None else acc + part
        return acc

    def bn_relu(acc, g_ref, be_ref):
        # BatchNorm2d training-mode (biased) stats over the masked valid rows,
        # folded into a single per-channel affine.  The conv bias is omitted
        # upstream because BN's mean subtraction cancels it exactly.
        am = acc * mask
        s1 = jnp.sum(am, axis=0, keepdims=True)
        s2 = jnp.sum(am * acc, axis=0, keepdims=True)
        mean = s1 * inv_count
        var = jnp.maximum(s2 * inv_count - mean * mean, 0.0)
        scale = g_ref[...] * jax.lax.rsqrt(var + eps)       # (1, C)
        shift = be_ref[...] - mean * scale                  # (1, C)
        return jnp.maximum(acc * scale + shift, 0.0)        # ReLU

    y1 = bn_relu(conv3x3(x_ref, w1_ref), g1_ref, be1_ref)

    # Re-pad y1 for conv2: zero only the halo head/tail rows; the masked
    # interior store also zeroes the embedded left/right halo columns
    # (garbage pw columns) and the padded-batch rows.
    p2_ref[pl.ds(0, head), :] = jnp.zeros((head, C), jnp.float32)
    p2_ref[pl.ds(head, M1), :] = y1 * mask
    p2_ref[pl.ds(head + M1, tail), :] = jnp.zeros((tail, C), jnp.float32)

    o_ref[...] = bn_relu(conv3x3(p2_ref, w2_ref), g2_ref, be2_ref)


def _vmem_bytes(shape, itemsize=4):
    """Tiled-(8,128) VMEM footprint of an f32 array of `shape`."""
    lead = 1
    for d in shape[:-2]:
        lead *= int(d)
    sub = int(shape[-2]) if len(shape) >= 2 else 1
    lane = int(shape[-1])
    return lead * (-(-sub // 8) * 8) * (-(-lane // 128) * 128) * itemsize


@jax.jit
def down_forward(x_nchw, params):
    """`down(in_channel, out_channel)` forward.  x_nchw: (N, Cin, 2H, 2W) f32."""
    N, Cin, H2, W2 = x_nchw.shape
    H, W = H2 // 2, W2 // 2
    Cout = params["w1"].shape[0]
    C = LANES
    assert Cout <= C
    NB = ((N + 7) // 8) * 8          # batch padded to a full sublane tile
    WP = W + 2
    WN = WP * NB
    Mp = (H + 3) * WN                # padded grid rows (+2 bottom rows for last taps)
    M1 = H * WN                      # conv-output rows

    xf = x_nchw.astype(jnp.float32)

    # --- XLA-side plumbing ---------------------------------------------------
    # MaxPool2d(2) fused into the layout transform (one pooled slab, not 4 taps).
    pooled = xf.reshape(N, Cin, H, 2, W, 2).max(axis=(3, 5))      # (N, Cin, H, W)
    pooled = jnp.transpose(pooled, (2, 3, 0, 1))                  # (H, W, N, Cin)
    pooled = jnp.pad(pooled, ((1, 2), (1, 1), (0, NB - N), (0, 0)))
    x_slab = pooled.reshape(Mp, Cin)                              # channels unpadded

    # Validity mask over conv-output rows: real w column AND real batch entry.
    # Shipped as a single (M1, 1) f32 column; lanes broadcast in-kernel.
    col_ok = jnp.arange(WP) < W
    n_ok = jnp.arange(NB) < N
    valid = (col_ok[:, None] & n_ok[None, :]).astype(jnp.float32)      # (WP, NB)
    mask = jnp.broadcast_to(valid[None], (H, WP, NB)).reshape(M1, 1)

    def prep_w(w, k_dim):
        # OIHW -> (9, K, C): tap-major, contraction dim K (unpadded for conv1,
        # lane-padded 128 for conv2), output channels zero-padded to 128 lanes.
        wt = jnp.transpose(w.astype(jnp.float32), (2, 3, 1, 0))         # (3,3,K0,O)
        wt = jnp.pad(wt, ((0, 0), (0, 0), (0, k_dim - w.shape[1]), (0, C - w.shape[0])))
        return wt.reshape(9, k_dim, C)

    row = lambda v: jnp.pad(v.astype(jnp.float32), (0, C - v.shape[0])).reshape(1, C)

    # NOTE: conv biases b1/b2 are intentionally not passed to the kernel —
    # train-mode BatchNorm subtracts the per-channel mean, so they cancel.

    # Re-derived VMEM budget (inputs + output + scratch, 2x headroom for
    # compiler temporaries), floored at 32 MiB.
    slab_shapes = [(Mp, Cin), (M1, 1), (9, Cin, C), (1, C), (1, C),
                   (9, C, C), (1, C), (1, C), (M1, C), (Mp, C)]
    vmem_need = sum(_vmem_bytes(s) for s in slab_shapes)
    vmem_limit = int(max(2 * vmem_need + (4 << 20), 32 << 20))

    vmem = pl.BlockSpec(memory_space=pltpu.MemorySpace.VMEM)
    kernel = functools.partial(_down_kernel, H=H, W=W, NB=NB,
                               inv_count=1.0 / float(N * H * W))
    # TODO(synk): for production UNet sizes / v7x (2 TCs, 64 MiB VMEM), split
    # into a tiled grid over batch/spatial rows with a "parallel" axis and
    # cross-tile BN-stat accumulation (two-pass per conv); this single
    # invocation VMEM-resident form only holds for small shapes.
    out_flat = pl.pallas_call(
        kernel,
        out_shape=jax.ShapeDtypeStruct((M1, C), jnp.float32),
        in_specs=[vmem] * 8,
        out_specs=vmem,
        scratch_shapes=[pltpu.VMEM((Mp, C), jnp.float32)],   # conv2 padded input
        compiler_params=pltpu.CompilerParams(vmem_limit_bytes=vmem_limit),
    )(x_slab, mask,
      prep_w(params["w1"], Cin), row(params["g1"]), row(params["be1"]),
      prep_w(params["w2"], C), row(params["g2"]), row(params["be2"]))

    out = out_flat.reshape(H, WP, NB, C)[:, :W, :N, :Cout]   # drop garbage cols / pads
    return jnp.transpose(out, (2, 3, 0, 1))                  # -> (N, Cout, H, W)


def down_reference(x, params):
    """Pure-JAX (XLA) reference used only to sanity-check the kernel."""
    p = jax.lax.reduce_window(x, -jnp.inf, jax.lax.max,
                              (1, 1, 2, 2), (1, 1, 2, 2), "VALID")

    def block(inp, w, b, g, be):
        y = jax.lax.conv_general_dilated(
            inp, w, window_strides=(1, 1), padding=((1, 1), (1, 1)),
            dimension_numbers=("NCHW", "OIHW", "NCHW"),
            precision=jax.lax.Precision.HIGHEST)
        y = y + b[None, :, None, None]
        mean = jnp.mean(y, axis=(0, 2, 3), keepdims=True)
        var = jnp.mean(jnp.square(y - mean), axis=(0, 2, 3), keepdims=True)
        y = (y - mean) * jax.lax.rsqrt(var + 1e-5)
        y = y * g[None, :, None, None] + be[None, :, None, None]
        return jnp.maximum(y, 0.0)

    y = block(p, params["w1"], params["b1"], params["g1"], params["be1"])
    y = block(y, params["w2"], params["b2"], params["g2"], params["be2"])
    return y


if __name__ == "__main__":
    key = jax.random.PRNGKey(0)
    ks = jax.random.split(key, 9)
    N, Cin, Cout, H2, W2 = 2, 4, 8, 16, 16

    x = jax.random.normal(ks[0], (N, Cin, H2, W2), jnp.float32)
    params = {
        "w1": 0.2 * jax.random.normal(ks[1], (Cout, Cin, 3, 3), jnp.float32),
        "b1": 0.1 * jax.random.normal(ks[2], (Cout,), jnp.float32),
        "g1": 1.0 + 0.1 * jax.random.normal(ks[3], (Cout,), jnp.float32),
        "be1": 0.1 * jax.random.normal(ks[4], (Cout,), jnp.float32),
        "w2": 0.2 * jax.random.normal(ks[5], (Cout, Cout, 3, 3), jnp.float32),
        "b2": 0.1 * jax.random.normal(ks[6], (Cout,), jnp.float32),
        "g2": 1.0 + 0.1 * jax.random.normal(ks[7], (Cout,), jnp.float32),
        "be2": 0.1 * jax.random.normal(ks[8], (Cout,), jnp.float32),
    }

    out = jax.block_until_ready(down_forward(x, params))
    ref = jax.block_until_ready(down_reference(x, params))

    assert out.shape == (N, Cout, H2 // 2, W2 // 2), out.shape
    err = float(jnp.max(jnp.abs(out - ref)))
    if err > 1e-3:
        raise AssertionError(f"kernel/reference mismatch, max abs err = {err}")
    print("KERNEL_OK")
</pallas_src>

<mosaic_0001>
module attributes {stable_mosaic.version = 11 : i64} {
  func.func @_down_kernel(%arg0: memref<880x4xf32, #tpu.memory_space<vmem>>, %arg1: memref<640x1xf32, #tpu.memory_space<vmem>>, %arg2: memref<9x4x128xf32, #tpu.memory_space<vmem>>, %arg3: memref<1x128xf32, #tpu.memory_space<vmem>>, %arg4: memref<1x128xf32, #tpu.memory_space<vmem>>, %arg5: memref<9x128x128xf32, #tpu.memory_space<vmem>>, %arg6: memref<1x128xf32, #tpu.memory_space<vmem>>, %arg7: memref<1x128xf32, #tpu.memory_space<vmem>>, %arg8: memref<640x128xf32, #tpu.memory_space<vmem>>, %arg9: memref<880x128xf32, #tpu.memory_space<vmem>>) attributes {dimension_semantics = [], scalar_prefetch = 0 : i64, scratch_operands = 1 : i64, tpu.core_type = #tpu.core_type<tc>} {
    %c0 = arith.constant 0 : index
    %c0_0 = arith.constant 0 : index
    %0 = vector.load %arg1[%c0, %c0_0] : memref<640x1xf32, #tpu.memory_space<vmem>>, vector<640x1xf32>
    %c0_1 = arith.constant 0 : index
    %c0_2 = arith.constant 0 : index
    %1 = vector.load %arg0[%c0_1, %c0_2] : memref<880x4xf32, #tpu.memory_space<vmem>>, vector<640x4xf32>
    %c0_3 = arith.constant 0 : index
    %c0_4 = arith.constant 0 : index
    %c0_5 = arith.constant 0 : index
    %2 = vector.load %arg2[%c0_3, %c0_4, %c0_5] : memref<9x4x128xf32, #tpu.memory_space<vmem>>, vector<1x4x128xf32>
    %3 = vector.shape_cast %2 : vector<1x4x128xf32> to vector<4x128xf32>
    %cst = arith.constant dense<0.000000e+00> : vector<640x128xf32>
    %4 = tpu.matmul %1, %3, %cst {dimension_numbers = #tpu.dot_dimension_numbers<[1], [0], [0], [1], [0, 0, 1, 1], [], []>} : vector<640x4xf32>, vector<4x128xf32>, vector<640x128xf32> -> vector<640x128xf32>
    %c8 = arith.constant 8 : index
    %c0_6 = arith.constant 0 : index
    %5 = vector.load %arg0[%c8, %c0_6] : memref<880x4xf32, #tpu.memory_space<vmem>>, vector<640x4xf32>
    %c1 = arith.constant 1 : index
    %c0_7 = arith.constant 0 : index
    %c0_8 = arith.constant 0 : index
    %6 = vector.load %arg2[%c1, %c0_7, %c0_8] : memref<9x4x128xf32, #tpu.memory_space<vmem>>, vector<1x4x128xf32>
    %7 = vector.shape_cast %6 : vector<1x4x128xf32> to vector<4x128xf32>
    %cst_9 = arith.constant dense<0.000000e+00> : vector<640x128xf32>
    %8 = tpu.matmul %5, %7, %cst_9 {dimension_numbers = #tpu.dot_dimension_numbers<[1], [0], [0], [1], [0, 0, 1, 1], [], []>} : vector<640x4xf32>, vector<4x128xf32>, vector<640x128xf32> -> vector<640x128xf32>
    %9 = arith.addf %4, %8 : vector<640x128xf32>
    %c16 = arith.constant 16 : index
    %c0_10 = arith.constant 0 : index
    %10 = vector.load %arg0[%c16, %c0_10] : memref<880x4xf32, #tpu.memory_space<vmem>>, vector<640x4xf32>
    %c2 = arith.constant 2 : index
    %c0_11 = arith.constant 0 : index
    %c0_12 = arith.constant 0 : index
    %11 = vector.load %arg2[%c2, %c0_11, %c0_12] : memref<9x4x128xf32, #tpu.memory_space<vmem>>, vector<1x4x128xf32>
    %12 = vector.shape_cast %11 : vector<1x4x128xf32> to vector<4x128xf32>
    %cst_13 = arith.constant dense<0.000000e+00> : vector<640x128xf32>
    %13 = tpu.matmul %10, %12, %cst_13 {dimension_numbers = #tpu.dot_dimension_numbers<[1], [0], [0], [1], [0, 0, 1, 1], [], []>} : vector<640x4xf32>, vector<4x128xf32>, vector<640x128xf32> -> vector<640x128xf32>
    %14 = arith.addf %9, %13 : vector<640x128xf32>
    %c80 = arith.constant 80 : index
    %c0_14 = arith.constant 0 : index
    %15 = vector.load %arg0[%c80, %c0_14] : memref<880x4xf32, #tpu.memory_space<vmem>>, vector<640x4xf32>
    %c3 = arith.constant 3 : index
    %c0_15 = arith.constant 0 : index
    %c0_16 = arith.constant 0 : index
    %16 = vector.load %arg2[%c3, %c0_15, %c0_16] : memref<9x4x128xf32, #tpu.memory_space<vmem>>, vector<1x4x128xf32>
    %17 = vector.shape_cast %16 : vector<1x4x128xf32> to vector<4x128xf32>
    %cst_17 = arith.constant dense<0.000000e+00> : vector<640x128xf32>
    %18 = tpu.matmul %15, %17, %cst_17 {dimension_numbers = #tpu.dot_dimension_numbers<[1], [0], [0], [1], [0, 0, 1, 1], [], []>} : vector<640x4xf32>, vector<4x128xf32>, vector<640x128xf32> -> vector<640x128xf32>
    %19 = arith.addf %14, %18 : vector<640x128xf32>
    %c88 = arith.constant 88 : index
    %c0_18 = arith.constant 0 : index
    %20 = vector.load %arg0[%c88, %c0_18] : memref<880x4xf32, #tpu.memory_space<vmem>>, vector<640x4xf32>
    %c4 = arith.constant 4 : index
    %c0_19 = arith.constant 0 : index
    %c0_20 = arith.constant 0 : index
    %21 = vector.load %arg2[%c4, %c0_19, %c0_20] : memref<9x4x128xf32, #tpu.memory_space<vmem>>, vector<1x4x128xf32>
    %22 = vector.shape_cast %21 : vector<1x4x128xf32> to vector<4x128xf32>
    %cst_21 = arith.constant dense<0.000000e+00> : vector<640x128xf32>
    %23 = tpu.matmul %20, %22, %cst_21 {dimension_numbers = #tpu.dot_dimension_numbers<[1], [0], [0], [1], [0, 0, 1, 1], [], []>} : vector<640x4xf32>, vector<4x128xf32>, vector<640x128xf32> -> vector<640x128xf32>
    %24 = arith.addf %19, %23 : vector<640x128xf32>
    %c96 = arith.constant 96 : index
    %c0_22 = arith.constant 0 : index
    %25 = vector.load %arg0[%c96, %c0_22] : memref<880x4xf32, #tpu.memory_space<vmem>>, vector<640x4xf32>
    %c5 = arith.constant 5 : index
    %c0_23 = arith.constant 0 : index
    %c0_24 = arith.constant 0 : index
    %26 = vector.load %arg2[%c5, %c0_23, %c0_24] : memref<9x4x128xf32, #tpu.memory_space<vmem>>, vector<1x4x128xf32>
    %27 = vector.shape_cast %26 : vector<1x4x128xf32> to vector<4x128xf32>
    %cst_25 = arith.constant dense<0.000000e+00> : vector<640x128xf32>
    %28 = tpu.matmul %25, %27, %cst_25 {dimension_numbers = #tpu.dot_dimension_numbers<[1], [0], [0], [1], [0, 0, 1, 1], [], []>} : vector<640x4xf32>, vector<4x128xf32>, vector<640x128xf32> -> vector<640x128xf32>
    %29 = arith.addf %24, %28 : vector<640x128xf32>
    %c160 = arith.constant 160 : index
    %c0_26 = arith.constant 0 : index
    %30 = vector.load %arg0[%c160, %c0_26] : memref<880x4xf32, #tpu.memory_space<vmem>>, vector<640x4xf32>
    %c6 = arith.constant 6 : index
    %c0_27 = arith.constant 0 : index
    %c0_28 = arith.constant 0 : index
    %31 = vector.load %arg2[%c6, %c0_27, %c0_28] : memref<9x4x128xf32, #tpu.memory_space<vmem>>, vector<1x4x128xf32>
    %32 = vector.shape_cast %31 : vector<1x4x128xf32> to vector<4x128xf32>
    %cst_29 = arith.constant dense<0.000000e+00> : vector<640x128xf32>
    %33 = tpu.matmul %30, %32, %cst_29 {dimension_numbers = #tpu.dot_dimension_numbers<[1], [0], [0], [1], [0, 0, 1, 1], [], []>} : vector<640x4xf32>, vector<4x128xf32>, vector<640x128xf32> -> vector<640x128xf32>
    %34 = arith.addf %29, %33 : vector<640x128xf32>
    %c168 = arith.constant 168 : index
    %c0_30 = arith.constant 0 : index
    %35 = vector.load %arg0[%c168, %c0_30] : memref<880x4xf32, #tpu.memory_space<vmem>>, vector<640x4xf32>
    %c7 = arith.constant 7 : index
    %c0_31 = arith.constant 0 : index
    %c0_32 = arith.constant 0 : index
    %36 = vector.load %arg2[%c7, %c0_31, %c0_32] : memref<9x4x128xf32, #tpu.memory_space<vmem>>, vector<1x4x128xf32>
    %37 = vector.shape_cast %36 : vector<1x4x128xf32> to vector<4x128xf32>
    %cst_33 = arith.constant dense<0.000000e+00> : vector<640x128xf32>
    %38 = tpu.matmul %35, %37, %cst_33 {dimension_numbers = #tpu.dot_dimension_numbers<[1], [0], [0], [1], [0, 0, 1, 1], [], []>} : vector<640x4xf32>, vector<4x128xf32>, vector<640x128xf32> -> vector<640x128xf32>
    %39 = arith.addf %34, %38 : vector<640x128xf32>
    %c176 = arith.constant 176 : index
    %c0_34 = arith.constant 0 : index
    %40 = vector.load %arg0[%c176, %c0_34] : memref<880x4xf32, #tpu.memory_space<vmem>>, vector<640x4xf32>
    %c8_35 = arith.constant 8 : index
    %c0_36 = arith.constant 0 : index
    %c0_37 = arith.constant 0 : index
    %41 = vector.load %arg2[%c8_35, %c0_36, %c0_37] : memref<9x4x128xf32, #tpu.memory_space<vmem>>, vector<1x4x128xf32>
    %42 = vector.shape_cast %41 : vector<1x4x128xf32> to vector<4x128xf32>
    %cst_38 = arith.constant dense<0.000000e+00> : vector<640x128xf32>
    %43 = tpu.matmul %40, %42, %cst_38 {dimension_numbers = #tpu.dot_dimension_numbers<[1], [0], [0], [1], [0, 0, 1, 1], [], []>} : vector<640x4xf32>, vector<4x128xf32>, vector<640x128xf32> -> vector<640x128xf32>
    %44 = arith.addf %39, %43 : vector<640x128xf32>
    %45 = vector.broadcast %0 : vector<640x1xf32> to vector<640x128xf32>
    %46 = arith.mulf %44, %45 : vector<640x128xf32>
    %cst_39 = arith.constant dense<0.000000e+00> : vector<128xf32>
    %47 = vector.multi_reduction <add>, %46, %cst_39 [0] : vector<640x128xf32> to vector<128xf32>
    %48 = vector.shape_cast %47 : vector<128xf32> to vector<1x128xf32>
    %49 = arith.mulf %46, %44 : vector<640x128xf32>
    %cst_40 = arith.constant dense<0.000000e+00> : vector<128xf32>
    %50 = vector.multi_reduction <add>, %49, %cst_40 [0] : vector<640x128xf32> to vector<128xf32>
    %51 = vector.shape_cast %50 : vector<128xf32> to vector<1x128xf32>
    %cst_41 = arith.constant 7.812500e-03 : f32
    %52 = vector.broadcast %cst_41 : f32 to vector<1x128xf32>
    %53 = arith.mulf %48, %52 : vector<1x128xf32>
    %cst_42 = arith.constant 7.812500e-03 : f32
    %54 = vector.broadcast %cst_42 : f32 to vector<1x128xf32>
    %55 = arith.mulf %51, %54 : vector<1x128xf32>
    %56 = arith.mulf %53, %53 : vector<1x128xf32>
    %57 = arith.subf %55, %56 : vector<1x128xf32>
    %cst_43 = arith.constant 0.000000e+00 : f32
    %58 = vector.broadcast %cst_43 : f32 to vector<1x128xf32>
    %59 = arith.maximumf %57, %58 : vector<1x128xf32>
    %c0_44 = arith.constant 0 : index
    %c0_45 = arith.constant 0 : index
    %60 = vector.load %arg3[%c0_44, %c0_45] : memref<1x128xf32, #tpu.memory_space<vmem>>, vector<1x128xf32>
    %cst_46 = arith.constant 9.99999974E-6 : f32
    %61 = vector.broadcast %cst_46 : f32 to vector<1x128xf32>
    %62 = arith.addf %59, %61 : vector<1x128xf32>
    %63 = math.rsqrt %62 : vector<1x128xf32>
    %64 = arith.mulf %60, %63 : vector<1x128xf32>
    %c0_47 = arith.constant 0 : index
    %c0_48 = arith.constant 0 : index
    %65 = vector.load %arg4[%c0_47, %c0_48] : memref<1x128xf32, #tpu.memory_space<vmem>>, vector<1x128xf32>
    %66 = arith.mulf %53, %64 : vector<1x128xf32>
    %67 = arith.subf %65, %66 : vector<1x128xf32>
    %68 = vector.broadcast %64 : vector<1x128xf32> to vector<640x128xf32>
    %69 = arith.mulf %44, %68 : vector<640x128xf32>
    %70 = vector.broadcast %67 : vector<1x128xf32> to vector<640x128xf32>
    %71 = arith.addf %69, %70 : vector<640x128xf32>
    %cst_49 = arith.constant 0.000000e+00 : f32
    %72 = vector.broadcast %cst_49 : f32 to vector<640x128xf32>
    %73 = arith.maximumf %71, %72 : vector<640x128xf32>
    %cst_50 = arith.constant 0.000000e+00 : f32
    %74 = vector.broadcast %cst_50 : f32 to vector<88x128xf32>
    %c0_51 = arith.constant 0 : index
    %c0_52 = arith.constant 0 : index
    %75 = vector.load %arg9[%c0_51, %c0_52] : memref<880x128xf32, #tpu.memory_space<vmem>>, vector<88x128xf32>
    tpu.vector_store %arg9[%c0_51, %c0_52], %74 {strides = array<i32>} : memref<880x128xf32, #tpu.memory_space<vmem>>, vector<88x128xf32>,
    %76 = vector.broadcast %0 : vector<640x1xf32> to vector<640x128xf32>
    %77 = arith.mulf %73, %76 : vector<640x128xf32>
    %c88_53 = arith.constant 88 : index
    %c0_54 = arith.constant 0 : index
    %78 = vector.load %arg9[%c88_53, %c0_54] : memref<880x128xf32, #tpu.memory_space<vmem>>, vector<640x128xf32>
    tpu.vector_store %arg9[%c88_53, %c0_54], %77 {strides = array<i32>} : memref<880x128xf32, #tpu.memory_space<vmem>>, vector<640x128xf32>,
    %cst_55 = arith.constant 0.000000e+00 : f32
    %79 = vector.broadcast %cst_55 : f32 to vector<152x128xf32>
    %c728 = arith.constant 728 : index
    %c0_56 = arith.constant 0 : index
    %80 = vector.load %arg9[%c728, %c0_56] : memref<880x128xf32, #tpu.memory_space<vmem>>, vector<152x128xf32>
    tpu.vector_store %arg9[%c728, %c0_56], %79 {strides = array<i32>} : memref<880x128xf32, #tpu.memory_space<vmem>>, vector<152x128xf32>,
    %c0_57 = arith.constant 0 : index
    %c0_58 = arith.constant 0 : index
    %81 = vector.load %arg9[%c0_57, %c0_58] : memref<880x128xf32, #tpu.memory_space<vmem>>, vector<640x128xf32>
    %c0_59 = arith.constant 0 : index
    %c0_60 = arith.constant 0 : index
    %c0_61 = arith.constant 0 : index
    %82 = vector.load %arg5[%c0_59, %c0_60, %c0_61] : memref<9x128x128xf32, #tpu.memory_space<vmem>>, vector<1x128x128xf32>
    %83 = vector.shape_cast %82 : vector<1x128x128xf32> to vector<128x128xf32>
    %cst_62 = arith.constant dense<0.000000e+00> : vector<640x128xf32>
    %84 = tpu.matmul %81, %83, %cst_62 {dimension_numbers = #tpu.dot_dimension_numbers<[1], [0], [0], [1], [0, 0, 1, 1], [], []>} : vector<640x128xf32>, vector<128x128xf32>, vector<640x128xf32> -> vector<640x128xf32>
    %c8_63 = arith.constant 8 : index
    %c0_64 = arith.constant 0 : index
    %85 = vector.load %arg9[%c8_63, %c0_64] : memref<880x128xf32, #tpu.memory_space<vmem>>, vector<640x128xf32>
    %c1_65 = arith.constant 1 : index
    %c0_66 = arith.constant 0 : index
    %c0_67 = arith.constant 0 : index
    %86 = vector.load %arg5[%c1_65, %c0_66, %c0_67] : memref<9x128x128xf32, #tpu.memory_space<vmem>>, vector<1x128x128xf32>
    %87 = vector.shape_cast %86 : vector<1x128x128xf32> to vector<128x128xf32>
    %cst_68 = arith.constant dense<0.000000e+00> : vector<640x128xf32>
    %88 = tpu.matmul %85, %87, %cst_68 {dimension_numbers = #tpu.dot_dimension_numbers<[1], [0], [0], [1], [0, 0, 1, 1], [], []>} : vector<640x128xf32>, vector<128x128xf32>, vector<640x128xf32> -> vector<640x128xf32>
    %89 = arith.addf %84, %88 : vector<640x128xf32>
    %c16_69 = arith.constant 16 : index
    %c0_70 = arith.constant 0 : index
    %90 = vector.load %arg9[%c16_69, %c0_70] : memref<880x128xf32, #tpu.memory_space<vmem>>, vector<640x128xf32>
    %c2_71 = arith.constant 2 : index
    %c0_72 = arith.constant 0 : index
    %c0_73 = arith.constant 0 : index
    %91 = vector.load %arg5[%c2_71, %c0_72, %c0_73] : memref<9x128x128xf32, #tpu.memory_space<vmem>>, vector<1x128x128xf32>
    %92 = vector.shape_cast %91 : vector<1x128x128xf32> to vector<128x128xf32>
    %cst_74 = arith.constant dense<0.000000e+00> : vector<640x128xf32>
    %93 = tpu.matmul %90, %92, %cst_74 {dimension_numbers = #tpu.dot_dimension_numbers<[1], [0], [0], [1], [0, 0, 1, 1], [], []>} : vector<640x128xf32>, vector<128x128xf32>, vector<640x128xf32> -> vector<640x128xf32>
    %94 = arith.addf %89, %93 : vector<640x128xf32>
    %c80_75 = arith.constant 80 : index
    %c0_76 = arith.constant 0 : index
    %95 = vector.load %arg9[%c80_75, %c0_76] : memref<880x128xf32, #tpu.memory_space<vmem>>, vector<640x128xf32>
    %c3_77 = arith.constant 3 : index
    %c0_78 = arith.constant 0 : index
    %c0_79 = arith.constant 0 : index
    %96 = vector.load %arg5[%c3_77, %c0_78, %c0_79] : memref<9x128x128xf32, #tpu.memory_space<vmem>>, vector<1x128x128xf32>
    %97 = vector.shape_cast %96 : vector<1x128x128xf32> to vector<128x128xf32>
    %cst_80 = arith.constant dense<0.000000e+00> : vector<640x128xf32>
    %98 = tpu.matmul %95, %97, %cst_80 {dimension_numbers = #tpu.dot_dimension_numbers<[1], [0], [0], [1], [0, 0, 1, 1], [], []>} : vector<640x128xf32>, vector<128x128xf32>, vector<640x128xf32> -> vector<640x128xf32>
    %99 = arith.addf %94, %98 : vector<640x128xf32>
    %c88_81 = arith.constant 88 : index
    %c0_82 = arith.constant 0 : index
    %100 = vector.load %arg9[%c88_81, %c0_82] : memref<880x128xf32, #tpu.memory_space<vmem>>, vector<640x128xf32>
    %c4_83 = arith.constant 4 : index
    %c0_84 = arith.constant 0 : index
    %c0_85 = arith.constant 0 : index
    %101 = vector.load %arg5[%c4_83, %c0_84, %c0_85] : memref<9x128x128xf32, #tpu.memory_space<vmem>>, vector<1x128x128xf32>
    %102 = vector.shape_cast %101 : vector<1x128x128xf32> to vector<128x128xf32>
    %cst_86 = arith.constant dense<0.000000e+00> : vector<640x128xf32>
    %103 = tpu.matmul %100, %102, %cst_86 {dimension_numbers = #tpu.dot_dimension_numbers<[1], [0], [0], [1], [0, 0, 1, 1], [], []>} : vector<640x128xf32>, vector<128x128xf32>, vector<640x128xf32> -> vector<640x128xf32>
    %104 = arith.addf %99, %103 : vector<640x128xf32>
    %c96_87 = arith.constant 96 : index
    %c0_88 = arith.constant 0 : index
    %105 = vector.load %arg9[%c96_87, %c0_88] : memref<880x128xf32, #tpu.memory_space<vmem>>, vector<640x128xf32>
    %c5_89 = arith.constant 5 : index
    %c0_90 = arith.constant 0 : index
    %c0_91 = arith.constant 0 : index
    %106 = vector.load %arg5[%c5_89, %c0_90, %c0_91] : memref<9x128x128xf32, #tpu.memory_space<vmem>>, vector<1x128x128xf32>
    %107 = vector.shape_cast %106 : vector<1x128x128xf32> to vector<128x128xf32>
    %cst_92 = arith.constant dense<0.000000e+00> : vector<640x128xf32>
    %108 = tpu.matmul %105, %107, %cst_92 {dimension_numbers = #tpu.dot_dimension_numbers<[1], [0], [0], [1], [0, 0, 1, 1], [], []>} : vector<640x128xf32>, vector<128x128xf32>, vector<640x128xf32> -> vector<640x128xf32>
    %109 = arith.addf %104, %108 : vector<640x128xf32>
    %c160_93 = arith.constant 160 : index
    %c0_94 = arith.constant 0 : index
    %110 = vector.load %arg9[%c160_93, %c0_94] : memref<880x128xf32, #tpu.memory_space<vmem>>, vector<640x128xf32>
    %c6_95 = arith.constant 6 : index
    %c0_96 = arith.constant 0 : index
    %c0_97 = arith.constant 0 : index
    %111 = vector.load %arg5[%c6_95, %c0_96, %c0_97] : memref<9x128x128xf32, #tpu.memory_space<vmem>>, vector<1x128x128xf32>
    %112 = vector.shape_cast %111 : vector<1x128x128xf32> to vector<128x128xf32>
    %cst_98 = arith.constant dense<0.000000e+00> : vector<640x128xf32>
    %113 = tpu.matmul %110, %112, %cst_98 {dimension_numbers = #tpu.dot_dimension_numbers<[1], [0], [0], [1], [0, 0, 1, 1], [], []>} : vector<640x128xf32>, vector<128x128xf32>, vector<640x128xf32> -> vector<640x128xf32>
    %114 = arith.addf %109, %113 : vector<640x128xf32>
    %c168_99 = arith.constant 168 : index
    %c0_100 = arith.constant 0 : index
    %115 = vector.load %arg9[%c168_99, %c0_100] : memref<880x128xf32, #tpu.memory_space<vmem>>, vector<640x128xf32>
    %c7_101 = arith.constant 7 : index
    %c0_102 = arith.constant 0 : index
    %c0_103 = arith.constant 0 : index
    %116 = vector.load %arg5[%c7_101, %c0_102, %c0_103] : memref<9x128x128xf32, #tpu.memory_space<vmem>>, vector<1x128x128xf32>
    %117 = vector.shape_cast %116 : vector<1x128x128xf32> to vector<128x128xf32>
    %cst_104 = arith.constant dense<0.000000e+00> : vector<640x128xf32>
    %118 = tpu.matmul %115, %117, %cst_104 {dimension_numbers = #tpu.dot_dimension_numbers<[1], [0], [0], [1], [0, 0, 1, 1], [], []>} : vector<640x128xf32>, vector<128x128xf32>, vector<640x128xf32> -> vector<640x128xf32>
    %119 = arith.addf %114, %118 : vector<640x128xf32>
    %c176_105 = arith.constant 176 : index
    %c0_106 = arith.constant 0 : index
    %120 = vector.load %arg9[%c176_105, %c0_106] : memref<880x128xf32, #tpu.memory_space<vmem>>, vector<640x128xf32>
    %c8_107 = arith.constant 8 : index
    %c0_108 = arith.constant 0 : index
    %c0_109 = arith.constant 0 : index
    %121 = vector.load %arg5[%c8_107, %c0_108, %c0_109] : memref<9x128x128xf32, #tpu.memory_space<vmem>>, vector<1x128x128xf32>
    %122 = vector.shape_cast %121 : vector<1x128x128xf32> to vector<128x128xf32>
    %cst_110 = arith.constant dense<0.000000e+00> : vector<640x128xf32>
    %123 = tpu.matmul %120, %122, %cst_110 {dimension_numbers = #tpu.dot_dimension_numbers<[1], [0], [0], [1], [0, 0, 1, 1], [], []>} : vector<640x128xf32>, vector<128x128xf32>, vector<640x128xf32> -> vector<640x128xf32>
    %124 = arith.addf %119, %123 : vector<640x128xf32>
    %125 = vector.broadcast %0 : vector<640x1xf32> to vector<640x128xf32>
    %126 = arith.mulf %124, %125 : vector<640x128xf32>
    %cst_111 = arith.constant dense<0.000000e+00> : vector<128xf32>
    %127 = vector.multi_reduction <add>, %126, %cst_111 [0] : vector<640x128xf32> to vector<128xf32>
    %128 = vector.shape_cast %127 : vector<128xf32> to vector<1x128xf32>
    %129 = arith.mulf %126, %124 : vector<640x128xf32>
    %cst_112 = arith.constant dense<0.000000e+00> : vector<128xf32>
    %130 = vector.multi_reduction <add>, %129, %cst_112 [0] : vector<640x128xf32> to vector<128xf32>
    %131 = vector.shape_cast %130 : vector<128xf32> to vector<1x128xf32>
    %cst_113 = arith.constant 7.812500e-03 : f32
    %132 = vector.broadcast %cst_113 : f32 to vector<1x128xf32>
    %133 = arith.mulf %128, %132 : vector<1x128xf32>
    %cst_114 = arith.constant 7.812500e-03 : f32
    %134 = vector.broadcast %cst_114 : f32 to vector<1x128xf32>
    %135 = arith.mulf %131, %134 : vector<1x128xf32>
    %136 = arith.mulf %133, %133 : vector<1x128xf32>
    %137 = arith.subf %135, %136 : vector<1x128xf32>
    %cst_115 = arith.constant 0.000000e+00 : f32
    %138 = vector.broadcast %cst_115 : f32 to vector<1x128xf32>
    %139 = arith.maximumf %137, %138 : vector<1x128xf32>
    %c0_116 = arith.constant 0 : index
    %c0_117 = arith.constant 0 : index
    %140 = vector.load %arg6[%c0_116, %c0_117] : memref<1x128xf32, #tpu.memory_space<vmem>>, vector<1x128xf32>
    %cst_118 = arith.constant 9.99999974E-6 : f32
    %141 = vector.broadcast %cst_118 : f32 to vector<1x128xf32>
    %142 = arith.addf %139, %141 : vector<1x128xf32>
    %143 = math.rsqrt %142 : vector<1x128xf32>
    %144 = arith.mulf %140, %143 : vector<1x128xf32>
    %c0_119 = arith.constant 0 : index
    %c0_120 = arith.constant 0 : index
    %145 = vector.load %arg7[%c0_119, %c0_120] : memref<1x128xf32, #tpu.memory_space<vmem>>, vector<1x128xf32>
    %146 = arith.mulf %133, %144 : vector<1x128xf32>
    %147 = arith.subf %145, %146 : vector<1x128xf32>
    %148 = vector.broadcast %144 : vector<1x128xf32> to vector<640x128xf32>
    %149 = arith.mulf %124, %148 : vector<640x128xf32>
    %150 = vector.broadcast %147 : vector<1x128xf32> to vector<640x128xf32>
    %151 = arith.addf %149, %150 : vector<640x128xf32>
    %cst_121 = arith.constant 0.000000e+00 : f32
    %152 = vector.broadcast %cst_121 : f32 to vector<640x128xf32>
    %153 = arith.maximumf %151, %152 : vector<640x128xf32>
    %c0_122 = arith.constant 0 : index
    %c0_123 = arith.constant 0 : index
    %154 = vector.load %arg8[%c0_122, %c0_123] : memref<640x128xf32, #tpu.memory_space<vmem>>, vector<640x128xf32>
    tpu.vector_store %arg8[%c0_122, %c0_123], %153 {strides = array<i32>} : memref<640x128xf32, #tpu.memory_space<vmem>>, vector<640x128xf32>,
    return
  }
}

</mosaic_0001>

<bundles_post_ra>
// kernel: down_forward.1
= control target key start
LH: loop header
LB: loop body
LE: loop exit
PB: predicated region body
PF: predicated region fallthrough
CT: control target
= control target key end

     0   :  { %vm434_vm0 = vcmask 1043456   ;;  %vm193_vm1 = vcmask 31744   ;;  %s28297_s2 = inlined_call_operand.vmem [shape: f32[9,4,128], index: 2, kind: input, shape index: {}]   ;;  %s28298_s0 = inlined_call_operand.vmem [shape: f32[880,4], index: 0, kind: input, shape index: {}]   ;;  %s28299_s1 = inlined_call_operand.vmem [shape: f32[640,1], index: 1, kind: input, shape index: {}]   ;;  %s28300_s5 = inlined_call_operand.vmem [shape: f32[9,128,128], index: 5, kind: input, shape index: {}]   ;;  %s28301_s3 = inlined_call_operand.vmem [shape: f32[1,128], index: 3, kind: input, shape index: {}]   ;;  %s28302_s4 = inlined_call_operand.vmem [shape: f32[1,128], index: 4, kind: input, shape index: {}]   ;;  %s28303_s6 = inlined_call_operand.vmem [shape: f32[1,128], index: 6, kind: input, shape index: {}]   ;;  %s28304_s7 = inlined_call_operand.vmem [shape: f32[1,128], index: 7, kind: input, shape index: {}]   ;;  %s28305_s8 = inlined_call_operand.vmem [shape: f32[640,128], index: 8, kind: output, shape index: {}]  }
   0x1   :  { %v14864_v0 = vld [vmem:[%s28297_s2 + $0x4] sm:$0xf]  ;;  %v21433_v1 = vld [vmem:[%s28298_s0 + $0x8] sm:$0xff]  ;;  %v21438_v2 = vld [vmem:[%s28298_s0 + $0x10] sm:$0xff] }
   0x2   :  { %17322 = vmatprep.subr.msk.mxu0 %vm434_vm0, %v14864_v0  ;;  %17324 = vmatprep.mubr.msk.f32.mxu0 %vm193_vm1, %v21433_v1  ;;  %v189_v3 = vld [vmem:[%s28297_s2] sm:$0xf]  ;;  %v21449_v4 = vld [vmem:[%s28298_s0 + $0x18] sm:$0xff]  ;;  %v21466_v6 = vld [vmem:[%s28298_s0 + $0x28] sm:$0xff] }
   0x3   :  { %17323 = vmatpush3.msk.msra.mxu0 %vm434_vm0, %v14864_v0  ;;  %v21461_v5 = vld [vmem:[%s28298_s0 + $0x20] sm:$0xff]  ;;  %v21475_v7 = vld [vmem:[%s28298_s0 + $0x30] sm:$0xff]  ;;  %v21480_v8 = vld [vmem:[%s28298_s0 + $0x38] sm:$0xff] }
   0x4   :  { %17325 = vmatmul.mubr.msk.f32.vlgmr.msra.gmra.mrb[0].mxu0 %vm193_vm1, %v21438_v2  ;;  %17444 = vmatprep.subr.msk.mxu0 %vm434_vm0, %v189_v3  ;;  %v21489_v9 = vld [vmem:[%s28298_s0 + $0x40] sm:$0xff]  ;;  %v21494_v10 = vld [vmem:[%s28298_s0 + $0x48] sm:$0xff]  ;;  %v21503_v11 = vld [vmem:[%s28298_s0 + $0x50] sm:$0xff] }
   0x5   :  { %17445 = vmatpush3.msk.msra.mxu0 %vm434_vm0, %v189_v3  ;;  %17327 = vmatprep.mubr.msk.f32.mxu0 %vm193_vm1, %v21449_v4  ;;  %v21508_v12 = vld [vmem:[%s28298_s0 + $0x58] sm:$0xff]  ;;  %v21517_v13 = vld [vmem:[%s28298_s0 + $0x60] sm:$0xff]  ;;  %v21522_v14 = vld [vmem:[%s28298_s0 + $0x68] sm:$0xff] }
   0x6   :  { %v21531_v15 = vld [vmem:[%s28298_s0 + $0x70] sm:$0xff]  ;;  %v21536_v16 = vld [vmem:[%s28298_s0 + $0x78] sm:$0xff]  ;;  %v21545_v17 = vld [vmem:[%s28298_s0 + $0x80] sm:$0xff] }
   0x7   :  { %v21550_v18 = vld [vmem:[%s28298_s0 + $0x88] sm:$0xff]  ;;  %v21559_v19 = vld [vmem:[%s28298_s0 + $0x90] sm:$0xff]  ;;  %v21564_v20 = vld [vmem:[%s28298_s0 + $0x98] sm:$0xff] }
   0x8   :  { %17328 = vmatmul.mubr.msk.f32.gmra.mrb[2].mxu0 %vm193_vm1, %v21461_v5  ;;  %v21571_v21 = vld [vmem:[%s28297_s2 + $0x8] sm:$0xf]  ;;  %v21578_v22 = vld [vmem:[%s28298_s0 + $0xa0] sm:$0xff]  ;;  %v21594_v24 = vld [vmem:[%s28298_s0 + $0xb0] sm:$0xff] }
   0x9   :  { %17330 = vmatprep.mubr.msk.f32.mxu0 %vm193_vm1, %v21466_v6  ;;  %17566 = vmatprep.subr.msk.mxu0 %vm434_vm0, %v21571_v21  ;;  %v21585_v23 = vld [vmem:[%s28298_s0 + $0xa8] sm:$0xff]  ;;  %v21599_v25 = vld [vmem:[%s28298_s0 + $0xb8] sm:$0xff]  ;;  %v21608_v26 = vld [vmem:[%s28298_s0 + $0xc0] sm:$0xff] }
   0xa   :  { %v21613_v27 = vld [vmem:[%s28298_s0 + $0xc8] sm:$0xff]  ;;  %v21622_v28 = vld [vmem:[%s28298_s0 + $0xd0] sm:$0xff]  ;;  %v21627_v29 = vld [vmem:[%s28298_s0 + $0xd8] sm:$0xff] }
   0xb   :  { %v21636_v30 = vld [vmem:[%s28298_s0 + $0xe0] sm:$0xff]  ;;  %v21641_v31 = vld [vmem:[%s28298_s0 + $0xe8] sm:$0xff]  ;;  %v21650_v32 = vld [vmem:[%s28298_s0 + $0xf0] sm:$0xff] }
   0xc   :  { %17331 = vmatmul.mubr.msk.f32.gmra.mrb[4].mxu0 %vm193_vm1, %v21475_v7  ;;  %v21655_v33 = vld [vmem:[%s28298_s0 + $0xf8] sm:$0xff]  ;;  %v21664_v34 = vld [vmem:[%s28298_s0 + $0x100] sm:$0xff]  ;;  %v21669_v35 = vld [vmem:[%s28298_s0 + $0x108] sm:$0xff] }
   0xd   :  { %17333 = vmatprep.mubr.msk.f32.mxu0 %vm193_vm1, %v21480_v8  ;;  %v21678_v36 = vld [vmem:[%s28298_s0 + $0x110] sm:$0xff]  ;;  %v21683_v37 = vld [vmem:[%s28298_s0 + $0x118] sm:$0xff]  ;;  %v21692_v38 = vld [vmem:[%s28298_s0 + $0x120] sm:$0xff] }
   0xe   :  { %v21697_v39 = vld [vmem:[%s28298_s0 + $0x128] sm:$0xff]  ;;  %v21706_v40 = vld [vmem:[%s28298_s0 + $0x130] sm:$0xff]  ;;  %v21711_v41 = vld [vmem:[%s28298_s0 + $0x138] sm:$0xff] }
   0xf   :  { %v21720_v42 = vld [vmem:[%s28298_s0 + $0x140] sm:$0xff]  ;;  %v21725_v43 = vld [vmem:[%s28298_s0 + $0x148] sm:$0xff]  ;;  %v21734_v44 = vld [vmem:[%s28298_s0 + $0x150] sm:$0xff] }
  0x10   :  { %17334 = vmatmul.mubr.msk.f32.gmra.mrb[6].mxu0 %vm193_vm1, %v21489_v9  ;;  %v21739_v45 = vld [vmem:[%s28298_s0 + $0x158] sm:$0xff]  ;;  %v21748_v46 = vld [vmem:[%s28298_s0 + $0x160] sm:$0xff]  ;;  %v21753_v47 = vld [vmem:[%s28298_s0 + $0x168] sm:$0xff] }
  0x11   :  { %17336 = vmatprep.mubr.msk.f32.mxu0 %vm193_vm1, %v21494_v10  ;;  %v21762_v48 = vld [vmem:[%s28298_s0 + $0x170] sm:$0xff]  ;;  %v21767_v49 = vld [vmem:[%s28298_s0 + $0x178] sm:$0xff]  ;;  %v21776_v50 = vld [vmem:[%s28298_s0 + $0x180] sm:$0xff] }
  0x12   :  { %v21781_v51 = vld [vmem:[%s28298_s0 + $0x188] sm:$0xff]  ;;  %v21790_v52 = vld [vmem:[%s28298_s0 + $0x190] sm:$0xff]  ;;  %v21795_v53 = vld [vmem:[%s28298_s0 + $0x198] sm:$0xff] }
  0x13   :  { %v21804_v54 = vld [vmem:[%s28298_s0 + $0x1a0] sm:$0xff]  ;;  %v21809_v55 = vld [vmem:[%s28298_s0 + $0x1a8] sm:$0xff]  ;;  %v21818_v56 = vld [vmem:[%s28298_s0 + $0x1b0] sm:$0xff] }
  0x14   :  { %17337 = vmatmul.mubr.msk.f32.gmra.mrb[8].mxu0 %vm193_vm1, %v21503_v11  ;;  %v21823_v57 = vld [vmem:[%s28298_s0 + $0x1b8] sm:$0xff]  ;;  %v21832_v58 = vld [vmem:[%s28298_s0 + $0x1c0] sm:$0xff]  ;;  %v21837_v59 = vld [vmem:[%s28298_s0 + $0x1c8] sm:$0xff] }
  0x15   :  { %17339 = vmatprep.mubr.msk.f32.mxu0 %vm193_vm1, %v21508_v12  ;;  %28751 = vst [vmem:[#allocation3_spill] sm:$0xff] %v21823_v57  ;;  %28752 = vst [vmem:[#allocation4_spill] sm:$0xff] %v21832_v58  ;;  %v21846_v60 = vld [vmem:[%s28298_s0 + $0x1d0] sm:$0xff]  ;;  %v21851_v61 = vld [vmem:[%s28298_s0 + $0x1d8] sm:$0xff] }
  0x16   :  { %28753 = vst [vmem:[#allocation5_spill] sm:$0xff] %v21837_v59  ;;  %28754 = vst [vmem:[#allocation6_spill] sm:$0xff] %v21846_v60  ;;  %v21860_v62 = vld [vmem:[%s28298_s0 + $0x1e0] sm:$0xff]  ;;  %v21865_v63 = vld [vmem:[%s28298_s0 + $0x1e8] sm:$0xff] }
  0x17   :  { %28755 = vst [vmem:[#allocation7_spill] sm:$0xff] %v21851_v61  ;;  %28756 = vst [vmem:[#allocation8_spill] sm:$0xff] %v21860_v62  ;;  %v21874_v0 = vld [vmem:[%s28298_s0 + $0x1f0] sm:$0xff]  ;;  %v21879_v3 = vld [vmem:[%s28298_s0 + $0x1f8] sm:$0xff] }
  0x18   :  { %17340 = vmatmul.mubr.msk.f32.gmra.mrb[10].mxu0 %vm193_vm1, %v21517_v13  ;;  %28757 = vst [vmem:[#allocation9_spill] sm:$0xff] %v21865_v63  ;;  %28758 = vst [vmem:[#allocation10_spill] sm:$0xff] %v21874_v0 }
  0x19   :  { %17342 = vmatprep.mubr.msk.f32.mxu0 %vm193_vm1, %v21522_v14  ;;  %28759 = vst [vmem:[#allocation11_spill] sm:$0xff] %v21879_v3 }
  0x1c   :  { %17343 = vmatmul.mubr.msk.f32.gmra.mrb[12].mxu0 %vm193_vm1, %v21531_v15 }
  0x1d   :  { %17345 = vmatprep.mubr.msk.f32.mxu0 %vm193_vm1, %v21536_v16 }
  0x20   :  { %17346 = vmatmul.mubr.msk.f32.gmra.mrb[14].mxu0 %vm193_vm1, %v21545_v17 }
  0x21   :  { %17348 = vmatprep.mubr.msk.f32.mxu0 %vm193_vm1, %v21550_v18 }
  0x24   :  { %17349 = vmatmul.mubr.msk.f32.gmra.mrb[16].mxu0 %vm193_vm1, %v21559_v19 }
  0x25   :  { %17351 = vmatprep.mubr.msk.f32.mxu0 %vm193_vm1, %v21564_v20 }
  0x28   :  { %17352 = vmatmul.mubr.msk.f32.gmra.mrb[18].mxu0 %vm193_vm1, %v21578_v22 }
  0x29   :  { %17354 = vmatprep.mubr.msk.f32.mxu0 %vm193_vm1, %v21585_v23 }
  0x2c   :  { %17355 = vmatmul.mubr.msk.f32.gmra.mrb[20].mxu0 %vm193_vm1, %v21594_v24 }
  0x2d   :  { %17357 = vmatprep.mubr.msk.f32.mxu0 %vm193_vm1, %v21599_v25 }
  0x30   :  { %17358 = vmatmul.mubr.msk.f32.gmra.mrb[22].mxu0 %vm193_vm1, %v21608_v26 }
  0x31   :  { %17360 = vmatprep.mubr.msk.f32.mxu0 %vm193_vm1, %v21613_v27 }
  0x34   :  { %17361 = vmatmul.mubr.msk.f32.gmra.mrb[24].mxu0 %vm193_vm1, %v21622_v28 }
  0x35   :  { %17363 = vmatprep.mubr.msk.f32.mxu0 %vm193_vm1, %v21627_v29 }
  0x38   :  { %17364 = vmatmul.mubr.msk.f32.gmra.mrb[26].mxu0 %vm193_vm1, %v21636_v30 }
  0x39   :  { %17366 = vmatprep.mubr.msk.f32.mxu0 %vm193_vm1, %v21641_v31 }
  0x3c   :  { %17367 = vmatmul.mubr.msk.f32.gmra.mrb[28].mxu0 %vm193_vm1, %v21650_v32 }
  0x3d   :  { %17369 = vmatprep.mubr.msk.f32.mxu0 %vm193_vm1, %v21655_v33 }
  0x40   :  { %17370 = vmatmul.mubr.msk.f32.gmra.mrb[30].mxu0 %vm193_vm1, %v21664_v34 }
  0x41   :  { %17372 = vmatprep.mubr.msk.f32.mxu0 %vm193_vm1, %v21669_v35 }
  0x44   :  { %17373 = vmatmul.mubr.msk.f32.gmra.mrb[32].mxu0 %vm193_vm1, %v21678_v36 }
  0x45   :  { %17375 = vmatprep.mubr.msk.f32.mxu0 %vm193_vm1, %v21683_v37 }
  0x48   :  { %17376 = vmatmul.mubr.msk.f32.gmra.mrb[34].mxu0 %vm193_vm1, %v21692_v38 }
  0x49   :  { %17378 = vmatprep.mubr.msk.f32.mxu0 %vm193_vm1, %v21697_v39 }
  0x4c   :  { %17379 = vmatmul.mubr.msk.f32.gmra.mrb[36].mxu0 %vm193_vm1, %v21706_v40 }
  0x4d   :  { %17381 = vmatprep.mubr.msk.f32.mxu0 %vm193_vm1, %v21711_v41 }
  0x50   :  { %17382 = vmatmul.mubr.msk.f32.gmra.mrb[38].mxu0 %vm193_vm1, %v21720_v42 }
  0x51   :  { %17384 = vmatprep.mubr.msk.f32.mxu0 %vm193_vm1, %v21725_v43 }
  0x54   :  { %17385 = vmatmul.mubr.msk.f32.gmra.mrb[40].mxu0 %vm193_vm1, %v21734_v44 }
  0x55   :  { %17387 = vmatprep.mubr.msk.f32.mxu0 %vm193_vm1, %v21739_v45 }
  0x58   :  { %17388 = vmatmul.mubr.msk.f32.gmra.mrb[42].mxu0 %vm193_vm1, %v21748_v46 }
  0x59   :  { %17390 = vmatprep.mubr.msk.f32.mxu0 %vm193_vm1, %v21753_v47 }
  0x5c   :  { %17391 = vmatmul.mubr.msk.f32.gmra.mrb[44].mxu0 %vm193_vm1, %v21762_v48 }
  0x5d   :  { %17393 = vmatprep.mubr.msk.f32.mxu0 %vm193_vm1, %v21767_v49 }
  0x60   :  { %17394 = vmatmul.mubr.msk.f32.gmra.mrb[46].mxu0 %vm193_vm1, %v21776_v50 }
  0x61   :  { %17396 = vmatprep.mubr.msk.f32.mxu0 %vm193_vm1, %v21781_v51 }
  0x64   :  { %17397 = vmatmul.mubr.msk.f32.gmra.mrb[48].mxu0 %vm193_vm1, %v21790_v52 }
  0x65   :  { %17399 = vmatprep.mubr.msk.f32.mxu0 %vm193_vm1, %v21795_v53 }
  0x68   :  { %17400 = vmatmul.mubr.msk.f32.gmra.mrb[50].mxu0 %vm193_vm1, %v21804_v54 }
  0x69   :  { %17402 = vmatprep.mubr.msk.f32.mxu0 %vm193_vm1, %v21809_v55 }
  0x6c   :  { %17403 = vmatmul.mubr.msk.f32.gmra.mrb[52].mxu0 %vm193_vm1, %v21818_v56 }
  0x6d   :  { %17405 = vmatprep.mubr.msk.f32.mxu0 %vm193_vm1, %v21823_v57 }
  0x70   :  { %17406 = vmatmul.mubr.msk.f32.gmra.mrb[54].mxu0 %vm193_vm1, %v21832_v58 }
  0x71   :  { %17408 = vmatprep.mubr.msk.f32.mxu0 %vm193_vm1, %v21837_v59 }
  0x74   :  { %17409 = vmatmul.mubr.msk.f32.gmra.mrb[56].mxu0 %vm193_vm1, %v21846_v60 }
  0x75   :  { %17411 = vmatprep.mubr.msk.f32.mxu0 %vm193_vm1, %v21851_v61 }
  0x78   :  { %17412 = vmatmul.mubr.msk.f32.gmra.mrb[58].mxu0 %vm193_vm1, %v21860_v62  ;;  %v21893_v62 = vld [vmem:[%s28298_s0 + $0x208] sm:$0xff] }
  0x79   :  { %17414 = vmatprep.mubr.msk.f32.mxu0 %vm193_vm1, %v21865_v63  ;;  %v21888_v63 = vld [vmem:[%s28298_s0 + $0x200] sm:$0xff]  ;;  %28761 = vst [vmem:[#allocation13_spill] sm:$0xff] %v21893_v62 }
  0x7a   :  { %28760 = vst [vmem:[#allocation12_spill] sm:$0xff] %v21888_v63 }
  0x7c   :  { %17415 = vmatmul.mubr.msk.f32.gmra.mrb[60].mxu0 %vm193_vm1, %v21874_v0  ;;  %v21907_v0 = vld [vmem:[%s28298_s0 + $0x218] sm:$0xff] }
  0x7d   :  { %17417 = vmatprep.mubr.msk.f32.mxu0 %vm193_vm1, %v21879_v3  ;;  %v21902_v3 = vld [vmem:[%s28298_s0 + $0x210] sm:$0xff]  ;;  %28763 = vst [vmem:[#allocation15_spill] sm:$0xff] %v21907_v0 }
  0x7e   :  { %28762 = vst [vmem:[#allocation14_spill] sm:$0xff] %v21902_v3 }
  0x80   :  { %17418 = vmatmul.mubr.msk.f32.gmra.mrb[62].mxu0 %vm193_vm1, %v21888_v63  ;;  %v21921_v63 = vld [vmem:[%s28298_s0 + $0x228] sm:$0xff] }
  0x81   :  { %17420 = vmatprep.mubr.msk.f32.mxu0 %vm193_vm1, %v21893_v62  ;;  %v21916_v62 = vld [vmem:[%s28298_s0 + $0x220] sm:$0xff]  ;;  %28765 = vst [vmem:[#allocation17_spill] sm:$0xff] %v21921_v63 }
  0x82   :  { %28764 = vst [vmem:[#allocation16_spill] sm:$0xff] %v21916_v62 }
  0x84   :  { %17421 = vmatmul.mubr.msk.f32.gmra.mrb[64].mxu0 %vm193_vm1, %v21902_v3  ;;  %v21935_v3 = vld [vmem:[%s28298_s0 + $0x238] sm:$0xff] }
  0x85   :  { %17423 = vmatprep.mubr.msk.f32.mxu0 %vm193_vm1, %v21907_v0  ;;  %v21930_v0 = vld [vmem:[%s28298_s0 + $0x230] sm:$0xff]  ;;  %28767 = vst [vmem:[#allocation19_spill] sm:$0xff] %v21935_v3 }
  0x86   :  { %28766 = vst [vmem:[#allocation18_spill] sm:$0xff] %v21930_v0 }
  0x88   :  { %17424 = vmatmul.mubr.msk.f32.gmra.mrb[66].mxu0 %vm193_vm1, %v21916_v62  ;;  %v21949_v62 = vld [vmem:[%s28298_s0 + $0x248] sm:$0xff] }
  0x89   :  { %17426 = vmatprep.mubr.msk.f32.mxu0 %vm193_vm1, %v21921_v63  ;;  %v21944_v63 = vld [vmem:[%s28298_s0 + $0x240] sm:$0xff]  ;;  %28769 = vst [vmem:[#allocation21_spill] sm:$0xff] %v21949_v62 }
  0x8a   :  { %28768 = vst [vmem:[#allocation20_spill] sm:$0xff] %v21944_v63 }
  0x8c   :  { %17427 = vmatmul.mubr.msk.f32.gmra.mrb[68].mxu0 %vm193_vm1, %v21930_v0  ;;  %v21963_v0 = vld [vmem:[%s28298_s0 + $0x258] sm:$0xff] }
  0x8d   :  { %17429 = vmatprep.mubr.msk.f32.mxu0 %vm193_vm1, %v21935_v3  ;;  %v21958_v3 = vld [vmem:[%s28298_s0 + $0x250] sm:$0xff]  ;;  %28771 = vst [vmem:[#allocation23_spill] sm:$0xff] %v21963_v0 }
  0x8e   :  { %28770 = vst [vmem:[#allocation22_spill] sm:$0xff] %v21958_v3 }
  0x90   :  { %17430 = vmatmul.mubr.msk.f32.gmra.mrb[70].mxu0 %vm193_vm1, %v21944_v63  ;;  %v21977_v63 = vld [vmem:[%s28298_s0 + $0x268] sm:$0xff] }
  0x91   :  { %17432 = vmatprep.mubr.msk.f32.mxu0 %vm193_vm1, %v21949_v62  ;;  %v21972_v62 = vld [vmem:[%s28298_s0 + $0x260] sm:$0xff]  ;;  %28773 = vst [vmem:[#allocation25_spill] sm:$0xff] %v21977_v63 }
  0x92   :  { %28772 = vst [vmem:[#allocation24_spill] sm:$0xff] %v21972_v62 }
  0x94   :  { %17433 = vmatmul.mubr.msk.f32.gmra.mrb[72].mxu0 %vm193_vm1, %v21958_v3  ;;  %v21991_v3 = vld [vmem:[%s28298_s0 + $0x278] sm:$0xff] }
  0x95   :  { %17435 = vmatprep.mubr.msk.f32.mxu0 %vm193_vm1, %v21963_v0  ;;  %v21986_v0 = vld [vmem:[%s28298_s0 + $0x270] sm:$0xff] }
  0x98   :  { %17436 = vmatmul.mubr.msk.f32.gmra.mrb[74].mxu0 %vm193_vm1, %v21972_v62  ;;  %v109_v62 = vld [vmem:[%s28298_s0] sm:$0xff] }
  0x99   :  { %17438 = vmatprep.mubr.msk.f32.mxu0 %vm193_vm1, %v21977_v63  ;;  %v22000_v63 = vld [vmem:[%s28298_s0 + $0x280] sm:$0xff] }
  0x9a   :  { %28774 = vst [vmem:[#allocation26_spill] sm:$0xff] %v22000_v63 }
  0x9c   :  { %17439 = vmatmul.mubr.msk.f32.gmra.mrb[76].mxu0 %vm193_vm1, %v21986_v0 }
  0x9d   :  { %17441 = vmatprep.mubr.msk.f32.mxu0 %vm193_vm1, %v21991_v3 }
  0xa0   :  { %17442 = vmatmul.mubr.msk.f32.gmra.mrb[78].mxu0 %vm193_vm1, %v22000_v63  ;;  %v28777_v63 = vld [vmem:[#allocation10_spill] sm:$0xff] }
  0xa1   :  { %17446 = vmatprep.mubr.msk.f32.mxu0 %vm193_vm1, %v109_v62  ;;  %v28776_v62 = vld [vmem:[#allocation9_spill] sm:$0xff] }
  0xa4   :  { %17447 = vmatmul.mubr.msk.f32.vlgmr.msra.gmra.mrb[0].mxu0 %vm193_vm1, %v21433_v1  ;;  %v22047_v1 = vld [vmem:[%s28297_s2 + $0xc] sm:$0xf] }
  0xa5   :  { %17567 = vmatpush3.msk.msra.mxu0 %vm434_vm0, %v21571_v21  ;;  %17449 = vmatprep.mubr.msk.f32.mxu0 %vm193_vm1, %v21438_v2  ;;  %v28775_v21 = vld [vmem:[#allocation8_spill] sm:$0xff] }
  0xa6   :  { %17688 = vmatprep.subr.msk.mxu0 %vm434_vm0, %v22047_v1 }
  0xa8   :  { %17450 = vmatmul.mubr.msk.f32.gmra.mrb[2].mxu0 %vm193_vm1, %v21449_v4 }
  0xa9   :  { %17452 = vmatprep.mubr.msk.f32.mxu0 %vm193_vm1, %v21461_v5 }
  0xac   :  { %17453 = vmatmul.mubr.msk.f32.gmra.mrb[4].mxu0 %vm193_vm1, %v21466_v6 }
  0xad   :  { %17455 = vmatprep.mubr.msk.f32.mxu0 %vm193_vm1, %v21475_v7 }
  0xb0   :  { %17456 = vmatmul.mubr.msk.f32.gmra.mrb[6].mxu0 %vm193_vm1, %v21480_v8 }
  0xb1   :  { %17458 = vmatprep.mubr.msk.f32.mxu0 %vm193_vm1, %v21489_v9 }
  0xb4   :  { %17459 = vmatmul.mubr.msk.f32.gmra.mrb[8].mxu0 %vm193_vm1, %v21494_v10 }
  0xb5   :  { %17461 = vmatprep.mubr.msk.f32.mxu0 %vm193_vm1, %v21503_v11 }
  0xb8   :  { %17462 = vmatmul.mubr.msk.f32.gmra.mrb[10].mxu0 %vm193_vm1, %v21508_v12 }
  0xb9   :  { %17464 = vmatprep.mubr.msk.f32.mxu0 %vm193_vm1, %v21517_v13 }
  0xbc   :  { %17465 = vmatmul.mubr.msk.f32.gmra.mrb[12].mxu0 %vm193_vm1, %v21522_v14 }
  0xbd   :  { %17467 = vmatprep.mubr.msk.f32.mxu0 %vm193_vm1, %v21531_v15 }
  0xc0   :  { %17468 = vmatmul.mubr.msk.f32.gmra.mrb[14].mxu0 %vm193_vm1, %v21536_v16 }
  0xc1   :  { %17470 = vmatprep.mubr.msk.f32.mxu0 %vm193_vm1, %v21545_v17 }
  0xc4   :  { %17471 = vmatmul.mubr.msk.f32.gmra.mrb[16].mxu0 %vm193_vm1, %v21550_v18 }
  0xc5   :  { %17473 = vmatprep.mubr.msk.f32.mxu0 %vm193_vm1, %v21559_v19 }
  0xc8   :  { %17474 = vmatmul.mubr.msk.f32.gmra.mrb[18].mxu0 %vm193_vm1, %v21564_v20 }
  0xc9   :  { %17476 = vmatprep.mubr.msk.f32.mxu0 %vm193_vm1, %v21578_v22 }
  0xcc   :  { %17477 = vmatmul.mubr.msk.f32.gmra.mrb[20].mxu0 %vm193_vm1, %v21585_v23 }
  0xcd   :  { %17479 = vmatprep.mubr.msk.f32.mxu0 %vm193_vm1, %v21594_v24 }
  0xd0   :  { %17480 = vmatmul.mubr.msk.f32.gmra.mrb[22].mxu0 %vm193_vm1, %v21599_v25 }
  0xd1   :  { %17482 = vmatprep.mubr.msk.f32.mxu0 %vm193_vm1, %v21608_v26 }
  0xd4   :  { %17483 = vmatmul.mubr.msk.f32.gmra.mrb[24].mxu0 %vm193_vm1, %v21613_v27 }
  0xd5   :  { %17485 = vmatprep.mubr.msk.f32.mxu0 %vm193_vm1, %v21622_v28 }
  0xd8   :  { %17486 = vmatmul.mubr.msk.f32.gmra.mrb[26].mxu0 %vm193_vm1, %v21627_v29 }
  0xd9   :  { %17488 = vmatprep.mubr.msk.f32.mxu0 %vm193_vm1, %v21636_v30 }
  0xdc   :  { %17489 = vmatmul.mubr.msk.f32.gmra.mrb[28].mxu0 %vm193_vm1, %v21641_v31 }
  0xdd   :  { %17491 = vmatprep.mubr.msk.f32.mxu0 %vm193_vm1, %v21650_v32 }
  0xe0   :  { %17492 = vmatmul.mubr.msk.f32.gmra.mrb[30].mxu0 %vm193_vm1, %v21655_v33 }
  0xe1   :  { %17494 = vmatprep.mubr.msk.f32.mxu0 %vm193_vm1, %v21664_v34 }
  0xe4   :  { %17495 = vmatmul.mubr.msk.f32.gmra.mrb[32].mxu0 %vm193_vm1, %v21669_v35 }
  0xe5   :  { %17497 = vmatprep.mubr.msk.f32.mxu0 %vm193_vm1, %v21678_v36 }
  0xe8   :  { %17498 = vmatmul.mubr.msk.f32.gmra.mrb[34].mxu0 %vm193_vm1, %v21683_v37 }
  0xe9   :  { %17500 = vmatprep.mubr.msk.f32.mxu0 %vm193_vm1, %v21692_v38 }
  0xec   :  { %17501 = vmatmul.mubr.msk.f32.gmra.mrb[36].mxu0 %vm193_vm1, %v21697_v39 }
  0xed   :  { %17503 = vmatprep.mubr.msk.f32.mxu0 %vm193_vm1, %v21706_v40 }
  0xf0   :  { %17504 = vmatmul.mubr.msk.f32.gmra.mrb[38].mxu0 %vm193_vm1, %v21711_v41 }
  0xf1   :  { %17506 = vmatprep.mubr.msk.f32.mxu0 %vm193_vm1, %v21720_v42 }
  0xf4   :  { %17507 = vmatmul.mubr.msk.f32.gmra.mrb[40].mxu0 %vm193_vm1, %v21725_v43 }
  0xf5   :  { %17509 = vmatprep.mubr.msk.f32.mxu0 %vm193_vm1, %v21734_v44 }
  0xf8   :  { %17510 = vmatmul.mubr.msk.f32.gmra.mrb[42].mxu0 %vm193_vm1, %v21739_v45 }
  0xf9   :  { %17512 = vmatprep.mubr.msk.f32.mxu0 %vm193_vm1, %v21748_v46 }
  0xfc   :  { %17513 = vmatmul.mubr.msk.f32.gmra.mrb[44].mxu0 %vm193_vm1, %v21753_v47 }
  0xfd   :  { %17515 = vmatprep.mubr.msk.f32.mxu0 %vm193_vm1, %v21762_v48 }
 0x100   :  { %17516 = vmatmul.mubr.msk.f32.gmra.mrb[46].mxu0 %vm193_vm1, %v21767_v49 }
 0x101   :  { %17518 = vmatprep.mubr.msk.f32.mxu0 %vm193_vm1, %v21776_v50 }
 0x104   :  { %17519 = vmatmul.mubr.msk.f32.gmra.mrb[48].mxu0 %vm193_vm1, %v21781_v51 }
 0x105   :  { %17521 = vmatprep.mubr.msk.f32.mxu0 %vm193_vm1, %v21790_v52 }
 0x108   :  { %17522 = vmatmul.mubr.msk.f32.gmra.mrb[50].mxu0 %vm193_vm1, %v21795_v53 }
 0x109   :  { %17524 = vmatprep.mubr.msk.f32.mxu0 %vm193_vm1, %v21804_v54 }
 0x10c   :  { %17525 = vmatmul.mubr.msk.f32.gmra.mrb[52].mxu0 %vm193_vm1, %v21809_v55 }
 0x10d   :  { %17527 = vmatprep.mubr.msk.f32.mxu0 %vm193_vm1, %v21818_v56 }
 0x110   :  { %17528 = vmatmul.mubr.msk.f32.gmra.mrb[54].mxu0 %vm193_vm1, %v21823_v57  ;;  %v28778_v57 = vld [vmem:[#allocation11_spill] sm:$0xff] }
 0x111   :  { %17530 = vmatprep.mubr.msk.f32.mxu0 %vm193_vm1, %v21832_v58  ;;  %v28779_v58 = vld [vmem:[#allocation12_spill] sm:$0xff] }
 0x114   :  { %17531 = vmatmul.mubr.msk.f32.gmra.mrb[56].mxu0 %vm193_vm1, %v21837_v59  ;;  %v28780_v59 = vld [vmem:[#allocation13_spill] sm:$0xff] }
 0x115   :  { %17533 = vmatprep.mubr.msk.f32.mxu0 %vm193_vm1, %v21846_v60  ;;  %v28781_v60 = vld [vmem:[#allocation14_spill] sm:$0xff] }
 0x118   :  { %17534 = vmatmul.mubr.msk.f32.gmra.mrb[58].mxu0 %vm193_vm1, %v21851_v61  ;;  %v28782_v61 = vld [vmem:[#allocation15_spill] sm:$0xff] }
 0x119   :  { %17536 = vmatprep.mubr.msk.f32.mxu0 %vm193_vm1, %v28775_v21  ;;  %v28783_v21 = vld [vmem:[#allocation16_spill] sm:$0xff] }
 0x11c   :  { %17537 = vmatmul.mubr.msk.f32.gmra.mrb[60].mxu0 %vm193_vm1, %v28776_v62  ;;  %v28784_v62 = vld [vmem:[#allocation17_spill] sm:$0xff] }
 0x11d   :  { %17539 = vmatprep.mubr.msk.f32.mxu0 %vm193_vm1, %v28777_v63  ;;  %v28785_v63 = vld [vmem:[#allocation18_spill] sm:$0xff] }
 0x120   :  { %17540 = vmatmul.mubr.msk.f32.gmra.mrb[62].mxu0 %vm193_vm1, %v28778_v57  ;;  %v28786_v57 = vld [vmem:[#allocation19_spill] sm:$0xff] }
 0x121   :  { %17542 = vmatprep.mubr.msk.f32.mxu0 %vm193_vm1, %v28779_v58  ;;  %v28787_v58 = vld [vmem:[#allocation20_spill] sm:$0xff] }
 0x124   :  { %17543 = vmatmul.mubr.msk.f32.gmra.mrb[64].mxu0 %vm193_vm1, %v28780_v59  ;;  %v28788_v59 = vld [vmem:[#allocation21_spill] sm:$0xff] }
 0x125   :  { %17545 = vmatprep.mubr.msk.f32.mxu0 %vm193_vm1, %v28781_v60  ;;  %v28789_v60 = vld [vmem:[#allocation22_spill] sm:$0xff] }
 0x128   :  { %17546 = vmatmul.mubr.msk.f32.gmra.mrb[66].mxu0 %vm193_vm1, %v28782_v61  ;;  %v28790_v61 = vld [vmem:[#allocation23_spill] sm:$0xff] }
 0x129   :  { %17548 = vmatprep.mubr.msk.f32.mxu0 %vm193_vm1, %v28783_v21  ;;  %v28791_v21 = vld [vmem:[#allocation24_spill] sm:$0xff] }
 0x12c   :  { %17549 = vmatmul.mubr.msk.f32.gmra.mrb[68].mxu0 %vm193_vm1, %v28784_v62  ;;  %v28792_v62 = vld [vmem:[#allocation25_spill] sm:$0xff] }
 0x12d   :  { %17551 = vmatprep.mubr.msk.f32.mxu0 %vm193_vm1, %v28785_v63 }
 0x130   :  { %17552 = vmatmul.mubr.msk.f32.gmra.mrb[70].mxu0 %vm193_vm1, %v28786_v57 }
 0x131   :  { %17554 = vmatprep.mubr.msk.f32.mxu0 %vm193_vm1, %v28787_v58 }
 0x134   :  { %17555 = vmatmul.mubr.msk.f32.gmra.mrb[72].mxu0 %vm193_vm1, %v28788_v59 }
 0x135   :  { %17557 = vmatprep.mubr.msk.f32.mxu0 %vm193_vm1, %v28789_v60 }
 0x138   :  { %17558 = vmatmul.mubr.msk.f32.gmra.mrb[74].mxu0 %vm193_vm1, %v28790_v61 }
 0x139   :  { %17560 = vmatprep.mubr.msk.f32.mxu0 %vm193_vm1, %v28791_v21 }
 0x13c   :  { %17561 = vmatmul.mubr.msk.f32.gmra.mrb[76].mxu0 %vm193_vm1, %v28792_v62 }
 0x13d   :  { %17563 = vmatprep.mubr.msk.f32.mxu0 %vm193_vm1, %v21986_v0 }
 0x140   :  { %17564 = vmatmul.mubr.msk.f32.gmra.mrb[78].mxu0 %vm193_vm1, %v21991_v3 }
 0x141   :  { %17568 = vmatprep.mubr.msk.f32.mxu0 %vm193_vm1, %v21438_v2  ;;  %v22216_v2 = vld [vmem:[%s28297_s2 + $0x10] sm:$0xf] }
 0x144   :  { %17569 = vmatmul.mubr.msk.f32.vlgmr.msra.gmra.mrb[0].mxu0 %vm193_vm1, %v21449_v4  ;;  %v28793_v4 = vld [vmem:[#allocation3_spill] sm:$0xff] }
 0x145   :  { %17689 = vmatpush3.msk.msra.mxu0 %vm434_vm0, %v22047_v1  ;;  %17571 = vmatprep.mubr.msk.f32.mxu0 %vm193_vm1, %v21461_v5  ;;  %v28794_v5 = vld [vmem:[#allocation4_spill] sm:$0xff]  ;;  %v28800_v1 = vld [vmem:[#allocation10_spill] sm:$0xff] }
 0x146   :  { %17810 = vmatprep.subr.msk.mxu0 %vm434_vm0, %v22216_v2 }
 0x148   :  { %17572 = vmatmul.mubr.msk.f32.gmra.mrb[2].mxu0 %vm193_vm1, %v21466_v6  ;;  %v28795_v6 = vld [vmem:[#allocation5_spill] sm:$0xff] }
 0x149   :  { %17574 = vmatprep.mubr.msk.f32.mxu0 %vm193_vm1, %v21475_v7  ;;  %v28796_v7 = vld [vmem:[#allocation6_spill] sm:$0xff] }
 0x14c   :  { %17575 = vmatmul.mubr.msk.f32.gmra.mrb[4].mxu0 %vm193_vm1, %v21480_v8  ;;  %v28797_v8 = vld [vmem:[#allocation7_spill] sm:$0xff] }
 0x14d   :  { %17577 = vmatprep.mubr.msk.f32.mxu0 %vm193_vm1, %v21489_v9  ;;  %v28798_v9 = vld [vmem:[#allocation8_spill] sm:$0xff] }
 0x150   :  { %17578 = vmatmul.mubr.msk.f32.gmra.mrb[6].mxu0 %vm193_vm1, %v21494_v10  ;;  %v28799_v10 = vld [vmem:[#allocation9_spill] sm:$0xff] }
 0x151   :  { %17580 = vmatprep.mubr.msk.f32.mxu0 %vm193_vm1, %v21503_v11 }
 0x154   :  { %17581 = vmatmul.mubr.msk.f32.gmra.mrb[8].mxu0 %vm193_vm1, %v21508_v12 }
 0x155   :  { %17583 = vmatprep.mubr.msk.f32.mxu0 %vm193_vm1, %v21517_v13 }
 0x158   :  { %17584 = vmatmul.mubr.msk.f32.gmra.mrb[10].mxu0 %vm193_vm1, %v21522_v14 }
 0x159   :  { %17586 = vmatprep.mubr.msk.f32.mxu0 %vm193_vm1, %v21531_v15 }
 0x15c   :  { %17587 = vmatmul.mubr.msk.f32.gmra.mrb[12].mxu0 %vm193_vm1, %v21536_v16 }
 0x15d   :  { %17589 = vmatprep.mubr.msk.f32.mxu0 %vm193_vm1, %v21545_v17 }
 0x160   :  { %17590 = vmatmul.mubr.msk.f32.gmra.mrb[14].mxu0 %vm193_vm1, %v21550_v18 }
 0x161   :  { %17592 = vmatprep.mubr.msk.f32.mxu0 %vm193_vm1, %v21559_v19 }
 0x164   :  { %17593 = vmatmul.mubr.msk.f32.gmra.mrb[16].mxu0 %vm193_vm1, %v21564_v20 }
 0x165   :  { %17595 = vmatprep.mubr.msk.f32.mxu0 %vm193_vm1, %v21578_v22 }
 0x168   :  { %17596 = vmatmul.mubr.msk.f32.gmra.mrb[18].mxu0 %vm193_vm1, %v21585_v23 }
 0x169   :  { %17598 = vmatprep.mubr.msk.f32.mxu0 %vm193_vm1, %v21594_v24 }
 0x16c   :  { %17599 = vmatmul.mubr.msk.f32.gmra.mrb[20].mxu0 %vm193_vm1, %v21599_v25 }
 0x16d   :  { %17601 = vmatprep.mubr.msk.f32.mxu0 %vm193_vm1, %v21608_v26 }
 0x170   :  { %17602 = vmatmul.mubr.msk.f32.gmra.mrb[22].mxu0 %vm193_vm1, %v21613_v27 }
 0x171   :  { %17604 = vmatprep.mubr.msk.f32.mxu0 %vm193_vm1, %v21622_v28 }
 0x174   :  { %17605 = vmatmul.mubr.msk.f32.gmra.mrb[24].mxu0 %vm193_vm1, %v21627_v29 }
 0x175   :  { %17607 = vmatprep.mubr.msk.f32.mxu0 %vm193_vm1, %v21636_v30 }
 0x178   :  { %17608 = vmatmul.mubr.msk.f32.gmra.mrb[26].mxu0 %vm193_vm1, %v21641_v31 }
 0x179   :  { %17610 = vmatprep.mubr.msk.f32.mxu0 %vm193_vm1, %v21650_v32 }
 0x17c   :  { %17611 = vmatmul.mubr.msk.f32.gmra.mrb[28].mxu0 %vm193_vm1, %v21655_v33 }
 0x17d   :  { %17613 = vmatprep.mubr.msk.f32.mxu0 %vm193_vm1, %v21664_v34 }
 0x180   :  { %17614 = vmatmul.mubr.msk.f32.gmra.mrb[30].mxu0 %vm193_vm1, %v21669_v35 }
 0x181   :  { %17616 = vmatprep.mubr.msk.f32.mxu0 %vm193_vm1, %v21678_v36 }
 0x184   :  { %17617 = vmatmul.mubr.msk.f32.gmra.mrb[32].mxu0 %vm193_vm1, %v21683_v37 }
 0x185   :  { %17619 = vmatprep.mubr.msk.f32.mxu0 %vm193_vm1, %v21692_v38 }
 0x188   :  { %17620 = vmatmul.mubr.msk.f32.gmra.mrb[34].mxu0 %vm193_vm1, %v21697_v39 }
 0x189   :  { %17622 = vmatprep.mubr.msk.f32.mxu0 %vm193_vm1, %v21706_v40 }
 0x18c   :  { %17623 = vmatmul.mubr.msk.f32.gmra.mrb[36].mxu0 %vm193_vm1, %v21711_v41 }
 0x18d   :  { %17625 = vmatprep.mubr.msk.f32.mxu0 %vm193_vm1, %v21720_v42 }
 0x190   :  { %17626 = vmatmul.mubr.msk.f32.gmra.mrb[38].mxu0 %vm193_vm1, %v21725_v43 }
 0x191   :  { %17628 = vmatprep.mubr.msk.f32.mxu0 %vm193_vm1, %v21734_v44 }
 0x194   :  { %17629 = vmatmul.mubr.msk.f32.gmra.mrb[40].mxu0 %vm193_vm1, %v21739_v45 }
 0x195   :  { %17631 = vmatprep.mubr.msk.f32.mxu0 %vm193_vm1, %v21748_v46 }
 0x198   :  { %17632 = vmatmul.mubr.msk.f32.gmra.mrb[42].mxu0 %vm193_vm1, %v21753_v47 }
 0x199   :  { %17634 = vmatprep.mubr.msk.f32.mxu0 %vm193_vm1, %v21762_v48 }
 0x19c   :  { %17635 = vmatmul.mubr.msk.f32.gmra.mrb[44].mxu0 %vm193_vm1, %v21767_v49 }
 0x19d   :  { %17637 = vmatprep.mubr.msk.f32.mxu0 %vm193_vm1, %v21776_v50 }
 0x1a0   :  { %17638 = vmatmul.mubr.msk.f32.gmra.mrb[46].mxu0 %vm193_vm1, %v21781_v51 }
 0x1a1   :  { %17640 = vmatprep.mubr.msk.f32.mxu0 %vm193_vm1, %v21790_v52 }
 0x1a4   :  { %17641 = vmatmul.mubr.msk.f32.gmra.mrb[48].mxu0 %vm193_vm1, %v21795_v53 }
 0x1a5   :  { %17643 = vmatprep.mubr.msk.f32.mxu0 %vm193_vm1, %v21804_v54 }
 0x1a8   :  { %17644 = vmatmul.mubr.msk.f32.gmra.mrb[50].mxu0 %vm193_vm1, %v21809_v55 }
 0x1a9   :  { %17646 = vmatprep.mubr.msk.f32.mxu0 %vm193_vm1, %v21818_v56 }
 0x1ac   :  { %17647 = vmatmul.mubr.msk.f32.gmra.mrb[52].mxu0 %vm193_vm1, %v28793_v4  ;;  %v28801_v4 = vld [vmem:[#allocation11_spill] sm:$0xff] }
 0x1ad   :  { %17649 = vmatprep.mubr.msk.f32.mxu0 %vm193_vm1, %v28794_v5  ;;  %v28802_v5 = vld [vmem:[#allocation12_spill] sm:$0xff] }
 0x1b0   :  { %17650 = vmatmul.mubr.msk.f32.gmra.mrb[54].mxu0 %vm193_vm1, %v28795_v6  ;;  %v28803_v6 = vld [vmem:[#allocation13_spill] sm:$0xff] }
 0x1b1   :  { %17652 = vmatprep.mubr.msk.f32.mxu0 %vm193_vm1, %v28796_v7  ;;  %v28804_v7 = vld [vmem:[#allocation14_spill] sm:$0xff] }
 0x1b4   :  { %17653 = vmatmul.mubr.msk.f32.gmra.mrb[56].mxu0 %vm193_vm1, %v28797_v8  ;;  %v28805_v8 = vld [vmem:[#allocation15_spill] sm:$0xff] }
 0x1b5   :  { %17655 = vmatprep.mubr.msk.f32.mxu0 %vm193_vm1, %v28798_v9  ;;  %v28806_v9 = vld [vmem:[#allocation16_spill] sm:$0xff] }
 0x1b8   :  { %17656 = vmatmul.mubr.msk.f32.gmra.mrb[58].mxu0 %vm193_vm1, %v28799_v10  ;;  %v28807_v10 = vld [vmem:[#allocation17_spill] sm:$0xff] }
 0x1b9   :  { %17658 = vmatprep.mubr.msk.f32.mxu0 %vm193_vm1, %v28800_v1 }
 0x1bc   :  { %17659 = vmatmul.mubr.msk.f32.gmra.mrb[60].mxu0 %vm193_vm1, %v28801_v4 }
 0x1bd   :  { %17661 = vmatprep.mubr.msk.f32.mxu0 %vm193_vm1, %v28802_v5 }
 0x1c0   :  { %17662 = vmatmul.mubr.msk.f32.gmra.mrb[62].mxu0 %vm193_vm1, %v28803_v6 }
 0x1c1   :  { %17664 = vmatprep.mubr.msk.f32.mxu0 %vm193_vm1, %v28804_v7 }
 0x1c4   :  { %17665 = vmatmul.mubr.msk.f32.gmra.mrb[64].mxu0 %vm193_vm1, %v28805_v8 }
 0x1c5   :  { %17667 = vmatprep.mubr.msk.f32.mxu0 %vm193_vm1, %v28806_v9 }
 0x1c8   :  { %17668 = vmatmul.mubr.msk.f32.gmra.mrb[66].mxu0 %vm193_vm1, %v28807_v10 }
 0x1c9   :  { %17670 = vmatprep.mubr.msk.f32.mxu0 %vm193_vm1, %v28785_v63 }
 0x1cc   :  { %17671 = vmatmul.mubr.msk.f32.gmra.mrb[68].mxu0 %vm193_vm1, %v28786_v57 }
 0x1cd   :  { %17673 = vmatprep.mubr.msk.f32.mxu0 %vm193_vm1, %v28787_v58  ;;  %v28808_v58 = vld [vmem:[#allocation26_spill] sm:$0xff] }
 0x1d0   :  { %17674 = vmatmul.mubr.msk.f32.gmra.mrb[70].mxu0 %vm193_vm1, %v28788_v59 }
 0x1d1   :  { %17676 = vmatprep.mubr.msk.f32.mxu0 %vm193_vm1, %v28789_v60  ;;  %v22345_v60 = vld [vmem:[%s28298_s0 + $0x288] sm:$0xff] }
 0x1d4   :  { %17677 = vmatmul.mubr.msk.f32.gmra.mrb[72].mxu0 %vm193_vm1, %v28790_v61 }
 0x1d5   :  { %17679 = vmatprep.mubr.msk.f32.mxu0 %vm193_vm1, %v28791_v21 }
 0x1d8   :  { %17680 = vmatmul.mubr.msk.f32.gmra.mrb[74].mxu0 %vm193_vm1, %v28792_v62 }
 0x1d9   :  { %17682 = vmatprep.mubr.msk.f32.mxu0 %vm193_vm1, %v21986_v0 }
 0x1dc   :  { %17683 = vmatmul.mubr.msk.f32.gmra.mrb[76].mxu0 %vm193_vm1, %v21991_v3 }
 0x1dd   :  { %17685 = vmatprep.mubr.msk.f32.mxu0 %vm193_vm1, %v28808_v58 }
 0x1e0   :  { %17686 = vmatmul.mubr.msk.f32.gmra.mrb[78].mxu0 %vm193_vm1, %v22345_v60 }
 0x1e1   :  { %17690 = vmatprep.mubr.msk.f32.mxu0 %vm193_vm1, %v21503_v11  ;;  %v22390_v11 = vld [vmem:[%s28297_s2 + $0x14] sm:$0xf] }
 0x1e4   :  { %17691 = vmatmul.mubr.msk.f32.vlgmr.msra.gmra.mrb[0].mxu0 %vm193_vm1, %v21508_v12  ;;  %v28809_v12 = vld [vmem:[#allocation3_spill] sm:$0xff] }
 0x1e5   :  { %17811 = vmatpush3.msk.msra.mxu0 %vm434_vm0, %v22216_v2  ;;  %17693 = vmatprep.mubr.msk.f32.mxu0 %vm193_vm1, %v21517_v13  ;;  %v28810_v13 = vld [vmem:[#allocation4_spill] sm:$0xff]  ;;  %v22812_v2 = vld [vmem:[%s28298_s0 + $0x170] sm:$0xff] }
 0x1e6   :  { %17932 = vmatprep.subr.msk.mxu0 %vm434_vm0, %v22390_v11 }
 0x1e8   :  { %17694 = vmatmul.mubr.msk.f32.gmra.mrb[2].mxu0 %vm193_vm1, %v21522_v14  ;;  %v28811_v14 = vld [vmem:[#allocation5_spill] sm:$0xff] }
 0x1e9   :  { %17696 = vmatprep.mubr.msk.f32.mxu0 %vm193_vm1, %v21531_v15  ;;  %v28812_v15 = vld [vmem:[#allocation6_spill] sm:$0xff] }
 0x1ec   :  { %17697 = vmatmul.mubr.msk.f32.gmra.mrb[4].mxu0 %vm193_vm1, %v21536_v16  ;;  %v28813_v16 = vld [vmem:[#allocation7_spill] sm:$0xff] }
 0x1ed   :  { %17699 = vmatprep.mubr.msk.f32.mxu0 %vm193_vm1, %v21545_v17  ;;  %v28814_v17 = vld [vmem:[#allocation8_spill] sm:$0xff] }
 0x1f0   :  { %17700 = vmatmul.mubr.msk.f32.gmra.mrb[6].mxu0 %vm193_vm1, %v21550_v18  ;;  %v28815_v18 = vld [vmem:[#allocation9_spill] sm:$0xff] }
 0x1f1   :  { %17702 = vmatprep.mubr.msk.f32.mxu0 %vm193_vm1, %v21559_v19  ;;  %v28816_v19 = vld [vmem:[#allocation20_spill] sm:$0xff] }
 0x1f4   :  { %17703 = vmatmul.mubr.msk.f32.gmra.mrb[8].mxu0 %vm193_vm1, %v21564_v20  ;;  %v28817_v20 = vld [vmem:[#allocation22_spill] sm:$0xff] }
 0x1f5   :  { %17705 = vmatprep.mubr.msk.f32.mxu0 %vm193_vm1, %v21578_v22  ;;  %v22503_v22 = vld [vmem:[%s28298_s0 + $0x290] sm:$0xff] }
 0x1f8   :  { %17706 = vmatmul.mubr.msk.f32.gmra.mrb[10].mxu0 %vm193_vm1, %v21585_v23  ;;  %v22512_v23 = vld [vmem:[%s28298_s0 + $0x298] sm:$0xff] }
 0x1f9   :  { %17708 = vmatprep.mubr.msk.f32.mxu0 %vm193_vm1, %v21594_v24  ;;  %28818 = vst [vmem:[#allocation18_spill] sm:$0xff] %v22512_v23  ;;  %v22517_v24 = vld [vmem:[%s28298_s0 + $0x2a0] sm:$0xff] }
 0x1fc   :  { %17709 = vmatmul.mubr.msk.f32.gmra.mrb[12].mxu0 %vm193_vm1, %v21599_v25  ;;  %v22526_v25 = vld [vmem:[%s28298_s0 + $0x2a8] sm:$0xff] }
 0x1fd   :  { %17711 = vmatprep.mubr.msk.f32.mxu0 %vm193_vm1, %v21608_v26  ;;  %v22531_v26 = vld [vmem:[%s28298_s0 + $0x2b0] sm:$0xff] }
 0x200   :  { %17712 = vmatmul.mubr.msk.f32.gmra.mrb[14].mxu0 %vm193_vm1, %v21613_v27  ;;  %v22540_v27 = vld [vmem:[%s28298_s0 + $0x2b8] sm:$0xff] }
 0x201   :  { %17714 = vmatprep.mubr.msk.f32.mxu0 %vm193_vm1, %v21622_v28  ;;  %v22545_v28 = vld [vmem:[%s28298_s0 + $0x2c0] sm:$0xff] }
 0x204   :  { %17715 = vmatmul.mubr.msk.f32.gmra.mrb[16].mxu0 %vm193_vm1, %v21627_v29  ;;  %v22554_v29 = vld [vmem:[%s28298_s0 + $0x2c8] sm:$0xff] }
 0x205   :  { %17717 = vmatprep.mubr.msk.f32.mxu0 %vm193_vm1, %v21636_v30  ;;  %v3114_v30 = vld [vmem:[%s28298_s0 + $0x58] sm:$0xff] }
 0x208   :  { %17718 = vmatmul.mubr.msk.f32.gmra.mrb[18].mxu0 %vm193_vm1, %v21641_v31  ;;  %v22565_v31 = vld [vmem:[%s28298_s0 + $0x60] sm:$0xff] }
 0x209   :  { %17720 = vmatprep.mubr.msk.f32.mxu0 %vm193_vm1, %v21650_v32  ;;  %v22570_v32 = vld [vmem:[%s28298_s0 + $0x68] sm:$0xff] }
 0x20c   :  { %17721 = vmatmul.mubr.msk.f32.gmra.mrb[20].mxu0 %vm193_vm1, %v21655_v33  ;;  %v22581_v33 = vld [vmem:[%s28298_s0 + $0x70] sm:$0xff] }
 0x20d   :  { %17723 = vmatprep.mubr.msk.f32.mxu0 %vm193_vm1, %v21664_v34  ;;  %v22586_v34 = vld [vmem:[%s28298_s0 + $0x78] sm:$0xff] }
 0x210   :  { %17724 = vmatmul.mubr.msk.f32.gmra.mrb[22].mxu0 %vm193_vm1, %v21669_v35  ;;  %v22595_v35 = vld [vmem:[%s28298_s0 + $0x80] sm:$0xff] }
 0x211   :  { %17726 = vmatprep.mubr.msk.f32.mxu0 %vm193_vm1, %v21678_v36  ;;  %v22600_v36 = vld [vmem:[%s28298_s0 + $0x88] sm:$0xff] }
 0x214   :  { %17727 = vmatmul.mubr.msk.f32.gmra.mrb[24].mxu0 %vm193_vm1, %v21683_v37  ;;  %v22609_v37 = vld [vmem:[%s28298_s0 + $0x90] sm:$0xff] }
 0x215   :  { %17729 = vmatprep.mubr.msk.f32.mxu0 %vm193_vm1, %v21692_v38  ;;  %v22614_v38 = vld [vmem:[%s28298_s0 + $0x98] sm:$0xff] }
 0x218   :  { %17730 = vmatmul.mubr.msk.f32.gmra.mrb[26].mxu0 %vm193_vm1, %v21697_v39  ;;  %v22623_v39 = vld [vmem:[%s28298_s0 + $0xa0] sm:$0xff] }
 0x219   :  { %17732 = vmatprep.mubr.msk.f32.mxu0 %vm193_vm1, %v21706_v40  ;;  %v22628_v40 = vld [vmem:[%s28298_s0 + $0xa8] sm:$0xff] }
 0x21c   :  { %17733 = vmatmul.mubr.msk.f32.gmra.mrb[28].mxu0 %vm193_vm1, %v21711_v41  ;;  %v22637_v41 = vld [vmem:[%s28298_s0 + $0xb0] sm:$0xff] }
 0x21d   :  { %17735 = vmatprep.mubr.msk.f32.mxu0 %vm193_vm1, %v21720_v42  ;;  %v22642_v42 = vld [vmem:[%s28298_s0 + $0xb8] sm:$0xff] }
 0x220   :  { %17736 = vmatmul.mubr.msk.f32.gmra.mrb[30].mxu0 %vm193_vm1, %v21725_v43  ;;  %v22651_v43 = vld [vmem:[%s28298_s0 + $0xc0] sm:$0xff] }
 0x221   :  { %17738 = vmatprep.mubr.msk.f32.mxu0 %vm193_vm1, %v21734_v44  ;;  %v22656_v44 = vld [vmem:[%s28298_s0 + $0xc8] sm:$0xff] }
 0x224   :  { %17739 = vmatmul.mubr.msk.f32.gmra.mrb[32].mxu0 %vm193_vm1, %v21739_v45  ;;  %v22665_v45 = vld [vmem:[%s28298_s0 + $0xd0] sm:$0xff] }
 0x225   :  { %17741 = vmatprep.mubr.msk.f32.mxu0 %vm193_vm1, %v21748_v46  ;;  %v22670_v46 = vld [vmem:[%s28298_s0 + $0xd8] sm:$0xff] }
 0x228   :  { %17742 = vmatmul.mubr.msk.f32.gmra.mrb[34].mxu0 %vm193_vm1, %v21753_v47  ;;  %v22679_v47 = vld [vmem:[%s28298_s0 + $0xe0] sm:$0xff] }
 0x229   :  { %17744 = vmatprep.mubr.msk.f32.mxu0 %vm193_vm1, %v21762_v48  ;;  %v22684_v48 = vld [vmem:[%s28298_s0 + $0xe8] sm:$0xff] }
 0x22c   :  { %17745 = vmatmul.mubr.msk.f32.gmra.mrb[36].mxu0 %vm193_vm1, %v21767_v49  ;;  %v22691_v49 = vld [vmem:[%s28297_s2 + $0x18] sm:$0xf] }
 0x22d   :  { %17747 = vmatprep.mubr.msk.f32.mxu0 %vm193_vm1, %v21776_v50  ;;  %v22698_v50 = vld [vmem:[%s28298_s0 + $0xf0] sm:$0xff] }
 0x230   :  { %17748 = vmatmul.mubr.msk.f32.gmra.mrb[38].mxu0 %vm193_vm1, %v21781_v51  ;;  %v22705_v51 = vld [vmem:[%s28298_s0 + $0xf8] sm:$0xff] }
 0x231   :  { %17750 = vmatprep.mubr.msk.f32.mxu0 %vm193_vm1, %v21790_v52  ;;  %v22714_v52 = vld [vmem:[%s28298_s0 + $0x100] sm:$0xff] }
 0x234   :  { %17751 = vmatmul.mubr.msk.f32.gmra.mrb[40].mxu0 %vm193_vm1, %v21795_v53  ;;  %v22719_v53 = vld [vmem:[%s28298_s0 + $0x108] sm:$0xff] }
 0x235   :  { %17753 = vmatprep.mubr.msk.f32.mxu0 %vm193_vm1, %v21804_v54  ;;  %v22728_v54 = vld [vmem:[%s28298_s0 + $0x110] sm:$0xff] }
 0x238   :  { %17754 = vmatmul.mubr.msk.f32.gmra.mrb[42].mxu0 %vm193_vm1, %v21809_v55  ;;  %v22733_v55 = vld [vmem:[%s28298_s0 + $0x118] sm:$0xff] }
 0x239   :  { %17756 = vmatprep.mubr.msk.f32.mxu0 %vm193_vm1, %v21818_v56  ;;  %v22742_v56 = vld [vmem:[%s28298_s0 + $0x120] sm:$0xff] }
 0x23c   :  { %17757 = vmatmul.mubr.msk.f32.gmra.mrb[44].mxu0 %vm193_vm1, %v28809_v12  ;;  %v22882_v12 = vld [vmem:[%s28298_s0 + $0x1c0] sm:$0xff] }
 0x23d   :  { %17759 = vmatprep.mubr.msk.f32.mxu0 %vm193_vm1, %v28810_v13  ;;  %28820 = vst [vmem:[#allocation21_spill] sm:$0xff] %v22882_v12  ;;  %v22887_v13 = vld [vmem:[%s28298_s0 + $0x1c8] sm:$0xff] }
 0x23e   :  { %28821 = vst [vmem:[#allocation23_spill] sm:$0xff] %v22887_v13 }
 0x240   :  { %17760 = vmatmul.mubr.msk.f32.gmra.mrb[46].mxu0 %vm193_vm1, %v28811_v14  ;;  %v22896_v14 = vld [vmem:[%s28298_s0 + $0x1d0] sm:$0xff] }
 0x241   :  { %17762 = vmatprep.mubr.msk.f32.mxu0 %vm193_vm1, %v28812_v15  ;;  %28822 = vst [vmem:[#allocation24_spill] sm:$0xff] %v22896_v14  ;;  %v22901_v15 = vld [vmem:[%s28298_s0 + $0x1d8] sm:$0xff] }
 0x242   :  { %28823 = vst [vmem:[#allocation25_spill] sm:$0xff] %v22901_v15 }
 0x244   :  { %17763 = vmatmul.mubr.msk.f32.gmra.mrb[48].mxu0 %vm193_vm1, %v28813_v16  ;;  %v22910_v16 = vld [vmem:[%s28298_s0 + $0x1e0] sm:$0xff] }
 0x245   :  { %17765 = vmatprep.mubr.msk.f32.mxu0 %vm193_vm1, %v28814_v17  ;;  %v22915_v17 = vld [vmem:[%s28298_s0 + $0x1e8] sm:$0xff] }
 0x246   :  { %28824 = vst [vmem:[#allocation10_spill] sm:$0xff] %v22915_v17 }
 0x248   :  { %17766 = vmatmul.mubr.msk.f32.gmra.mrb[50].mxu0 %vm193_vm1, %v28815_v18  ;;  %v22924_v18 = vld [vmem:[%s28298_s0 + $0x1f0] sm:$0xff] }
 0x249   :  { %17768 = vmatprep.mubr.msk.f32.mxu0 %vm193_vm1, %v28800_v1  ;;  %v22868_v1 = vld [vmem:[%s28298_s0 + $0x1b0] sm:$0xff]  ;;  %28825 = vst [vmem:[#allocation11_spill] sm:$0xff] %v22924_v18 }
 0x24c   :  { %17769 = vmatmul.mubr.msk.f32.gmra.mrb[52].mxu0 %vm193_vm1, %v28801_v4  ;;  %v22817_v4 = vld [vmem:[%s28298_s0 + $0x178] sm:$0xff] }
 0x24d   :  { %17771 = vmatprep.mubr.msk.f32.mxu0 %vm193_vm1, %v28802_v5  ;;  %v22826_v5 = vld [vmem:[%s28298_s0 + $0x180] sm:$0xff] }
 0x250   :  { %17772 = vmatmul.mubr.msk.f32.gmra.mrb[54].mxu0 %vm193_vm1, %v28803_v6  ;;  %v22831_v6 = vld [vmem:[%s28298_s0 + $0x188] sm:$0xff] }
 0x251   :  { %17774 = vmatprep.mubr.msk.f32.mxu0 %vm193_vm1, %v28804_v7  ;;  %v22840_v7 = vld [vmem:[%s28298_s0 + $0x190] sm:$0xff] }
 0x254   :  { %17775 = vmatmul.mubr.msk.f32.gmra.mrb[56].mxu0 %vm193_vm1, %v28805_v8  ;;  %v22845_v8 = vld [vmem:[%s28298_s0 + $0x198] sm:$0xff] }
 0x255   :  { %17777 = vmatprep.mubr.msk.f32.mxu0 %vm193_vm1, %v28806_v9  ;;  %v22854_v9 = vld [vmem:[%s28298_s0 + $0x1a0] sm:$0xff] }
 0x258   :  { %17778 = vmatmul.mubr.msk.f32.gmra.mrb[58].mxu0 %vm193_vm1, %v28807_v10  ;;  %v22859_v10 = vld [vmem:[%s28298_s0 + $0x1a8] sm:$0xff] }
 0x259   :  { %17780 = vmatprep.mubr.msk.f32.mxu0 %vm193_vm1, %v28785_v63  ;;  %v22775_v63 = vld [vmem:[%s28298_s0 + $0x148] sm:$0xff] }
 0x25c   :  { %17781 = vmatmul.mubr.msk.f32.gmra.mrb[60].mxu0 %vm193_vm1, %v28786_v57  ;;  %v22747_v57 = vld [vmem:[%s28298_s0 + $0x128] sm:$0xff] }
 0x25d   :  { %17783 = vmatprep.mubr.msk.f32.mxu0 %vm193_vm1, %v28816_v19  ;;  %v22929_v19 = vld [vmem:[%s28298_s0 + $0x1f8] sm:$0xff] }
 0x25e   :  { %28826 = vst [vmem:[#allocation12_spill] sm:$0xff] %v22929_v19 }
 0x260   :  { %17784 = vmatmul.mubr.msk.f32.gmra.mrb[62].mxu0 %vm193_vm1, %v28788_v59  ;;  %v22761_v59 = vld [vmem:[%s28298_s0 + $0x138] sm:$0xff] }
 0x261   :  { %17786 = vmatprep.mubr.msk.f32.mxu0 %vm193_vm1, %v28817_v20  ;;  %v22938_v20 = vld [vmem:[%s28298_s0 + $0x200] sm:$0xff] }
 0x262   :  { %28827 = vst [vmem:[#allocation13_spill] sm:$0xff] %v22938_v20 }
 0x264   :  { %17787 = vmatmul.mubr.msk.f32.gmra.mrb[64].mxu0 %vm193_vm1, %v28790_v61  ;;  %v22770_v61 = vld [vmem:[%s28298_s0 + $0x140] sm:$0xff] }
 0x265   :  { %17789 = vmatprep.mubr.msk.f32.mxu0 %vm193_vm1, %v28791_v21  ;;  %v22798_v21 = vld [vmem:[%s28298_s0 + $0x160] sm:$0xff] }
 0x268   :  { %17790 = vmatmul.mubr.msk.f32.gmra.mrb[66].mxu0 %vm193_vm1, %v28792_v62  ;;  %v22803_v62 = vld [vmem:[%s28298_s0 + $0x168] sm:$0xff] }
 0x269   :  { %17792 = vmatprep.mubr.msk.f32.mxu0 %vm193_vm1, %v21986_v0  ;;  %v22784_v0 = vld [vmem:[%s28298_s0 + $0x150] sm:$0xff] }
 0x26c   :  { %17793 = vmatmul.mubr.msk.f32.gmra.mrb[68].mxu0 %vm193_vm1, %v21991_v3  ;;  %v22789_v3 = vld [vmem:[%s28298_s0 + $0x158] sm:$0xff] }
 0x26d   :  { %17795 = vmatprep.mubr.msk.f32.mxu0 %vm193_vm1, %v28808_v58  ;;  %v22756_v58 = vld [vmem:[%s28298_s0 + $0x130] sm:$0xff] }
 0x270   :  { %17796 = vmatmul.mubr.msk.f32.gmra.mrb[70].mxu0 %vm193_vm1, %v22345_v60 }
 0x271   :  { %17798 = vmatprep.mubr.msk.f32.mxu0 %vm193_vm1, %v22503_v22 }
 0x274   :  { %17799 = vmatmul.mubr.msk.f32.gmra.mrb[72].mxu0 %vm193_vm1, %v22512_v23 }
 0x275   :  { %17801 = vmatprep.mubr.msk.f32.mxu0 %vm193_vm1, %v22517_v24 }
 0x278   :  { %17802 = vmatmul.mubr.msk.f32.gmra.mrb[74].mxu0 %vm193_vm1, %v22526_v25 }
 0x279   :  { %17804 = vmatprep.mubr.msk.f32.mxu0 %vm193_vm1, %v22531_v26 }
 0x27c   :  { %17805 = vmatmul.mubr.msk.f32.gmra.mrb[76].mxu0 %vm193_vm1, %v22540_v27 }
 0x27d   :  { %17807 = vmatprep.mubr.msk.f32.mxu0 %vm193_vm1, %v22545_v28 }
 0x280   :  { %17808 = vmatmul.mubr.msk.f32.gmra.mrb[78].mxu0 %vm193_vm1, %v22554_v29 }
 0x281   :  { %17812 = vmatprep.mubr.msk.f32.mxu0 %vm193_vm1, %v3114_v30  ;;  %v22943_v30 = vld [vmem:[%s28298_s0 + $0x208] sm:$0xff] }
 0x282   :  { %28828 = vst [vmem:[#allocation14_spill] sm:$0xff] %v22943_v30 }
 0x284   :  { %17813 = vmatmul.mubr.msk.f32.vlgmr.msra.gmra.mrb[0].mxu0 %vm193_vm1, %v22565_v31 }
 0x285   :  { %17933 = vmatpush3.msk.msra.mxu0 %vm434_vm0, %v22390_v11  ;;  %17815 = vmatprep.mubr.msk.f32.mxu0 %vm193_vm1, %v22570_v32  ;;  %v22873_v11 = vld [vmem:[%s28298_s0 + $0x1b8] sm:$0xff] }
 0x286   :  { %18054 = vmatprep.subr.msk.mxu0 %vm434_vm0, %v22691_v49  ;;  %28819 = vst [vmem:[#allocation19_spill] sm:$0xff] %v22873_v11 }
 0x288   :  { %17816 = vmatmul.mubr.msk.f32.gmra.mrb[2].mxu0 %vm193_vm1, %v22581_v33 }
 0x289   :  { %17818 = vmatprep.mubr.msk.f32.mxu0 %vm193_vm1, %v22586_v34 }
 0x28c   :  { %17819 = vmatmul.mubr.msk.f32.gmra.mrb[4].mxu0 %vm193_vm1, %v22595_v35 }
 0x28d   :  { %17821 = vmatprep.mubr.msk.f32.mxu0 %vm193_vm1, %v22600_v36 }
 0x290   :  { %17822 = vmatmul.mubr.msk.f32.gmra.mrb[6].mxu0 %vm193_vm1, %v22609_v37 }
 0x291   :  { %17824 = vmatprep.mubr.msk.f32.mxu0 %vm193_vm1, %v22614_v38 }
 0x294   :  { %17825 = vmatmul.mubr.msk.f32.gmra.mrb[8].mxu0 %vm193_vm1, %v22623_v39 }
 0x295   :  { %17827 = vmatprep.mubr.msk.f32.mxu0 %vm193_vm1, %v22628_v40 }
 0x298   :  { %17828 = vmatmul.mubr.msk.f32.gmra.mrb[10].mxu0 %vm193_vm1, %v22637_v41 }
 0x299   :  { %17830 = vmatprep.mubr.msk.f32.mxu0 %vm193_vm1, %v22642_v42 }
 0x29c   :  { %17831 = vmatmul.mubr.msk.f32.gmra.mrb[12].mxu0 %vm193_vm1, %v22651_v43 }
 0x29d   :  { %17833 = vmatprep.mubr.msk.f32.mxu0 %vm193_vm1, %v22656_v44 }
 0x2a0   :  { %17834 = vmatmul.mubr.msk.f32.gmra.mrb[14].mxu0 %vm193_vm1, %v22665_v45 }
 0x2a1   :  { %17836 = vmatprep.mubr.msk.f32.mxu0 %vm193_vm1, %v22670_v46 }
 0x2a4   :  { %17837 = vmatmul.mubr.msk.f32.gmra.mrb[16].mxu0 %vm193_vm1, %v22679_v47 }
 0x2a5   :  { %17839 = vmatprep.mubr.msk.f32.mxu0 %vm193_vm1, %v22684_v48 }
 0x2a8   :  { %17840 = vmatmul.mubr.msk.f32.gmra.mrb[18].mxu0 %vm193_vm1, %v22698_v50 }
 0x2a9   :  { %17842 = vmatprep.mubr.msk.f32.mxu0 %vm193_vm1, %v22705_v51 }
 0x2ac   :  { %17843 = vmatmul.mubr.msk.f32.gmra.mrb[20].mxu0 %vm193_vm1, %v22714_v52 }
 0x2ad   :  { %17845 = vmatprep.mubr.msk.f32.mxu0 %vm193_vm1, %v22719_v53 }
 0x2b0   :  { %17846 = vmatmul.mubr.msk.f32.gmra.mrb[22].mxu0 %vm193_vm1, %v22728_v54 }
 0x2b1   :  { %17848 = vmatprep.mubr.msk.f32.mxu0 %vm193_vm1, %v22733_v55 }
 0x2b4   :  { %17849 = vmatmul.mubr.msk.f32.gmra.mrb[24].mxu0 %vm193_vm1, %v22742_v56 }
 0x2b5   :  { %17851 = vmatprep.mubr.msk.f32.mxu0 %vm193_vm1, %v22747_v57 }
 0x2b8   :  { %17852 = vmatmul.mubr.msk.f32.gmra.mrb[26].mxu0 %vm193_vm1, %v22756_v58 }
 0x2b9   :  { %17854 = vmatprep.mubr.msk.f32.mxu0 %vm193_vm1, %v22761_v59 }
 0x2bc   :  { %17855 = vmatmul.mubr.msk.f32.gmra.mrb[28].mxu0 %vm193_vm1, %v22770_v61 }
 0x2bd   :  { %17857 = vmatprep.mubr.msk.f32.mxu0 %vm193_vm1, %v22775_v63 }
 0x2c0   :  { %17858 = vmatmul.mubr.msk.f32.gmra.mrb[30].mxu0 %vm193_vm1, %v22784_v0 }
 0x2c1   :  { %17860 = vmatprep.mubr.msk.f32.mxu0 %vm193_vm1, %v22789_v3 }
 0x2c4   :  { %17861 = vmatmul.mubr.msk.f32.gmra.mrb[32].mxu0 %vm193_vm1, %v22798_v21 }
 0x2c5   :  { %17863 = vmatprep.mubr.msk.f32.mxu0 %vm193_vm1, %v22803_v62 }
 0x2c8   :  { %17864 = vmatmul.mubr.msk.f32.gmra.mrb[34].mxu0 %vm193_vm1, %v22812_v2 }
 0x2c9   :  { %17866 = vmatprep.mubr.msk.f32.mxu0 %vm193_vm1, %v22817_v4 }
 0x2cc   :  { %17867 = vmatmul.mubr.msk.f32.gmra.mrb[36].mxu0 %vm193_vm1, %v22826_v5 }
 0x2cd   :  { %17869 = vmatprep.mubr.msk.f32.mxu0 %vm193_vm1, %v22831_v6 }
 0x2d0   :  { %17870 = vmatmul.mubr.msk.f32.gmra.mrb[38].mxu0 %vm193_vm1, %v22840_v7 }
 0x2d1   :  { %17872 = vmatprep.mubr.msk.f32.mxu0 %vm193_vm1, %v22845_v8 }
 0x2d4   :  { %17873 = vmatmul.mubr.msk.f32.gmra.mrb[40].mxu0 %vm193_vm1, %v22854_v9 }
 0x2d5   :  { %17875 = vmatprep.mubr.msk.f32.mxu0 %vm193_vm1, %v22859_v10 }
 0x2d8   :  { %17876 = vmatmul.mubr.msk.f32.gmra.mrb[42].mxu0 %vm193_vm1, %v22868_v1 }
 0x2d9   :  { %17878 = vmatprep.mubr.msk.f32.mxu0 %vm193_vm1, %v22873_v11 }
 0x2dc   :  { %17879 = vmatmul.mubr.msk.f32.gmra.mrb[44].mxu0 %vm193_vm1, %v22882_v12 }
 0x2dd   :  { %17881 = vmatprep.mubr.msk.f32.mxu0 %vm193_vm1, %v22887_v13 }
 0x2e0   :  { %17882 = vmatmul.mubr.msk.f32.gmra.mrb[46].mxu0 %vm193_vm1, %v22896_v14 }
 0x2e1   :  { %17884 = vmatprep.mubr.msk.f32.mxu0 %vm193_vm1, %v22901_v15 }
 0x2e4   :  { %17885 = vmatmul.mubr.msk.f32.gmra.mrb[48].mxu0 %vm193_vm1, %v22910_v16 }
 0x2e5   :  { %17887 = vmatprep.mubr.msk.f32.mxu0 %vm193_vm1, %v22915_v17 }
 0x2e8   :  { %17888 = vmatmul.mubr.msk.f32.gmra.mrb[50].mxu0 %vm193_vm1, %v22924_v18  ;;  %v22957_v18 = vld [vmem:[%s28298_s0 + $0x218] sm:$0xff] }
 0x2e9   :  { %17890 = vmatprep.mubr.msk.f32.mxu0 %vm193_vm1, %v22929_v19  ;;  %v22952_v19 = vld [vmem:[%s28298_s0 + $0x210] sm:$0xff]  ;;  %28830 = vst [vmem:[#allocation16_spill] sm:$0xff] %v22957_v18 }
 0x2ea   :  { %28829 = vst [vmem:[#allocation15_spill] sm:$0xff] %v22952_v19 }
 0x2ec   :  { %17891 = vmatmul.mubr.msk.f32.gmra.mrb[52].mxu0 %vm193_vm1, %v22938_v20  ;;  %v22971_v20 = vld [vmem:[%s28298_s0 + $0x228] sm:$0xff] }
 0x2ed   :  { %17893 = vmatprep.mubr.msk.f32.mxu0 %vm193_vm1, %v22943_v30  ;;  %v22966_v30 = vld [vmem:[%s28298_s0 + $0x220] sm:$0xff]  ;;  %28832 = vst [vmem:[#allocation26_spill] sm:$0xff] %v22971_v20 }
 0x2ee   :  { %28831 = vst [vmem:[#allocation17_spill] sm:$0xff] %v22966_v30 }
 0x2f0   :  { %17894 = vmatmul.mubr.msk.f32.gmra.mrb[54].mxu0 %vm193_vm1, %v22952_v19  ;;  %v22985_v19 = vld [vmem:[%s28298_s0 + $0x238] sm:$0xff] }
 0x2f1   :  { %17896 = vmatprep.mubr.msk.f32.mxu0 %vm193_vm1, %v22957_v18  ;;  %v22980_v18 = vld [vmem:[%s28298_s0 + $0x230] sm:$0xff]  ;;  %28834 = vst [vmem:[#allocation4_spill] sm:$0xff] %v22985_v19 }
 0x2f2   :  { %28833 = vst [vmem:[#allocation3_spill] sm:$0xff] %v22980_v18 }
 0x2f4   :  { %17897 = vmatmul.mubr.msk.f32.gmra.mrb[56].mxu0 %vm193_vm1, %v22966_v30  ;;  %v22999_v30 = vld [vmem:[%s28298_s0 + $0x248] sm:$0xff] }
 0x2f5   :  { %17899 = vmatprep.mubr.msk.f32.mxu0 %vm193_vm1, %v22971_v20  ;;  %v22994_v20 = vld [vmem:[%s28298_s0 + $0x240] sm:$0xff]  ;;  %28836 = vst [vmem:[#allocation6_spill] sm:$0xff] %v22999_v30 }
 0x2f6   :  { %28835 = vst [vmem:[#allocation5_spill] sm:$0xff] %v22994_v20 }
 0x2f8   :  { %17900 = vmatmul.mubr.msk.f32.gmra.mrb[58].mxu0 %vm193_vm1, %v22980_v18  ;;  %v23013_v18 = vld [vmem:[%s28298_s0 + $0x258] sm:$0xff] }
 0x2f9   :  { %17902 = vmatprep.mubr.msk.f32.mxu0 %vm193_vm1, %v22985_v19  ;;  %v23008_v19 = vld [vmem:[%s28298_s0 + $0x250] sm:$0xff]  ;;  %28838 = vst [vmem:[#allocation8_spill] sm:$0xff] %v23013_v18 }
 0x2fa   :  { %28837 = vst [vmem:[#allocation7_spill] sm:$0xff] %v23008_v19 }
 0x2fc   :  { %17903 = vmatmul.mubr.msk.f32.gmra.mrb[60].mxu0 %vm193_vm1, %v22994_v20  ;;  %v23027_v20 = vld [vmem:[%s28298_s0 + $0x268] sm:$0xff] }
 0x2fd   :  { %17905 = vmatprep.mubr.msk.f32.mxu0 %vm193_vm1, %v22999_v30  ;;  %v23022_v30 = vld [vmem:[%s28298_s0 + $0x260] sm:$0xff]  ;;  %28839 = vst [vmem:[#allocation9_spill] sm:$0xff] %v23027_v20 }
 0x300   :  { %17906 = vmatmul.mubr.msk.f32.gmra.mrb[62].mxu0 %vm193_vm1, %v23008_v19  ;;  %v23041_v19 = vld [vmem:[%s28298_s0 + $0x278] sm:$0xff] }
 0x301   :  { %17908 = vmatprep.mubr.msk.f32.mxu0 %vm193_vm1, %v23013_v18  ;;  %v23036_v18 = vld [vmem:[%s28298_s0 + $0x270] sm:$0xff]  ;;  %28840 = vst [vmem:[#allocation20_spill] sm:$0xff] %v23041_v19 }
 0x304   :  { %17909 = vmatmul.mubr.msk.f32.gmra.mrb[64].mxu0 %vm193_vm1, %v23022_v30 }
 0x305   :  { %17911 = vmatprep.mubr.msk.f32.mxu0 %vm193_vm1, %v23027_v20  ;;  %v23050_v20 = vld [vmem:[%s28298_s0 + $0x280] sm:$0xff] }
 0x306   :  { %28841 = vst [vmem:[#allocation22_spill] sm:$0xff] %v23050_v20 }
 0x308   :  { %17912 = vmatmul.mubr.msk.f32.gmra.mrb[66].mxu0 %vm193_vm1, %v23036_v18 }
 0x309   :  { %17914 = vmatprep.mubr.msk.f32.mxu0 %vm193_vm1, %v23041_v19 }
 0x30c   :  { %17915 = vmatmul.mubr.msk.f32.gmra.mrb[68].mxu0 %vm193_vm1, %v23050_v20 }
 0x30d   :  { %17917 = vmatprep.mubr.msk.f32.mxu0 %vm193_vm1, %v22345_v60 }
 0x310   :  { %17918 = vmatmul.mubr.msk.f32.gmra.mrb[70].mxu0 %vm193_vm1, %v22503_v22 }
 0x311   :  { %17920 = vmatprep.mubr.msk.f32.mxu0 %vm193_vm1, %v22512_v23  ;;  %v23075_v23 = vld [vmem:[%s28298_s0 + $0x2d0] sm:$0xff] }
 0x314   :  { %17921 = vmatmul.mubr.msk.f32.gmra.mrb[72].mxu0 %vm193_vm1, %v22517_v24 }
 0x315   :  { %17923 = vmatprep.mubr.msk.f32.mxu0 %vm193_vm1, %v22526_v25 }
 0x318   :  { %17924 = vmatmul.mubr.msk.f32.gmra.mrb[74].mxu0 %vm193_vm1, %v22531_v26 }
 0x319   :  { %17926 = vmatprep.mubr.msk.f32.mxu0 %vm193_vm1, %v22540_v27 }
 0x31c   :  { %17927 = vmatmul.mubr.msk.f32.gmra.mrb[76].mxu0 %vm193_vm1, %v22545_v28 }
 0x31d   :  { %17929 = vmatprep.mubr.msk.f32.mxu0 %vm193_vm1, %v22554_v29 }
 0x320   :  { %17930 = vmatmul.mubr.msk.f32.gmra.mrb[78].mxu0 %vm193_vm1, %v23075_v23 }
 0x321   :  { %17934 = vmatprep.mubr.msk.f32.mxu0 %vm193_vm1, %v22565_v31  ;;  %v23120_v31 = vld [vmem:[%s28297_s2 + $0x1c] sm:$0xf] }
 0x324   :  { %17935 = vmatmul.mubr.msk.f32.vlgmr.msra.gmra.mrb[0].mxu0 %vm193_vm1, %v22570_v32  ;;  %v28842_v32 = vld [vmem:[#allocation11_spill] sm:$0xff] }
 0x325   :  { %18055 = vmatpush3.msk.msra.mxu0 %vm434_vm0, %v22691_v49  ;;  %17937 = vmatprep.mubr.msk.f32.mxu0 %vm193_vm1, %v22581_v33  ;;  %v28843_v33 = vld [vmem:[#allocation12_spill] sm:$0xff]  ;;  %v28849_v49 = vld [vmem:[#allocation26_spill] sm:$0xff] }
 0x326   :  { %18176 = vmatprep.subr.msk.mxu0 %vm434_vm0, %v23120_v31 }
 0x328   :  { %17938 = vmatmul.mubr.msk.f32.gmra.mrb[2].mxu0 %vm193_vm1, %v22586_v34  ;;  %v28844_v34 = vld [vmem:[#allocation13_spill] sm:$0xff] }
 0x329   :  { %17940 = vmatprep.mubr.msk.f32.mxu0 %vm193_vm1, %v22595_v35  ;;  %v28845_v35 = vld [vmem:[#allocation14_spill] sm:$0xff] }
 0x32c   :  { %17941 = vmatmul.mubr.msk.f32.gmra.mrb[4].mxu0 %vm193_vm1, %v22600_v36  ;;  %v28846_v36 = vld [vmem:[#allocation15_spill] sm:$0xff] }
 0x32d   :  { %17943 = vmatprep.mubr.msk.f32.mxu0 %vm193_vm1, %v22609_v37  ;;  %v28847_v37 = vld [vmem:[#allocation16_spill] sm:$0xff] }
 0x330   :  { %17944 = vmatmul.mubr.msk.f32.gmra.mrb[6].mxu0 %vm193_vm1, %v22614_v38  ;;  %v28848_v38 = vld [vmem:[#allocation17_spill] sm:$0xff] }
 0x331   :  { %17946 = vmatprep.mubr.msk.f32.mxu0 %vm193_vm1, %v22623_v39 }
 0x334   :  { %17947 = vmatmul.mubr.msk.f32.gmra.mrb[8].mxu0 %vm193_vm1, %v22628_v40 }
 0x335   :  { %17949 = vmatprep.mubr.msk.f32.mxu0 %vm193_vm1, %v22637_v41 }
 0x338   :  { %17950 = vmatmul.mubr.msk.f32.gmra.mrb[10].mxu0 %vm193_vm1, %v22642_v42 }
 0x339   :  { %17952 = vmatprep.mubr.msk.f32.mxu0 %vm193_vm1, %v22651_v43 }
 0x33c   :  { %17953 = vmatmul.mubr.msk.f32.gmra.mrb[12].mxu0 %vm193_vm1, %v22656_v44 }
 0x33d   :  { %17955 = vmatprep.mubr.msk.f32.mxu0 %vm193_vm1, %v22665_v45 }
 0x340   :  { %17956 = vmatmul.mubr.msk.f32.gmra.mrb[14].mxu0 %vm193_vm1, %v22670_v46 }
 0x341   :  { %17958 = vmatprep.mubr.msk.f32.mxu0 %vm193_vm1, %v22679_v47 }
 0x344   :  { %17959 = vmatmul.mubr.msk.f32.gmra.mrb[16].mxu0 %vm193_vm1, %v22684_v48 }
 0x345   :  { %17961 = vmatprep.mubr.msk.f32.mxu0 %vm193_vm1, %v22698_v50 }
 0x348   :  { %17962 = vmatmul.mubr.msk.f32.gmra.mrb[18].mxu0 %vm193_vm1, %v22705_v51 }
 0x349   :  { %17964 = vmatprep.mubr.msk.f32.mxu0 %vm193_vm1, %v22714_v52 }
 0x34c   :  { %17965 = vmatmul.mubr.msk.f32.gmra.mrb[20].mxu0 %vm193_vm1, %v22719_v53 }
 0x34d   :  { %17967 = vmatprep.mubr.msk.f32.mxu0 %vm193_vm1, %v22728_v54 }
 0x350   :  { %17968 = vmatmul.mubr.msk.f32.gmra.mrb[22].mxu0 %vm193_vm1, %v22733_v55 }
 0x351   :  { %17970 = vmatprep.mubr.msk.f32.mxu0 %vm193_vm1, %v22742_v56 }
 0x354   :  { %17971 = vmatmul.mubr.msk.f32.gmra.mrb[24].mxu0 %vm193_vm1, %v22747_v57 }
 0x355   :  { %17973 = vmatprep.mubr.msk.f32.mxu0 %vm193_vm1, %v22756_v58 }
 0x358   :  { %17974 = vmatmul.mubr.msk.f32.gmra.mrb[26].mxu0 %vm193_vm1, %v22761_v59 }
 0x359   :  { %17976 = vmatprep.mubr.msk.f32.mxu0 %vm193_vm1, %v22770_v61 }
 0x35c   :  { %17977 = vmatmul.mubr.msk.f32.gmra.mrb[28].mxu0 %vm193_vm1, %v22775_v63 }
 0x35d   :  { %17979 = vmatprep.mubr.msk.f32.mxu0 %vm193_vm1, %v22784_v0 }
 0x360   :  { %17980 = vmatmul.mubr.msk.f32.gmra.mrb[30].mxu0 %vm193_vm1, %v22789_v3 }
 0x361   :  { %17982 = vmatprep.mubr.msk.f32.mxu0 %vm193_vm1, %v22798_v21 }
 0x364   :  { %17983 = vmatmul.mubr.msk.f32.gmra.mrb[32].mxu0 %vm193_vm1, %v22803_v62 }
 0x365   :  { %17985 = vmatprep.mubr.msk.f32.mxu0 %vm193_vm1, %v22812_v2 }
 0x368   :  { %17986 = vmatmul.mubr.msk.f32.gmra.mrb[34].mxu0 %vm193_vm1, %v22817_v4 }
 0x369   :  { %17988 = vmatprep.mubr.msk.f32.mxu0 %vm193_vm1, %v22826_v5 }
 0x36c   :  { %17989 = vmatmul.mubr.msk.f32.gmra.mrb[36].mxu0 %vm193_vm1, %v22831_v6 }
 0x36d   :  { %17991 = vmatprep.mubr.msk.f32.mxu0 %vm193_vm1, %v22840_v7 }
 0x370   :  { %17992 = vmatmul.mubr.msk.f32.gmra.mrb[38].mxu0 %vm193_vm1, %v22845_v8 }
 0x371   :  { %17994 = vmatprep.mubr.msk.f32.mxu0 %vm193_vm1, %v22854_v9 }
 0x374   :  { %17995 = vmatmul.mubr.msk.f32.gmra.mrb[40].mxu0 %vm193_vm1, %v22859_v10 }
 0x375   :  { %17997 = vmatprep.mubr.msk.f32.mxu0 %vm193_vm1, %v22868_v1 }
 0x378   :  { %17998 = vmatmul.mubr.msk.f32.gmra.mrb[42].mxu0 %vm193_vm1, %v22873_v11 }
 0x379   :  { %18000 = vmatprep.mubr.msk.f32.mxu0 %vm193_vm1, %v22882_v12 }
 0x37c   :  { %18001 = vmatmul.mubr.msk.f32.gmra.mrb[44].mxu0 %vm193_vm1, %v22887_v13 }
 0x37d   :  { %18003 = vmatprep.mubr.msk.f32.mxu0 %vm193_vm1, %v22896_v14 }
 0x380   :  { %18004 = vmatmul.mubr.msk.f32.gmra.mrb[46].mxu0 %vm193_vm1, %v22901_v15 }
 0x381   :  { %18006 = vmatprep.mubr.msk.f32.mxu0 %vm193_vm1, %v22910_v16 }
 0x384   :  { %18007 = vmatmul.mubr.msk.f32.gmra.mrb[48].mxu0 %vm193_vm1, %v22915_v17 }
 0x385   :  { %18009 = vmatprep.mubr.msk.f32.mxu0 %vm193_vm1, %v28842_v32  ;;  %v28850_v32 = vld [vmem:[#allocation3_spill] sm:$0xff] }
 0x388   :  { %18010 = vmatmul.mubr.msk.f32.gmra.mrb[50].mxu0 %vm193_vm1, %v28843_v33  ;;  %v28851_v33 = vld [vmem:[#allocation4_spill] sm:$0xff] }
 0x389   :  { %18012 = vmatprep.mubr.msk.f32.mxu0 %vm193_vm1, %v28844_v34  ;;  %v28852_v34 = vld [vmem:[#allocation5_spill] sm:$0xff] }
 0x38c   :  { %18013 = vmatmul.mubr.msk.f32.gmra.mrb[52].mxu0 %vm193_vm1, %v28845_v35  ;;  %v28853_v35 = vld [vmem:[#allocation6_spill] sm:$0xff] }
 0x38d   :  { %18015 = vmatprep.mubr.msk.f32.mxu0 %vm193_vm1, %v28846_v36  ;;  %v28854_v36 = vld [vmem:[#allocation7_spill] sm:$0xff] }
 0x390   :  { %18016 = vmatmul.mubr.msk.f32.gmra.mrb[54].mxu0 %vm193_vm1, %v28847_v37  ;;  %v28855_v37 = vld [vmem:[#allocation8_spill] sm:$0xff] }
 0x391   :  { %18018 = vmatprep.mubr.msk.f32.mxu0 %vm193_vm1, %v28848_v38 }
 0x394   :  { %18019 = vmatmul.mubr.msk.f32.gmra.mrb[56].mxu0 %vm193_vm1, %v28849_v49  ;;  %v28856_v49 = vld [vmem:[#allocation9_spill] sm:$0xff] }
 0x395   :  { %18021 = vmatprep.mubr.msk.f32.mxu0 %vm193_vm1, %v28850_v32 }
 0x398   :  { %18022 = vmatmul.mubr.msk.f32.gmra.mrb[58].mxu0 %vm193_vm1, %v28851_v33 }
 0x399   :  { %18024 = vmatprep.mubr.msk.f32.mxu0 %vm193_vm1, %v28852_v34 }
 0x39c   :  { %18025 = vmatmul.mubr.msk.f32.gmra.mrb[60].mxu0 %vm193_vm1, %v28853_v35 }
 0x39d   :  { %18027 = vmatprep.mubr.msk.f32.mxu0 %vm193_vm1, %v28854_v36 }
 0x3a0   :  { %18028 = vmatmul.mubr.msk.f32.gmra.mrb[62].mxu0 %vm193_vm1, %v28855_v37  ;;  %v28857_v37 = vld [vmem:[#allocation18_spill] sm:$0xff] }
 0x3a1   :  { %18030 = vmatprep.mubr.msk.f32.mxu0 %vm193_vm1, %v23022_v30 }
 0x3a4   :  { %18031 = vmatmul.mubr.msk.f32.gmra.mrb[64].mxu0 %vm193_vm1, %v28856_v49 }
 0x3a5   :  { %18033 = vmatprep.mubr.msk.f32.mxu0 %vm193_vm1, %v23036_v18 }
 0x3a8   :  { %18034 = vmatmul.mubr.msk.f32.gmra.mrb[66].mxu0 %vm193_vm1, %v23041_v19 }
 0x3a9   :  { %18036 = vmatprep.mubr.msk.f32.mxu0 %vm193_vm1, %v23050_v20 }
 0x3ac   :  { %18037 = vmatmul.mubr.msk.f32.gmra.mrb[68].mxu0 %vm193_vm1, %v22345_v60  ;;  %v23249_v60 = vld [vmem:[%s28298_s0 + $0x2d8] sm:$0xff] }
 0x3ad   :  { %18039 = vmatprep.mubr.msk.f32.mxu0 %vm193_vm1, %v22503_v22 }
 0x3b0   :  { %18040 = vmatmul.mubr.msk.f32.gmra.mrb[70].mxu0 %vm193_vm1, %v28857_v37 }
 0x3b1   :  { %18042 = vmatprep.mubr.msk.f32.mxu0 %vm193_vm1, %v22517_v24 }
 0x3b4   :  { %18043 = vmatmul.mubr.msk.f32.gmra.mrb[72].mxu0 %vm193_vm1, %v22526_v25 }
 0x3b5   :  { %18045 = vmatprep.mubr.msk.f32.mxu0 %vm193_vm1, %v22531_v26 }
 0x3b8   :  { %18046 = vmatmul.mubr.msk.f32.gmra.mrb[74].mxu0 %vm193_vm1, %v22540_v27 }
 0x3b9   :  { %18048 = vmatprep.mubr.msk.f32.mxu0 %vm193_vm1, %v22545_v28 }
 0x3bc   :  { %18049 = vmatmul.mubr.msk.f32.gmra.mrb[76].mxu0 %vm193_vm1, %v22554_v29 }
 0x3bd   :  { %18051 = vmatprep.mubr.msk.f32.mxu0 %vm193_vm1, %v23075_v23 }
 0x3c0   :  { %18052 = vmatmul.mubr.msk.f32.gmra.mrb[78].mxu0 %vm193_vm1, %v23249_v60 }
 0x3c1   :  { %18056 = vmatprep.mubr.msk.f32.mxu0 %vm193_vm1, %v22623_v39  ;;  %v23294_v39 = vld [vmem:[%s28297_s2 + $0x20] sm:$0xf] }
 0x3c4   :  { %18057 = vmatmul.mubr.msk.f32.vlgmr.msra.gmra.mrb[0].mxu0 %vm193_vm1, %v22628_v40 }
 0x3c5   :  { %18177 = vmatpush3.msk.msra.mxu0 %vm434_vm0, %v23120_v31  ;;  %18059 = vmatprep.mubr.msk.f32.mxu0 %vm193_vm1, %v22637_v41  ;;  %v28858_v31 = vld [vmem:[#allocation11_spill] sm:$0xff] }
 0x3c6   :  { %18298 = vmatprep.subr.msk.mxu0 %vm434_vm0, %v23294_v39 }
 0x3c8   :  { %18060 = vmatmul.mubr.msk.f32.gmra.mrb[2].mxu0 %vm193_vm1, %v22642_v42 }
 0x3c9   :  { %18062 = vmatprep.mubr.msk.f32.mxu0 %vm193_vm1, %v22651_v43 }
 0x3cc   :  { %18063 = vmatmul.mubr.msk.f32.gmra.mrb[4].mxu0 %vm193_vm1, %v22656_v44 }
 0x3cd   :  { %18065 = vmatprep.mubr.msk.f32.mxu0 %vm193_vm1, %v22665_v45 }
 0x3d0   :  { %18066 = vmatmul.mubr.msk.f32.gmra.mrb[6].mxu0 %vm193_vm1, %v22670_v46 }
 0x3d1   :  { %18068 = vmatprep.mubr.msk.f32.mxu0 %vm193_vm1, %v22679_v47 }
 0x3d4   :  { %18069 = vmatmul.mubr.msk.f32.gmra.mrb[8].mxu0 %vm193_vm1, %v22684_v48 }
 0x3d5   :  { %18071 = vmatprep.mubr.msk.f32.mxu0 %vm193_vm1, %v22698_v50 }
 0x3d8   :  { %18072 = vmatmul.mubr.msk.f32.gmra.mrb[10].mxu0 %vm193_vm1, %v22705_v51 }
 0x3d9   :  { %18074 = vmatprep.mubr.msk.f32.mxu0 %vm193_vm1, %v22714_v52 }
 0x3dc   :  { %18075 = vmatmul.mubr.msk.f32.gmra.mrb[12].mxu0 %vm193_vm1, %v22719_v53 }
 0x3dd   :  { %18077 = vmatprep.mubr.msk.f32.mxu0 %vm193_vm1, %v22728_v54 }
 0x3e0   :  { %18078 = vmatmul.mubr.msk.f32.gmra.mrb[14].mxu0 %vm193_vm1, %v22733_v55 }
 0x3e1   :  { %18080 = vmatprep.mubr.msk.f32.mxu0 %vm193_vm1, %v22742_v56 }
 0x3e4   :  { %18081 = vmatmul.mubr.msk.f32.gmra.mrb[16].mxu0 %vm193_vm1, %v22747_v57 }
 0x3e5   :  { %18083 = vmatprep.mubr.msk.f32.mxu0 %vm193_vm1, %v22756_v58 }
 0x3e8   :  { %18084 = vmatmul.mubr.msk.f32.gmra.mrb[18].mxu0 %vm193_vm1, %v22761_v59 }
 0x3e9   :  { %18086 = vmatprep.mubr.msk.f32.mxu0 %vm193_vm1, %v22770_v61 }
 0x3ec   :  { %18087 = vmatmul.mubr.msk.f32.gmra.mrb[20].mxu0 %vm193_vm1, %v22775_v63 }
 0x3ed   :  { %18089 = vmatprep.mubr.msk.f32.mxu0 %vm193_vm1, %v22784_v0 }
 0x3f0   :  { %18090 = vmatmul.mubr.msk.f32.gmra.mrb[22].mxu0 %vm193_vm1, %v22789_v3 }
 0x3f1   :  { %18092 = vmatprep.mubr.msk.f32.mxu0 %vm193_vm1, %v22798_v21 }
 0x3f4   :  { %18093 = vmatmul.mubr.msk.f32.gmra.mrb[24].mxu0 %vm193_vm1, %v22803_v62 }
 0x3f5   :  { %18095 = vmatprep.mubr.msk.f32.mxu0 %vm193_vm1, %v22812_v2 }
 0x3f8   :  { %18096 = vmatmul.mubr.msk.f32.gmra.mrb[26].mxu0 %vm193_vm1, %v22817_v4 }
 0x3f9   :  { %18098 = vmatprep.mubr.msk.f32.mxu0 %vm193_vm1, %v22826_v5 }
 0x3fc   :  { %18099 = vmatmul.mubr.msk.f32.gmra.mrb[28].mxu0 %vm193_vm1, %v22831_v6 }
 0x3fd   :  { %18101 = vmatprep.mubr.msk.f32.mxu0 %vm193_vm1, %v22840_v7 }
 0x400   :  { %18102 = vmatmul.mubr.msk.f32.gmra.mrb[30].mxu0 %vm193_vm1, %v22845_v8 }
 0x401   :  { %18104 = vmatprep.mubr.msk.f32.mxu0 %vm193_vm1, %v22854_v9 }
 0x404   :  { %18105 = vmatmul.mubr.msk.f32.gmra.mrb[32].mxu0 %vm193_vm1, %v22859_v10 }
 0x405   :  { %18107 = vmatprep.mubr.msk.f32.mxu0 %vm193_vm1, %v22868_v1 }
 0x408   :  { %18108 = vmatmul.mubr.msk.f32.gmra.mrb[34].mxu0 %vm193_vm1, %v22873_v11  ;;  %v28859_v11 = vld [vmem:[#allocation12_spill] sm:$0xff] }
 0x409   :  { %18110 = vmatprep.mubr.msk.f32.mxu0 %vm193_vm1, %v22882_v12  ;;  %v28860_v12 = vld [vmem:[#allocation13_spill] sm:$0xff] }
 0x40c   :  { %18111 = vmatmul.mubr.msk.f32.gmra.mrb[36].mxu0 %vm193_vm1, %v22887_v13  ;;  %v28861_v13 = vld [vmem:[#allocation14_spill] sm:$0xff] }
 0x40d   :  { %18113 = vmatprep.mubr.msk.f32.mxu0 %vm193_vm1, %v22896_v14  ;;  %v28862_v14 = vld [vmem:[#allocation15_spill] sm:$0xff] }
 0x410   :  { %18114 = vmatmul.mubr.msk.f32.gmra.mrb[38].mxu0 %vm193_vm1, %v22901_v15  ;;  %v28863_v15 = vld [vmem:[#allocation16_spill] sm:$0xff] }
 0x411   :  { %18116 = vmatprep.mubr.msk.f32.mxu0 %vm193_vm1, %v22910_v16 }
 0x414   :  { %18117 = vmatmul.mubr.msk.f32.gmra.mrb[40].mxu0 %vm193_vm1, %v22915_v17  ;;  %v28864_v17 = vld [vmem:[#allocation26_spill] sm:$0xff] }
 0x415   :  { %18119 = vmatprep.mubr.msk.f32.mxu0 %vm193_vm1, %v28858_v31 }
 0x418   :  { %18120 = vmatmul.mubr.msk.f32.gmra.mrb[42].mxu0 %vm193_vm1, %v28859_v11 }
 0x419   :  { %18122 = vmatprep.mubr.msk.f32.mxu0 %vm193_vm1, %v28860_v12 }
 0x41c   :  { %18123 = vmatmul.mubr.msk.f32.gmra.mrb[44].mxu0 %vm193_vm1, %v28861_v13 }
 0x41d   :  { %18125 = vmatprep.mubr.msk.f32.mxu0 %vm193_vm1, %v28862_v14 }
 0x420   :  { %18126 = vmatmul.mubr.msk.f32.gmra.mrb[46].mxu0 %vm193_vm1, %v28863_v15  ;;  %v28865_v15 = vld [vmem:[#allocation8_spill] sm:$0xff] }
 0x421   :  { %18128 = vmatprep.mubr.msk.f32.mxu0 %vm193_vm1, %v28848_v38 }
 0x424   :  { %18129 = vmatmul.mubr.msk.f32.gmra.mrb[48].mxu0 %vm193_vm1, %v28864_v17 }
 0x425   :  { %18131 = vmatprep.mubr.msk.f32.mxu0 %vm193_vm1, %v28850_v32 }
 0x428   :  { %18132 = vmatmul.mubr.msk.f32.gmra.mrb[50].mxu0 %vm193_vm1, %v28851_v33 }
 0x429   :  { %18134 = vmatprep.mubr.msk.f32.mxu0 %vm193_vm1, %v28852_v34 }
 0x42c   :  { %18135 = vmatmul.mubr.msk.f32.gmra.mrb[52].mxu0 %vm193_vm1, %v28853_v35 }
 0x42d   :  { %18137 = vmatprep.mubr.msk.f32.mxu0 %vm193_vm1, %v28854_v36  ;;  %v23387_v36 = vld [vmem:[%s28298_s0 + $0x288] sm:$0xff] }
 0x430   :  { %18138 = vmatmul.mubr.msk.f32.gmra.mrb[54].mxu0 %vm193_vm1, %v28865_v15  ;;  %v21380_v15 = vmov 0  }
 0x431   :  { %18140 = vmatprep.mubr.msk.f32.mxu0 %vm193_vm1, %v23022_v30  ;;  %21374 = vset.pattern.permute.xlu0 %v21380_v15 }
 0x432   :  { %21375 = vset.pattern.permute.xlu1 %v21380_v15  ;;  %v33_v15 = vld [vmem:[%s28299_s1 + $0x20] sm:$0xff] }
 0x434   :  { %18141 = vmatmul.mubr.msk.f32.gmra.mrb[56].mxu0 %vm193_vm1, %v28856_v49  ;;  %v29_v49 = vld [vmem:[%s28299_s1] sm:$0xff] }
 0x435   :  { %18143 = vmatprep.mubr.msk.f32.mxu0 %vm193_vm1, %v23036_v18  ;;  %7466 = vperm.xlu0 %21374, %v29_v49   ;;  %v23465_v49 = vld [vmem:[%s28298_s0 + $0x2f0] sm:$0xff] }
 0x438   :  { %18144 = vmatmul.mubr.msk.f32.gmra.mrb[58].mxu0 %vm193_vm1, %v23041_v19  ;;  %v30_v19 = vld [vmem:[%s28299_s1 + $0x8] sm:$0xff] }
 0x439   :  { %18146 = vmatprep.mubr.msk.f32.mxu0 %vm193_vm1, %v23050_v20  ;;  %v31_v20 = vld [vmem:[%s28299_s1 + $0x10] sm:$0xff]  ;;  %7471 = vperm.xlu0 %21374, %v30_v19  }
 0x43a   :  { %7476 = vperm.xlu1 %21375, %v31_v20   ;;  %v35_v19 = vld [vmem:[%s28299_s1 + $0x30] sm:$0xff]  ;;  %v23445_v20 = vld [vmem:[%s28298_s0 + $0x2e0] sm:$0xff] }
 0x43c   :  { %18147 = vmatmul.mubr.msk.f32.gmra.mrb[60].mxu0 %vm193_vm1, %v23387_v36 }
 0x43d   :  { %18149 = vmatprep.mubr.msk.f32.mxu0 %vm193_vm1, %v22503_v22  ;;  %v32_v22 = vld [vmem:[%s28299_s1 + $0x18] sm:$0xff]  ;;  %7486 = vperm.xlu0 %21374, %v33_v15   ;;  %v42_v15 = vld [vmem:[%s28299_s1 + $0x68] sm:$0xff] }
 0x43e   :  { %7481 = vperm.xlu1 %21375, %v32_v22   ;;  %v23474_v22 = vld [vmem:[%s28298_s0 + $0x2f8] sm:$0xff] }
 0x440   :  { %18150 = vmatmul.mubr.msk.f32.gmra.mrb[62].mxu0 %vm193_vm1, %v28857_v37  ;;  %v41_v37 = vld [vmem:[%s28299_s1 + $0x60] sm:$0xff] }
 0x441   :  { %18152 = vmatprep.mubr.msk.f32.mxu0 %vm193_vm1, %v22517_v24  ;;  %v34_v24 = vld [vmem:[%s28299_s1 + $0x28] sm:$0xff]  ;;  %7496 = vperm.xlu0 %21374, %v35_v19   ;;  %v23485_v19 = vld [vmem:[%s28298_s0 + $0x300] sm:$0xff] }
 0x442   :  { %7491 = vperm.xlu1 %21375, %v34_v24   ;;  %v43_v24 = vld [vmem:[%s28299_s1 + $0x70] sm:$0xff] }
 0x444   :  { %18153 = vmatmul.mubr.msk.f32.gmra.mrb[64].mxu0 %vm193_vm1, %v22526_v25  ;;  %v36_v25 = vld [vmem:[%s28299_s1 + $0x38] sm:$0xff] }
 0x445   :  { %18155 = vmatprep.mubr.msk.f32.mxu0 %vm193_vm1, %v22531_v26  ;;  %v37_v26 = vld [vmem:[%s28299_s1 + $0x40] sm:$0xff] }
 0x446   :  { %7501 = vperm.xlu1 %21375, %v36_v25   ;;  %7506 = vperm.xlu0 %21374, %v37_v26   ;;  %v23494_v25 = vld [vmem:[%s28298_s0 + $0x308] sm:$0xff]  ;;  %v44_v26 = vld [vmem:[%s28299_s1 + $0x78] sm:$0xff] }
 0x448   :  { %18156 = vmatmul.mubr.msk.f32.gmra.mrb[66].mxu0 %vm193_vm1, %v22540_v27  ;;  %v38_v27 = vld [vmem:[%s28299_s1 + $0x48] sm:$0xff] }
 0x449   :  { %18158 = vmatprep.mubr.msk.f32.mxu0 %vm193_vm1, %v22545_v28  ;;  %v39_v28 = vld [vmem:[%s28299_s1 + $0x50] sm:$0xff] }
 0x44a   :  { %7511 = vperm.xlu1 %21375, %v38_v27   ;;  %7516 = vperm.xlu0 %21374, %v39_v28   ;;  %v45_v27 = vld [vmem:[%s28299_s1 + $0x80] sm:$0xff]  ;;  %v23505_v28 = vld [vmem:[%s28298_s0 + $0x310] sm:$0xff] }
 0x44c   :  { %18159 = vmatmul.mubr.msk.f32.gmra.mrb[68].mxu0 %vm193_vm1, %v22554_v29  ;;  %v40_v29 = vld [vmem:[%s28299_s1 + $0x58] sm:$0xff] }
 0x44d   :  { %18161 = vmatprep.mubr.msk.f32.mxu0 %vm193_vm1, %v23075_v23  ;;  %v23454_v23 = vld [vmem:[%s28298_s0 + $0x2e8] sm:$0xff] }
 0x44e   :  { %7521 = vperm.xlu1 %21375, %v40_v29   ;;  %7526 = vperm.xlu0 %21374, %v41_v37   ;;  %v23514_v29 = vld [vmem:[%s28298_s0 + $0x318] sm:$0xff]  ;;  %v46_v37 = vld [vmem:[%s28299_s1 + $0x88] sm:$0xff] }
 0x450   :  { %18162 = vmatmul.mubr.msk.f32.gmra.mrb[70].mxu0 %vm193_vm1, %v23249_v60 }
 0x451   :  { %18164 = vmatprep.mubr.msk.f32.mxu0 %vm193_vm1, %v23445_v20 }
 0x452   :  { %7531 = vperm.xlu1 %21375, %v42_v15   ;;  %7536 = vperm.xlu0 %21374, %v43_v24   ;;  %v47_v15 = vld [vmem:[%s28299_s1 + $0x90] sm:$0xff]  ;;  %v48_v24 = vld [vmem:[%s28299_s1 + $0x98] sm:$0xff] }
 0x454   :  { %18165 = vmatmul.mubr.msk.f32.gmra.mrb[72].mxu0 %vm193_vm1, %v23454_v23 }
 0x455   :  { %18167 = vmatprep.mubr.msk.f32.mxu0 %vm193_vm1, %v23465_v49 }
 0x456   :  { %7541 = vperm.xlu1 %21375, %v44_v26   ;;  %7546 = vperm.xlu0 %21374, %v45_v27   ;;  %v49_v26 = vld [vmem:[%s28299_s1 + $0xa0] sm:$0xff]  ;;  %v51_v27 = vld [vmem:[%s28299_s1 + $0xb0] sm:$0xff] }
 0x458   :  { %18168 = vmatmul.mubr.msk.f32.gmra.mrb[74].mxu0 %vm193_vm1, %v23474_v22 }
 0x459   :  { %18170 = vmatprep.mubr.msk.f32.mxu0 %vm193_vm1, %v23485_v19 }
 0x45a   :  { %7551 = vperm.xlu1 %21375, %v46_v37   ;;  %7556 = vperm.xlu0 %21374, %v47_v15   ;;  %v28867_v37 = vld [vmem:[#allocation21_spill] sm:$0xff]  ;;  %v28868_v15 = vld [vmem:[#allocation23_spill] sm:$0xff] }
 0x45c   :  { %18171 = vmatmul.mubr.msk.f32.gmra.mrb[76].mxu0 %vm193_vm1, %v23494_v25 }
 0x45d   :  { %18173 = vmatprep.mubr.msk.f32.mxu0 %vm193_vm1, %v23505_v28 }
 0x45e   :  { %7561 = vperm.xlu1 %21375, %v48_v24   ;;  %7566 = vperm.xlu0 %21374, %v49_v26   ;;  %v85_v24 = vld [vmem:[%s28299_s1 + $0x1c0] sm:$0xff]  ;;  %v28869_v26 = vld [vmem:[#allocation24_spill] sm:$0xff] }
 0x460   :  { %18174 = vmatmul.mubr.msk.f32.gmra.mrb[78].mxu0 %vm193_vm1, %v23514_v29 }
 0x461   :  { %18178 = vmatprep.mubr.msk.f32.mxu0 %vm193_vm1, %v22628_v40  ;;  %v50_v40 = vld [vmem:[%s28299_s1 + $0xa8] sm:$0xff] }
 0x462   :  { %7571 = vperm.xlu1 %21375, %v50_v40   ;;  %7576 = vperm.xlu0 %21374, %v51_v27   ;;  %v28870_v40 = vld [vmem:[#allocation25_spill] sm:$0xff]  ;;  %v86_v27 = vld [vmem:[%s28299_s1 + $0x1c8] sm:$0xff] }
 0x464   :  { %18179 = vmatmul.mubr.msk.f32.vlgmr.msra.gmra.mrb[0].mxu0 %vm193_vm1, %v22637_v41  ;;  %v52_v41 = vld [vmem:[%s28299_s1 + $0xb8] sm:$0xff] }
 0x465   :  { %18299 = vmatpush3.msk.msra.mxu0 %vm434_vm0, %v23294_v39  ;;  %18181 = vmatprep.mubr.msk.f32.mxu0 %vm193_vm1, %v22642_v42  ;;  %v53_v42 = vld [vmem:[%s28299_s1 + $0xc0] sm:$0xff] }
 0x466   :  { %7581 = vperm.xlu1 %21375, %v52_v41   ;;  %7586 = vperm.xlu0 %21374, %v53_v42   ;;  %v28866_v39 = vld [vmem:[#allocation19_spill] sm:$0xff]  ;;  %v87_v41 = vld [vmem:[%s28299_s1 + $0x1d0] sm:$0xff]  ;;  %v28871_v42 = vld [vmem:[#allocation10_spill] sm:$0xff] }
 0x468   :  { %18182 = vmatmul.mubr.msk.f32.gmra.mrb[2].mxu0 %vm193_vm1, %v22651_v43  ;;  %v54_v43 = vld [vmem:[%s28299_s1 + $0xc8] sm:$0xff] }
 0x469   :  { %18184 = vmatprep.mubr.msk.f32.mxu0 %vm193_vm1, %v22656_v44  ;;  %v55_v44 = vld [vmem:[%s28299_s1 + $0xd0] sm:$0xff] }
 0x46a   :  { %7591 = vperm.xlu1 %21375, %v54_v43   ;;  %7596 = vperm.xlu0 %21374, %v55_v44   ;;  %v88_v43 = vld [vmem:[%s28299_s1 + $0x1d8] sm:$0xff]  ;;  %v89_v44 = vld [vmem:[%s28299_s1 + $0x1e0] sm:$0xff] }
 0x46c   :  { %18185 = vmatmul.mubr.msk.f32.gmra.mrb[4].mxu0 %vm193_vm1, %v22665_v45  ;;  %v56_v45 = vld [vmem:[%s28299_s1 + $0xd8] sm:$0xff] }
 0x46d   :  { %18187 = vmatprep.mubr.msk.f32.mxu0 %vm193_vm1, %v22670_v46  ;;  %v57_v46 = vld [vmem:[%s28299_s1 + $0xe0] sm:$0xff] }
 0x46e   :  { %7601 = vperm.xlu1 %21375, %v56_v45   ;;  %7606 = vperm.xlu0 %21374, %v57_v46   ;;  %v91_v45 = vld [vmem:[%s28299_s1 + $0x1f0] sm:$0xff]  ;;  %v28872_v46 = vld [vmem:[#allocation16_spill] sm:$0xff] }
 0x470   :  { %18188 = vmatmul.mubr.msk.f32.gmra.mrb[6].mxu0 %vm193_vm1, %v22679_v47  ;;  %v58_v47 = vld [vmem:[%s28299_s1 + $0xe8] sm:$0xff] }
 0x471   :  { %18190 = vmatprep.mubr.msk.f32.mxu0 %vm193_vm1, %v22684_v48  ;;  %v59_v48 = vld [vmem:[%s28299_s1 + $0xf0] sm:$0xff] }
 0x472   :  { %7611 = vperm.xlu1 %21375, %v58_v47   ;;  %7616 = vperm.xlu0 %21374, %v59_v48   ;;  %v97_v47 = vld [vmem:[%s28299_s1 + $0x220] sm:$0xff] }
 0x473   :  { %v28873_v48 = vld [vmem:[#allocation7_spill] sm:$0xff] }
 0x474   :  { %18191 = vmatmul.mubr.msk.f32.gmra.mrb[8].mxu0 %vm193_vm1, %v22698_v50  ;;  %v60_v50 = vld [vmem:[%s28299_s1 + $0xf8] sm:$0xff] }
 0x475   :  { %18193 = vmatprep.mubr.msk.f32.mxu0 %vm193_vm1, %v22705_v51  ;;  %v61_v51 = vld [vmem:[%s28299_s1 + $0x100] sm:$0xff] }
 0x476   :  { %7621 = vperm.xlu1 %21375, %v60_v50   ;;  %7626 = vperm.xlu0 %21374, %v61_v51   ;;  %v28874_v50 = vld [vmem:[#allocation8_spill] sm:$0xff]  ;;  %v28875_v51 = vld [vmem:[#allocation9_spill] sm:$0xff] }
 0x478   :  { %18194 = vmatmul.mubr.msk.f32.gmra.mrb[10].mxu0 %vm193_vm1, %v22714_v52  ;;  %v62_v52 = vld [vmem:[%s28299_s1 + $0x108] sm:$0xff] }
 0x479   :  { %18196 = vmatprep.mubr.msk.f32.mxu0 %vm193_vm1, %v22719_v53  ;;  %v63_v53 = vld [vmem:[%s28299_s1 + $0x110] sm:$0xff] }
 0x47a   :  { %7631 = vperm.xlu1 %21375, %v62_v52   ;;  %7636 = vperm.xlu0 %21374, %v63_v53   ;;  %v104_v52 = vld [vmem:[%s28299_s1 + $0x258] sm:$0xff]  ;;  %v105_v53 = vld [vmem:[%s28299_s1 + $0x260] sm:$0xff] }
 0x47c   :  { %18197 = vmatmul.mubr.msk.f32.gmra.mrb[12].mxu0 %vm193_vm1, %v22728_v54  ;;  %v64_v54 = vld [vmem:[%s28299_s1 + $0x118] sm:$0xff] }
 0x47d   :  { %18199 = vmatprep.mubr.msk.f32.mxu0 %vm193_vm1, %v22733_v55  ;;  %v65_v55 = vld [vmem:[%s28299_s1 + $0x120] sm:$0xff] }
 0x47e   :  { %7641 = vperm.xlu1 %21375, %v64_v54   ;;  %7646 = vperm.xlu0 %21374, %v65_v55   ;;  %v28876_v54 = vld [vmem:[#allocation20_spill] sm:$0xff]  ;;  %v107_v55 = vld [vmem:[%s28299_s1 + $0x270] sm:$0xff] }
 0x480   :  { %18200 = vmatmul.mubr.msk.f32.gmra.mrb[14].mxu0 %vm193_vm1, %v22742_v56  ;;  %v66_v56 = vld [vmem:[%s28299_s1 + $0x128] sm:$0xff] }
 0x481   :  { %18202 = vmatprep.mubr.msk.f32.mxu0 %vm193_vm1, %v22747_v57  ;;  %v67_v57 = vld [vmem:[%s28299_s1 + $0x130] sm:$0xff] }
 0x482   :  { %7651 = vperm.xlu1 %21375, %v66_v56   ;;  %7656 = vperm.xlu0 %21374, %v67_v57   ;;  %v28877_v56 = vld [vmem:[#allocation22_spill] sm:$0xff] }
 0x483   :  { %v108_v57 = vld [vmem:[%s28299_s1 + $0x278] sm:$0xff] }
 0x484   :  { %18203 = vmatmul.mubr.msk.f32.gmra.mrb[16].mxu0 %vm193_vm1, %v22756_v58  ;;  %v68_v58 = vld [vmem:[%s28299_s1 + $0x138] sm:$0xff] }
 0x485   :  { %18205 = vmatprep.mubr.msk.f32.mxu0 %vm193_vm1, %v22761_v59  ;;  %v69_v59 = vld [vmem:[%s28299_s1 + $0x140] sm:$0xff] }
 0x486   :  { %7661 = vperm.xlu1 %21375, %v68_v58   ;;  %7666 = vperm.xlu0 %21374, %v69_v59   ;;  %v23839_v58 = vld [vmem:[%s28298_s0 + $0x298] sm:$0xff]  ;;  %v23853_v59 = vld [vmem:[%s28298_s0 + $0x2a8] sm:$0xff] }
 0x488   :  { %18206 = vmatmul.mubr.msk.f32.gmra.mrb[18].mxu0 %vm193_vm1, %v22770_v61  ;;  %v70_v61 = vld [vmem:[%s28299_s1 + $0x148] sm:$0xff] }
 0x489   :  { %18208 = vmatprep.mubr.msk.f32.mxu0 %vm193_vm1, %v22775_v63  ;;  %v71_v63 = vld [vmem:[%s28299_s1 + $0x150] sm:$0xff] }
 0x48a   :  { %7671 = vperm.xlu1 %21375, %v70_v61   ;;  %7676 = vperm.xlu0 %21374, %v71_v63   ;;  %v23862_v61 = vld [vmem:[%s28298_s0 + $0x2b0] sm:$0xff]  ;;  %v23867_v63 = vld [vmem:[%s28298_s0 + $0x2b8] sm:$0xff] }
 0x48c   :  { %18209 = vmatmul.mubr.msk.f32.gmra.mrb[20].mxu0 %vm193_vm1, %v22784_v0  ;;  %v72_v0 = vld [vmem:[%s28299_s1 + $0x158] sm:$0xff] }
 0x48d   :  { %18211 = vmatprep.mubr.msk.f32.mxu0 %vm193_vm1, %v22789_v3  ;;  %v73_v3 = vld [vmem:[%s28299_s1 + $0x160] sm:$0xff] }
 0x48e   :  { %7681 = vperm.xlu1 %21375, %v72_v0   ;;  %7686 = vperm.xlu0 %21374, %v73_v3   ;;  %v23876_v0 = vld [vmem:[%s28298_s0 + $0x2c0] sm:$0xff]  ;;  %v23881_v3 = vld [vmem:[%s28298_s0 + $0x2c8] sm:$0xff] }
 0x490   :  { %18212 = vmatmul.mubr.msk.f32.gmra.mrb[22].mxu0 %vm193_vm1, %v22798_v21  ;;  %v74_v21 = vld [vmem:[%s28299_s1 + $0x168] sm:$0xff] }
 0x491   :  { %18214 = vmatprep.mubr.msk.f32.mxu0 %vm193_vm1, %v22803_v62  ;;  %v75_v62 = vld [vmem:[%s28299_s1 + $0x170] sm:$0xff] }
 0x492   :  { %7691 = vperm.xlu1 %21375, %v74_v21   ;;  %7696 = vperm.xlu0 %21374, %v75_v62   ;;  %v23890_v21 = vld [vmem:[%s28298_s0 + $0x2d0] sm:$0xff] }
 0x493   :  { %v6602_v62 = vld [vmem:[%s28298_s0 + $0xf0] sm:$0xff] }
 0x494   :  { %18215 = vmatmul.mubr.msk.f32.gmra.mrb[24].mxu0 %vm193_vm1, %v22812_v2  ;;  %v76_v2 = vld [vmem:[%s28299_s1 + $0x178] sm:$0xff] }
 0x495   :  { %18217 = vmatprep.mubr.msk.f32.mxu0 %vm193_vm1, %v22817_v4  ;;  %v77_v4 = vld [vmem:[%s28299_s1 + $0x180] sm:$0xff] }
 0x496   :  { %7701 = vperm.xlu1 %21375, %v76_v2   ;;  %7706 = vperm.xlu0 %21374, %v77_v4   ;;  %v6603_v2 = vld [vmem:[%s28298_s0 + $0xf8] sm:$0xff]  ;;  %v6604_v4 = vld [vmem:[%s28298_s0 + $0x100] sm:$0xff] }
 0x498   :  { %18218 = vmatmul.mubr.msk.f32.gmra.mrb[26].mxu0 %vm193_vm1, %v22826_v5  ;;  %v78_v5 = vld [vmem:[%s28299_s1 + $0x188] sm:$0xff] }
 0x499   :  { %18220 = vmatprep.mubr.msk.f32.mxu0 %vm193_vm1, %v22831_v6  ;;  %v79_v6 = vld [vmem:[%s28299_s1 + $0x190] sm:$0xff] }
 0x49a   :  { %7711 = vperm.xlu1 %21375, %v78_v5   ;;  %7716 = vperm.xlu0 %21374, %v79_v6   ;;  %v6605_v5 = vld [vmem:[%s28298_s0 + $0x108] sm:$0xff]  ;;  %v6606_v6 = vld [vmem:[%s28298_s0 + $0x110] sm:$0xff] }
 0x49c   :  { %18221 = vmatmul.mubr.msk.f32.gmra.mrb[28].mxu0 %vm193_vm1, %v22840_v7  ;;  %v80_v7 = vld [vmem:[%s28299_s1 + $0x198] sm:$0xff] }
 0x49d   :  { %18223 = vmatprep.mubr.msk.f32.mxu0 %vm193_vm1, %v22845_v8  ;;  %v81_v8 = vld [vmem:[%s28299_s1 + $0x1a0] sm:$0xff] }
 0x49e   :  { %7721 = vperm.xlu1 %21375, %v80_v7   ;;  %7726 = vperm.xlu0 %21374, %v81_v8   ;;  %v6607_v7 = vld [vmem:[%s28298_s0 + $0x118] sm:$0xff]  ;;  %v6608_v8 = vld [vmem:[%s28298_s0 + $0x120] sm:$0xff] }
 0x4a0   :  { %18224 = vmatmul.mubr.msk.f32.gmra.mrb[30].mxu0 %vm193_vm1, %v22854_v9  ;;  %v82_v9 = vld [vmem:[%s28299_s1 + $0x1a8] sm:$0xff] }
 0x4a1   :  { %18226 = vmatprep.mubr.msk.f32.mxu0 %vm193_vm1, %v22859_v10  ;;  %v83_v10 = vld [vmem:[%s28299_s1 + $0x1b0] sm:$0xff] }
 0x4a2   :  { %7731 = vperm.xlu1 %21375, %v82_v9   ;;  %7736 = vperm.xlu0 %21374, %v83_v10   ;;  %v6610_v9 = vld [vmem:[%s28298_s0 + $0x130] sm:$0xff]  ;;  %v6611_v10 = vld [vmem:[%s28298_s0 + $0x138] sm:$0xff] }
 0x4a4   :  { %18227 = vmatmul.mubr.msk.f32.gmra.mrb[32].mxu0 %vm193_vm1, %v22868_v1  ;;  %v84_v1 = vld [vmem:[%s28299_s1 + $0x1b8] sm:$0xff] }
 0x4a5   :  { %18229 = vmatprep.mubr.msk.f32.mxu0 %vm193_vm1, %v28866_v39  ;;  %v6609_v39 = vld [vmem:[%s28298_s0 + $0x128] sm:$0xff] }
 0x4a6   :  { %7741 = vperm.xlu1 %21375, %v84_v1   ;;  %7746 = vperm.xlu0 %21374, %v85_v24   ;;  %v6614_v1 = vld [vmem:[%s28298_s0 + $0x150] sm:$0xff]  ;;  %v6615_v24 = vld [vmem:[%s28298_s0 + $0x158] sm:$0xff] }
 0x4a8   :  { %18230 = vmatmul.mubr.msk.f32.gmra.mrb[34].mxu0 %vm193_vm1, %v28867_v37  ;;  %v6612_v37 = vld [vmem:[%s28298_s0 + $0x140] sm:$0xff] }
 0x4a9   :  { %18232 = vmatprep.mubr.msk.f32.mxu0 %vm193_vm1, %v28868_v15  ;;  %v6613_v15 = vld [vmem:[%s28298_s0 + $0x148] sm:$0xff] }
 0x4aa   :  { %7751 = vperm.xlu1 %21375, %v86_v27   ;;  %7756 = vperm.xlu0 %21374, %v87_v41   ;;  %v6618_v27 = vld [vmem:[%s28298_s0 + $0x170] sm:$0xff]  ;;  %v6619_v41 = vld [vmem:[%s28298_s0 + $0x178] sm:$0xff] }
 0x4ac   :  { %18233 = vmatmul.mubr.msk.f32.gmra.mrb[36].mxu0 %vm193_vm1, %v28869_v26  ;;  %v6616_v26 = vld [vmem:[%s28298_s0 + $0x160] sm:$0xff] }
 0x4ad   :  { %18235 = vmatprep.mubr.msk.f32.mxu0 %vm193_vm1, %v28870_v40  ;;  %v6617_v40 = vld [vmem:[%s28298_s0 + $0x168] sm:$0xff] }
 0x4ae   :  { %7761 = vperm.xlu1 %21375, %v88_v43   ;;  %7766 = vperm.xlu0 %21374, %v89_v44   ;;  %v6621_v43 = vld [vmem:[%s28298_s0 + $0x188] sm:$0xff]  ;;  %v6622_v44 = vld [vmem:[%s28298_s0 + $0x190] sm:$0xff] }
 0x4b0   :  { %18236 = vmatmul.mubr.msk.f32.gmra.mrb[38].mxu0 %vm193_vm1, %v22910_v16  ;;  %v90_v16 = vld [vmem:[%s28299_s1 + $0x1e8] sm:$0xff] }
 0x4b1   :  { %18238 = vmatprep.mubr.msk.f32.mxu0 %vm193_vm1, %v28871_v42  ;;  %v6620_v42 = vld [vmem:[%s28298_s0 + $0x180] sm:$0xff] }
 0x4b2   :  { %7771 = vperm.xlu1 %21375, %v90_v16   ;;  %7776 = vperm.xlu0 %21374, %v91_v45   ;;  %v6623_v16 = vld [vmem:[%s28298_s0 + $0x198] sm:$0xff]  ;;  %v6624_v45 = vld [vmem:[%s28298_s0 + $0x1a0] sm:$0xff] }
 0x4b4   :  { %18239 = vmatmul.mubr.msk.f32.gmra.mrb[40].mxu0 %vm193_vm1, %v28858_v31  ;;  %v93_v31 = vld [vmem:[%s28299_s1 + $0x200] sm:$0xff] }
 0x4b5   :  { %18241 = vmatprep.mubr.msk.f32.mxu0 %vm193_vm1, %v28859_v11  ;;  %v92_v11 = vld [vmem:[%s28299_s1 + $0x1f8] sm:$0xff] }
 0x4b6   :  { %7781 = vperm.xlu1 %21375, %v92_v11   ;;  %7786 = vperm.xlu0 %21374, %v93_v31   ;;  %v6625_v11 = vld [vmem:[%s28298_s0 + $0x1a8] sm:$0xff]  ;;  %v6626_v31 = vld [vmem:[%s28298_s0 + $0x1b0] sm:$0xff] }
 0x4b8   :  { %18242 = vmatmul.mubr.msk.f32.gmra.mrb[42].mxu0 %vm193_vm1, %v28860_v12  ;;  %v94_v12 = vld [vmem:[%s28299_s1 + $0x208] sm:$0xff] }
 0x4b9   :  { %18244 = vmatprep.mubr.msk.f32.mxu0 %vm193_vm1, %v28861_v13  ;;  %v95_v13 = vld [vmem:[%s28299_s1 + $0x210] sm:$0xff] }
 0x4ba   :  { %7791 = vperm.xlu1 %21375, %v94_v12   ;;  %7796 = vperm.xlu0 %21374, %v95_v13   ;;  %v6628_v12 = vld [vmem:[%s28298_s0 + $0x1c0] sm:$0xff]  ;;  %v6629_v13 = vld [vmem:[%s28298_s0 + $0x1c8] sm:$0xff] }
 0x4bc   :  { %18245 = vmatmul.mubr.msk.f32.gmra.mrb[44].mxu0 %vm193_vm1, %v28862_v14  ;;  %v96_v14 = vld [vmem:[%s28299_s1 + $0x218] sm:$0xff] }
 0x4bd   :  { %18247 = vmatprep.mubr.msk.f32.mxu0 %vm193_vm1, %v28872_v46  ;;  %v6627_v46 = vld [vmem:[%s28298_s0 + $0x1b8] sm:$0xff] }
 0x4be   :  { %7801 = vperm.xlu1 %21375, %v96_v14   ;;  %7806 = vperm.xlu0 %21374, %v97_v47   ;;  %v6630_v14 = vld [vmem:[%s28298_s0 + $0x1d0] sm:$0xff]  ;;  %v6631_v47 = vld [vmem:[%s28298_s0 + $0x1d8] sm:$0xff] }
 0x4c0   :  { %18248 = vmatmul.mubr.msk.f32.gmra.mrb[46].mxu0 %vm193_vm1, %v28848_v38  ;;  %v99_v38 = vld [vmem:[%s28299_s1 + $0x230] sm:$0xff] }
 0x4c1   :  { %18250 = vmatprep.mubr.msk.f32.mxu0 %vm193_vm1, %v28864_v17  ;;  %v98_v17 = vld [vmem:[%s28299_s1 + $0x228] sm:$0xff] }
 0x4c2   :  { %7811 = vperm.xlu1 %21375, %v98_v17   ;;  %7816 = vperm.xlu0 %21374, %v99_v38   ;;  %v6632_v17 = vld [vmem:[%s28298_s0 + $0x1e0] sm:$0xff]  ;;  %v6633_v38 = vld [vmem:[%s28298_s0 + $0x1e8] sm:$0xff] }
 0x4c4   :  { %18251 = vmatmul.mubr.msk.f32.gmra.mrb[48].mxu0 %vm193_vm1, %v28850_v32  ;;  %v100_v32 = vld [vmem:[%s28299_s1 + $0x238] sm:$0xff] }
 0x4c5   :  { %18253 = vmatprep.mubr.msk.f32.mxu0 %vm193_vm1, %v28851_v33  ;;  %v101_v33 = vld [vmem:[%s28299_s1 + $0x240] sm:$0xff] }
 0x4c6   :  { %7821 = vperm.xlu1 %21375, %v100_v32   ;;  %7826 = vperm.xlu0 %21374, %v101_v33   ;;  %v6634_v32 = vld [vmem:[%s28298_s0 + $0x1f0] sm:$0xff]  ;;  %v6635_v33 = vld [vmem:[%s28298_s0 + $0x1f8] sm:$0xff] }
 0x4c8   :  { %18254 = vmatmul.mubr.msk.f32.gmra.mrb[50].mxu0 %vm193_vm1, %v28852_v34  ;;  %v102_v34 = vld [vmem:[%s28299_s1 + $0x248] sm:$0xff] }
 0x4c9   :  { %18256 = vmatprep.mubr.msk.f32.mxu0 %vm193_vm1, %v28853_v35  ;;  %v103_v35 = vld [vmem:[%s28299_s1 + $0x250] sm:$0xff] }
 0x4ca   :  { %7831 = vperm.xlu1 %21375, %v102_v34   ;;  %7836 = vperm.xlu0 %21374, %v103_v35   ;;  %v6638_v34 = vld [vmem:[%s28298_s0 + $0x210] sm:$0xff]  ;;  %v6639_v35 = vld [vmem:[%s28298_s0 + $0x218] sm:$0xff] }
 0x4cc   :  { %18257 = vmatmul.mubr.msk.f32.gmra.mrb[52].mxu0 %vm193_vm1, %v28873_v48  ;;  %v6636_v48 = vld [vmem:[%s28298_s0 + $0x200] sm:$0xff] }
 0x4cd   :  { %18259 = vmatprep.mubr.msk.f32.mxu0 %vm193_vm1, %v28874_v50  ;;  %v6637_v50 = vld [vmem:[%s28298_s0 + $0x208] sm:$0xff] }
 0x4ce   :  { %7841 = vperm.xlu1 %21375, %v104_v52   ;;  %7846 = vperm.xlu0 %21374, %v105_v53   ;;  %v6641_v52 = vld [vmem:[%s28298_s0 + $0x228] sm:$0xff]  ;;  %v6642_v53 = vld [vmem:[%s28298_s0 + $0x230] sm:$0xff] }
 0x4d0   :  { %18260 = vmatmul.mubr.msk.f32.gmra.mrb[54].mxu0 %vm193_vm1, %v23022_v30  ;;  %v106_v30 = vld [vmem:[%s28299_s1 + $0x268] sm:$0xff] }
 0x4d1   :  { %18262 = vmatprep.mubr.msk.f32.mxu0 %vm193_vm1, %v28875_v51  ;;  %v6640_v51 = vld [vmem:[%s28298_s0 + $0x220] sm:$0xff] }
 0x4d2   :  { %7851 = vperm.xlu1 %21375, %v106_v30   ;;  %7856 = vperm.xlu0 %21374, %v107_v55   ;;  %v6644_v30 = vld [vmem:[%s28298_s0 + $0x240] sm:$0xff]  ;;  %v6645_v55 = vld [vmem:[%s28298_s0 + $0x248] sm:$0xff] }
 0x4d4   :  { %18263 = vmatmul.mubr.msk.f32.gmra.mrb[56].mxu0 %vm193_vm1, %v23036_v18  ;;  %v23831_v18 = vld [vmem:[%s28298_s0 + $0x290] sm:$0xff] }
 0x4d5   :  { %18265 = vmatprep.mubr.msk.f32.mxu0 %vm193_vm1, %v28876_v54  ;;  %v6643_v54 = vld [vmem:[%s28298_s0 + $0x238] sm:$0xff] }
 0x4d6   :  { %7861 = vperm.xlu1 %21375, %v108_v57   ;;  %v6647_v57 = vld [vmem:[%s28298_s0 + $0x258] sm:$0xff] }
 0x4d8   :  { %18266 = vmatmul.mubr.msk.f32.gmra.mrb[58].mxu0 %vm193_vm1, %v28877_v56  ;;  %v6646_v56 = vld [vmem:[%s28298_s0 + $0x250] sm:$0xff] }
 0x4d9   :  { %18268 = vmatprep.mubr.msk.f32.mxu0 %vm193_vm1, %v23387_v36  ;;  %v23848_v36 = vld [vmem:[%s28298_s0 + $0x2a0] sm:$0xff] }
 0x4dc   :  { %18269 = vmatmul.mubr.msk.f32.gmra.mrb[60].mxu0 %vm193_vm1, %v23831_v18 }
 0x4dd   :  { %18271 = vmatprep.mubr.msk.f32.mxu0 %vm193_vm1, %v23839_v58 }
 0x4e0   :  { %18272 = vmatmul.mubr.msk.f32.gmra.mrb[62].mxu0 %vm193_vm1, %v23848_v36 }
 0x4e1   :  { %18274 = vmatprep.mubr.msk.f32.mxu0 %vm193_vm1, %v23853_v59 }
 0x4e4   :  { %18275 = vmatmul.mubr.msk.f32.gmra.mrb[64].mxu0 %vm193_vm1, %v23862_v61 }
 0x4e5   :  { %18277 = vmatprep.mubr.msk.f32.mxu0 %vm193_vm1, %v23867_v63 }
 0x4e8   :  { %18278 = vmatmul.mubr.msk.f32.gmra.mrb[66].mxu0 %vm193_vm1, %v23876_v0 }
 0x4e9   :  { %18280 = vmatprep.mubr.msk.f32.mxu0 %vm193_vm1, %v23881_v3 }
 0x4ec   :  { %18281 = vmatmul.mubr.msk.f32.gmra.mrb[68].mxu0 %vm193_vm1, %v23890_v21 }
 0x4ed   :  { %18283 = vmatprep.mubr.msk.f32.mxu0 %vm193_vm1, %v23249_v60  ;;  %v23915_v60 = vld [vmem:[%s28298_s0 + $0x320] sm:$0xff] }
 0x4f0   :  { %18284 = vmatmul.mubr.msk.f32.gmra.mrb[70].mxu0 %vm193_vm1, %v23445_v20  ;;  %v6594_v20 = vld [vmem:[%s28298_s0 + $0xb0] sm:$0xff] }
 0x4f1   :  { %18286 = vmatprep.mubr.msk.f32.mxu0 %vm193_vm1, %v23454_v23  ;;  %v6595_v23 = vld [vmem:[%s28298_s0 + $0xb8] sm:$0xff] }
 0x4f4   :  { %18287 = vmatmul.mubr.msk.f32.gmra.mrb[72].mxu0 %vm193_vm1, %v23465_v49  ;;  %v6596_v49 = vld [vmem:[%s28298_s0 + $0xc0] sm:$0xff] }
 0x4f5   :  { %18289 = vmatprep.mubr.msk.f32.mxu0 %vm193_vm1, %v23474_v22  ;;  %v6597_v22 = vld [vmem:[%s28298_s0 + $0xc8] sm:$0xff] }
 0x4f8   :  { %18290 = vmatmul.mubr.msk.f32.gmra.mrb[74].mxu0 %vm193_vm1, %v23485_v19  ;;  %v6598_v19 = vld [vmem:[%s28298_s0 + $0xd0] sm:$0xff] }
 0x4f9   :  { %18292 = vmatprep.mubr.msk.f32.mxu0 %vm193_vm1, %v23494_v25  ;;  %v6599_v25 = vld [vmem:[%s28298_s0 + $0xd8] sm:$0xff] }
 0x4fc   :  { %18293 = vmatmul.mubr.msk.f32.gmra.mrb[76].mxu0 %vm193_vm1, %v23505_v28  ;;  %v6600_v28 = vld [vmem:[%s28298_s0 + $0xe0] sm:$0xff] }
 0x4fd   :  { %18295 = vmatprep.mubr.msk.f32.mxu0 %vm193_vm1, %v23514_v29  ;;  %v6601_v29 = vld [vmem:[%s28298_s0 + $0xe8] sm:$0xff] }
 0x500   :  { %18296 = vmatmul.mubr.msk.f32.gmra.mrb[78].mxu0 %vm193_vm1, %v23915_v60 }
 0x501   :  { %18300 = vmatprep.mubr.msk.f32.mxu0 %vm193_vm1, %v6594_v20  ;;  %v6648_v20 = vld [vmem:[%s28298_s0 + $0x260] sm:$0xff] }
 0x504   :  { %18301 = vmatmul.mubr.msk.f32.vlgmr.msra.gmra.mrb[0].mxu0 %vm193_vm1, %v6595_v23  ;;  %v6649_v23 = vld [vmem:[%s28298_s0 + $0x268] sm:$0xff] }
 0x505   :  { %18303 = vmatprep.mubr.msk.f32.mxu0 %vm193_vm1, %v6596_v49  ;;  %v6650_v49 = vld [vmem:[%s28298_s0 + $0x270] sm:$0xff] }
 0x508   :  { %18304 = vmatmul.mubr.msk.f32.gmra.mrb[2].mxu0 %vm193_vm1, %v6597_v22  ;;  %v6651_v22 = vld [vmem:[%s28298_s0 + $0x278] sm:$0xff] }
 0x509   :  { %18306 = vmatprep.mubr.msk.f32.mxu0 %vm193_vm1, %v6598_v19  ;;  %v6652_v19 = vld [vmem:[%s28298_s0 + $0x280] sm:$0xff] }
 0x50c   :  { %18307 = vmatmul.mubr.msk.f32.gmra.mrb[4].mxu0 %vm193_vm1, %v6599_v25  ;;  %v6653_v25 = vld [vmem:[%s28298_s0 + $0x288] sm:$0xff] }
 0x50d   :  { %18309 = vmatprep.mubr.msk.f32.mxu0 %vm193_vm1, %v6600_v28  ;;  %v6668_v28 = vld [vmem:[%s28298_s0 + $0x300] sm:$0xff] }
 0x510   :  { %18310 = vmatmul.mubr.msk.f32.gmra.mrb[6].mxu0 %vm193_vm1, %v6601_v29 }
 0x511   :  { %18312 = vmatprep.mubr.msk.f32.mxu0 %vm193_vm1, %v6602_v62  ;;  %v6669_v62 = vld [vmem:[%s28298_s0 + $0x308] sm:$0xff] }
 0x514   :  { %18313 = vmatmul.mubr.msk.f32.gmra.mrb[8].mxu0 %vm193_vm1, %v6603_v2 }
 0x515   :  { %18315 = vmatprep.mubr.msk.f32.mxu0 %vm193_vm1, %v6604_v4  ;;  %v6670_v4 = vld [vmem:[%s28298_s0 + $0x310] sm:$0xff] }
 0x518   :  { %18316 = vmatmul.mubr.msk.f32.gmra.mrb[10].mxu0 %vm193_vm1, %v6605_v5  ;;  %v6671_v5 = vld [vmem:[%s28298_s0 + $0x318] sm:$0xff] }
 0x519   :  { %18318 = vmatprep.mubr.msk.f32.mxu0 %vm193_vm1, %v6606_v6 }
 0x51c   :  { %18319 = vmatmul.mubr.msk.f32.gmra.mrb[12].mxu0 %vm193_vm1, %v6607_v7 }
 0x51d   :  { %18321 = vmatprep.mubr.msk.f32.mxu0 %vm193_vm1, %v6608_v8  ;;  %v6673_v8 = vld [vmem:[%s28298_s0 + $0x328] sm:$0xff] }
 0x520   :  { %18322 = vmatmul.mubr.msk.f32.gmra.mrb[14].mxu0 %vm193_vm1, %v6609_v39 }
 0x521   :  { %18324 = vmatprep.mubr.msk.f32.mxu0 %vm193_vm1, %v6610_v9 }
 0x524   :  { %18325 = vmatmul.mubr.msk.f32.gmra.mrb[16].mxu0 %vm193_vm1, %v6611_v10 }
 0x525   :  { %18327 = vmatprep.mubr.msk.f32.mxu0 %vm193_vm1, %v6612_v37 }
 0x528   :  { %18328 = vmatmul.mubr.msk.f32.gmra.mrb[18].mxu0 %vm193_vm1, %v6613_v15 }
 0x529   :  { %18330 = vmatprep.mubr.msk.f32.mxu0 %vm193_vm1, %v6614_v1 }
 0x52c   :  { %18331 = vmatmul.mubr.msk.f32.gmra.mrb[20].mxu0 %vm193_vm1, %v6615_v24 }
 0x52d   :  { %18333 = vmatprep.mubr.msk.f32.mxu0 %vm193_vm1, %v6616_v26 }
 0x530   :  { %18334 = vmatmul.mubr.msk.f32.gmra.mrb[22].mxu0 %vm193_vm1, %v6617_v40 }
 0x531   :  { %18336 = vmatprep.mubr.msk.f32.mxu0 %vm193_vm1, %v6618_v27 }
 0x534   :  { %18337 = vmatmul.mubr.msk.f32.gmra.mrb[24].mxu0 %vm193_vm1, %v6619_v41 }
 0x535   :  { %18339 = vmatprep.mubr.msk.f32.mxu0 %vm193_vm1, %v6620_v42 }
 0x538   :  { %18340 = vmatmul.mubr.msk.f32.gmra.mrb[26].mxu0 %vm193_vm1, %v6621_v43 }
 0x539   :  { %18342 = vmatprep.mubr.msk.f32.mxu0 %vm193_vm1, %v6622_v44 }
 0x53c   :  { %18343 = vmatmul.mubr.msk.f32.gmra.mrb[28].mxu0 %vm193_vm1, %v6623_v16 }
 0x53d   :  { %18345 = vmatprep.mubr.msk.f32.mxu0 %vm193_vm1, %v6624_v45 }
 0x540   :  { %18346 = vmatmul.mubr.msk.f32.gmra.mrb[30].mxu0 %vm193_vm1, %v6625_v11 }
 0x541   :  { %18348 = vmatprep.mubr.msk.f32.mxu0 %vm193_vm1, %v6626_v31 }
 0x544   :  { %18349 = vmatmul.mubr.msk.f32.gmra.mrb[32].mxu0 %vm193_vm1, %v6627_v46 }
 0x545   :  { %18351 = vmatprep.mubr.msk.f32.mxu0 %vm193_vm1, %v6628_v12 }
 0x548   :  { %18352 = vmatmul.mubr.msk.f32.gmra.mrb[34].mxu0 %vm193_vm1, %v6629_v13 }
 0x549   :  { %18354 = vmatprep.mubr.msk.f32.mxu0 %vm193_vm1, %v6630_v14 }
 0x54c   :  { %18355 = vmatmul.mubr.msk.f32.gmra.mrb[36].mxu0 %vm193_vm1, %v6631_v47 }
 0x54d   :  { %18357 = vmatprep.mubr.msk.f32.mxu0 %vm193_vm1, %v6632_v17 }
 0x550   :  { %18358 = vmatmul.mubr.msk.f32.gmra.mrb[38].mxu0 %vm193_vm1, %v6633_v38 }
 0x551   :  { %18360 = vmatprep.mubr.msk.f32.mxu0 %vm193_vm1, %v6634_v32 }
 0x554   :  { %18361 = vmatmul.mubr.msk.f32.gmra.mrb[40].mxu0 %vm193_vm1, %v6635_v33 }
 0x555   :  { %18363 = vmatprep.mubr.msk.f32.mxu0 %vm193_vm1, %v6636_v48 }
 0x558   :  { %18364 = vmatmul.mubr.msk.f32.gmra.mrb[42].mxu0 %vm193_vm1, %v6637_v50 }
 0x559   :  { %18366 = vmatprep.mubr.msk.f32.mxu0 %vm193_vm1, %v6638_v34 }
 0x55c   :  { %18367 = vmatmul.mubr.msk.f32.gmra.mrb[44].mxu0 %vm193_vm1, %v6639_v35 }
 0x55d   :  { %18369 = vmatprep.mubr.msk.f32.mxu0 %vm193_vm1, %v6640_v51 }
 0x560   :  { %18370 = vmatmul.mubr.msk.f32.gmra.mrb[46].mxu0 %vm193_vm1, %v6641_v52 }
 0x561   :  { %18372 = vmatprep.mubr.msk.f32.mxu0 %vm193_vm1, %v6642_v53 }
 0x564   :  { %18373 = vmatmul.mubr.msk.f32.gmra.mrb[48].mxu0 %vm193_vm1, %v6643_v54 }
 0x565   :  { %18375 = vmatprep.mubr.msk.f32.mxu0 %vm193_vm1, %v6644_v30 }
 0x568   :  { %18376 = vmatmul.mubr.msk.f32.gmra.mrb[50].mxu0 %vm193_vm1, %v6645_v55 }
 0x569   :  { %18378 = vmatprep.mubr.msk.f32.mxu0 %vm193_vm1, %v6646_v56 }
 0x56c   :  { %18379 = vmatmul.mubr.msk.f32.gmra.mrb[52].mxu0 %vm193_vm1, %v6647_v57 }
 0x56d   :  { %18381 = vmatprep.mubr.msk.f32.mxu0 %vm193_vm1, %v6648_v20 }
 0x570   :  { %18382 = vmatmul.mubr.msk.f32.gmra.mrb[54].mxu0 %vm193_vm1, %v6649_v23 }
 0x571   :  { %18384 = vmatprep.mubr.msk.f32.mxu0 %vm193_vm1, %v6650_v49 }
 0x574   :  { %18385 = vmatmul.mubr.msk.f32.gmra.mrb[56].mxu0 %vm193_vm1, %v6651_v22 }
 0x575   :  { %18387 = vmatprep.mubr.msk.f32.mxu0 %vm193_vm1, %v6652_v19 }
 0x578   :  { %18388 = vmatmul.mubr.msk.f32.gmra.mrb[58].mxu0 %vm193_vm1, %v6653_v25 }
 0x579   :  { %18390 = vmatprep.mubr.msk.f32.mxu0 %vm193_vm1, %v23831_v18  ;;  %v24175_v18 = vpop.permute.xlu0 %7466 }
 0x57a   :  { %28878 = vst [vmem:[#allocation17_spill] sm:$0xff] %v24175_v18 }
 0x57c   :  { %18391 = vmatmul.mubr.msk.f32.gmra.mrb[60].mxu0 %vm193_vm1, %v23839_v58  ;;  %v6663_v58 = vld [vmem:[%s28298_s0 + $0x2d8] sm:$0xff] }
 0x57d   :  { %18393 = vmatprep.mubr.msk.f32.mxu0 %vm193_vm1, %v23848_v36  ;;  %v24182_v36 = vpop.permute.xlu1 %7476 }
 0x57e   :  { %28879 = vst [vmem:[#allocation3_spill] sm:$0xff] %v24182_v36 }
 0x580   :  { %18394 = vmatmul.mubr.msk.f32.gmra.mrb[62].mxu0 %vm193_vm1, %v23853_v59  ;;  %v6664_v59 = vld [vmem:[%s28298_s0 + $0x2e0] sm:$0xff] }
 0x581   :  { %18396 = vmatprep.mubr.msk.f32.mxu0 %vm193_vm1, %v23862_v61  ;;  %v6665_v61 = vld [vmem:[%s28298_s0 + $0x2e8] sm:$0xff] }
 0x584   :  { %18397 = vmatmul.mubr.msk.f32.gmra.mrb[64].mxu0 %vm193_vm1, %v23867_v63  ;;  %v6666_v63 = vld [vmem:[%s28298_s0 + $0x2f0] sm:$0xff] }
 0x585   :  { %18399 = vmatprep.mubr.msk.f32.mxu0 %vm193_vm1, %v23876_v0  ;;  %v24195_v0 = vpop.permute.xlu0 %7471 }
 0x586   :  { %28880 = vst [vmem:[#allocation4_spill] sm:$0xff] %v24195_v0 }
 0x588   :  { %18400 = vmatmul.mubr.msk.f32.gmra.mrb[66].mxu0 %vm193_vm1, %v23881_v3  ;;  %v24197_v3 = vpop.permute.xlu1 %7481 }
 0x589   :  { %18402 = vmatprep.mubr.msk.f32.mxu0 %vm193_vm1, %v23890_v21  ;;  %28881 = vst [vmem:[#allocation5_spill] sm:$0xff] %v24197_v3  ;;  %v6667_v21 = vld [vmem:[%s28298_s0 + $0x2f8] sm:$0xff]  ;;  %v24208_v29 = vpop.permute.xlu0 %7486 }
 0x58a   :  { %28882 = vst [vmem:[#allocation6_spill] sm:$0xff] %v24208_v29 }
 0x58c   :  { %18403 = vmatmul.mubr.msk.f32.gmra.mrb[68].mxu0 %vm193_vm1, %v6663_v58  ;;  %v24214_v2 = vpop.permute.xlu1 %7491 }
 0x58d   :  { %18405 = vmatprep.mubr.msk.f32.mxu0 %vm193_vm1, %v6664_v59  ;;  %28883 = vst [vmem:[#allocation18_spill] sm:$0xff] %v24214_v2  ;;  %v24224_v6 = vpop.permute.xlu0 %7496 }
 0x58e   :  { %28884 = vst [vmem:[#allocation11_spill] sm:$0xff] %v24224_v6 }
 0x590   :  { %18406 = vmatmul.mubr.msk.f32.gmra.mrb[70].mxu0 %vm193_vm1, %v6665_v61  ;;  %v24226_v7 = vpop.permute.xlu1 %7501 }
 0x591   :  { %18408 = vmatprep.mubr.msk.f32.mxu0 %vm193_vm1, %v6666_v63  ;;  %28885 = vst [vmem:[#allocation12_spill] sm:$0xff] %v24226_v7  ;;  %v24235_v39 = vpop.permute.xlu0 %7506 }
 0x592   :  { %28886 = vst [vmem:[#allocation13_spill] sm:$0xff] %v24235_v39 }
 0x594   :  { %18409 = vmatmul.mubr.msk.f32.gmra.mrb[72].mxu0 %vm193_vm1, %v6667_v21  ;;  %v24237_v9 = vpop.permute.xlu1 %7511 }
 0x595   :  { %18411 = vmatprep.mubr.msk.f32.mxu0 %vm193_vm1, %v6668_v28  ;;  %28887 = vst [vmem:[#allocation14_spill] sm:$0xff] %v24237_v9  ;;  %v24239_v10 = vpop.permute.xlu0 %7516 }
 0x596   :  { %28888 = vst [vmem:[#allocation15_spill] sm:$0xff] %v24239_v10 }
 0x598   :  { %18412 = vmatmul.mubr.msk.f32.gmra.mrb[74].mxu0 %vm193_vm1, %v6669_v62  ;;  %v24241_v37 = vpop.permute.xlu1 %7521 }
 0x599   :  { %18414 = vmatprep.mubr.msk.f32.mxu0 %vm193_vm1, %v6670_v4  ;;  %28889 = vst [vmem:[#allocation26_spill] sm:$0xff] %v24241_v37  ;;  %v24243_v15 = vpop.permute.xlu0 %7526 }
 0x59a   :  { %28890 = vst [vmem:[#allocation19_spill] sm:$0xff] %v24243_v15 }
 0x59c   :  { %18415 = vmatmul.mubr.msk.f32.gmra.mrb[76].mxu0 %vm193_vm1, %v6671_v5  ;;  %v24245_v1 = vpop.permute.xlu1 %7531 }
 0x59d   :  { %18417 = vmatprep.mubr.msk.f32.mxu0 %vm193_vm1, %v23915_v60  ;;  %28891 = vst [vmem:[#allocation21_spill] sm:$0xff] %v24245_v1  ;;  %v24247_v24 = vpop.permute.xlu0 %7536 }
 0x59e   :  { %28892 = vst [vmem:[#allocation23_spill] sm:$0xff] %v24247_v24 }
 0x5a0   :  { %18418 = vmatmul.mubr.msk.f32.gmra.mrb[78].mxu0 %vm193_vm1, %v6673_v8  ;;  %v24249_v60 = vpop.permute.xlu1 %7541 }
 0x5a1   :  { %28893 = vst [vmem:[#allocation24_spill] sm:$0xff] %v24249_v60  ;;  %v24251_v26 = vpop.permute.xlu0 %7546 }
 0x5a2   :  { %28894 = vst [vmem:[#allocation25_spill] sm:$0xff] %v24251_v26 }
 0x5a4   :  { %v24253_v40 = vpop.permute.xlu1 %7551 }
 0x5a5   :  { %28895 = vst [vmem:[#allocation10_spill] sm:$0xff] %v24253_v40  ;;  %v24255_v27 = vpop.permute.xlu0 %7556 }
 0x5a6   :  { %28896 = vst [vmem:[#allocation16_spill] sm:$0xff] %v24255_v27 }
 0x5a8   :  { %v24257_v41 = vpop.permute.xlu1 %7561 }
 0x5a9   :  { %28897 = vst [vmem:[#allocation7_spill] sm:$0xff] %v24257_v41  ;;  %v24259_v42 = vpop.permute.xlu0 %7566 }
 0x5aa   :  { %28898 = vst [vmem:[#allocation8_spill] sm:$0xff] %v24259_v42 }
 0x5ac   :  { %v24261_v43 = vpop.permute.xlu1 %7571 }
 0x5ad   :  { %28899 = vst [vmem:[#allocation9_spill] sm:$0xff] %v24261_v43  ;;  %v24263_v44 = vpop.permute.xlu0 %7576 }
 0x5ae   :  { %28900 = vst [vmem:[#allocation20_spill] sm:$0xff] %v24263_v44 }
 0x5b0   :  { %v24265_v16 = vpop.permute.xlu1 %7581 }
 0x5b1   :  { %28901 = vst [vmem:[#allocation22_spill] sm:$0xff] %v24265_v16  ;;  %v24267_v45 = vpop.permute.xlu0 %7586 }
 0x5b2   :  { %28902 = vst [vmem:[#allocation27_spill] sm:$0xff] %v24267_v45 }
 0x5b4   :  { %v24269_v11 = vpop.permute.xlu1 %7591 }
 0x5b5   :  { %28903 = vst [vmem:[#allocation28_spill] sm:$0xff] %v24269_v11  ;;  %v24271_v31 = vpop.permute.xlu0 %7596 }
 0x5b6   :  { %28904 = vst [vmem:[#allocation29_spill] sm:$0xff] %v24271_v31 }
 0x5b8   :  { %v24275_v12 = vpop.permute.xlu1 %7601 }
 0x5b9   :  { %28905 = vst [vmem:[#allocation30_spill] sm:$0xff] %v24275_v12  ;;  %v24291_v34 = vpop.permute.xlu0 %7606 }
 0x5ba   :  { %28906 = vst [vmem:[#allocation31_spill] sm:$0xff] %v24291_v34 }
 0x5bc   :  { %v24295_v52 = vpop.permute.xlu1 %7611 }
 0x5bd   :  { %28907 = vst [vmem:[#allocation32_spill] sm:$0xff] %v24295_v52  ;;  %v24307_v22 = vpop.permute.xlu0 %7616 }
 0x5be   :  { %28908 = vst [vmem:[#allocation33_spill] sm:$0xff] %v24307_v22 }
 0x5c0   :  { %v24312_v61 = vpop.permute.xlu1 %7621 }
 0x5c1   :  { %28909 = vst [vmem:[#allocation34_spill] sm:$0xff] %v24312_v61 }
 0x5d7   :  { %v24273_v46 = vpop.f32.mrb[0].mxu0 }
 0x5d8   :  { %v7865_v13 = vmul.f32 %v24273_v46, %v24195_v0  ;;  %v24279_v14 = vpop.f32.mrb[1].mxu0 }
 0x5d9   :  { %v7864_v47 = vmul.f32 %v24175_v18, %v24279_v14 }
 0x5da   :  { %v8030_v17 = vmul.f32 %v24273_v46, %v7865_v13 }
 0x5db   :  { %v7944_v38 = vadd.f32 %v7865_v13, %v7864_v47  ;;  %v8029_v32 = vmul.f32 %v7864_v47, %v24279_v14  ;;  %v24285_v33 = vpop.f32.mrb[2].mxu0 }
 0x5dc   :  { %v7867_v48 = vmul.f32 %v24285_v33, %v24197_v3  ;;  %v24289_v50 = vpop.f32.mrb[3].mxu0 }
 0x5dd   :  { %v8109_v35 = vadd.f32 %v8030_v17, %v8029_v32  ;;  %v7866_v51 = vmul.f32 %v24182_v36, %v24289_v50 }
 0x5de   :  { %v8032_v55 = vmul.f32 %v24285_v33, %v7867_v48 }
 0x5df   :  { %v7945_v53 = vadd.f32 %v7944_v38, %v7866_v51  ;;  %v8031_v54 = vmul.f32 %v7866_v51, %v24289_v50  ;;  %v24298_v30 = vpop.f32.mrb[4].mxu0 }
 0x5e0   :  { %v24301_v56 = vpop.f32.mrb[5].mxu0  ;;  %v7869_v23 = vmul.f32 %v24298_v30, %v24214_v2 }
 0x5e1   :  { %v7946_v57 = vadd.f32 %v7945_v53, %v7867_v48  ;;  %v8110_v20 = vadd.f32 %v8109_v35, %v8031_v54  ;;  %v7868_v49 = vmul.f32 %v24208_v29, %v24301_v56  ;;  %v24327_v48 = vpop.permute.xlu0 %7626 }
 0x5e2   :  { %v8034_v28 = vmul.f32 %v24298_v30, %v7869_v23  ;;  %28910 = vst [vmem:[#allocation35_spill] sm:$0xff] %v24327_v48 }
 0x5e3   :  { %v8111_v19 = vadd.f32 %v8110_v20, %v8032_v55  ;;  %v7947_v25 = vadd.f32 %v7946_v57, %v7868_v49  ;;  %v8033_v58 = vmul.f32 %v7868_v49, %v24301_v56  ;;  %v24310_v59 = vpop.f32.mrb[6].mxu0  ;;  %v24333_v55 = vpop.permute.xlu1 %7631 }
 0x5e4   :  { %v7871_v63 = vmul.f32 %v24310_v59, %v24226_v7  ;;  %v24316_v21 = vpop.f32.mrb[7].mxu0  ;;  %28911 = vst [vmem:[#allocation36_spill] sm:$0xff] %v24333_v55 }
 0x5e5   :  { %v7948_v62 = vadd.f32 %v7947_v25, %v7869_v23  ;;  %v8112_v4 = vadd.f32 %v8111_v19, %v8033_v58  ;;  %v7870_v5 = vmul.f32 %v24224_v6, %v24316_v21 }
 0x5e6   :  { %v8036_v38 = vmul.f32 %v24310_v59, %v7871_v63 }
 0x5e7   :  { %v8113_v8 = vadd.f32 %v8112_v4, %v8034_v28  ;;  %v7949_v13 = vadd.f32 %v7948_v62, %v7870_v5  ;;  %v8035_v47 = vmul.f32 %v7870_v5, %v24316_v21  ;;  %v24322_v17 = vpop.f32.mrb[8].mxu0  ;;  %v24345_v4 = vpop.permute.xlu0 %7636 }
 0x5e8   :  { %v24325_v32 = vpop.f32.mrb[9].mxu0  ;;  %v7873_v53 = vmul.f32 %v24322_v17, %v24237_v9  ;;  %28912 = vst [vmem:[#allocation37_spill] sm:$0xff] %v24345_v4 }
 0x5e9   :  { %v7950_v35 = vadd.f32 %v7949_v13, %v7871_v63  ;;  %v8114_v51 = vadd.f32 %v8113_v8, %v8035_v47  ;;  %v7872_v54 = vmul.f32 %v24235_v39, %v24325_v32 }
 0x5ea   :  { %v8038_v58 = vmul.f32 %v24322_v17, %v7873_v53 }
 0x5eb   :  { %v8115_v57 = vadd.f32 %v8114_v51, %v8036_v38  ;;  %v7951_v20 = vadd.f32 %v7950_v35, %v7872_v54  ;;  %v8037_v23 = vmul.f32 %v7872_v54, %v24325_v32  ;;  %v24336_v49 = vpop.f32.mrb[10].mxu0  ;;  %v24350_v38 = vpop.permute.xlu1 %7641 }
 0x5ec   :  { %v7875_v19 = vmul.f32 %v24336_v49, %v24241_v37  ;;  %v24340_v25 = vpop.f32.mrb[11].mxu0  ;;  %28913 = vst [vmem:[#allocation38_spill] sm:$0xff] %v24350_v38 }
 0x5ed   :  { %v7952_v63 = vadd.f32 %v7951_v20, %v7873_v53  ;;  %v8116_v28 = vadd.f32 %v8115_v57, %v8037_v23  ;;  %v7874_v62 = vmul.f32 %v24239_v10, %v24340_v25  ;;  %v24366_v10 = vpop.permute.xlu0 %7646 }
 0x5ee   :  { %v8040_v35 = vmul.f32 %v24336_v49, %v7875_v19  ;;  %28914 = vst [vmem:[#allocation39_spill] sm:$0xff] %v24366_v10 }
 0x5ef   :  { %v8117_v5 = vadd.f32 %v8116_v28, %v8038_v58  ;;  %v7953_v8 = vadd.f32 %v7952_v63, %v7874_v62  ;;  %v8039_v13 = vmul.f32 %v7874_v62, %v24340_v25  ;;  %v24348_v47 = vpop.f32.mrb[12].mxu0 }
 0x5f0   :  { %v24353_v51 = vpop.f32.mrb[13].mxu0  ;;  %v7877_v57 = vmul.f32 %v24348_v47, %v24245_v1 }
 0x5f1   :  { %v7954_v54 = vadd.f32 %v7953_v8, %v7875_v19  ;;  %v8118_v53 = vadd.f32 %v8117_v5, %v8039_v13  ;;  %v7876_v20 = vmul.f32 %v24243_v15, %v24353_v51 }
 0x5f2   :  { %v8042_v19 = vmul.f32 %v24348_v47, %v7877_v57 }
 0x5f3   :  { %v8119_v23 = vadd.f32 %v8118_v53, %v8040_v35  ;;  %v7955_v58 = vadd.f32 %v7954_v54, %v7876_v20  ;;  %v8041_v63 = vmul.f32 %v7876_v20, %v24353_v51  ;;  %v24360_v28 = vpop.f32.mrb[14].mxu0  ;;  %v24371_v35 = vpop.permute.xlu1 %7651 }
 0x5f4   :  { %v7879_v62 = vmul.f32 %v24360_v28, %v24249_v60  ;;  %v24364_v37 = vpop.f32.mrb[15].mxu0  ;;  %28915 = vst [vmem:[#allocation40_spill] sm:$0xff] %v24371_v35 }
 0x5f5   :  { %v7956_v5 = vadd.f32 %v7955_v58, %v7877_v57  ;;  %v8120_v8 = vadd.f32 %v8119_v23, %v8041_v63  ;;  %v7878_v13 = vmul.f32 %v24247_v24, %v24364_v37  ;;  %v24383_v58 = vpop.permute.xlu0 %7656 }
 0x5f6   :  { %v8044_v60 = vmul.f32 %v24360_v28, %v7879_v62  ;;  %28916 = vst [vmem:[#allocation41_spill] sm:$0xff] %v24383_v58 }
 0x5f7   :  { %v8121_v54 = vadd.f32 %v8120_v8, %v8042_v19  ;;  %v7957_v53 = vadd.f32 %v7956_v5, %v7878_v13  ;;  %v8043_v20 = vmul.f32 %v7878_v13, %v24364_v37  ;;  %v24374_v1 = vpop.f32.mrb[16].mxu0  ;;  %v24388_v13 = vpop.permute.xlu1 %7661 }
 0x5f8   :  { %v24377_v15 = vpop.f32.mrb[17].mxu0  ;;  %v7881_v57 = vmul.f32 %v24374_v1, %v24253_v40  ;;  %28917 = vst [vmem:[#allocation42_spill] sm:$0xff] %v24388_v13 }
 0x5f9   :  { %v7958_v9 = vadd.f32 %v7957_v53, %v7879_v62  ;;  %v8122_v39 = vadd.f32 %v8121_v54, %v8043_v20  ;;  %v7880_v23 = vmul.f32 %v24251_v26, %v24377_v15 }
 0x5fa   :  { %v8046_v53 = vmul.f32 %v24374_v1, %v7881_v57 }
 0x5fb   :  { %v8123_v63 = vadd.f32 %v8122_v39, %v8044_v60  ;;  %v7959_v19 = vadd.f32 %v7958_v9, %v7880_v23  ;;  %v8045_v5 = vmul.f32 %v7880_v23, %v24377_v15  ;;  %v24386_v8 = vpop.f32.mrb[18].mxu0 }
 0x5fc   :  { %v7883_v62 = vmul.f32 %v24386_v8, %v24257_v41  ;;  %v24392_v54 = vpop.f32.mrb[19].mxu0  ;;  %v24403_v41 = vpop.permute.xlu0 %7666 }
 0x5fd   :  { %v7960_v20 = vadd.f32 %v7959_v19, %v7881_v57  ;;  %v8124_v40 = vadd.f32 %v8123_v63, %v8045_v5  ;;  %v7882_v26 = vmul.f32 %v24255_v27, %v24392_v54  ;;  %28918 = vst [vmem:[#allocation43_spill] sm:$0xff] %v24403_v41 }
 0x5fe   :  { %v8048_v24 = vmul.f32 %v24386_v8, %v7883_v62 }
 0x5ff   :  { %v8125_v39 = vadd.f32 %v8124_v40, %v8046_v53  ;;  %v7961_v9 = vadd.f32 %v7960_v20, %v7882_v26  ;;  %v8047_v60 = vmul.f32 %v7882_v26, %v24392_v54  ;;  %v24398_v23 = vpop.f32.mrb[20].mxu0  ;;  %v24409_v40 = vpop.permute.xlu1 %7671 }
 0x600   :  { %v24401_v7 = vpop.f32.mrb[21].mxu0  ;;  %v7885_v57 = vmul.f32 %v24398_v23, %v24261_v43  ;;  %28919 = vst [vmem:[#allocation44_spill] sm:$0xff] %v24409_v40  ;;  %v24421_v43 = vpop.permute.xlu0 %7676 }
 0x601   :  { %v7962_v6 = vadd.f32 %v7961_v9, %v7883_v62  ;;  %v8126_v2 = vadd.f32 %v8125_v39, %v8047_v60  ;;  %v7884_v63 = vmul.f32 %v24259_v42, %v24401_v7  ;;  %28920 = vst [vmem:[#allocation45_spill] sm:$0xff] %v24421_v43 }
 0x602   :  { %v8050_v62 = vmul.f32 %v24398_v23, %v7885_v57 }
 0x603   :  { %v8127_v19 = vadd.f32 %v8126_v2, %v8048_v24  ;;  %v7963_v26 = vadd.f32 %v7962_v6, %v7884_v63  ;;  %v8049_v5 = vmul.f32 %v7884_v63, %v24401_v7  ;;  %v24412_v53 = vpop.f32.mrb[22].mxu0  ;;  %v24426_v42 = vpop.permute.xlu1 %7681 }
 0x604   :  { %v7887_v20 = vmul.f32 %v24412_v53, %v24265_v16  ;;  %v24416_v27 = vpop.f32.mrb[23].mxu0  ;;  %28921 = vst [vmem:[#allocation46_spill] sm:$0xff] %v24426_v42  ;;  %v24442_v36 = vpop.permute.xlu0 %7686 }
 0x605   :  { %v8128_v39 = vadd.f32 %v8127_v19, %v8049_v5  ;;  %v7886_v9 = vmul.f32 %v24263_v44, %v24416_v27  ;;  %v7964_v60 = vadd.f32 %v7963_v26, %v7885_v57  ;;  %28922 = vst [vmem:[#allocation47_spill] sm:$0xff] %v24442_v36 }
 0x606   :  { %v8052_v16 = vmul.f32 %v24412_v53, %v7887_v20 }
 0x607   :  { %v7965_v2 = vadd.f32 %v7964_v60, %v7886_v9  ;;  %v8051_v6 = vmul.f32 %v7886_v9, %v24416_v27  ;;  %v8129_v24 = vadd.f32 %v8128_v39, %v8050_v62  ;;  %v24424_v63 = vpop.f32.mrb[24].mxu0 }
 0x608   :  { %v24429_v29 = vpop.f32.mrb[25].mxu0  ;;  %v7889_v19 = vmul.f32 %v24424_v63, %v24269_v11 }
 0x609   :  { %v8130_v3 = vadd.f32 %v8129_v24, %v8051_v6  ;;  %v7888_v57 = vmul.f32 %v24267_v45, %v24429_v29  ;;  %v7966_v26 = vadd.f32 %v7965_v2, %v7887_v20  ;;  %v24447_v2 = vpop.permute.xlu1 %7691 }
 0x60a   :  { %v8054_v6 = vmul.f32 %v24424_v63, %v7889_v19  ;;  %28923 = vst [vmem:[#allocation48_spill] sm:$0xff] %v24447_v2 }
 0x60b   :  { %v7967_v5 = vadd.f32 %v7966_v26, %v7888_v57  ;;  %v8053_v9 = vmul.f32 %v7888_v57, %v24429_v29  ;;  %v8131_v62 = vadd.f32 %v8130_v3, %v8052_v16  ;;  %v24436_v39 = vpop.f32.mrb[26].mxu0 }
 0x60c   :  { %v7891_v60 = vmul.f32 %v24436_v39, %v24275_v12  ;;  %v24440_v44 = vpop.f32.mrb[27].mxu0 }
 0x60d   :  { %v8132_v24 = vadd.f32 %v8131_v62, %v8053_v9  ;;  %v7890_v11 = vmul.f32 %v24271_v31, %v24440_v44  ;;  %v7968_v20 = vadd.f32 %v7967_v5, %v7889_v19  ;;  %v24459_v5 = vpop.permute.xlu0 %7696  ;;  %v24464_v31 = vpop.permute.xlu1 %7701 }
 0x60e   :  { %v8056_v12 = vmul.f32 %v24436_v39, %v7891_v60  ;;  %28926 = vst [vmem:[#allocation51_spill] sm:$0xff] %v24459_v5  ;;  %28928 = vst [vmem:[#allocation53_spill] sm:$0xff] %v24464_v31 }
 0x60f   :  { %v7969_v57 = vadd.f32 %v7968_v20, %v7890_v11  ;;  %v8055_v3 = vmul.f32 %v7890_v11, %v24440_v44  ;;  %v8133_v16 = vadd.f32 %v8132_v24, %v8054_v6  ;;  %v24450_v26 = vpop.f32.mrb[28].mxu0 }
 0x610   :  { %28924 = vst [vmem:[#allocation49_spill] sm:$0xff] %v24450_v26  ;;  %v24453_v45 = vpop.f32.mrb[29].mxu0  ;;  %v7893_v9 = vmul.f32 %v24450_v26, %v24295_v52 }
 0x611   :  { %28925 = vst [vmem:[#allocation50_spill] sm:$0xff] %v24453_v45  ;;  %v8134_v0 = vadd.f32 %v8133_v16, %v8055_v3  ;;  %v7892_v62 = vmul.f32 %v24291_v34, %v24453_v45  ;;  %v7970_v19 = vadd.f32 %v7969_v57, %v7891_v60 }
 0x612   :  { %v8058_v52 = vmul.f32 %v24450_v26, %v7893_v9 }
 0x613   :  { %v7971_v20 = vadd.f32 %v7970_v19, %v7892_v62  ;;  %v8057_v11 = vmul.f32 %v7892_v62, %v24453_v45  ;;  %v8135_v6 = vadd.f32 %v8134_v0, %v8056_v12  ;;  %v24462_v24 = vpop.f32.mrb[30].mxu0  ;;  %v15601_v0 = vld [vmem:[%s28300_s5 + $0x80] sm:$0xff]  ;;  %v15602_v12 = vld [vmem:[%s28300_s5 + $0x88] sm:$0xff] }
 0x614   :  { %28927 = vst [vmem:[#allocation52_spill] sm:$0xff] %v24462_v24  ;;  %v7895_v3 = vmul.f32 %v24462_v24, %v24312_v61  ;;  %v24468_v16 = vpop.f32.mrb[31].mxu0  ;;  %v19788_v62 = vpack.c.bf16 %v15602_v12, %v15601_v0 }
 0x615   :  { %28929 = vst [vmem:[#allocation54_spill] sm:$0xff] %v24468_v16  ;;  %v8136_v18 = vadd.f32 %v8135_v6, %v8057_v11  ;;  %v7894_v60 = vmul.f32 %v24307_v22, %v24468_v16  ;;  %v7972_v57 = vadd.f32 %v7971_v20, %v7893_v9  ;;  %v24487_v6 = vpop.permute.xlu0 %7706 }
 0x616   :  { %v8060_v11 = vmul.f32 %v24462_v24, %v7895_v3  ;;  %20076 = vmatprep.subr.bf16.mxu1 %v19788_v62  ;;  %19789 = vmatprep.subr.bf16.mxu0 %v19788_v62  ;;  %28931 = vst [vmem:[#allocation56_spill] sm:$0xff] %v24487_v6 }
 0x617   :  { %v7973_v19 = vadd.f32 %v7972_v57, %v7894_v60  ;;  %v8059_v61 = vmul.f32 %v7894_v60, %v24468_v16  ;;  %v8137_v34 = vadd.f32 %v8136_v18, %v8058_v52  ;;  %v24480_v45 = vpop.f32.mrb[32].mxu0  ;;  %20084 = vmatpush3.bf16.msra.mxu1 %v19788_v62  ;;  %19791 = vmatpush3.bf16.msra.mxu0 %v19788_v62  ;;  %v24491_v18 = vpop.permute.xlu1 %7711 }
 0x618   :  { %28930 = vst [vmem:[#allocation55_spill] sm:$0xff] %v24480_v45  ;;  %v7897_v9 = vmul.f32 %v24480_v45, %v24333_v55  ;;  %v24485_v20 = vpop.f32.mrb[33].mxu0  ;;  %28932 = vst [vmem:[#allocation57_spill] sm:$0xff] %v24491_v18 }
 0x619   :  { %v8138_v22 = vadd.f32 %v8137_v34, %v8059_v61  ;;  %v7896_v57 = vmul.f32 %v24327_v48, %v24485_v20  ;;  %v7974_v0 = vadd.f32 %v7973_v19, %v7895_v3  ;;  %v24503_v62 = vpop.permute.xlu0 %7716 }
 0x61a   :  { %v8062_v24 = vmul.f32 %v24480_v45, %v7897_v9  ;;  %28934 = vst [vmem:[#allocation59_spill] sm:$0xff] %v24503_v62 }
 0x61b   :  { %v7975_v52 = vadd.f32 %v7974_v0, %v7896_v57  ;;  %v8061_v60 = vmul.f32 %v7896_v57, %v24485_v20  ;;  %v8139_v12 = vadd.f32 %v8138_v22, %v8060_v11  ;;  %v24494_v55 = vpop.f32.mrb[34].mxu0  ;;  %v24508_v0 = vpop.permute.xlu1 %7721 }
 0x61c   :  { %v24497_v16 = vpop.f32.mrb[35].mxu0  ;;  %v7899_v34 = vmul.f32 %v24494_v55, %v24350_v38  ;;  %28936 = vst [vmem:[#allocation61_spill] sm:$0xff] %v24508_v0 }
 0x61d   :  { %28933 = vst [vmem:[#allocation58_spill] sm:$0xff] %v24497_v16  ;;  %v8140_v26 = vadd.f32 %v8139_v12, %v8061_v60  ;;  %v7898_v61 = vmul.f32 %v24345_v4, %v24497_v16  ;;  %v7976_v3 = vadd.f32 %v7975_v52, %v7897_v9 }
 0x61e   :  { %v8064_v38 = vmul.f32 %v24494_v55, %v7899_v34 }
 0x61f   :  { %v7977_v19 = vadd.f32 %v7976_v3, %v7898_v61  ;;  %v8063_v57 = vmul.f32 %v7898_v61, %v24497_v16  ;;  %v8141_v22 = vadd.f32 %v8140_v26, %v8062_v24  ;;  %v24506_v11 = vpop.f32.mrb[36].mxu0 }
 0x620   :  { %28935 = vst [vmem:[#allocation60_spill] sm:$0xff] %v24506_v11  ;;  %v7901_v60 = vmul.f32 %v24506_v11, %v24371_v35  ;;  %v24512_v12 = vpop.f32.mrb[37].mxu0  ;;  %v24523_v35 = vpop.permute.xlu0 %7726 }
 0x621   :  { %v8142_v48 = vadd.f32 %v8141_v22, %v8063_v57  ;;  %v7900_v9 = vmul.f32 %v24366_v10, %v24512_v12  ;;  %v7978_v52 = vadd.f32 %v7977_v19, %v7899_v34  ;;  %28939 = vst [vmem:[#allocation64_spill] sm:$0xff] %v24523_v35  ;;  %v24529_v19 = vpop.permute.xlu1 %7731 }
 0x622   :  { %v8066_v4 = vmul.f32 %v24506_v11, %v7901_v60  ;;  %28940 = vst [vmem:[#allocation65_spill] sm:$0xff] %v24529_v19 }
 0x623   :  { %v7979_v3 = vadd.f32 %v7978_v52, %v7900_v9  ;;  %v8065_v61 = vmul.f32 %v7900_v9, %v24512_v12  ;;  %v8143_v26 = vadd.f32 %v8142_v48, %v8064_v38  ;;  %v24518_v24 = vpop.f32.mrb[38].mxu0 }
 0x624   :  { %28937 = vst [vmem:[#allocation62_spill] sm:$0xff] %v24518_v24  ;;  %v24521_v16 = vpop.f32.mrb[39].mxu0  ;;  %v7903_v57 = vmul.f32 %v24518_v24, %v24388_v13 }
 0x625   :  { %28938 = vst [vmem:[#allocation63_spill] sm:$0xff] %v24521_v16  ;;  %v8144_v45 = vadd.f32 %v8143_v26, %v8065_v61  ;;  %v7902_v22 = vmul.f32 %v24383_v58, %v24521_v16  ;;  %v7980_v34 = vadd.f32 %v7979_v3, %v7901_v60  ;;  %v24541_v3 = vpop.permute.xlu0 %7736  ;;  %v24546_v58 = vpop.permute.xlu1 %7741 }
 0x626   :  { %v8068_v61 = vmul.f32 %v24518_v24, %v7903_v57  ;;  %28942 = vst [vmem:[#allocation67_spill] sm:$0xff] %v24541_v3  ;;  %28943 = vst [vmem:[#allocation68_spill] sm:$0xff] %v24546_v58 }
 0x627   :  { %v7981_v9 = vadd.f32 %v7980_v34, %v7902_v22  ;;  %v8067_v48 = vmul.f32 %v7902_v22, %v24521_v16  ;;  %v8145_v38 = vadd.f32 %v8144_v45, %v8066_v4  ;;  %v24532_v52 = vpop.f32.mrb[40].mxu0 }
 0x628   :  { %28941 = vst [vmem:[#allocation66_spill] sm:$0xff] %v24532_v52  ;;  %v7905_v10 = vmul.f32 %v24532_v52, %v24409_v40  ;;  %v24536_v11 = vpop.f32.mrb[41].mxu0 }
 0x629   :  { %v8146_v26 = vadd.f32 %v8145_v38, %v8067_v48  ;;  %v7904_v13 = vmul.f32 %v24403_v41, %v24536_v11  ;;  %v7982_v60 = vadd.f32 %v7981_v9, %v7903_v57 }
 0x62a   :  { %v8070_v40 = vmul.f32 %v24532_v52, %v7905_v10  ;;  %v24562_v52 = vpop.permute.xlu0 %7746 }
 0x62b   :  { %v7983_v34 = vadd.f32 %v7982_v60, %v7904_v13  ;;  %v8069_v22 = vmul.f32 %v7904_v13, %v24536_v11  ;;  %v8147_v45 = vadd.f32 %v8146_v26, %v8068_v61  ;;  %v24544_v4 = vpop.f32.mrb[42].mxu0  ;;  %28946 = vst [vmem:[#allocation71_spill] sm:$0xff] %v24562_v52 }
 0x62c   :  { %v24549_v16 = vpop.f32.mrb[43].mxu0  ;;  %v7907_v48 = vmul.f32 %v24544_v4, %v24426_v42 }
 0x62d   :  { %28944 = vst [vmem:[#allocation69_spill] sm:$0xff] %v24549_v16  ;;  %v8148_v24 = vadd.f32 %v8147_v45, %v8069_v22  ;;  %v7906_v57 = vmul.f32 %v24421_v43, %v24549_v16  ;;  %v7984_v9 = vadd.f32 %v7983_v34, %v7905_v10  ;;  %v24567_v34 = vpop.permute.xlu1 %7751 }
 0x62e   :  { %v8072_v22 = vmul.f32 %v24544_v4, %v7907_v48  ;;  %28947 = vst [vmem:[#allocation72_spill] sm:$0xff] %v24567_v34 }
 0x62f   :  { %v7985_v38 = vadd.f32 %v7984_v9, %v7906_v57  ;;  %v8071_v13 = vmul.f32 %v7906_v57, %v24549_v16  ;;  %v8149_v61 = vadd.f32 %v8148_v24, %v8070_v40  ;;  %v24556_v26 = vpop.f32.mrb[44].mxu0 }
 0x630   :  { %28945 = vst [vmem:[#allocation70_spill] sm:$0xff] %v24556_v26  ;;  %v7909_v60 = vmul.f32 %v24556_v26, %v24447_v2  ;;  %v24560_v41 = vpop.f32.mrb[45].mxu0 }
 0x631   :  { %v8150_v45 = vadd.f32 %v8149_v61, %v8071_v13  ;;  %v7908_v42 = vmul.f32 %v24442_v36, %v24560_v41  ;;  %v7986_v10 = vadd.f32 %v7985_v38, %v7907_v48  ;;  %v24579_v38 = vpop.permute.xlu0 %7756  ;;  %v24584_v36 = vpop.permute.xlu1 %7761 }
 0x632   :  { %v8074_v2 = vmul.f32 %v24556_v26, %v7909_v60  ;;  %28950 = vst [vmem:[#allocation75_spill] sm:$0xff] %v24579_v38  ;;  %28952 = vst [vmem:[#allocation77_spill] sm:$0xff] %v24584_v36 }
 0x633   :  { %v7987_v57 = vadd.f32 %v7986_v10, %v7908_v42  ;;  %v8073_v40 = vmul.f32 %v7908_v42, %v24560_v41  ;;  %v8151_v24 = vadd.f32 %v8150_v45, %v8072_v22  ;;  %v24570_v9 = vpop.f32.mrb[46].mxu0 }
 0x634   :  { %28948 = vst [vmem:[#allocation73_spill] sm:$0xff] %v24570_v9  ;;  %v24573_v43 = vpop.f32.mrb[47].mxu0  ;;  %v7911_v13 = vmul.f32 %v24570_v9, %v24464_v31 }
 0x635   :  { %28949 = vst [vmem:[#allocation74_spill] sm:$0xff] %v24573_v43  ;;  %v8152_v16 = vadd.f32 %v8151_v24, %v8073_v40  ;;  %v7910_v61 = vmul.f32 %v24459_v5, %v24573_v43  ;;  %v7988_v48 = vadd.f32 %v7987_v57, %v7909_v60 }
 0x636   :  { %v8076_v31 = vmul.f32 %v24570_v9, %v7911_v13 }
 0x637   :  { %v7989_v10 = vadd.f32 %v7988_v48, %v7910_v61  ;;  %v8075_v42 = vmul.f32 %v7910_v61, %v24573_v43  ;;  %v8153_v22 = vadd.f32 %v8152_v16, %v8074_v2  ;;  %v24582_v45 = vpop.f32.mrb[48].mxu0  ;;  %v15603_v2 = vld [vmem:[%s28300_s5 + $0x90] sm:$0xff]  ;;  %v15604_v16 = vld [vmem:[%s28300_s5 + $0x98] sm:$0xff] }
 0x638   :  { %28951 = vst [vmem:[#allocation76_spill] sm:$0xff] %v24582_v45  ;;  %v7913_v40 = vmul.f32 %v24582_v45, %v24491_v18  ;;  %v24588_v24 = vpop.f32.mrb[49].mxu0  ;;  %v19792_v9 = vpack.c.bf16 %v15604_v16, %v15603_v2 }
 0x639   :  { %v8154_v26 = vadd.f32 %v8153_v22, %v8075_v42  ;;  %v7912_v60 = vmul.f32 %v24487_v6, %v24588_v24  ;;  %v7990_v57 = vadd.f32 %v7989_v10, %v7911_v13  ;;  %v24607_v22 = vpop.permute.xlu0 %7766 }
 0x63a   :  { %v8078_v42 = vmul.f32 %v24582_v45, %v7913_v40  ;;  %28955 = vst [vmem:[#allocation80_spill] sm:$0xff] %v24607_v22  ;;  %20077 = vmatprep.subr.bf16.mxu1 %v19792_v9  ;;  %19793 = vmatprep.subr.bf16.mxu0 %v19792_v9 }
 0x63b   :  { %v7991_v61 = vadd.f32 %v7990_v57, %v7912_v60  ;;  %v8077_v48 = vmul.f32 %v7912_v60, %v24588_v24  ;;  %v8155_v18 = vadd.f32 %v8154_v26, %v8076_v31  ;;  %v24600_v5 = vpop.f32.mrb[50].mxu0  ;;  %v24611_v31 = vpop.permute.xlu1 %7771  ;;  %20085 = vmatpush3.bf16.msra.mxu1 %v19792_v9  ;;  %19795 = vmatpush3.bf16.msra.mxu0 %v19792_v9 }
 0x63c   :  { %28953 = vst [vmem:[#allocation78_spill] sm:$0xff] %v24600_v5  ;;  %v7915_v13 = vmul.f32 %v24600_v5, %v24508_v0  ;;  %v24605_v10 = vpop.f32.mrb[51].mxu0  ;;  %28956 = vst [vmem:[#allocation81_spill] sm:$0xff] %v24611_v31 }
 0x63d   :  { %28954 = vst [vmem:[#allocation79_spill] sm:$0xff] %v24605_v10  ;;  %v8156_v6 = vadd.f32 %v8155_v18, %v8077_v48  ;;  %v7914_v43 = vmul.f32 %v24503_v62, %v24605_v10  ;;  %v7992_v57 = vadd.f32 %v7991_v61, %v7913_v40  ;;  %v24623_v62 = vpop.permute.xlu0 %7776 }
 0x63e   :  { %v8080_v0 = vmul.f32 %v24600_v5, %v7915_v13  ;;  %28958 = vst [vmem:[#allocation83_spill] sm:$0xff] %v24623_v62 }
 0x63f   :  { %v7993_v26 = vadd.f32 %v7992_v57, %v7914_v43  ;;  %v8079_v60 = vmul.f32 %v7914_v43, %v24605_v10  ;;  %v8157_v2 = vadd.f32 %v8156_v6, %v8078_v42  ;;  %v24614_v16 = vpop.f32.mrb[52].mxu0  ;;  %v24628_v57 = vpop.permute.xlu1 %7781 }
 0x640   :  { %v24617_v45 = vpop.f32.mrb[53].mxu0  ;;  %v7917_v40 = vmul.f32 %v24614_v16, %v24529_v19  ;;  %28960 = vst [vmem:[#allocation85_spill] sm:$0xff] %v24628_v57 }
 0x641   :  { %28957 = vst [vmem:[#allocation82_spill] sm:$0xff] %v24617_v45  ;;  %v8158_v18 = vadd.f32 %v8157_v2, %v8079_v60  ;;  %v7916_v61 = vmul.f32 %v24523_v35, %v24617_v45  ;;  %v7994_v48 = vadd.f32 %v7993_v26, %v7915_v13 }
 0x642   :  { %v8082_v19 = vmul.f32 %v24614_v16, %v7917_v40 }
 0x643   :  { %v7995_v9 = vadd.f32 %v7994_v48, %v7916_v61  ;;  %v8081_v43 = vmul.f32 %v7916_v61, %v24617_v45  ;;  %v8159_v6 = vadd.f32 %v8158_v18, %v8080_v0  ;;  %v24626_v42 = vpop.f32.mrb[54].mxu0 }
 0x644   :  { %28959 = vst [vmem:[#allocation84_spill] sm:$0xff] %v24626_v42  ;;  %v7919_v60 = vmul.f32 %v24626_v42, %v24546_v58  ;;  %v24632_v2 = vpop.f32.mrb[55].mxu0  ;;  %v24643_v58 = vpop.permute.xlu0 %7786 }
 0x645   :  { %28961 = vst [vmem:[#allocation86_spill] sm:$0xff] %v24632_v2  ;;  %v8160_v5 = vadd.f32 %v8159_v6, %v8081_v43  ;;  %v7918_v13 = vmul.f32 %v24541_v3, %v24632_v2  ;;  %v7996_v26 = vadd.f32 %v7995_v9, %v7917_v40  ;;  %28964 = vst [vmem:[#allocation89_spill] sm:$0xff] %v24643_v58  ;;  %v24649_v9 = vpop.permute.xlu1 %7791 }
 0x646   :  { %v8084_v35 = vmul.f32 %v24626_v42, %v7919_v60  ;;  %28965 = vst [vmem:[#allocation90_spill] sm:$0xff] %v24649_v9 }
 0x647   :  { %v7997_v48 = vadd.f32 %v7996_v26, %v7918_v13  ;;  %v8083_v61 = vmul.f32 %v7918_v13, %v24632_v2  ;;  %v8161_v0 = vadd.f32 %v8160_v5, %v8082_v19  ;;  %v24638_v18 = vpop.f32.mrb[56].mxu0 }
 0x648   :  { %28962 = vst [vmem:[#allocation87_spill] sm:$0xff] %v24638_v18  ;;  %v24641_v45 = vpop.f32.mrb[57].mxu0  ;;  %v7921_v43 = vmul.f32 %v24638_v18, %v24567_v34 }
 0x649   :  { %28963 = vst [vmem:[#allocation88_spill] sm:$0xff] %v24641_v45  ;;  %v8162_v10 = vadd.f32 %v8161_v0, %v8083_v61  ;;  %v7920_v6 = vmul.f32 %v24562_v52, %v24641_v45  ;;  %v7998_v40 = vadd.f32 %v7997_v48, %v7919_v60  ;;  %v24661_v48 = vpop.permute.xlu0 %7796  ;;  %v24666_v52 = vpop.permute.xlu1 %7801 }
 0x64a   :  { %v8086_v61 = vmul.f32 %v24638_v18, %v7921_v43  ;;  %28968 = vst [vmem:[#allocation93_spill] sm:$0xff] %v24661_v48  ;;  %28969 = vst [vmem:[#allocation94_spill] sm:$0xff] %v24666_v52 }
 0x64b   :  { %v7999_v13 = vadd.f32 %v7998_v40, %v7920_v6  ;;  %v8085_v5 = vmul.f32 %v7920_v6, %v24641_v45  ;;  %v8163_v19 = vadd.f32 %v8162_v10, %v8084_v35  ;;  %v24652_v26 = vpop.f32.mrb[58].mxu0 }
 0x64c   :  { %28966 = vst [vmem:[#allocation91_spill] sm:$0xff] %v24652_v26  ;;  %v7923_v3 = vmul.f32 %v24652_v26, %v24584_v36  ;;  %v24656_v42 = vpop.f32.mrb[59].mxu0 }
 0x64d   :  { %28967 = vst [vmem:[#allocation92_spill] sm:$0xff] %v24656_v42  ;;  %v8164_v0 = vadd.f32 %v8163_v19, %v8085_v5  ;;  %v7922_v34 = vmul.f32 %v24579_v38, %v24656_v42  ;;  %v8000_v60 = vadd.f32 %v7999_v13, %v7921_v43  ;;  %v15605_v43 = vld [vmem:[%s28300_s5 + $0xa0] sm:$0xff] }
 0x64e   :  { %v8088_v36 = vmul.f32 %v24652_v26, %v7923_v3 }
 0x64f   :  { %v8001_v40 = vadd.f32 %v8000_v60, %v7922_v34  ;;  %v8087_v6 = vmul.f32 %v7922_v34, %v24656_v42  ;;  %v8165_v35 = vadd.f32 %v8164_v0, %v8086_v61  ;;  %v24664_v10 = vpop.f32.mrb[60].mxu0  ;;  %v15606_v34 = vld [vmem:[%s28300_s5 + $0xa8] sm:$0xff] }
 0x650   :  { %v7925_v18 = vmul.f32 %v24664_v10, %v24611_v31  ;;  %v24671_v5 = vpop.f32.mrb[61].mxu0  ;;  %v19796_v0 = vpack.c.bf16 %v15606_v34, %v15605_v43 }
 0x651   :  { %v8166_v13 = vadd.f32 %v8165_v35, %v8087_v6  ;;  %v7924_v19 = vmul.f32 %v24607_v22, %v24671_v5  ;;  %v8002_v61 = vadd.f32 %v8001_v40, %v7923_v3  ;;  %v15607_v3 = vld [vmem:[%s28300_s5 + $0xb0] sm:$0xff]  ;;  %v24695_v40 = vpop.permute.xlu0 %7806 }
 0x652   :  { %20078 = vmatprep.subr.bf16.mxu1 %v19796_v0  ;;  %19797 = vmatprep.subr.bf16.mxu0 %v19796_v0  ;;  %v8090_v42 = vmul.f32 %v24664_v10, %v7925_v18  ;;  %28972 = vst [vmem:[#allocation97_spill] sm:$0xff] %v24695_v40 }
 0x653   :  { %v8003_v60 = vadd.f32 %v8002_v61, %v7924_v19  ;;  %v8089_v38 = vmul.f32 %v7924_v19, %v24671_v5  ;;  %v8167_v31 = vadd.f32 %v8166_v13, %v8088_v36  ;;  %v24682_v26 = vpop.f32.mrb[62].mxu0  ;;  %20086 = vmatpush3.bf16.msra.mxu1 %v19796_v0  ;;  %v15608_v36 = vld [vmem:[%s28300_s5 + $0xb8] sm:$0xff]  ;;  %19799 = vmatpush3.bf16.msra.mxu0 %v19796_v0  ;;  %v24699_v13 = vpop.permute.xlu1 %7811 }
 0x654   :  { %28970 = vst [vmem:[#allocation95_spill] sm:$0xff] %v24682_v26  ;;  %v7927_v45 = vmul.f32 %v24682_v26, %v24628_v57  ;;  %v24687_v2 = vpop.f32.mrb[63].mxu0  ;;  %v19800_v34 = vpack.c.bf16 %v15608_v36, %v15607_v3  ;;  %28973 = vst [vmem:[#allocation98_spill] sm:$0xff] %v24699_v13 }
 0x655   :  { %28971 = vst [vmem:[#allocation96_spill] sm:$0xff] %v24687_v2  ;;  %v8168_v6 = vadd.f32 %v8167_v31, %v8089_v38  ;;  %v7926_v35 = vmul.f32 %v24623_v62, %v24687_v2  ;;  %v8004_v43 = vadd.f32 %v8003_v60, %v7925_v18  ;;  %v15609_v18 = vld [vmem:[%s28300_s5 + $0xc0] sm:$0xff] }
 0x656   :  { %20079 = vmatprep.subr.bf16.mxu1 %v19800_v34  ;;  %19801 = vmatprep.subr.bf16.mxu0 %v19800_v34  ;;  %v8092_v0 = vmul.f32 %v24682_v26, %v7927_v45 }
 0x657   :  { %v8005_v19 = vadd.f32 %v8004_v43, %v7926_v35  ;;  %v8091_v61 = vmul.f32 %v7926_v35, %v24687_v2  ;;  %v8169_v57 = vadd.f32 %v8168_v6, %v8090_v42  ;;  %v24702_v22 = vpop.f32.mrb[64].mxu0  ;;  %20087 = vmatpush3.bf16.msra.mxu1 %v19800_v34  ;;  %v15610_v42 = vld [vmem:[%s28300_s5 + $0xc8] sm:$0xff]  ;;  %19803 = vmatpush3.bf16.msra.mxu0 %v19800_v34  ;;  %v24717_v35 = vpop.permute.xlu0 %7816 }
 0x658   :  { %28974 = vst [vmem:[#allocation99_spill] sm:$0xff] %v24702_v22  ;;  %v7929_v38 = vmul.f32 %v24702_v22, %v24649_v9  ;;  %v24707_v31 = vpop.f32.mrb[65].mxu0  ;;  %v19804_v6 = vpack.c.bf16 %v15610_v42, %v15609_v18  ;;  %28976 = vst [vmem:[#allocation101_spill] sm:$0xff] %v24717_v35  ;;  %v24722_v2 = vpop.permute.xlu1 %7821 }
 0x659   :  { %28975 = vst [vmem:[#allocation100_spill] sm:$0xff] %v24707_v31  ;;  %v8170_v60 = vadd.f32 %v8169_v57, %v8091_v61  ;;  %v7928_v3 = vmul.f32 %v24643_v58, %v24707_v31  ;;  %v8006_v36 = vadd.f32 %v8005_v19, %v7927_v45  ;;  %28977 = vst [vmem:[#allocation102_spill] sm:$0xff] %v24722_v2  ;;  %v15611_v45 = vld [vmem:[%s28300_s5 + $0xd0] sm:$0xff]  ;;  %v15612_v19 = vld [vmem:[%s28300_s5 + $0xd8] sm:$0xff] }
 0x65a   :  { %20080 = vmatprep.subr.bf16.mxu1 %v19804_v6  ;;  %19805 = vmatprep.subr.bf16.mxu0 %v19804_v6  ;;  %v8094_v34 = vmul.f32 %v24702_v22, %v7929_v38 }
 0x65b   :  { %v8007_v43 = vadd.f32 %v8006_v36, %v7928_v3  ;;  %v8093_v9 = vmul.f32 %v7928_v3, %v24707_v31  ;;  %v8171_v62 = vadd.f32 %v8170_v60, %v8092_v0  ;;  %v24720_v26 = vpop.f32.mrb[66].mxu0  ;;  %20088 = vmatpush3.bf16.msra.mxu1 %v19804_v6  ;;  %19807 = vmatpush3.bf16.msra.mxu0 %v19804_v6 }
 0x65c   :  { %v7931_v57 = vmul.f32 %v24720_v26, %v24666_v52  ;;  %v24727_v61 = vpop.f32.mrb[67].mxu0  ;;  %v19808_v60 = vpack.c.bf16 %v15612_v19, %v15611_v45 }
 0x65d   :  { %v8172_v0 = vadd.f32 %v8171_v62, %v8093_v9  ;;  %v7930_v18 = vmul.f32 %v24661_v48, %v24727_v61  ;;  %v8008_v42 = vadd.f32 %v8007_v43, %v7929_v38  ;;  %v15613_v62 = vld [vmem:[%s28300_s5 + $0xe0] sm:$0xff]  ;;  %v15614_v9 = vld [vmem:[%s28300_s5 + $0xe8] sm:$0xff]  ;;  %v24751_v38 = vpop.permute.xlu0 %7826 }
 0x65e   :  { %20081 = vmatprep.subr.bf16.mxu1 %v19808_v60  ;;  %19809 = vmatprep.subr.bf16.mxu0 %v19808_v60  ;;  %v8096_v22 = vmul.f32 %v24720_v26, %v7931_v57  ;;  %28980 = vst [vmem:[#allocation105_spill] sm:$0xff] %v24751_v38  ;;  %v19812_v19 = vpack.c.bf16 %v15614_v9, %v15613_v62 }
 0x65f   :  { %v8009_v3 = vadd.f32 %v8008_v42, %v7930_v18  ;;  %v8095_v36 = vmul.f32 %v7930_v18, %v24727_v61  ;;  %v8173_v52 = vadd.f32 %v8172_v0, %v8094_v34  ;;  %v24738_v58 = vpop.f32.mrb[68].mxu0  ;;  %20089 = vmatpush3.bf16.msra.mxu1 %v19808_v60  ;;  %19811 = vmatpush3.bf16.msra.mxu0 %v19808_v60  ;;  %v24755_v0 = vpop.permute.xlu1 %7831 }
 0x660   :  { %28978 = vst [vmem:[#allocation103_spill] sm:$0xff] %v24738_v58  ;;  %v7933_v31 = vmul.f32 %v24738_v58, %v24699_v13  ;;  %v24743_v6 = vpop.f32.mrb[69].mxu0  ;;  %28981 = vst [vmem:[#allocation106_spill] sm:$0xff] %v24755_v0  ;;  %20082 = vmatprep.subr.bf16.mxu1 %v19812_v19  ;;  %19813 = vmatprep.subr.bf16.mxu0 %v19812_v19 }
 0x661   :  { %28979 = vst [vmem:[#allocation104_spill] sm:$0xff] %v24743_v6  ;;  %v8174_v43 = vadd.f32 %v8173_v52, %v8095_v36  ;;  %v7932_v34 = vmul.f32 %v24695_v40, %v24743_v6  ;;  %v8010_v45 = vadd.f32 %v8009_v3, %v7931_v57  ;;  %v15615_v57 = vld [vmem:[%s28300_s5 + $0xf0] sm:$0xff] }
 0x662   :  { %v8098_v60 = vmul.f32 %v24738_v58, %v7933_v31 }
 0x663   :  { %v8011_v18 = vadd.f32 %v8010_v45, %v7932_v34  ;;  %v8097_v42 = vmul.f32 %v7932_v34, %v24743_v6  ;;  %v8175_v13 = vadd.f32 %v8174_v43, %v8096_v22  ;;  %v24758_v48 = vpop.f32.mrb[70].mxu0  ;;  %20090 = vmatpush3.bf16.msra.mxu1 %v19812_v19  ;;  %v15616_v22 = vld [vmem:[%s28300_s5 + $0xf8] sm:$0xff]  ;;  %19815 = vmatpush3.bf16.msra.mxu0 %v19812_v19  ;;  %v24773_v34 = vpop.permute.xlu0 %7836 }
 0x664   :  { %28982 = vst [vmem:[#allocation107_spill] sm:$0xff] %v24758_v48  ;;  %v7935_v52 = vmul.f32 %v24758_v48, %v24722_v2  ;;  %v24763_v36 = vpop.f32.mrb[71].mxu0  ;;  %v19816_v43 = vpack.c.bf16 %v15616_v22, %v15615_v57  ;;  %28984 = vst [vmem:[#allocation109_spill] sm:$0xff] %v24773_v34  ;;  %v24778_v6 = vpop.permute.xlu1 %7841  ;;  %v28588_v57 = vmov 0.0  }
 0x665   :  { %28983 = vst [vmem:[#allocation108_spill] sm:$0xff] %v24763_v36  ;;  %v8176_v3 = vadd.f32 %v8175_v13, %v8097_v42  ;;  %v7934_v62 = vmul.f32 %v24717_v35, %v24763_v36  ;;  %v8012_v9 = vadd.f32 %v8011_v18, %v7933_v31  ;;  %28986 = vst [vmem:[#allocation111_spill] sm:$0xff] %v24778_v6  ;;  %18461 = vmatprep.mubr.f32.mxu1 %v28588_v57 }
 0x666   :  { %20083 = vmatprep.subr.bf16.mxu1 %v19816_v43  ;;  %19817 = vmatprep.subr.bf16.mxu0 %v19816_v43  ;;  %v8100_v19 = vmul.f32 %v24758_v48, %v7935_v52 }
 0x667   :  { %v8013_v45 = vadd.f32 %v8012_v9, %v7934_v62  ;;  %v8099_v2 = vmul.f32 %v7934_v62, %v24763_v36  ;;  %v8177_v40 = vadd.f32 %v8176_v3, %v8098_v60  ;;  %v24776_v58 = vpop.f32.mrb[72].mxu0  ;;  %20091 = vmatpush3.bf16.msra.mxu1 %v19816_v43  ;;  %19819 = vmatpush3.bf16.msra.mxu0 %v19816_v43 }
 0x668   :  { %28985 = vst [vmem:[#allocation110_spill] sm:$0xff] %v24776_v58  ;;  %v7937_v13 = vmul.f32 %v24776_v58, %v24755_v0  ;;  %v24783_v42 = vpop.f32.mrb[73].mxu0  ;;  %18452 = vmatprep.mubr.f32.mxu0 %v28588_v57 }
 0x669   :  { %28987 = vst [vmem:[#allocation112_spill] sm:$0xff] %v24783_v42  ;;  %v8178_v31 = vadd.f32 %v8177_v40, %v8099_v2  ;;  %v7936_v18 = vmul.f32 %v24751_v38, %v24783_v42  ;;  %v8014_v60 = vadd.f32 %v8013_v45, %v7935_v52  ;;  %v24800_v52 = vpop.permute.xlu0 %7846 }
 0x66a   :  { %18462 = vmatmul.mubr.f32.vlgmr.msra.gmra.mrb[0].mxu1 %v28588_v57  ;;  %18453 = vmatmul.mubr.f32.vlgmr.msra.gmra.mrb[80].mxu0 %v28588_v57  ;;  %28990 = vst [vmem:[#allocation115_spill] sm:$0xff] %v24800_v52  ;;  %v8102_v43 = vmul.f32 %v24776_v58, %v7937_v13 }
 0x66b   :  { %v8015_v22 = vadd.f32 %v8014_v60, %v7936_v18  ;;  %v8101_v3 = vmul.f32 %v7936_v18, %v24783_v42  ;;  %v8179_v62 = vadd.f32 %v8178_v31, %v8100_v19  ;;  %v24790_v9 = vpop.f32.mrb[74].mxu0  ;;  %18464 = vmatprep.mubr.f32.mxu1 %v28588_v57  ;;  %18455 = vmatprep.mubr.f32.mxu0 %v28588_v57  ;;  %v24805_v18 = vpop.permute.xlu1 %7851 }
 0x66c   :  { %28988 = vst [vmem:[#allocation113_spill] sm:$0xff] %v24790_v9  ;;  %v7939_v2 = vmul.f32 %v24790_v9, %v24778_v6  ;;  %v24796_v40 = vpop.f32.mrb[75].mxu0  ;;  %28991 = vst [vmem:[#allocation116_spill] sm:$0xff] %v24805_v18 }
 0x66d   :  { %28989 = vst [vmem:[#allocation114_spill] sm:$0xff] %v24796_v40  ;;  %v8180_v45 = vadd.f32 %v8179_v62, %v8101_v3  ;;  %v7938_v19 = vmul.f32 %v24773_v34, %v24796_v40  ;;  %v8016_v31 = vadd.f32 %v8015_v22, %v7937_v13  ;;  %v8728_v13 = vld [vmem:[%s28300_s5] sm:$0xff]  ;;  %v8729_v22 = vld [vmem:[%s28300_s5 + $0x8] sm:$0xff]  ;;  %v8731_v34 = vld [vmem:[%s28300_s5 + $0x18] sm:$0xff] }
 0x66e   :  { %18465 = vmatmul.mubr.f32.gmra.mrb[2].mxu1 %v28588_v57  ;;  %18456 = vmatmul.mubr.f32.gmra.mrb[82].mxu0 %v28588_v57  ;;  %v8104_v35 = vmul.f32 %v24790_v9, %v7939_v2 }
 0x66f   :  { %v8017_v60 = vadd.f32 %v8016_v31, %v7938_v19  ;;  %v8103_v6 = vmul.f32 %v7938_v19, %v24796_v40  ;;  %v8181_v0 = vadd.f32 %v8180_v45, %v8102_v43  ;;  %v24808_v38 = vpop.f32.mrb[76].mxu0  ;;  %v8730_v43 = vld [vmem:[%s28300_s5 + $0x10] sm:$0xff]  ;;  %18458 = vmatprep.mubr.f32.mxu0 %v28588_v57  ;;  %v24832_v40 = vpop.permute.xlu0 %7856 }
 0x670   :  { %28992 = vst [vmem:[#allocation117_spill] sm:$0xff] %v24808_v38  ;;  %v7941_v3 = vmul.f32 %v24808_v38, %v24805_v18  ;;  %v24815_v62 = vpop.f32.mrb[77].mxu0  ;;  %v19820_v18 = vpack.c.bf16 %v8729_v22, %v8728_v13  ;;  %v19824_v9 = vpack.c.bf16 %v8731_v34, %v8730_v43  ;;  %28994 = vst [vmem:[#allocation119_spill] sm:$0xff] %v24832_v40 }
 0x671   :  { %28993 = vst [vmem:[#allocation118_spill] sm:$0xff] %v24815_v62  ;;  %v8182_v45 = vadd.f32 %v8181_v0, %v8103_v6  ;;  %v7940_v19 = vmul.f32 %v24800_v52, %v24815_v62  ;;  %v8018_v31 = vadd.f32 %v8017_v60, %v7939_v2  ;;  %v24838_v6 = vpop.permute.xlu1 %7861 }
 0x672   :  { %19821 = vmatprep.subr.bf16.mxu1 %v19820_v18  ;;  %18459 = vmatmul.mubr.f32.gmra.mrb[84].mxu0 %v28588_v57  ;;  %28996 = vst [vmem:[#allocation121_spill] sm:$0xff] %v24838_v6  ;;  %v8106_v0 = vmul.f32 %v24808_v38, %v7941_v3 }
 0x673   :  { %v8019_v58 = vadd.f32 %v8018_v31, %v7940_v19  ;;  %v8105_v42 = vmul.f32 %v7940_v19, %v24815_v62  ;;  %v8183_v48 = vadd.f32 %v8182_v45, %v8104_v35  ;;  %v24835_v36 = vpop.f32.mrb[78].mxu0  ;;  %19823 = vmatpush3.bf16.msra.mxu1 %v19820_v18 }
 0x674   :  { %28995 = vst [vmem:[#allocation120_spill] sm:$0xff] %v24835_v36  ;;  %v7375_v2 = vpop.f32.mrb[79].mxu0  ;;  %v7943_v34 = vmul.f32 %v24835_v36, %v24838_v6  ;;  %19825 = vmatprep.subr.bf16.mxu1 %v19824_v9 }
 0x675   :  { %v8184_v60 = vadd.f32 %v8183_v48, %v8105_v42  ;;  %v7942_v13 = vmul.f32 %v24832_v40, %v7375_v2  ;;  %v8020_v22 = vadd.f32 %v8019_v58, %v7941_v3  ;;  %v8732_v48 = vld [vmem:[%s28300_s5 + $0x20] sm:$0xff]  ;;  %v8733_v42 = vld [vmem:[%s28300_s5 + $0x28] sm:$0xff] }
 0x676   :  { %v8108_v19 = vmul.f32 %v24835_v36, %v7943_v34  ;;  %v19828_v3 = vpack.c.bf16 %v8733_v42, %v8732_v48  ;;  %v8207_v48 = vlaneseq }
 0x677   :  { %v8021_v35 = vadd.f32 %v8020_v22, %v7942_v13  ;;  %v8107_v43 = vmul.f32 %v7942_v13, %v7375_v2  ;;  %v8185_v45 = vadd.f32 %v8184_v60, %v8106_v0  ;;  %19827 = vmatpush3.bf16.msra.mxu1 %v19824_v9 }
 0x678   :  { %19829 = vmatprep.subr.bf16.mxu1 %v19828_v3  ;;  %v8208_v42 = vshrl.u32 %v8207_v48, 7  ;;  %v29004_v48 = vld [vmem:[#allocation58_spill] sm:$0xff] }
 0x679   :  { %v8022_v31 = vadd.f32 %v8021_v35, %v7943_v34  ;;  %v8186_v57 = vadd.f32 %v8185_v45, %v8107_v43 }
 0x67b   :  { %v8023_v52 = vrot.slane %v8022_v31, 4  ;;  %v8187_v38 = vadd.f32 %v8186_v57, %v8108_v19  ;;  %19831 = vmatpush3.bf16.msra.mxu1 %v19828_v3 }
 0x67d   :  { %v8024_v58 = vadd.f32 %v8023_v52, %v8022_v31  ;;  %v8188_v18 = vrot.slane %v8187_v38, 4  ;;  %v8734_v52 = vld [vmem:[%s28300_s5 + $0x30] sm:$0xff] }
 0x67f   :  { %v8025_v13 = vrot.slane %v8024_v58, 2  ;;  %v8189_v0 = vadd.f32 %v8188_v18, %v8187_v38  ;;  %v8735_v38 = vld [vmem:[%s28300_s5 + $0x38] sm:$0xff]  ;;  %v8203_v18 = vld [vmem:[%s28302_s4] sm:$0x1] }
 0x680   :  { %v19832_v31 = vpack.c.bf16 %v8735_v38, %v8734_v52  ;;  %v29002_v52 = vld [vmem:[#allocation52_spill] sm:$0xff]  ;;  %v29003_v38 = vld [vmem:[#allocation55_spill] sm:$0xff] }
 0x681   :  { %v8026_v9 = vadd.f32 %v8025_v13, %v8024_v58  ;;  %v8190_v60 = vrot.slane %v8189_v0, 2 }
 0x682   :  { %19833 = vmatprep.subr.bf16.mxu1 %v19832_v31 }
 0x683   :  { %v8027_v34 = vrot.slane %v8026_v9, 1  ;;  %v8191_v22 = vadd.f32 %v8190_v60, %v8189_v0  ;;  %19835 = vmatpush3.bf16.msra.mxu1 %v19832_v31 }
 0x685   :  { %v8028_v57 = vadd.f32 %v8027_v34, %v8026_v9  ;;  %v8192_v35 = vrot.slane %v8191_v22, 1 }
 0x687   :  { %v8193_v43 = vadd.f32 %v8192_v35, %v8191_v22  ;;  %v8194_v45 = vmul.f32 0.0078125, %v8028_v57 }
 0x689   :  { %v8195_v19 = vmul.f32 0.0078125, %v8193_v43  ;;  %v8196_v6 = vmul.f32 %v8194_v45, %v8194_v45  ;;  %v28999_v43 = vld [vmem:[#allocation50_spill] sm:$0xff] }
 0x68b   :  { %v8197_v40 = vsub.f32 %v8195_v19, %v8196_v6  ;;  %v8199_v6 = vld [vmem:[%s28301_s3] sm:$0x1]  ;;  %v29001_v19 = vld [vmem:[#allocation54_spill] sm:$0xff] }
 0x68d   :  { %v8198_v36 = vmax.f32 %v8197_v40, 0.0  ;;  %v24860_v40 = vsub.s32 0, %v8208_v42 }
 0x68f   :  { %v8200_v62 = vadd.f32 1e-05, %v8198_v36  ;;  %28997 = vst [vmem:[#allocation122_spill] sm:$0xff] %v24860_v40 }
 0x691   :  { %21376 = vrsqrt.f32 %v8200_v62 }
 0x69b   :  { %v21377_v36 = vpop.eup %21376 }
 0x69c   :  { %v8202_v58 = vmul.f32 %v21377_v36, %v8199_v6 }
 0x69e   :  { %v8204_v3 = vmul.f32 %v8202_v58, %v8194_v45  ;;  %v24866_v13 = vrot.slane %v8202_v58, %v24860_v40  ;;  %v29000_v45 = vld [vmem:[#allocation49_spill] sm:$0xff]  ;;  %v29005_v58 = vld [vmem:[#allocation60_spill] sm:$0xff] }
 0x6a0   :  { %v8205_v62 = vsub.f32 %v8203_v18, %v8204_v3  ;;  %v8290_v0 = vmul.f32 %v24866_v13, %v7375_v2  ;;  %v24871_v9 = vmul.f32 %v24866_v13, %v24279_v14  ;;  %v24875_v60 = vmul.f32 %v24273_v46, %v24866_v13  ;;  %v29006_v18 = vld [vmem:[#allocation63_spill] sm:$0xff] }
 0x6a1   :  { %v24879_v34 = vmul.f32 %v24866_v13, %v24289_v50  ;;  %v24883_v22 = vmul.f32 %v24285_v33, %v24866_v13  ;;  %v24887_v57 = vmul.f32 %v24866_v13, %v24301_v56  ;;  %v24891_v14 = vmul.f32 %v24298_v30, %v24866_v13 }
 0x6a2   :  { %v24894_v2 = vrot.slane %v8205_v62, %v24860_v40  ;;  %v24898_v46 = vmul.f32 %v24866_v13, %v24316_v21  ;;  %v24902_v50 = vmul.f32 %v24310_v59, %v24866_v13  ;;  %v24906_v33 = vmul.f32 %v24866_v13, %v24325_v32  ;;  %v29007_v62 = vld [vmem:[#allocation62_spill] sm:$0xff]  ;;  %v29017_v40 = vld [vmem:[#allocation79_spill] sm:$0xff] }
 0x6a3   :  { %v24910_v56 = vmul.f32 %v24322_v17, %v24866_v13  ;;  %v24914_v30 = vmul.f32 %v24866_v13, %v24340_v25  ;;  %v24918_v21 = vmul.f32 %v24336_v49, %v24866_v13  ;;  %v24922_v59 = vmul.f32 %v24866_v13, %v24353_v51 }
 0x6a4   :  { %v24925_v35 = vadd.f32 %v24894_v2, %v8290_v0  ;;  %v24929_v32 = vmul.f32 %v24348_v47, %v24866_v13  ;;  %v24933_v17 = vmul.f32 %v24866_v13, %v24364_v37  ;;  %v24937_v25 = vmul.f32 %v24360_v28, %v24866_v13 }
 0x6a5   :  { %v24941_v49 = vmul.f32 %v24866_v13, %v24377_v15  ;;  %v24945_v51 = vmul.f32 %v24374_v1, %v24866_v13  ;;  %v24949_v47 = vmul.f32 %v24866_v13, %v24392_v54  ;;  %v24953_v37 = vmul.f32 %v24386_v8, %v24866_v13 }
 0x6a6   :  { %28998 = vst [vmem:[#allocation123_spill] sm:$0xff] %v24925_v35  ;;  %v24957_v28 = vmul.f32 %v24866_v13, %v24401_v7  ;;  %v24961_v15 = vmul.f32 %v24398_v23, %v24866_v13  ;;  %v24965_v1 = vmul.f32 %v24866_v13, %v24416_v27  ;;  %v24969_v54 = vmul.f32 %v24412_v53, %v24866_v13  ;;  %v29019_v35 = vld [vmem:[#allocation78_spill] sm:$0xff] }
 0x6a7   :  { %v24973_v8 = vmul.f32 %v24866_v13, %v24429_v29  ;;  %v24977_v7 = vmul.f32 %v24424_v63, %v24866_v13  ;;  %v24981_v23 = vmul.f32 %v24866_v13, %v24440_v44  ;;  %v24985_v27 = vmul.f32 %v24436_v39, %v24866_v13 }
 0x6a8   :  { %v24989_v53 = vmul.f32 %v24866_v13, %v28999_v43  ;;  %v24993_v29 = vmul.f32 %v29000_v45, %v24866_v13  ;;  %v24997_v63 = vmul.f32 %v24866_v13, %v29001_v19  ;;  %v25001_v44 = vmul.f32 %v29002_v52, %v24866_v13  ;;  %v29008_v43 = vld [vmem:[#allocation66_spill] sm:$0xff]  ;;  %v29009_v45 = vld [vmem:[#allocation69_spill] sm:$0xff] }
 0x6a9   :  { %v25005_v39 = vmul.f32 %v24866_v13, %v24485_v20  ;;  %v25009_v31 = vmul.f32 %v29003_v38, %v24866_v13  ;;  %v25013_v42 = vmul.f32 %v24866_v13, %v29004_v48  ;;  %v25017_v6 = vmul.f32 %v24494_v55, %v24866_v13  ;;  %v29010_v48 = vld [vmem:[#allocation70_spill] sm:$0xff] }
 0x6aa   :  { %v25021_v36 = vmul.f32 %v24866_v13, %v24512_v12  ;;  %v25025_v20 = vmul.f32 %v29005_v58, %v24866_v13  ;;  %v25029_v3 = vmul.f32 %v24866_v13, %v29006_v18  ;;  %v25033_v0 = vmul.f32 %v29007_v62, %v24866_v13  ;;  %v29011_v58 = vld [vmem:[#allocation74_spill] sm:$0xff]  ;;  %v29013_v62 = vld [vmem:[#allocation73_spill] sm:$0xff] }
 0x6ab   :  { %v25037_v55 = vmul.f32 %v24866_v13, %v24536_v11  ;;  %v25041_v12 = vmul.f32 %v29008_v43, %v24866_v13  ;;  %v25045_v19 = vmul.f32 %v24866_v13, %v29009_v45  ;;  %v25049_v52 = vmul.f32 %v24544_v4, %v24866_v13  ;;  %v29015_v45 = vld [vmem:[#allocation76_spill] sm:$0xff] }
 0x6ac   :  { %v25053_v38 = vmul.f32 %v24866_v13, %v24560_v41  ;;  %v25057_v11 = vmul.f32 %v29010_v48, %v24866_v13  ;;  %v25061_v18 = vmul.f32 %v24866_v13, %v29011_v58  ;;  %v25065_v43 = vmul.f32 %v29013_v62, %v24866_v13 }
 0x6ad   :  { %v25069_v4 = vmul.f32 %v24866_v13, %v24588_v24  ;;  %v25073_v41 = vmul.f32 %v29015_v45, %v24866_v13  ;;  %v25077_v48 = vmul.f32 %v24866_v13, %v29017_v40  ;;  %v25081_v58 = vmul.f32 %v29019_v35, %v24866_v13 }
 0x6ae   :  { %29012 = vst [vmem:[#allocation50_spill] sm:$0xff] %v25061_v18  ;;  %v29021_v18 = vld [vmem:[#allocation82_spill] sm:$0xff]  ;;  %v25089_v24 = vmul.f32 %v24614_v16, %v24866_v13 }
 0x6af   :  { %29014 = vst [vmem:[#allocation49_spill] sm:$0xff] %v25069_v4  ;;  %29016 = vst [vmem:[#allocation54_spill] sm:$0xff] %v25073_v41  ;;  %v25085_v62 = vmul.f32 %v24866_v13, %v29021_v18  ;;  %v29024_v4 = vld [vmem:[#allocation86_spill] sm:$0xff]  ;;  %v29025_v41 = vld [vmem:[#allocation84_spill] sm:$0xff] }
 0x6b0   :  { %29018 = vst [vmem:[#allocation52_spill] sm:$0xff] %v25077_v48  ;;  %29020 = vst [vmem:[#allocation55_spill] sm:$0xff] %v25081_v58  ;;  %v25093_v45 = vmul.f32 %v24866_v13, %v29024_v4  ;;  %v25097_v40 = vmul.f32 %v29025_v41, %v24866_v13  ;;  %v29026_v48 = vld [vmem:[#allocation88_spill] sm:$0xff]  ;;  %v29028_v58 = vld [vmem:[#allocation87_spill] sm:$0xff]  ;;  %v25117_v41 = vmul.f32 %v24866_v13, %v24671_v5 }
 0x6b1   :  { %29022 = vst [vmem:[#allocation58_spill] sm:$0xff] %v25085_v62  ;;  %29023 = vst [vmem:[#allocation60_spill] sm:$0xff] %v25089_v24  ;;  %v25101_v35 = vmul.f32 %v24866_v13, %v29026_v48  ;;  %v25105_v18 = vmul.f32 %v29028_v58, %v24866_v13  ;;  %v29030_v62 = vld [vmem:[#allocation92_spill] sm:$0xff]  ;;  %v29032_v24 = vld [vmem:[#allocation91_spill] sm:$0xff]  ;;  %v25121_v48 = vmul.f32 %v24664_v10, %v24866_v13 }
 0x6b2   :  { %v25109_v16 = vmul.f32 %v24866_v13, %v29030_v62  ;;  %v25113_v4 = vmul.f32 %v29032_v24, %v24866_v13  ;;  %v25141_v10 = vmul.f32 %v24866_v13, %v24727_v61 }
 0x6b3   :  { %29027 = vst [vmem:[#allocation63_spill] sm:$0xff] %v25101_v35  ;;  %29029 = vst [vmem:[#allocation62_spill] sm:$0xff] %v25105_v18  ;;  %v29034_v35 = vld [vmem:[#allocation96_spill] sm:$0xff]  ;;  %v29036_v18 = vld [vmem:[#allocation95_spill] sm:$0xff] }
 0x6b4   :  { %29031 = vst [vmem:[#allocation66_spill] sm:$0xff] %v25109_v16  ;;  %29033 = vst [vmem:[#allocation69_spill] sm:$0xff] %v25113_v4  ;;  %v25125_v58 = vmul.f32 %v24866_v13, %v29034_v35  ;;  %v25129_v62 = vmul.f32 %v29036_v18, %v24866_v13  ;;  %v29038_v16 = vld [vmem:[#allocation100_spill] sm:$0xff]  ;;  %v29040_v4 = vld [vmem:[#allocation99_spill] sm:$0xff]  ;;  %v25145_v35 = vmul.f32 %v24720_v26, %v24866_v13 }
 0x6b5   :  { %v25133_v24 = vmul.f32 %v24866_v13, %v29038_v16  ;;  %v25137_v5 = vmul.f32 %v29040_v4, %v24866_v13  ;;  %29042 = vst [vmem:[#allocation79_spill] sm:$0xff] %v25141_v10  ;;  %v29052_v10 = vld [vmem:[#allocation112_spill] sm:$0xff] }
 0x6b6   :  { %29035 = vst [vmem:[#allocation70_spill] sm:$0xff] %v25125_v58  ;;  %29037 = vst [vmem:[#allocation74_spill] sm:$0xff] %v25129_v62  ;;  %v29044_v58 = vld [vmem:[#allocation104_spill] sm:$0xff]  ;;  %v29046_v62 = vld [vmem:[#allocation103_spill] sm:$0xff]  ;;  %v25165_v26 = vmul.f32 %v24866_v13, %v29052_v10 }
 0x6b7   :  { %29039 = vst [vmem:[#allocation73_spill] sm:$0xff] %v25133_v24  ;;  %29041 = vst [vmem:[#allocation76_spill] sm:$0xff] %v25137_v5  ;;  %v25149_v18 = vmul.f32 %v24866_v13, %v29044_v58  ;;  %v25153_v16 = vmul.f32 %v29046_v62, %v24866_v13  ;;  %v29048_v24 = vld [vmem:[#allocation108_spill] sm:$0xff]  ;;  %v29050_v5 = vld [vmem:[#allocation107_spill] sm:$0xff] }
 0x6b8   :  { %29043 = vst [vmem:[#allocation78_spill] sm:$0xff] %v25145_v35  ;;  %v25157_v4 = vmul.f32 %v24866_v13, %v29048_v24  ;;  %v25161_v61 = vmul.f32 %v29050_v5, %v24866_v13  ;;  %29053 = vst [vmem:[#allocation87_spill] sm:$0xff] %v25165_v26  ;;  %v29054_v35 = vld [vmem:[#allocation110_spill] sm:$0xff]  ;;  %v29059_v26 = vld [vmem:[#allocation120_spill] sm:$0xff] }
 0x6b9   :  { %29045 = vst [vmem:[#allocation82_spill] sm:$0xff] %v25149_v18  ;;  %29047 = vst [vmem:[#allocation86_spill] sm:$0xff] %v25153_v16  ;;  %v25169_v58 = vmul.f32 %v29054_v35, %v24866_v13  ;;  %v29055_v18 = vld [vmem:[#allocation114_spill] sm:$0xff]  ;;  %v29056_v16 = vld [vmem:[#allocation113_spill] sm:$0xff]  ;;  %v25189_v35 = vmul.f32 %v29059_v26, %v24866_v13 }
 0x6ba   :  { %29049 = vst [vmem:[#allocation84_spill] sm:$0xff] %v25157_v4  ;;  %29051 = vst [vmem:[#allocation88_spill] sm:$0xff] %v25161_v61  ;;  %v25173_v62 = vmul.f32 %v24866_v13, %v29055_v18  ;;  %v25177_v24 = vmul.f32 %v29056_v16, %v24866_v13  ;;  %v29057_v4 = vld [vmem:[#allocation118_spill] sm:$0xff]  ;;  %v29058_v61 = vld [vmem:[#allocation117_spill] sm:$0xff]  ;;  %v25193_v18 = vadd.f32 %v24894_v2, %v24871_v9 }
 0x6bb   :  { %v25181_v5 = vmul.f32 %v24866_v13, %v29057_v4  ;;  %v25185_v10 = vmul.f32 %v29058_v61, %v24866_v13  ;;  %v25197_v16 = vadd.f32 %v24894_v2, %v24875_v60  ;;  %v25201_v4 = vadd.f32 %v24894_v2, %v24879_v34  ;;  %v29064_v26 = vld [vmem:[#allocation50_spill] sm:$0xff] }
 0x6bc   :  { %v25205_v61 = vadd.f32 %v24894_v2, %v24883_v22  ;;  %v25209_v13 = vadd.f32 %v24894_v2, %v24887_v57  ;;  %v25213_v9 = vadd.f32 %v24894_v2, %v24891_v14  ;;  %v25217_v60 = vadd.f32 %v24894_v2, %v24898_v46 }
 0x6bd   :  { %v25221_v34 = vadd.f32 %v24894_v2, %v24902_v50  ;;  %v25225_v22 = vadd.f32 %v24894_v2, %v24906_v33  ;;  %v25229_v57 = vadd.f32 %v24894_v2, %v24910_v56  ;;  %v25233_v14 = vadd.f32 %v24894_v2, %v24914_v30 }
 0x6be   :  { %v25237_v46 = vadd.f32 %v24894_v2, %v24918_v21  ;;  %v25241_v50 = vadd.f32 %v24894_v2, %v24922_v59  ;;  %v25245_v33 = vadd.f32 %v24894_v2, %v24929_v32  ;;  %v25249_v56 = vadd.f32 %v24894_v2, %v24933_v17 }
 0x6bf   :  { %v25253_v30 = vadd.f32 %v24894_v2, %v24937_v25  ;;  %v25257_v21 = vadd.f32 %v24894_v2, %v24941_v49  ;;  %v25261_v59 = vadd.f32 %v24894_v2, %v24945_v51  ;;  %v25265_v32 = vadd.f32 %v24894_v2, %v24949_v47 }
 0x6c0   :  { %v25269_v17 = vadd.f32 %v24894_v2, %v24953_v37  ;;  %v25273_v25 = vadd.f32 %v24894_v2, %v24957_v28  ;;  %v25277_v49 = vadd.f32 %v24894_v2, %v24961_v15  ;;  %v25281_v51 = vadd.f32 %v24894_v2, %v24965_v1 }
 0x6c1   :  { %v25285_v47 = vadd.f32 %v24894_v2, %v24969_v54  ;;  %v25289_v37 = vadd.f32 %v24894_v2, %v24973_v8  ;;  %v25293_v28 = vadd.f32 %v24894_v2, %v24977_v7  ;;  %v25297_v15 = vadd.f32 %v24894_v2, %v24981_v23 }
 0x6c2   :  { %v25301_v1 = vadd.f32 %v24894_v2, %v24985_v27  ;;  %v25305_v54 = vadd.f32 %v24894_v2, %v24989_v53  ;;  %v25309_v8 = vadd.f32 %v24894_v2, %v24993_v29  ;;  %v25313_v7 = vadd.f32 %v24894_v2, %v24997_v63 }
 0x6c3   :  { %v25317_v23 = vadd.f32 %v24894_v2, %v25001_v44  ;;  %v25321_v27 = vadd.f32 %v24894_v2, %v25005_v39  ;;  %v25325_v53 = vadd.f32 %v24894_v2, %v25009_v31  ;;  %v25329_v29 = vadd.f32 %v24894_v2, %v25013_v42 }
 0x6c4   :  { %v25333_v63 = vadd.f32 %v24894_v2, %v25017_v6  ;;  %v25337_v44 = vadd.f32 %v24894_v2, %v25021_v36  ;;  %v25341_v39 = vadd.f32 %v24894_v2, %v25025_v20  ;;  %v25345_v31 = vadd.f32 %v24894_v2, %v25029_v3 }
 0x6c5   :  { %v25349_v42 = vadd.f32 %v24894_v2, %v25033_v0  ;;  %v25353_v6 = vadd.f32 %v24894_v2, %v25037_v55  ;;  %v25357_v36 = vadd.f32 %v24894_v2, %v25041_v12  ;;  %v25361_v20 = vadd.f32 %v24894_v2, %v25045_v19 }
 0x6c6   :  { %v25365_v3 = vadd.f32 %v24894_v2, %v25049_v52  ;;  %v25369_v0 = vadd.f32 %v24894_v2, %v25053_v38  ;;  %v25373_v55 = vadd.f32 %v24894_v2, %v25057_v11  ;;  %v25377_v12 = vadd.f32 %v24894_v2, %v29064_v26 }
 0x6c7   :  { %29060 = vst [vmem:[#allocation92_spill] sm:$0xff] %v25361_v20  ;;  %v25381_v19 = vadd.f32 %v24894_v2, %v25065_v43  ;;  %v29067_v20 = vld [vmem:[#allocation49_spill] sm:$0xff] }
 0x6c8   :  { %29061 = vst [vmem:[#allocation91_spill] sm:$0xff] %v25365_v3  ;;  %29062 = vst [vmem:[#allocation96_spill] sm:$0xff] %v25369_v0  ;;  %v25385_v52 = vadd.f32 %v24894_v2, %v29067_v20  ;;  %v29068_v3 = vld [vmem:[#allocation54_spill] sm:$0xff]  ;;  %v29069_v0 = vld [vmem:[#allocation52_spill] sm:$0xff] }
 0x6c9   :  { %29063 = vst [vmem:[#allocation95_spill] sm:$0xff] %v25373_v55  ;;  %29065 = vst [vmem:[#allocation100_spill] sm:$0xff] %v25377_v12  ;;  %v25389_v38 = vadd.f32 %v24894_v2, %v29068_v3  ;;  %v25393_v11 = vadd.f32 %v24894_v2, %v29069_v0  ;;  %v29071_v55 = vld [vmem:[#allocation55_spill] sm:$0xff]  ;;  %v29073_v12 = vld [vmem:[#allocation58_spill] sm:$0xff]  ;;  %v25409_v3 = vadd.f32 %v24894_v2, %v25093_v45 }
 0x6ca   :  { %29066 = vst [vmem:[#allocation99_spill] sm:$0xff] %v25381_v19  ;;  %v25397_v26 = vadd.f32 %v24894_v2, %v29071_v55  ;;  %v25401_v43 = vadd.f32 %v24894_v2, %v29073_v12  ;;  %v29075_v19 = vld [vmem:[#allocation60_spill] sm:$0xff]  ;;  %v25413_v0 = vadd.f32 %v24894_v2, %v25097_v40  ;;  %v25433_v40 = vadd.f32 %v24894_v2, %v25117_v41 }
 0x6cb   :  { %29070 = vst [vmem:[#allocation104_spill] sm:$0xff] %v25393_v11  ;;  %v25405_v20 = vadd.f32 %v24894_v2, %v29075_v19  ;;  %v29077_v11 = vld [vmem:[#allocation63_spill] sm:$0xff] }
 0x6cc   :  { %29072 = vst [vmem:[#allocation103_spill] sm:$0xff] %v25397_v26  ;;  %29074 = vst [vmem:[#allocation108_spill] sm:$0xff] %v25401_v43  ;;  %v25417_v55 = vadd.f32 %v24894_v2, %v29077_v11  ;;  %v29079_v26 = vld [vmem:[#allocation62_spill] sm:$0xff]  ;;  %v25437_v11 = vadd.f32 %v24894_v2, %v25121_v48 }
 0x6cd   :  { %29076 = vst [vmem:[#allocation107_spill] sm:$0xff] %v25405_v20  ;;  %v25421_v12 = vadd.f32 %v24894_v2, %v29079_v26  ;;  %v29081_v43 = vld [vmem:[#allocation66_spill] sm:$0xff]  ;;  %v29083_v20 = vld [vmem:[#allocation69_spill] sm:$0xff]  ;;  %29085 = vst [vmem:[#allocation118_spill] sm:$0xff] %v25433_v40 }
 0x6ce   :  { %29078 = vst [vmem:[#allocation112_spill] sm:$0xff] %v25417_v55  ;;  %v25425_v19 = vadd.f32 %v24894_v2, %v29081_v43  ;;  %v25429_v45 = vadd.f32 %v24894_v2, %v29083_v20  ;;  %29086 = vst [vmem:[#allocation117_spill] sm:$0xff] %v25437_v11  ;;  %v29087_v55 = vld [vmem:[#allocation70_spill] sm:$0xff]  ;;  %v29095_v40 = vld [vmem:[#allocation79_spill] sm:$0xff] }
 0x6cf   :  { %29080 = vst [vmem:[#allocation110_spill] sm:$0xff] %v25421_v12  ;;  %v25441_v26 = vadd.f32 %v24894_v2, %v29087_v55  ;;  %v29089_v12 = vld [vmem:[#allocation74_spill] sm:$0xff]  ;;  %v25457_v48 = vadd.f32 %v24894_v2, %v29095_v40 }
 0x6d0   :  { %29082 = vst [vmem:[#allocation114_spill] sm:$0xff] %v25425_v19  ;;  %29084 = vst [vmem:[#allocation113_spill] sm:$0xff] %v25429_v45  ;;  %v25445_v43 = vadd.f32 %v24894_v2, %v29089_v12  ;;  %v29091_v19 = vld [vmem:[#allocation73_spill] sm:$0xff]  ;;  %v29093_v45 = vld [vmem:[#allocation76_spill] sm:$0xff] }
 0x6d1   :  { %29088 = vst [vmem:[#allocation120_spill] sm:$0xff] %v25441_v26  ;;  %v25449_v20 = vadd.f32 %v24894_v2, %v29091_v19  ;;  %v25453_v41 = vadd.f32 %v24894_v2, %v29093_v45  ;;  %29096 = vst [vmem:[#allocation52_spill] sm:$0xff] %v25457_v48  ;;  %v29097_v11 = vld [vmem:[#allocation78_spill] sm:$0xff]  ;;  %v29104_v48 = vld [vmem:[#allocation87_spill] sm:$0xff] }
 0x6d2   :  { %29090 = vst [vmem:[#allocation50_spill] sm:$0xff] %v25445_v43  ;;  %v25461_v55 = vadd.f32 %v24894_v2, %v29097_v11  ;;  %v29098_v26 = vld [vmem:[#allocation82_spill] sm:$0xff]  ;;  %v25481_v11 = vadd.f32 %v24894_v2, %v29104_v48  ;;  %v25501_v48 = vadd.f32 %v24894_v2, %v25185_v10  ;;  %v8382_v10 = vmax.f32 %v25209_v13, 0.0 }
 0x6d3   :  { %29092 = vst [vmem:[#allocation49_spill] sm:$0xff] %v25449_v20  ;;  %29094 = vst [vmem:[#allocation54_spill] sm:$0xff] %v25453_v41  ;;  %v25465_v12 = vadd.f32 %v24894_v2, %v29098_v26  ;;  %v29099_v43 = vld [vmem:[#allocation86_spill] sm:$0xff]  ;;  %v29100_v20 = vld [vmem:[#allocation84_spill] sm:$0xff]  ;;  %v25485_v26 = vadd.f32 %v24894_v2, %v25169_v58  ;;  %v25505_v58 = vadd.f32 %v24894_v2, %v25189_v35  ;;  %v8385_v13 = vmax.f32 %v25221_v34, 0.0 }
 0x6d4   :  { %v25469_v19 = vadd.f32 %v24894_v2, %v29099_v43  ;;  %v25473_v45 = vadd.f32 %v24894_v2, %v29100_v20  ;;  %v29102_v41 = vld [vmem:[#allocation88_spill] sm:$0xff]  ;;  %29105 = vst [vmem:[#allocation60_spill] sm:$0xff] %v25481_v11  ;;  %v25489_v43 = vadd.f32 %v24894_v2, %v25173_v62  ;;  %v25493_v20 = vadd.f32 %v24894_v2, %v25177_v24  ;;  %v29112_v24 = vld [vmem:[#allocation17_spill] sm:$0xff] }
 0x6d5   :  { %v25477_v40 = vadd.f32 %v24894_v2, %v29102_v41  ;;  %29106 = vst [vmem:[#allocation63_spill] sm:$0xff] %v25485_v26  ;;  %v25497_v41 = vadd.f32 %v24894_v2, %v25181_v5  ;;  %29110 = vst [vmem:[#allocation70_spill] sm:$0xff] %v25501_v48  ;;  %v8378_v26 = vmax.f32 %v25193_v18, 0.0  ;;  %v8379_v62 = vmax.f32 %v25197_v16, 0.0  ;;  %v29114_v48 = vld [vmem:[#allocation3_spill] sm:$0xff]  ;;  %v29115_v35 = vld [vmem:[#allocation5_spill] sm:$0xff] }
 0x6d6   :  { %29101 = vst [vmem:[#allocation55_spill] sm:$0xff] %v25473_v45  ;;  %29107 = vst [vmem:[#allocation62_spill] sm:$0xff] %v25489_v43  ;;  %v8380_v43 = vmax.f32 %v25201_v4, 0.0  ;;  %v8381_v5 = vmax.f32 %v25205_v61, 0.0  ;;  %v8383_v2 = vmax.f32 %v25213_v9, 0.0  ;;  %v8384_v16 = vmax.f32 %v25217_v60, 0.0 }
 0x6d7   :  { %29103 = vst [vmem:[#allocation58_spill] sm:$0xff] %v25477_v40  ;;  %29108 = vst [vmem:[#allocation66_spill] sm:$0xff] %v25493_v20  ;;  %v25511_v20 = vmul.f32 %v8378_v26, %v29112_v24  ;;  %v29116_v4 = vld [vmem:[#allocation6_spill] sm:$0xff]  ;;  %v29118_v9 = vld [vmem:[#allocation11_spill] sm:$0xff]  ;;  %v8387_v60 = vmax.f32 %v25229_v57, 0.0 }
 0x6d8   :  { %29109 = vst [vmem:[#allocation69_spill] sm:$0xff] %v25497_v41  ;;  %29111 = vst [vmem:[#allocation74_spill] sm:$0xff] %v25505_v58  ;;  %v29113_v41 = vld [vmem:[#allocation4_spill] sm:$0xff]  ;;  %v25519_v40 = vmul.f32 %v8380_v43, %v29114_v48  ;;  %v25526_v18 = vmul.f32 %v8381_v5, %v29115_v35  ;;  %v25530_v61 = vmul.f32 %v8382_v10, %v29116_v4  ;;  %v29117_v26 = vld [vmem:[#allocation18_spill] sm:$0xff]  ;;  %v8388_v4 = vmax.f32 %v25233_v14, 0.0 }
 0x6d9   :  { %v25515_v11 = vmul.f32 %v8379_v62, %v29113_v41  ;;  %18467 = vmatprep.mubr.f32.mxu1 %v25511_v20  ;;  %v25536_v43 = vmul.f32 %v8383_v2, %v29117_v26  ;;  %v8386_v62 = vmax.f32 %v25225_v22, 0.0  ;;  %v25540_v48 = vmul.f32 %v8384_v16, %v29118_v9  ;;  %v29119_v5 = vld [vmem:[#allocation12_spill] sm:$0xff]  ;;  %v29120_v34 = vld [vmem:[#allocation13_spill] sm:$0xff]  ;;  %v29121_v2 = vld [vmem:[#allocation14_spill] sm:$0xff] }
 0x6da   :  { %v25546_v10 = vmul.f32 %v8385_v13, %v29119_v5  ;;  %v8389_v22 = vmax.f32 %v25237_v46, 0.0  ;;  %v25556_v16 = vmul.f32 %v8387_v60, %v29121_v2  ;;  %v8736_v57 = vld [vmem:[%s28300_s5 + $0x40] sm:$0xff]  ;;  %v8737_v14 = vld [vmem:[%s28300_s5 + $0x48] sm:$0xff]  ;;  %v8390_v13 = vmax.f32 %v25241_v50, 0.0  ;;  %v8738_v46 = vld [vmem:[%s28300_s5 + $0x50] sm:$0xff] }
 0x6db   :  { %18468 = vmatmul.mubr.f32.gmra.mrb[4].mxu1 %v25515_v11  ;;  %v25550_v35 = vmul.f32 %v8386_v62, %v29120_v34  ;;  %v29122_v62 = vld [vmem:[#allocation15_spill] sm:$0xff]  ;;  %v8739_v60 = vld [vmem:[%s28300_s5 + $0x58] sm:$0xff]  ;;  %v19836_v2 = vpack.c.bf16 %v8737_v14, %v8736_v57  ;;  %v8391_v5 = vmax.f32 %v25245_v33, 0.0  ;;  %v8741_v57 = vld [vmem:[%s28300_s5 + $0x68] sm:$0xff]  ;;  %v8393_v33 = vmax.f32 %v25253_v30, 0.0 }
 0x6dc   :  { %18470 = vmatprep.mubr.f32.mxu1 %v25519_v40  ;;  %v25566_v34 = vmul.f32 %v8388_v4, %v29122_v62  ;;  %v29123_v9 = vld [vmem:[#allocation26_spill] sm:$0xff]  ;;  %v19840_v4 = vpack.c.bf16 %v8739_v60, %v8738_v46  ;;  %v8392_v62 = vmax.f32 %v25249_v56, 0.0  ;;  %v29124_v26 = vld [vmem:[#allocation19_spill] sm:$0xff]  ;;  %v29125_v56 = vld [vmem:[#allocation21_spill] sm:$0xff]  ;;  %v8395_v30 = vmax.f32 %v25261_v59, 0.0 }
 0x6dd   :  { %v25578_v50 = vmul.f32 %v8389_v22, %v29123_v9  ;;  %v25582_v24 = vmul.f32 %v8390_v13, %v29124_v26  ;;  %19837 = vmatprep.subr.bf16.mxu1 %v19836_v2  ;;  %v8740_v41 = vld [vmem:[%s28300_s5 + $0x60] sm:$0xff]  ;;  %v25594_v22 = vmul.f32 %v8391_v5, %v29125_v56  ;;  %v8394_v13 = vmax.f32 %v25257_v21, 0.0  ;;  %v8742_v26 = vld [vmem:[%s28300_s5 + $0x70] sm:$0xff] }
 0x6de   :  { %19839 = vmatpush3.bf16.msra.mxu1 %v19836_v2  ;;  %v19844_v14 = vpack.c.bf16 %v8741_v57, %v8740_v41  ;;  %v29126_v46 = vld [vmem:[#allocation23_spill] sm:$0xff]  ;;  %v8743_v2 = vld [vmem:[%s28300_s5 + $0x78] sm:$0xff]  ;;  %v29127_v41 = vld [vmem:[#allocation24_spill] sm:$0xff]  ;;  %v8397_v59 = vmax.f32 %v25269_v17, 0.0 }
 0x6df   :  { %18471 = vmatmul.mubr.f32.gmra.mrb[6].mxu1 %v25526_v18  ;;  %19841 = vmatprep.subr.bf16.mxu1 %v19840_v4  ;;  %v25598_v60 = vmul.f32 %v8392_v62, %v29126_v46  ;;  %v25610_v21 = vmul.f32 %v8393_v33, %v29127_v41  ;;  %v19848_v5 = vpack.c.bf16 %v8743_v2, %v8742_v26  ;;  %v8396_v62 = vmax.f32 %v25265_v32, 0.0  ;;  %v29128_v57 = vld [vmem:[#allocation25_spill] sm:$0xff]  ;;  %v15617_v56 = vld [vmem:[%s28300_s5 + $0x100] sm:$0xff]  ;;  %v29129_v26 = vld [vmem:[#allocation10_spill] sm:$0xff] }
 0x6e0   :  { %18473 = vmatprep.mubr.f32.mxu1 %v25530_v61  ;;  %v25614_v46 = vmul.f32 %v8394_v13, %v29128_v57  ;;  %v25626_v32 = vmul.f32 %v8395_v30, %v29129_v26  ;;  %v8398_v13 = vmax.f32 %v25273_v25, 0.0  ;;  %v29130_v2 = vld [vmem:[#allocation16_spill] sm:$0xff]  ;;  %v29131_v41 = vld [vmem:[#allocation7_spill] sm:$0xff]  ;;  %v8401_v25 = vmax.f32 %v25285_v47, 0.0 }
 0x6e1   :  { %v25632_v57 = vmul.f32 %v8396_v62, %v29130_v2  ;;  %v25638_v17 = vmul.f32 %v8397_v59, %v29131_v41  ;;  %v29132_v30 = vld [vmem:[#allocation8_spill] sm:$0xff]  ;;  %v29133_v62 = vld [vmem:[#allocation9_spill] sm:$0xff]  ;;  %v8404_v2 = vmax.f32 %v25297_v15, 0.0  ;;  %v29136_v47 = vld [vmem:[#allocation27_spill] sm:$0xff]  ;;  %v8407_v15 = vmax.f32 %v25309_v8, 0.0 }
 0x6e2   :  { %19843 = vmatpush3.bf16.msra.mxu1 %v19840_v4  ;;  %v15618_v4 = vld [vmem:[%s28300_s5 + $0x108] sm:$0xff]  ;;  %v29142_v8 = vld [vmem:[#allocation33_spill] sm:$0xff] }
 0x6e3   :  { %18474 = vmatmul.mubr.f32.gmra.mrb[8].mxu1 %v25536_v43  ;;  %19845 = vmatprep.subr.bf16.mxu1 %v19844_v14  ;;  %v25628_v33 = vpack.c.bf16 %v15618_v4, %v15617_v56  ;;  %v8400_v56 = vmax.f32 %v25281_v51, 0.0  ;;  %v25643_v4 = vmul.f32 %v8398_v13, %v29132_v30  ;;  %v29134_v59 = vld [vmem:[#allocation20_spill] sm:$0xff]  ;;  %v8403_v51 = vmax.f32 %v25293_v28, 0.0  ;;  %v29135_v13 = vld [vmem:[#allocation22_spill] sm:$0xff]  ;;  %v29138_v28 = vld [vmem:[#allocation29_spill] sm:$0xff] }
 0x6e4   :  { %18476 = vmatprep.mubr.f32.mxu1 %v25540_v48  ;;  %v25659_v30 = vmul.f32 %v8401_v25, %v29135_v13  ;;  %v29139_v25 = vld [vmem:[#allocation30_spill] sm:$0xff] }
 0x6e5   :  { %v25653_v41 = vmul.f32 %v8400_v56, %v29134_v59  ;;  %v8406_v59 = vmax.f32 %v25305_v54, 0.0  ;;  %v8409_v54 = vmax.f32 %v25317_v23, 0.0  ;;  %v29144_v23 = vld [vmem:[#allocation35_spill] sm:$0xff] }
 0x6e6   :  { %19847 = vmatpush3.bf16.msra.mxu1 %v19844_v14  ;;  %v8399_v14 = vmax.f32 %v25277_v49, 0.0  ;;  %v8402_v49 = vmax.f32 %v25289_v37, 0.0  ;;  %v8405_v37 = vmax.f32 %v25301_v1, 0.0  ;;  %v29140_v1 = vld [vmem:[#allocation31_spill] sm:$0xff] }
 0x6e7   :  { %18477 = vmatmul.mubr.f32.gmra.mrb[10].mxu1 %v25546_v10  ;;  %19849 = vmatprep.subr.bf16.mxu1 %v19848_v5  ;;  %v25683_v13 = vmul.f32 %v8406_v59, %v29140_v1  ;;  %v29143_v59 = vld [vmem:[#allocation34_spill] sm:$0xff]  ;;  %v8412_v1 = vmax.f32 %v25329_v29, 0.0  ;;  %v8415_v29 = vmax.f32 %v25341_v39, 0.0  ;;  %v29150_v39 = vld [vmem:[#allocation41_spill] sm:$0xff] }
 0x6e8   :  { %18479 = vmatprep.mubr.f32.mxu1 %v25550_v35  ;;  %v25663_v26 = vmul.f32 %v8402_v49, %v29136_v47  ;;  %v25679_v49 = vmul.f32 %v8405_v37, %v29139_v25  ;;  %v8408_v47 = vmax.f32 %v25313_v7, 0.0  ;;  %v8411_v7 = vmax.f32 %v25325_v53, 0.0  ;;  %v29146_v53 = vld [vmem:[#allocation37_spill] sm:$0xff] }
 0x6e9   :  { %v25699_v37 = vmul.f32 %v8409_v54, %v29143_v59 }
 0x6ea   :  { %19851 = vmatpush3.bf16.msra.mxu1 %v19848_v5  ;;  %v25649_v5 = vmul.f32 %v8399_v14, %v29133_v62  ;;  %v29137_v14 = vld [vmem:[#allocation28_spill] sm:$0xff]  ;;  %v25673_v62 = vmul.f32 %v8404_v2, %v29138_v28  ;;  %v8410_v28 = vmax.f32 %v25321_v27, 0.0  ;;  %v8413_v27 = vmax.f32 %v25333_v63, 0.0  ;;  %v29148_v63 = vld [vmem:[#allocation39_spill] sm:$0xff] }
 0x6eb   :  { %18480 = vmatmul.mubr.f32.gmra.mrb[12].mxu1 %v25556_v16  ;;  %19853 = vmatprep.subr.bf16.mxu1 %v25628_v33  ;;  %v25669_v56 = vmul.f32 %v8403_v51, %v29137_v14  ;;  %v29141_v2 = vld [vmem:[#allocation32_spill] sm:$0xff]  ;;  %v25693_v14 = vmul.f32 %v8408_v47, %v29142_v8  ;;  %v8414_v8 = vmax.f32 %v25337_v44, 0.0  ;;  %v8417_v44 = vmax.f32 %v25349_v42, 0.0  ;;  %v29154_v42 = vld [vmem:[#allocation43_spill] sm:$0xff] }
 0x6ec   :  { %18482 = vmatprep.mubr.f32.mxu1 %v25566_v34  ;;  %v25689_v51 = vmul.f32 %v8407_v15, %v29141_v2  ;;  %v25703_v25 = vmul.f32 %v8410_v28, %v29144_v23  ;;  %v29145_v47 = vld [vmem:[#allocation36_spill] sm:$0xff]  ;;  %v25713_v2 = vmul.f32 %v8412_v1, %v29146_v53  ;;  %v29147_v28 = vld [vmem:[#allocation38_spill] sm:$0xff]  ;;  %v8416_v23 = vmax.f32 %v25345_v31, 0.0 }
 0x6ed   :  { %v25709_v15 = vmul.f32 %v8411_v7, %v29145_v47  ;;  %v25719_v54 = vmul.f32 %v8413_v27, %v29147_v28  ;;  %v25723_v59 = vmul.f32 %v8414_v8, %v29148_v63  ;;  %v29149_v1 = vld [vmem:[#allocation40_spill] sm:$0xff]  ;;  %v8418_v53 = vmax.f32 %v25353_v6, 0.0  ;;  %v29151_v8 = vld [vmem:[#allocation42_spill] sm:$0xff]  ;;  %v29156_v6 = vld [vmem:[#allocation91_spill] sm:$0xff] }
 0x6ee   :  { %v25729_v7 = vmul.f32 %v8415_v29, %v29149_v1  ;;  %v25733_v47 = vmul.f32 %v8416_v23, %v29150_v39  ;;  %v8419_v31 = vmax.f32 %v25357_v36, 0.0  ;;  %v25739_v27 = vmul.f32 %v8417_v44, %v29151_v8  ;;  %v29153_v63 = vld [vmem:[#allocation92_spill] sm:$0xff]  ;;  %v29159_v36 = vld [vmem:[#allocation45_spill] sm:$0xff]  ;;  %v29162_v44 = vld [vmem:[#allocation46_spill] sm:$0xff] }
 0x6ef   :  { %18483 = vmatmul.mubr.f32.gmra.mrb[14].mxu1 %v25578_v50  ;;  %v8420_v28 = vmax.f32 %v29153_v63, 0.0  ;;  %v25743_v9 = vmul.f32 %v8418_v53, %v29154_v42  ;;  %v8421_v23 = vmax.f32 %v29156_v6, 0.0  ;;  %v29157_v29 = vld [vmem:[#allocation44_spill] sm:$0xff]  ;;  %v29161_v53 = vld [vmem:[#allocation95_spill] sm:$0xff] }
 0x6f0   :  { %18485 = vmatprep.mubr.f32.mxu1 %v25582_v24  ;;  %29152 = vst [vmem:[#allocation73_spill] sm:$0xff] %v25739_v27  ;;  %v25749_v39 = vmul.f32 %v8419_v31, %v29157_v29  ;;  %v29158_v1 = vld [vmem:[#allocation96_spill] sm:$0xff]  ;;  %v8423_v63 = vmax.f32 %v29161_v53, 0.0  ;;  %v29165_v6 = vld [vmem:[#allocation47_spill] sm:$0xff]  ;;  %v8426_v29 = vmax.f32 %v25385_v52, 0.0 }
 0x6f1   :  { %29155 = vst [vmem:[#allocation76_spill] sm:$0xff] %v25743_v9  ;;  %v8422_v58 = vmax.f32 %v29158_v1, 0.0  ;;  %v25753_v45 = vmul.f32 %v8420_v28, %v29159_v36  ;;  %v25759_v42 = vmul.f32 %v8421_v23, %v29162_v44  ;;  %v29164_v8 = vld [vmem:[#allocation100_spill] sm:$0xff]  ;;  %v29167_v28 = vld [vmem:[#allocation99_spill] sm:$0xff] }
 0x6f2   :  { %v8425_v1 = vmax.f32 %v29167_v28, 0.0  ;;  %v29168_v31 = vld [vmem:[#allocation48_spill] sm:$0xff]  ;;  %v29170_v53 = vld [vmem:[#allocation51_spill] sm:$0xff] }
 0x6f3   :  { %18486 = vmatmul.mubr.f32.gmra.mrb[16].mxu1 %v25594_v22  ;;  %29160 = vst [vmem:[#allocation79_spill] sm:$0xff] %v25753_v45  ;;  %29163 = vst [vmem:[#allocation78_spill] sm:$0xff] %v25759_v42  ;;  %v25769_v36 = vmul.f32 %v8423_v63, %v29168_v31  ;;  %v29175_v28 = vld [vmem:[#allocation56_spill] sm:$0xff]  ;;  %v29177_v52 = vld [vmem:[#allocation103_spill] sm:$0xff] }
 0x6f4   :  { %18488 = vmatprep.mubr.f32.mxu1 %v25598_v60  ;;  %v29178_v63 = vld [vmem:[#allocation57_spill] sm:$0xff]  ;;  %v29180_v31 = vld [vmem:[#allocation108_spill] sm:$0xff] }
 0x6f5   :  { %29169 = vst [vmem:[#allocation86_spill] sm:$0xff] %v25769_v36 }
 0x6f7   :  { %18489 = vmatmul.mubr.f32.gmra.mrb[18].mxu1 %v25610_v21 }
 0x6f8   :  { %18491 = vmatprep.mubr.f32.mxu1 %v25614_v46 }
 0x6fb   :  { %18492 = vmatmul.mubr.f32.gmra.mrb[20].mxu1 %v25626_v32 }
 0x6fc   :  { %18494 = vmatprep.mubr.f32.mxu1 %v25632_v57 }
 0x6ff   :  { %18495 = vmatmul.mubr.f32.gmra.mrb[22].mxu1 %v25638_v17 }
 0x700   :  { %18497 = vmatprep.mubr.f32.mxu1 %v25643_v4 }
 0x703   :  { %18498 = vmatmul.mubr.f32.gmra.mrb[24].mxu1 %v25649_v5 }
 0x704   :  { %18500 = vmatprep.mubr.f32.mxu1 %v25653_v41 }
 0x707   :  { %18501 = vmatmul.mubr.f32.gmra.mrb[26].mxu1 %v25659_v30 }
 0x708   :  { %18503 = vmatprep.mubr.f32.mxu1 %v25663_v26 }
 0x70b   :  { %18504 = vmatmul.mubr.f32.gmra.mrb[28].mxu1 %v25669_v56 }
 0x70c   :  { %18506 = vmatprep.mubr.f32.mxu1 %v25673_v62 }
 0x70f   :  { %18507 = vmatmul.mubr.f32.gmra.mrb[30].mxu1 %v25679_v49 }
 0x710   :  { %18509 = vmatprep.mubr.f32.mxu1 %v25683_v13 }
 0x713   :  { %18510 = vmatmul.mubr.f32.gmra.mrb[32].mxu1 %v25689_v51 }
 0x714   :  { %18512 = vmatprep.mubr.f32.mxu1 %v25693_v14 }
 0x717   :  { %18513 = vmatmul.mubr.f32.gmra.mrb[34].mxu1 %v25699_v37 }
 0x718   :  { %18515 = vmatprep.mubr.f32.mxu1 %v25703_v25 }
 0x71b   :  { %18516 = vmatmul.mubr.f32.gmra.mrb[36].mxu1 %v25709_v15 }
 0x71c   :  { %18518 = vmatprep.mubr.f32.mxu1 %v25713_v2 }
 0x71f   :  { %18519 = vmatmul.mubr.f32.gmra.mrb[38].mxu1 %v25719_v54 }
 0x720   :  { %18521 = vmatprep.mubr.f32.mxu1 %v25723_v59 }
 0x723   :  { %18522 = vmatmul.mubr.f32.gmra.mrb[40].mxu1 %v25729_v7 }
 0x724   :  { %18524 = vmatprep.mubr.f32.mxu1 %v25733_v47 }
 0x727   :  { %18525 = vmatmul.mubr.f32.gmra.mrb[42].mxu1 %v25739_v27  ;;  %v25763_v27 = vmul.f32 %v8422_v58, %v29165_v6  ;;  %v8427_v58 = vmax.f32 %v25389_v38, 0.0  ;;  %v29174_v6 = vld [vmem:[#allocation104_spill] sm:$0xff]  ;;  %v29181_v38 = vld [vmem:[#allocation59_spill] sm:$0xff] }
 0x728   :  { %18527 = vmatprep.mubr.f32.mxu1 %v25743_v9  ;;  %v8424_v9 = vmax.f32 %v29164_v8, 0.0  ;;  %v29172_v8 = vld [vmem:[#allocation53_spill] sm:$0xff]  ;;  %v8428_v44 = vmax.f32 %v29174_v6, 0.0 }
 0x729   :  { %29166 = vst [vmem:[#allocation82_spill] sm:$0xff] %v25763_v27  ;;  %v25779_v23 = vmul.f32 %v8425_v1, %v29172_v8  ;;  %v29184_v1 = vld [vmem:[#allocation61_spill] sm:$0xff]  ;;  %v8432_v8 = vmax.f32 %v25409_v3, 0.0  ;;  %v29193_v3 = vld [vmem:[#allocation110_spill] sm:$0xff] }
 0x72b   :  { %18528 = vmatmul.mubr.f32.gmra.mrb[44].mxu1 %v25749_v39  ;;  %29173 = vst [vmem:[#allocation88_spill] sm:$0xff] %v25779_v23 }
 0x72c   :  { %18530 = vmatprep.mubr.f32.mxu1 %v25753_v45  ;;  %v25773_v45 = vmul.f32 %v8424_v9, %v29170_v53  ;;  %v8429_v9 = vmax.f32 %v29177_v52, 0.0  ;;  %v25789_v53 = vmul.f32 %v8427_v58, %v29178_v63  ;;  %v29186_v52 = vld [vmem:[#allocation64_spill] sm:$0xff] }
 0x72e   :  { %29171 = vst [vmem:[#allocation84_spill] sm:$0xff] %v25773_v45  ;;  %29179 = vst [vmem:[#allocation92_spill] sm:$0xff] %v25789_v53 }
 0x72f   :  { %18531 = vmatmul.mubr.f32.gmra.mrb[46].mxu1 %v25759_v42 }
 0x730   :  { %18533 = vmatprep.mubr.f32.mxu1 %v25763_v27  ;;  %v25783_v27 = vmul.f32 %v8426_v29, %v29175_v28  ;;  %v29183_v29 = vld [vmem:[#allocation107_spill] sm:$0xff]  ;;  %v25799_v28 = vmul.f32 %v8429_v9, %v29184_v1  ;;  %v29194_v9 = vld [vmem:[#allocation68_spill] sm:$0xff]  ;;  %v29196_v1 = vld [vmem:[#allocation114_spill] sm:$0xff] }
 0x731   :  { %v8431_v6 = vmax.f32 %v29183_v29, 0.0  ;;  %v29191_v29 = vld [vmem:[#allocation67_spill] sm:$0xff] }
 0x732   :  { %29176 = vst [vmem:[#allocation87_spill] sm:$0xff] %v25783_v27  ;;  %29185 = vst [vmem:[#allocation96_spill] sm:$0xff] %v25799_v28 }
 0x733   :  { %18534 = vmatmul.mubr.f32.gmra.mrb[48].mxu1 %v25769_v36  ;;  %v25793_v36 = vmul.f32 %v8428_v44, %v29181_v38  ;;  %v8433_v44 = vmax.f32 %v25413_v0, 0.0  ;;  %v29190_v38 = vld [vmem:[#allocation112_spill] sm:$0xff]  ;;  %v29197_v0 = vld [vmem:[#allocation71_spill] sm:$0xff] }
 0x734   :  { %18536 = vmatprep.mubr.f32.mxu1 %v25773_v45  ;;  %v8430_v45 = vmax.f32 %v29180_v31, 0.0  ;;  %v29188_v31 = vld [vmem:[#allocation65_spill] sm:$0xff]  ;;  %v8434_v63 = vmax.f32 %v29190_v38, 0.0 }
 0x735   :  { %29182 = vst [vmem:[#allocation91_spill] sm:$0xff] %v25793_v36  ;;  %v25809_v58 = vmul.f32 %v8431_v6, %v29188_v31  ;;  %v29200_v6 = vld [vmem:[#allocation72_spill] sm:$0xff]  ;;  %v29202_v31 = vld [vmem:[#allocation118_spill] sm:$0xff] }
 0x737   :  { %18537 = vmatmul.mubr.f32.gmra.mrb[50].mxu1 %v25779_v23  ;;  %29189 = vst [vmem:[#allocation100_spill] sm:$0xff] %v25809_v58 }
 0x738   :  { %18539 = vmatprep.mubr.f32.mxu1 %v25783_v27  ;;  %v25803_v27 = vmul.f32 %v8430_v45, %v29186_v52  ;;  %v8435_v45 = vmax.f32 %v29193_v3, 0.0  ;;  %v25819_v52 = vmul.f32 %v8433_v44, %v29194_v9  ;;  %v29203_v3 = vld [vmem:[#allocation75_spill] sm:$0xff]  ;;  %v29206_v44 = vld [vmem:[#allocation77_spill] sm:$0xff]  ;;  %v29208_v9 = vld [vmem:[#allocation120_spill] sm:$0xff] }
 0x73a   :  { %29187 = vst [vmem:[#allocation95_spill] sm:$0xff] %v25803_v27  ;;  %29195 = vst [vmem:[#allocation104_spill] sm:$0xff] %v25819_v52 }
 0x73b   :  { %18540 = vmatmul.mubr.f32.gmra.mrb[52].mxu1 %v25789_v53 }
 0x73c   :  { %18542 = vmatprep.mubr.f32.mxu1 %v25793_v36  ;;  %v25813_v36 = vmul.f32 %v8432_v8, %v29191_v29  ;;  %v29199_v8 = vld [vmem:[#allocation113_spill] sm:$0xff]  ;;  %v25829_v29 = vmul.f32 %v8435_v45, %v29200_v6 }
 0x73d   :  { %v8437_v38 = vmax.f32 %v29199_v8, 0.0  ;;  %v29209_v8 = vld [vmem:[#allocation80_spill] sm:$0xff]  ;;  %v29212_v45 = vld [vmem:[#allocation81_spill] sm:$0xff] }
 0x73e   :  { %29192 = vst [vmem:[#allocation99_spill] sm:$0xff] %v25813_v36  ;;  %29201 = vst [vmem:[#allocation108_spill] sm:$0xff] %v25829_v29  ;;  %v29214_v6 = vld [vmem:[#allocation49_spill] sm:$0xff] }
 0x73f   :  { %18543 = vmatmul.mubr.f32.gmra.mrb[54].mxu1 %v25799_v28  ;;  %v25823_v28 = vmul.f32 %v8434_v63, %v29197_v0  ;;  %v29205_v63 = vld [vmem:[#allocation117_spill] sm:$0xff]  ;;  %v25839_v0 = vmul.f32 %v8437_v38, %v29206_v44  ;;  %v29220_v44 = vld [vmem:[#allocation52_spill] sm:$0xff] }
 0x740   :  { %18545 = vmatprep.mubr.f32.mxu1 %v25803_v27  ;;  %v8436_v27 = vmax.f32 %v29196_v1, 0.0  ;;  %v8439_v1 = vmax.f32 %v29205_v63, 0.0  ;;  %v29215_v63 = vld [vmem:[#allocation83_spill] sm:$0xff]  ;;  %v29218_v38 = vld [vmem:[#allocation85_spill] sm:$0xff] }
 0x741   :  { %29198 = vst [vmem:[#allocation103_spill] sm:$0xff] %v25823_v28  ;;  %29207 = vst [vmem:[#allocation112_spill] sm:$0xff] %v25839_v0 }
 0x743   :  { %18546 = vmatmul.mubr.f32.gmra.mrb[56].mxu1 %v25809_v58  ;;  %v25833_v58 = vmul.f32 %v8436_v27, %v29203_v3  ;;  %v29211_v27 = vld [vmem:[#allocation50_spill] sm:$0xff]  ;;  %v25849_v3 = vmul.f32 %v8439_v1, %v29212_v45 }
 0x744   :  { %18548 = vmatprep.mubr.f32.mxu1 %v25813_v36  ;;  %v8438_v36 = vmax.f32 %v29202_v31, 0.0  ;;  %v8441_v31 = vmax.f32 %v29211_v27, 0.0  ;;  %v29221_v27 = vld [vmem:[#allocation89_spill] sm:$0xff] }
 0x745   :  { %29204 = vst [vmem:[#allocation107_spill] sm:$0xff] %v25833_v58  ;;  %29213 = vst [vmem:[#allocation114_spill] sm:$0xff] %v25849_v3 }
 0x747   :  { %18549 = vmatmul.mubr.f32.gmra.mrb[58].mxu1 %v25819_v52  ;;  %v25843_v52 = vmul.f32 %v8438_v36, %v29209_v8  ;;  %v29217_v36 = vld [vmem:[#allocation54_spill] sm:$0xff]  ;;  %v25859_v8 = vmul.f32 %v8441_v31, %v29218_v38 }
 0x748   :  { %18551 = vmatprep.mubr.f32.mxu1 %v25823_v28  ;;  %v8440_v28 = vmax.f32 %v29208_v9, 0.0  ;;  %v8443_v9 = vmax.f32 %v29217_v36, 0.0  ;;  %v29225_v36 = vld [vmem:[#allocation93_spill] sm:$0xff] }
 0x749   :  { %29210 = vst [vmem:[#allocation110_spill] sm:$0xff] %v25843_v52  ;;  %29219 = vst [vmem:[#allocation118_spill] sm:$0xff] %v25859_v8 }
 0x74b   :  { %18552 = vmatmul.mubr.f32.gmra.mrb[60].mxu1 %v25829_v29  ;;  %v25853_v29 = vmul.f32 %v8440_v28, %v29215_v63  ;;  %v8445_v28 = vmax.f32 %v25461_v55, 0.0  ;;  %v8446_v63 = vmax.f32 %v25465_v12, 0.0  ;;  %v29231_v55 = vld [vmem:[#allocation98_spill] sm:$0xff] }
 0x74c   :  { %18554 = vmatprep.mubr.f32.mxu1 %v25833_v58  ;;  %v8442_v58 = vmax.f32 %v29214_v6, 0.0  ;;  %v29223_v6 = vld [vmem:[#allocation90_spill] sm:$0xff] }
 0x74d   :  { %29216 = vst [vmem:[#allocation113_spill] sm:$0xff] %v25853_v29  ;;  %v25869_v1 = vmul.f32 %v8443_v9, %v29223_v6  ;;  %v29233_v9 = vmov 0.0   ;;  %v29243_v6 = vld [vmem:[#allocation95_spill] sm:$0xff] }
 0x74f   :  { %18555 = vmatmul.mubr.f32.gmra.mrb[62].mxu1 %v25839_v0  ;;  %v25863_v0 = vmul.f32 %v8442_v58, %v29221_v27  ;;  %29224 = vst [vmem:[#allocation120_spill] sm:$0xff] %v25869_v1  ;;  %v8447_v58 = vmax.f32 %v25469_v19, 0.0  ;;  %v29229_v27 = vld [vmem:[#allocation97_spill] sm:$0xff]  ;;  %v15620_v19 = vld [vmem:[%s28300_s5 + $0x118] sm:$0xff] }
 0x750   :  { %18557 = vmatprep.mubr.f32.mxu1 %v25843_v52  ;;  %v8444_v52 = vmax.f32 %v29220_v44, 0.0  ;;  %v29227_v44 = vld [vmem:[#allocation94_spill] sm:$0xff]  ;;  %v25882_v38 = vmul.f32 %v8446_v63, %v29229_v27 }
 0x751   :  { %29222 = vst [vmem:[#allocation117_spill] sm:$0xff] %v25863_v0  ;;  %v25879_v31 = vmul.f32 %v8445_v28, %v29227_v44  ;;  %v25887_v12 = vmul.f32 %v8447_v58, %v29231_v55  ;;  %v15621_v28 = vld [vmem:[%s28300_s5 + $0x120] sm:$0xff]  ;;  %v15622_v58 = vld [vmem:[%s28300_s5 + $0x128] sm:$0xff] }
 0x752   :  { %v25873_v45 = vmul.f32 %v8444_v52, %v29225_v36  ;;  %29230 = vst [vmem:[#allocation54_spill] sm:$0xff] %v25882_v38  ;;  %v15619_v52 = vld [vmem:[%s28300_s5 + $0x110] sm:$0xff]  ;;  %v19860_v55 = vpack.c.bf16 %v15622_v58, %v15621_v28  ;;  %v15626_v28 = vld [vmem:[%s28300_s5 + $0x148] sm:$0xff]  ;;  %v29241_v44 = vld [vmem:[#allocation91_spill] sm:$0xff] }
 0x753   :  { %18558 = vmatmul.mubr.f32.gmra.mrb[64].mxu1 %v25849_v3  ;;  %29228 = vst [vmem:[#allocation49_spill] sm:$0xff] %v25879_v31  ;;  %29232 = vst [vmem:[#allocation52_spill] sm:$0xff] %v25887_v12  ;;  %v19856_v63 = vpack.c.bf16 %v15620_v19, %v15619_v52  ;;  %v15623_v52 = vld [vmem:[%s28300_s5 + $0x130] sm:$0xff]  ;;  %v15624_v19 = vld [vmem:[%s28300_s5 + $0x138] sm:$0xff] }
 0x754   :  { %18560 = vmatprep.mubr.f32.mxu1 %v25853_v29  ;;  %29226 = vst [vmem:[#allocation50_spill] sm:$0xff] %v25873_v45  ;;  %v19864_v27 = vpack.c.bf16 %v15624_v19, %v15623_v52  ;;  %v15628_v52 = vld [vmem:[%s28300_s5 + $0x158] sm:$0xff]  ;;  %v29242_v36 = vld [vmem:[#allocation96_spill] sm:$0xff] }
 0x757   :  { %18561 = vmatmul.mubr.f32.gmra.mrb[66].mxu1 %v25859_v8 }
 0x758   :  { %18563 = vmatprep.mubr.f32.mxu1 %v25863_v0 }
 0x75b   :  { %18564 = vmatmul.mubr.f32.gmra.mrb[68].mxu1 %v25869_v1 }
 0x75c   :  { %18566 = vmatprep.mubr.f32.mxu1 %v25873_v45 }
 0x75f   :  { %18567 = vmatmul.mubr.f32.gmra.mrb[70].mxu1 %v25879_v31 }
 0x760   :  { %18569 = vmatprep.mubr.f32.mxu1 %v25882_v38 }
 0x763   :  { %18570 = vmatmul.mubr.f32.gmra.mrb[72].mxu1 %v25887_v12  ;;  %v29244_v12 = vld [vmem:[#allocation100_spill] sm:$0xff] }
 0x764   :  { %18604 = vmatprep.mubr.f32.mxu1 %v29233_v9 }
 0x767   :  { %18605 = vmatmul.mubr.f32.vlgmr.msra.gmra.mrb[74].mxu1 %v29233_v9 }
 0x768   :  { %19855 = vmatpush3.bf16.msra.mxu1 %v25628_v33  ;;  %18607 = vmatprep.mubr.f32.mxu1 %v29233_v9  ;;  %v15625_v33 = vld [vmem:[%s28300_s5 + $0x140] sm:$0xff] }
 0x769   :  { %19857 = vmatprep.subr.bf16.mxu1 %v19856_v63  ;;  %v19868_v58 = vpack.c.bf16 %v15626_v28, %v15625_v33  ;;  %v15630_v33 = vld [vmem:[%s28300_s5 + $0x168] sm:$0xff] }
 0x76b   :  { %18608 = vmatmul.mubr.f32.gmra.mrb[76].mxu1 %v29233_v9 }
 0x76c   :  { %18610 = vmatprep.mubr.f32.mxu1 %v29233_v9  ;;  %19859 = vmatpush3.bf16.msra.mxu1 %v19856_v63  ;;  %v15627_v63 = vld [vmem:[%s28300_s5 + $0x150] sm:$0xff] }
 0x76d   :  { %19861 = vmatprep.subr.bf16.mxu1 %v19860_v55  ;;  %v19872_v19 = vpack.c.bf16 %v15628_v52, %v15627_v63  ;;  %v15632_v63 = vld [vmem:[%s28300_s5 + $0x178] sm:$0xff] }
 0x76f   :  { %18611 = vmatmul.mubr.f32.gmra.mrb[78].mxu1 %v29233_v9 }
 0x770   :  { %18613 = vmatprep.mubr.f32.mxu1 %v29233_v9  ;;  %19863 = vmatpush3.bf16.msra.mxu1 %v19860_v55  ;;  %v15629_v55 = vld [vmem:[%s28300_s5 + $0x160] sm:$0xff] }
 0x771   :  { %19865 = vmatprep.subr.bf16.mxu1 %v19864_v27  ;;  %v19876_v28 = vpack.c.bf16 %v15630_v33, %v15629_v55  ;;  %v29234_v33 = vld [vmem:[#allocation73_spill] sm:$0xff] }
 0x773   :  { %18614 = vmatmul.mubr.f32.gmra.mrb[0].mxu1 %v29233_v9 }
 0x774   :  { %18616 = vmatprep.mubr.f32.mxu1 %v29233_v9  ;;  %19867 = vmatpush3.bf16.msra.mxu1 %v19864_v27  ;;  %v15631_v27 = vld [vmem:[%s28300_s5 + $0x170] sm:$0xff] }
 0x775   :  { %19869 = vmatprep.subr.bf16.mxu1 %v19868_v58  ;;  %v19880_v52 = vpack.c.bf16 %v15632_v63, %v15631_v27  ;;  %v29236_v27 = vld [vmem:[#allocation79_spill] sm:$0xff]  ;;  %v29237_v63 = vld [vmem:[#allocation82_spill] sm:$0xff] }
 0x777   :  { %18617 = vmatmul.mubr.f32.gmra.mrb[2].mxu1 %v29233_v9 }
 0x778   :  { %18619 = vmatprep.mubr.f32.mxu1 %v29233_v9  ;;  %19871 = vmatpush3.bf16.msra.mxu1 %v19868_v58  ;;  %v15633_v58 = vld [vmem:[%s28300_s5 + $0x180] sm:$0xff] }
 0x779   :  { %19873 = vmatprep.subr.bf16.mxu1 %v19872_v19 }
 0x77b   :  { %18620 = vmatmul.mubr.f32.gmra.mrb[4].mxu1 %v25511_v20 }
 0x77c   :  { %18622 = vmatprep.mubr.f32.mxu1 %v25515_v11  ;;  %19875 = vmatpush3.bf16.msra.mxu1 %v19872_v19  ;;  %v15634_v19 = vld [vmem:[%s28300_s5 + $0x188] sm:$0xff] }
 0x77d   :  { %19877 = vmatprep.subr.bf16.mxu1 %v19876_v28  ;;  %v25958_v55 = vpack.c.bf16 %v15634_v19, %v15633_v58  ;;  %v29239_v58 = vld [vmem:[#allocation84_spill] sm:$0xff]  ;;  %v29240_v19 = vld [vmem:[#allocation87_spill] sm:$0xff] }
 0x77f   :  { %18623 = vmatmul.mubr.f32.gmra.mrb[6].mxu1 %v25519_v40 }
 0x780   :  { %18625 = vmatprep.mubr.f32.mxu1 %v25526_v18  ;;  %19879 = vmatpush3.bf16.msra.mxu1 %v19876_v28  ;;  %v29235_v28 = vld [vmem:[#allocation76_spill] sm:$0xff] }
 0x781   :  { %19881 = vmatprep.subr.bf16.mxu1 %v19880_v52 }
 0x783   :  { %18626 = vmatmul.mubr.f32.gmra.mrb[8].mxu1 %v25530_v61 }
 0x784   :  { %18628 = vmatprep.mubr.f32.mxu1 %v25536_v43  ;;  %19883 = vmatpush3.bf16.msra.mxu1 %v19880_v52  ;;  %v29238_v52 = vld [vmem:[#allocation86_spill] sm:$0xff] }
 0x785   :  { %19885 = vmatprep.subr.bf16.mxu1 %v25958_v55 }
 0x787   :  { %18629 = vmatmul.mubr.f32.gmra.mrb[10].mxu1 %v25540_v48 }
 0x788   :  { %18631 = vmatprep.mubr.f32.mxu1 %v25546_v10 }
 0x78b   :  { %18632 = vmatmul.mubr.f32.gmra.mrb[12].mxu1 %v25550_v35 }
 0x78c   :  { %18634 = vmatprep.mubr.f32.mxu1 %v25556_v16 }
 0x78f   :  { %18635 = vmatmul.mubr.f32.gmra.mrb[14].mxu1 %v25566_v34 }
 0x790   :  { %18637 = vmatprep.mubr.f32.mxu1 %v25578_v50 }
 0x793   :  { %18638 = vmatmul.mubr.f32.gmra.mrb[16].mxu1 %v25582_v24 }
 0x794   :  { %18640 = vmatprep.mubr.f32.mxu1 %v25594_v22 }
 0x797   :  { %18641 = vmatmul.mubr.f32.gmra.mrb[18].mxu1 %v25598_v60 }
 0x798   :  { %18643 = vmatprep.mubr.f32.mxu1 %v25610_v21 }
 0x79b   :  { %18644 = vmatmul.mubr.f32.gmra.mrb[20].mxu1 %v25614_v46 }
 0x79c   :  { %18646 = vmatprep.mubr.f32.mxu1 %v25626_v32 }
 0x79f   :  { %18647 = vmatmul.mubr.f32.gmra.mrb[22].mxu1 %v25632_v57 }
 0x7a0   :  { %18649 = vmatprep.mubr.f32.mxu1 %v25638_v17 }
 0x7a3   :  { %18650 = vmatmul.mubr.f32.gmra.mrb[24].mxu1 %v25643_v4 }
 0x7a4   :  { %18652 = vmatprep.mubr.f32.mxu1 %v25649_v5 }
 0x7a7   :  { %18653 = vmatmul.mubr.f32.gmra.mrb[26].mxu1 %v25653_v41 }
 0x7a8   :  { %18655 = vmatprep.mubr.f32.mxu1 %v25659_v30 }
 0x7ab   :  { %18656 = vmatmul.mubr.f32.gmra.mrb[28].mxu1 %v25663_v26 }
 0x7ac   :  { %18658 = vmatprep.mubr.f32.mxu1 %v25669_v56 }
 0x7af   :  { %18659 = vmatmul.mubr.f32.gmra.mrb[30].mxu1 %v25673_v62 }
 0x7b0   :  { %18661 = vmatprep.mubr.f32.mxu1 %v25679_v49 }
 0x7b3   :  { %18662 = vmatmul.mubr.f32.gmra.mrb[32].mxu1 %v25683_v13 }
 0x7b4   :  { %18664 = vmatprep.mubr.f32.mxu1 %v25689_v51 }
 0x7b7   :  { %18665 = vmatmul.mubr.f32.gmra.mrb[34].mxu1 %v25693_v14 }
 0x7b8   :  { %18667 = vmatprep.mubr.f32.mxu1 %v25699_v37 }
 0x7bb   :  { %18668 = vmatmul.mubr.f32.gmra.mrb[36].mxu1 %v25703_v25 }
 0x7bc   :  { %18670 = vmatprep.mubr.f32.mxu1 %v25709_v15 }
 0x7bf   :  { %18671 = vmatmul.mubr.f32.gmra.mrb[38].mxu1 %v25713_v2 }
 0x7c0   :  { %18673 = vmatprep.mubr.f32.mxu1 %v25719_v54 }
 0x7c3   :  { %18674 = vmatmul.mubr.f32.gmra.mrb[40].mxu1 %v25723_v59 }
 0x7c4   :  { %18676 = vmatprep.mubr.f32.mxu1 %v25729_v7 }
 0x7c7   :  { %18677 = vmatmul.mubr.f32.gmra.mrb[42].mxu1 %v25733_v47 }
 0x7c8   :  { %18679 = vmatprep.mubr.f32.mxu1 %v29234_v33 }
 0x7cb   :  { %18680 = vmatmul.mubr.f32.gmra.mrb[44].mxu1 %v29235_v28 }
 0x7cc   :  { %18682 = vmatprep.mubr.f32.mxu1 %v25749_v39 }
 0x7cf   :  { %18683 = vmatmul.mubr.f32.gmra.mrb[46].mxu1 %v29236_v27 }
 0x7d0   :  { %18685 = vmatprep.mubr.f32.mxu1 %v25759_v42  ;;  %v29245_v42 = vld [vmem:[#allocation99_spill] sm:$0xff] }
 0x7d3   :  { %18686 = vmatmul.mubr.f32.gmra.mrb[48].mxu1 %v29237_v63  ;;  %v29246_v63 = vld [vmem:[#allocation104_spill] sm:$0xff] }
 0x7d4   :  { %18688 = vmatprep.mubr.f32.mxu1 %v29238_v52  ;;  %v29247_v52 = vld [vmem:[#allocation103_spill] sm:$0xff] }
 0x7d7   :  { %18689 = vmatmul.mubr.f32.gmra.mrb[50].mxu1 %v29239_v58  ;;  %v29248_v58 = vld [vmem:[#allocation108_spill] sm:$0xff] }
 0x7d8   :  { %18691 = vmatprep.mubr.f32.mxu1 %v25779_v23  ;;  %v29249_v23 = vld [vmem:[#allocation107_spill] sm:$0xff] }
 0x7db   :  { %18692 = vmatmul.mubr.f32.gmra.mrb[52].mxu1 %v29240_v19  ;;  %v29250_v19 = vld [vmem:[#allocation112_spill] sm:$0xff] }
 0x7dc   :  { %18694 = vmatprep.mubr.f32.mxu1 %v25789_v53  ;;  %v29251_v53 = vld [vmem:[#allocation110_spill] sm:$0xff] }
 0x7df   :  { %18695 = vmatmul.mubr.f32.gmra.mrb[54].mxu1 %v29241_v44 }
 0x7e0   :  { %18697 = vmatprep.mubr.f32.mxu1 %v29242_v36 }
 0x7e3   :  { %18698 = vmatmul.mubr.f32.gmra.mrb[56].mxu1 %v29243_v6 }
 0x7e4   :  { %18700 = vmatprep.mubr.f32.mxu1 %v29244_v12 }
 0x7e7   :  { %18701 = vmatmul.mubr.f32.gmra.mrb[58].mxu1 %v29245_v42 }
 0x7e8   :  { %18703 = vmatprep.mubr.f32.mxu1 %v29246_v63 }
 0x7eb   :  { %18704 = vmatmul.mubr.f32.gmra.mrb[60].mxu1 %v29247_v52 }
 0x7ec   :  { %18706 = vmatprep.mubr.f32.mxu1 %v29248_v58 }
 0x7ef   :  { %18707 = vmatmul.mubr.f32.gmra.mrb[62].mxu1 %v29249_v23 }
 0x7f0   :  { %18709 = vmatprep.mubr.f32.mxu1 %v29250_v19  ;;  %v15635_v19 = vld [vmem:[%s28300_s5 + $0x190] sm:$0xff] }
 0x7f3   :  { %18710 = vmatmul.mubr.f32.gmra.mrb[64].mxu1 %v29251_v53 }
 0x7f4   :  { %18712 = vmatprep.mubr.f32.mxu1 %v25849_v3  ;;  %v15636_v3 = vld [vmem:[%s28300_s5 + $0x198] sm:$0xff] }
 0x7f7   :  { %18713 = vmatmul.mubr.f32.gmra.mrb[66].mxu1 %v25853_v29 }
 0x7f8   :  { %18715 = vmatprep.mubr.f32.mxu1 %v25859_v8  ;;  %v19888_v8 = vpack.c.bf16 %v15636_v3, %v15635_v19  ;;  %v15639_v3 = vld [vmem:[%s28300_s5 + $0x1b0] sm:$0xff]  ;;  %v15640_v19 = vld [vmem:[%s28300_s5 + $0x1b8] sm:$0xff] }
 0x7fb   :  { %18716 = vmatmul.mubr.f32.gmra.mrb[68].mxu1 %v25863_v0 }
 0x7fc   :  { %18718 = vmatprep.mubr.f32.mxu1 %v25869_v1  ;;  %v15637_v1 = vld [vmem:[%s28300_s5 + $0x1a0] sm:$0xff] }
 0x7ff   :  { %18719 = vmatmul.mubr.f32.gmra.mrb[70].mxu1 %v25873_v45 }
 0x800   :  { %18721 = vmatprep.mubr.f32.mxu1 %v25879_v31  ;;  %v15638_v31 = vld [vmem:[%s28300_s5 + $0x1a8] sm:$0xff] }
 0x801   :  { %v19892_v45 = vpack.c.bf16 %v15638_v31, %v15637_v1  ;;  %v15642_v1 = vld [vmem:[%s28300_s5 + $0x1c8] sm:$0xff] }
 0x803   :  { %18722 = vmatmul.mubr.f32.gmra.mrb[72].mxu1 %v25882_v38  ;;  %v19896_v38 = vpack.c.bf16 %v15640_v19, %v15639_v3  ;;  %v15644_v3 = vld [vmem:[%s28300_s5 + $0x1d8] sm:$0xff] }
 0x804   :  { %18756 = vmatprep.mubr.f32.mxu1 %v29233_v9 }
 0x807   :  { %18757 = vmatmul.mubr.f32.vlgmr.msra.gmra.mrb[74].mxu1 %v29233_v9 }
 0x808   :  { %19887 = vmatpush3.bf16.msra.mxu1 %v25958_v55  ;;  %18759 = vmatprep.mubr.f32.mxu1 %v29233_v9  ;;  %v15641_v55 = vld [vmem:[%s28300_s5 + $0x1c0] sm:$0xff] }
 0x809   :  { %19889 = vmatprep.subr.bf16.mxu1 %v19888_v8  ;;  %v19900_v31 = vpack.c.bf16 %v15642_v1, %v15641_v55  ;;  %v15646_v55 = vld [vmem:[%s28300_s5 + $0x1e8] sm:$0xff] }
 0x80b   :  { %18760 = vmatmul.mubr.f32.gmra.mrb[76].mxu1 %v29233_v9 }
 0x80c   :  { %18762 = vmatprep.mubr.f32.mxu1 %v29233_v9  ;;  %19891 = vmatpush3.bf16.msra.mxu1 %v19888_v8  ;;  %v15643_v8 = vld [vmem:[%s28300_s5 + $0x1d0] sm:$0xff] }
 0x80d   :  { %19893 = vmatprep.subr.bf16.mxu1 %v19892_v45  ;;  %v19904_v19 = vpack.c.bf16 %v15644_v3, %v15643_v8  ;;  %v15648_v8 = vld [vmem:[%s28300_s5 + $0x1f8] sm:$0xff] }
 0x80f   :  { %18763 = vmatmul.mubr.f32.gmra.mrb[78].mxu1 %v29233_v9 }
 0x810   :  { %18765 = vmatprep.mubr.f32.mxu1 %v29233_v9  ;;  %19895 = vmatpush3.bf16.msra.mxu1 %v19892_v45  ;;  %v15645_v45 = vld [vmem:[%s28300_s5 + $0x1e0] sm:$0xff] }
 0x811   :  { %19897 = vmatprep.subr.bf16.mxu1 %v19896_v38  ;;  %v19908_v1 = vpack.c.bf16 %v15646_v55, %v15645_v45  ;;  %v29252_v55 = vld [vmem:[#allocation78_spill] sm:$0xff] }
 0x813   :  { %18766 = vmatmul.mubr.f32.gmra.mrb[0].mxu1 %v29233_v9 }
 0x814   :  { %18768 = vmatprep.mubr.f32.mxu1 %v29233_v9  ;;  %19899 = vmatpush3.bf16.msra.mxu1 %v19896_v38  ;;  %v15647_v38 = vld [vmem:[%s28300_s5 + $0x1f0] sm:$0xff] }
 0x815   :  { %19901 = vmatprep.subr.bf16.mxu1 %v19900_v31  ;;  %v19912_v3 = vpack.c.bf16 %v15648_v8, %v15647_v38  ;;  %v29254_v38 = vld [vmem:[#allocation86_spill] sm:$0xff]  ;;  %v29255_v8 = vld [vmem:[#allocation84_spill] sm:$0xff] }
 0x817   :  { %18769 = vmatmul.mubr.f32.gmra.mrb[2].mxu1 %v25511_v20 }
 0x818   :  { %18771 = vmatprep.mubr.f32.mxu1 %v25515_v11  ;;  %19903 = vmatpush3.bf16.msra.mxu1 %v19900_v31  ;;  %v15649_v31 = vld [vmem:[%s28300_s5 + $0x200] sm:$0xff] }
 0x819   :  { %19905 = vmatprep.subr.bf16.mxu1 %v19904_v19 }
 0x81b   :  { %18772 = vmatmul.mubr.f32.gmra.mrb[4].mxu1 %v25519_v40 }
 0x81c   :  { %18774 = vmatprep.mubr.f32.mxu1 %v25526_v18  ;;  %19907 = vmatpush3.bf16.msra.mxu1 %v19904_v19  ;;  %v15650_v19 = vld [vmem:[%s28300_s5 + $0x208] sm:$0xff] }
 0x81d   :  { %19909 = vmatprep.subr.bf16.mxu1 %v19908_v1  ;;  %v26090_v45 = vpack.c.bf16 %v15650_v19, %v15649_v31  ;;  %v29257_v31 = vld [vmem:[#allocation87_spill] sm:$0xff]  ;;  %v29258_v19 = vld [vmem:[#allocation92_spill] sm:$0xff] }
 0x81f   :  { %18775 = vmatmul.mubr.f32.gmra.mrb[6].mxu1 %v25530_v61 }
 0x820   :  { %18777 = vmatprep.mubr.f32.mxu1 %v25536_v43  ;;  %19911 = vmatpush3.bf16.msra.mxu1 %v19908_v1  ;;  %v29253_v1 = vld [vmem:[#allocation82_spill] sm:$0xff] }
 0x821   :  { %19913 = vmatprep.subr.bf16.mxu1 %v19912_v3 }
 0x823   :  { %18778 = vmatmul.mubr.f32.gmra.mrb[8].mxu1 %v25540_v48 }
 0x824   :  { %18780 = vmatprep.mubr.f32.mxu1 %v25546_v10  ;;  %19915 = vmatpush3.bf16.msra.mxu1 %v19912_v3  ;;  %v29256_v3 = vld [vmem:[#allocation88_spill] sm:$0xff] }
 0x825   :  { %19917 = vmatprep.subr.bf16.mxu1 %v26090_v45 }
 0x827   :  { %18781 = vmatmul.mubr.f32.gmra.mrb[10].mxu1 %v25550_v35 }
 0x828   :  { %18783 = vmatprep.mubr.f32.mxu1 %v25556_v16 }
 0x82b   :  { %18784 = vmatmul.mubr.f32.gmra.mrb[12].mxu1 %v25566_v34 }
 0x82c   :  { %18786 = vmatprep.mubr.f32.mxu1 %v25578_v50 }
 0x82f   :  { %18787 = vmatmul.mubr.f32.gmra.mrb[14].mxu1 %v25582_v24 }
 0x830   :  { %18789 = vmatprep.mubr.f32.mxu1 %v25594_v22 }
 0x833   :  { %18790 = vmatmul.mubr.f32.gmra.mrb[16].mxu1 %v25598_v60 }
 0x834   :  { %18792 = vmatprep.mubr.f32.mxu1 %v25610_v21 }
 0x837   :  { %18793 = vmatmul.mubr.f32.gmra.mrb[18].mxu1 %v25614_v46 }
 0x838   :  { %18795 = vmatprep.mubr.f32.mxu1 %v25626_v32 }
 0x83b   :  { %18796 = vmatmul.mubr.f32.gmra.mrb[20].mxu1 %v25632_v57 }
 0x83c   :  { %18798 = vmatprep.mubr.f32.mxu1 %v25638_v17 }
 0x83f   :  { %18799 = vmatmul.mubr.f32.gmra.mrb[22].mxu1 %v25643_v4 }
 0x840   :  { %18801 = vmatprep.mubr.f32.mxu1 %v25649_v5 }
 0x843   :  { %18802 = vmatmul.mubr.f32.gmra.mrb[24].mxu1 %v25653_v41 }
 0x844   :  { %18804 = vmatprep.mubr.f32.mxu1 %v25659_v30 }
 0x847   :  { %18805 = vmatmul.mubr.f32.gmra.mrb[26].mxu1 %v25663_v26 }
 0x848   :  { %18807 = vmatprep.mubr.f32.mxu1 %v25669_v56 }
 0x84b   :  { %18808 = vmatmul.mubr.f32.gmra.mrb[28].mxu1 %v25673_v62 }
 0x84c   :  { %18810 = vmatprep.mubr.f32.mxu1 %v25679_v49 }
 0x84f   :  { %18811 = vmatmul.mubr.f32.gmra.mrb[30].mxu1 %v25683_v13 }
 0x850   :  { %18813 = vmatprep.mubr.f32.mxu1 %v25689_v51 }
 0x853   :  { %18814 = vmatmul.mubr.f32.gmra.mrb[32].mxu1 %v25693_v14 }
 0x854   :  { %18816 = vmatprep.mubr.f32.mxu1 %v25699_v37 }
 0x857   :  { %18817 = vmatmul.mubr.f32.gmra.mrb[34].mxu1 %v25703_v25 }
 0x858   :  { %18819 = vmatprep.mubr.f32.mxu1 %v25709_v15 }
 0x85b   :  { %18820 = vmatmul.mubr.f32.gmra.mrb[36].mxu1 %v25713_v2 }
 0x85c   :  { %18822 = vmatprep.mubr.f32.mxu1 %v25719_v54 }
 0x85f   :  { %18823 = vmatmul.mubr.f32.gmra.mrb[38].mxu1 %v25723_v59 }
 0x860   :  { %18825 = vmatprep.mubr.f32.mxu1 %v25729_v7 }
 0x863   :  { %18826 = vmatmul.mubr.f32.gmra.mrb[40].mxu1 %v25733_v47 }
 0x864   :  { %18828 = vmatprep.mubr.f32.mxu1 %v29234_v33 }
 0x867   :  { %18829 = vmatmul.mubr.f32.gmra.mrb[42].mxu1 %v29235_v28 }
 0x868   :  { %18831 = vmatprep.mubr.f32.mxu1 %v25749_v39 }
 0x86b   :  { %18832 = vmatmul.mubr.f32.gmra.mrb[44].mxu1 %v29236_v27 }
 0x86c   :  { %18834 = vmatprep.mubr.f32.mxu1 %v29252_v55 }
 0x86f   :  { %18835 = vmatmul.mubr.f32.gmra.mrb[46].mxu1 %v29253_v1 }
 0x870   :  { %18837 = vmatprep.mubr.f32.mxu1 %v29254_v38 }
 0x873   :  { %18838 = vmatmul.mubr.f32.gmra.mrb[48].mxu1 %v29255_v8 }
 0x874   :  { %18840 = vmatprep.mubr.f32.mxu1 %v29256_v3 }
 0x877   :  { %18841 = vmatmul.mubr.f32.gmra.mrb[50].mxu1 %v29257_v31  ;;  %v29259_v31 = vld [vmem:[#allocation112_spill] sm:$0xff] }
 0x878   :  { %18843 = vmatprep.mubr.f32.mxu1 %v29258_v19 }
 0x87b   :  { %18844 = vmatmul.mubr.f32.gmra.mrb[52].mxu1 %v29241_v44  ;;  %v29260_v44 = vld [vmem:[#allocation114_spill] sm:$0xff] }
 0x87c   :  { %18846 = vmatprep.mubr.f32.mxu1 %v29242_v36 }
 0x87f   :  { %18847 = vmatmul.mubr.f32.gmra.mrb[54].mxu1 %v29243_v6  ;;  %v29261_v6 = vld [vmem:[#allocation118_spill] sm:$0xff] }
 0x880   :  { %18849 = vmatprep.mubr.f32.mxu1 %v29244_v12  ;;  %v29266_v12 = vld [vmem:[#allocation54_spill] sm:$0xff] }
 0x883   :  { %18850 = vmatmul.mubr.f32.gmra.mrb[56].mxu1 %v29245_v42  ;;  %v29262_v42 = vld [vmem:[#allocation120_spill] sm:$0xff] }
 0x884   :  { %18852 = vmatprep.mubr.f32.mxu1 %v29246_v63  ;;  %v29263_v63 = vld [vmem:[#allocation50_spill] sm:$0xff] }
 0x887   :  { %18853 = vmatmul.mubr.f32.gmra.mrb[58].mxu1 %v29247_v52  ;;  %v29264_v52 = vld [vmem:[#allocation49_spill] sm:$0xff] }
 0x888   :  { %18855 = vmatprep.mubr.f32.mxu1 %v29248_v58  ;;  %v29265_v58 = vld [vmem:[#allocation55_spill] sm:$0xff] }
 0x88b   :  { %18856 = vmatmul.mubr.f32.gmra.mrb[60].mxu1 %v29249_v23  ;;  %v8448_v23 = vmax.f32 %v29265_v58, 0.0 }
 0x88c   :  { %18858 = vmatprep.mubr.f32.mxu1 %v29259_v31  ;;  %v29267_v31 = vld [vmem:[#allocation52_spill] sm:$0xff] }
 0x88f   :  { %18859 = vmatmul.mubr.f32.gmra.mrb[62].mxu1 %v29251_v53  ;;  %v29268_v53 = vld [vmem:[#allocation101_spill] sm:$0xff] }
 0x890   :  { %18861 = vmatprep.mubr.f32.mxu1 %v29260_v44  ;;  %v26155_v44 = vmul.f32 %v8448_v23, %v29268_v53  ;;  %v15654_v23 = vld [vmem:[%s28300_s5 + $0x228] sm:$0xff] }
 0x892   :  { %29269 = vst [vmem:[#allocation73_spill] sm:$0xff] %v26155_v44 }
 0x893   :  { %18862 = vmatmul.mubr.f32.gmra.mrb[64].mxu1 %v25853_v29 }
 0x894   :  { %18864 = vmatprep.mubr.f32.mxu1 %v29261_v6  ;;  %v15651_v6 = vld [vmem:[%s28300_s5 + $0x210] sm:$0xff] }
 0x897   :  { %18865 = vmatmul.mubr.f32.gmra.mrb[66].mxu1 %v25863_v0 }
 0x898   :  { %18867 = vmatprep.mubr.f32.mxu1 %v29262_v42  ;;  %v15652_v42 = vld [vmem:[%s28300_s5 + $0x218] sm:$0xff] }
 0x899   :  { %v19920_v58 = vpack.c.bf16 %v15652_v42, %v15651_v6  ;;  %v15655_v42 = vld [vmem:[%s28300_s5 + $0x230] sm:$0xff]  ;;  %v15656_v6 = vld [vmem:[%s28300_s5 + $0x238] sm:$0xff] }
 0x89b   :  { %18868 = vmatmul.mubr.f32.gmra.mrb[68].mxu1 %v29263_v63 }
 0x89c   :  { %18870 = vmatprep.mubr.f32.mxu1 %v29264_v52 }
 0x89f   :  { %18871 = vmatmul.mubr.f32.gmra.mrb[70].mxu1 %v29266_v12 }
 0x8a0   :  { %18873 = vmatprep.mubr.f32.mxu1 %v29267_v31  ;;  %v15653_v31 = vld [vmem:[%s28300_s5 + $0x220] sm:$0xff] }
 0x8a1   :  { %v19924_v53 = vpack.c.bf16 %v15654_v23, %v15653_v31  ;;  %v15658_v31 = vld [vmem:[%s28300_s5 + $0x248] sm:$0xff] }
 0x8a3   :  { %18874 = vmatmul.mubr.f32.gmra.mrb[72].mxu1 %v26155_v44 }
 0x8a4   :  { %18908 = vmatprep.mubr.f32.mxu1 %v29233_v9  ;;  %v19928_v9 = vpack.c.bf16 %v15656_v6, %v15655_v42  ;;  %v15660_v42 = vld [vmem:[%s28300_s5 + $0x258] sm:$0xff] }
 0x8a7   :  { %18909 = vmatmul.mubr.f32.vlgmr.msra.gmra.mrb[74].mxu1 %v25511_v20 }
 0x8a8   :  { %18911 = vmatprep.mubr.f32.mxu1 %v25515_v11  ;;  %19919 = vmatpush3.bf16.msra.mxu1 %v26090_v45  ;;  %v15657_v45 = vld [vmem:[%s28300_s5 + $0x240] sm:$0xff] }
 0x8a9   :  { %19921 = vmatprep.subr.bf16.mxu1 %v19920_v58  ;;  %v19932_v23 = vpack.c.bf16 %v15658_v31, %v15657_v45  ;;  %v15662_v45 = vld [vmem:[%s28300_s5 + $0x268] sm:$0xff] }
 0x8ab   :  { %18912 = vmatmul.mubr.f32.gmra.mrb[76].mxu1 %v25519_v40 }
 0x8ac   :  { %18914 = vmatprep.mubr.f32.mxu1 %v25526_v18  ;;  %19923 = vmatpush3.bf16.msra.mxu1 %v19920_v58  ;;  %v15659_v58 = vld [vmem:[%s28300_s5 + $0x250] sm:$0xff] }
 0x8ad   :  { %19925 = vmatprep.subr.bf16.mxu1 %v19924_v53  ;;  %v19936_v6 = vpack.c.bf16 %v15660_v42, %v15659_v58  ;;  %v15664_v58 = vld [vmem:[%s28300_s5 + $0x278] sm:$0xff] }
 0x8af   :  { %18915 = vmatmul.mubr.f32.gmra.mrb[78].mxu1 %v25530_v61 }
 0x8b0   :  { %18917 = vmatprep.mubr.f32.mxu1 %v25536_v43  ;;  %19927 = vmatpush3.bf16.msra.mxu1 %v19924_v53  ;;  %v15661_v53 = vld [vmem:[%s28300_s5 + $0x260] sm:$0xff] }
 0x8b1   :  { %19929 = vmatprep.subr.bf16.mxu1 %v19928_v9  ;;  %v19940_v31 = vpack.c.bf16 %v15662_v45, %v15661_v53  ;;  %v29270_v45 = vld [vmem:[#allocation87_spill] sm:$0xff] }
 0x8b3   :  { %18918 = vmatmul.mubr.f32.gmra.mrb[0].mxu1 %v25540_v48 }
 0x8b4   :  { %18920 = vmatprep.mubr.f32.mxu1 %v25546_v10  ;;  %19931 = vmatpush3.bf16.msra.mxu1 %v19928_v9  ;;  %v15663_v9 = vld [vmem:[%s28300_s5 + $0x270] sm:$0xff] }
 0x8b5   :  { %19933 = vmatprep.subr.bf16.mxu1 %v19932_v23  ;;  %v19944_v42 = vpack.c.bf16 %v15664_v58, %v15663_v9  ;;  %v29272_v9 = vld [vmem:[#allocation95_spill] sm:$0xff]  ;;  %v29273_v58 = vld [vmem:[#allocation100_spill] sm:$0xff] }
 0x8b7   :  { %18921 = vmatmul.mubr.f32.gmra.mrb[2].mxu1 %v25550_v35 }
 0x8b8   :  { %18923 = vmatprep.mubr.f32.mxu1 %v25556_v16  ;;  %19935 = vmatpush3.bf16.msra.mxu1 %v19932_v23  ;;  %v15665_v23 = vld [vmem:[%s28300_s5 + $0x280] sm:$0xff] }
 0x8b9   :  { %19937 = vmatprep.subr.bf16.mxu1 %v19936_v6 }
 0x8bb   :  { %18924 = vmatmul.mubr.f32.gmra.mrb[4].mxu1 %v25566_v34 }
 0x8bc   :  { %18926 = vmatprep.mubr.f32.mxu1 %v25578_v50  ;;  %19939 = vmatpush3.bf16.msra.mxu1 %v19936_v6  ;;  %v15666_v6 = vld [vmem:[%s28300_s5 + $0x288] sm:$0xff] }
 0x8bd   :  { %19941 = vmatprep.subr.bf16.mxu1 %v19940_v31  ;;  %v26226_v53 = vpack.c.bf16 %v15666_v6, %v15665_v23  ;;  %v29275_v23 = vld [vmem:[#allocation104_spill] sm:$0xff]  ;;  %v29276_v6 = vld [vmem:[#allocation103_spill] sm:$0xff] }
 0x8bf   :  { %18927 = vmatmul.mubr.f32.gmra.mrb[6].mxu1 %v25582_v24 }
 0x8c0   :  { %18929 = vmatprep.mubr.f32.mxu1 %v25594_v22  ;;  %19943 = vmatpush3.bf16.msra.mxu1 %v19940_v31  ;;  %v29271_v31 = vld [vmem:[#allocation91_spill] sm:$0xff] }
 0x8c1   :  { %19945 = vmatprep.subr.bf16.mxu1 %v19944_v42 }
 0x8c3   :  { %18930 = vmatmul.mubr.f32.gmra.mrb[8].mxu1 %v25598_v60 }
 0x8c4   :  { %18932 = vmatprep.mubr.f32.mxu1 %v25610_v21  ;;  %19947 = vmatpush3.bf16.msra.mxu1 %v19944_v42  ;;  %v29274_v42 = vld [vmem:[#allocation99_spill] sm:$0xff] }
 0x8c5   :  { %19949 = vmatprep.subr.bf16.mxu1 %v26226_v53 }
 0x8c7   :  { %18933 = vmatmul.mubr.f32.gmra.mrb[10].mxu1 %v25614_v46 }
 0x8c8   :  { %18935 = vmatprep.mubr.f32.mxu1 %v25626_v32 }
 0x8cb   :  { %18936 = vmatmul.mubr.f32.gmra.mrb[12].mxu1 %v25632_v57 }
 0x8cc   :  { %18938 = vmatprep.mubr.f32.mxu1 %v25638_v17 }
 0x8cf   :  { %18939 = vmatmul.mubr.f32.gmra.mrb[14].mxu1 %v25643_v4 }
 0x8d0   :  { %18941 = vmatprep.mubr.f32.mxu1 %v25649_v5 }
 0x8d3   :  { %18942 = vmatmul.mubr.f32.gmra.mrb[16].mxu1 %v25653_v41 }
 0x8d4   :  { %18944 = vmatprep.mubr.f32.mxu1 %v25659_v30 }
 0x8d7   :  { %18945 = vmatmul.mubr.f32.gmra.mrb[18].mxu1 %v25663_v26 }
 0x8d8   :  { %18947 = vmatprep.mubr.f32.mxu1 %v25669_v56 }
 0x8db   :  { %18948 = vmatmul.mubr.f32.gmra.mrb[20].mxu1 %v25673_v62 }
 0x8dc   :  { %18950 = vmatprep.mubr.f32.mxu1 %v25679_v49 }
 0x8df   :  { %18951 = vmatmul.mubr.f32.gmra.mrb[22].mxu1 %v25683_v13 }
 0x8e0   :  { %18953 = vmatprep.mubr.f32.mxu1 %v25689_v51 }
 0x8e3   :  { %18954 = vmatmul.mubr.f32.gmra.mrb[24].mxu1 %v25693_v14 }
 0x8e4   :  { %18956 = vmatprep.mubr.f32.mxu1 %v25699_v37 }
 0x8e7   :  { %18957 = vmatmul.mubr.f32.gmra.mrb[26].mxu1 %v25703_v25 }
 0x8e8   :  { %18959 = vmatprep.mubr.f32.mxu1 %v25709_v15 }
 0x8eb   :  { %18960 = vmatmul.mubr.f32.gmra.mrb[28].mxu1 %v25713_v2 }
 0x8ec   :  { %18962 = vmatprep.mubr.f32.mxu1 %v25719_v54 }
 0x8ef   :  { %18963 = vmatmul.mubr.f32.gmra.mrb[30].mxu1 %v25723_v59 }
 0x8f0   :  { %18965 = vmatprep.mubr.f32.mxu1 %v25729_v7 }
 0x8f3   :  { %18966 = vmatmul.mubr.f32.gmra.mrb[32].mxu1 %v25733_v47 }
 0x8f4   :  { %18968 = vmatprep.mubr.f32.mxu1 %v29234_v33 }
 0x8f7   :  { %18969 = vmatmul.mubr.f32.gmra.mrb[34].mxu1 %v29235_v28 }
 0x8f8   :  { %18971 = vmatprep.mubr.f32.mxu1 %v25749_v39 }
 0x8fb   :  { %18972 = vmatmul.mubr.f32.gmra.mrb[36].mxu1 %v29236_v27 }
 0x8fc   :  { %18974 = vmatprep.mubr.f32.mxu1 %v29252_v55 }
 0x8ff   :  { %18975 = vmatmul.mubr.f32.gmra.mrb[38].mxu1 %v29253_v1 }
 0x900   :  { %18977 = vmatprep.mubr.f32.mxu1 %v29254_v38 }
 0x903   :  { %18978 = vmatmul.mubr.f32.gmra.mrb[40].mxu1 %v29255_v8  ;;  %v29277_v8 = vld [vmem:[#allocation108_spill] sm:$0xff] }
 0x904   :  { %18980 = vmatprep.mubr.f32.mxu1 %v29256_v3  ;;  %v29278_v3 = vld [vmem:[#allocation107_spill] sm:$0xff] }
 0x907   :  { %18981 = vmatmul.mubr.f32.gmra.mrb[42].mxu1 %v29270_v45  ;;  %v29279_v45 = vld [vmem:[#allocation112_spill] sm:$0xff] }
 0x908   :  { %18983 = vmatprep.mubr.f32.mxu1 %v29258_v19  ;;  %v29280_v19 = vld [vmem:[#allocation110_spill] sm:$0xff] }
 0x90b   :  { %18984 = vmatmul.mubr.f32.gmra.mrb[44].mxu1 %v29271_v31  ;;  %v29281_v31 = vld [vmem:[#allocation114_spill] sm:$0xff] }
 0x90c   :  { %18986 = vmatprep.mubr.f32.mxu1 %v29242_v36 }
 0x90f   :  { %18987 = vmatmul.mubr.f32.gmra.mrb[46].mxu1 %v29272_v9  ;;  %v29282_v9 = vld [vmem:[#allocation118_spill] sm:$0xff] }
 0x910   :  { %18989 = vmatprep.mubr.f32.mxu1 %v29273_v58  ;;  %v29294_v58 = vld [vmem:[#allocation106_spill] sm:$0xff] }
 0x913   :  { %18990 = vmatmul.mubr.f32.gmra.mrb[48].mxu1 %v29274_v42  ;;  %v29283_v42 = vld [vmem:[#allocation120_spill] sm:$0xff] }
 0x914   :  { %18992 = vmatprep.mubr.f32.mxu1 %v29275_v23  ;;  %v29288_v23 = vld [vmem:[#allocation102_spill] sm:$0xff] }
 0x917   :  { %18993 = vmatmul.mubr.f32.gmra.mrb[50].mxu1 %v29276_v6  ;;  %v29287_v6 = vld [vmem:[#allocation63_spill] sm:$0xff] }
 0x918   :  { %18995 = vmatprep.mubr.f32.mxu1 %v29277_v8  ;;  %v29284_v8 = vld [vmem:[#allocation58_spill] sm:$0xff] }
 0x91b   :  { %18996 = vmatmul.mubr.f32.gmra.mrb[52].mxu1 %v29278_v3  ;;  %v8449_v3 = vmax.f32 %v29284_v8, 0.0  ;;  %v29293_v8 = vld [vmem:[#allocation66_spill] sm:$0xff] }
 0x91c   :  { %18998 = vmatprep.mubr.f32.mxu1 %v29279_v45  ;;  %v29285_v45 = vld [vmem:[#allocation52_spill] sm:$0xff] }
 0x91f   :  { %18999 = vmatmul.mubr.f32.gmra.mrb[54].mxu1 %v29280_v19  ;;  %v29286_v19 = vld [vmem:[#allocation60_spill] sm:$0xff] }
 0x920   :  { %19001 = vmatprep.mubr.f32.mxu1 %v29281_v31  ;;  %v8450_v31 = vmax.f32 %v29286_v19, 0.0 }
 0x923   :  { %19002 = vmatmul.mubr.f32.gmra.mrb[56].mxu1 %v25853_v29  ;;  %v8451_v29 = vmax.f32 %v29287_v6, 0.0  ;;  %v29297_v6 = vld [vmem:[#allocation109_spill] sm:$0xff] }
 0x924   :  { %19004 = vmatprep.mubr.f32.mxu1 %v29282_v9  ;;  %v26285_v9 = vmul.f32 %v8449_v3, %v29288_v23  ;;  %v29296_v3 = vld [vmem:[#allocation69_spill] sm:$0xff] }
 0x925   :  { %v8454_v19 = vmax.f32 %v29296_v3, 0.0  ;;  %v15668_v3 = vld [vmem:[%s28300_s5 + $0x298] sm:$0xff] }
 0x926   :  { %29289 = vst [vmem:[#allocation76_spill] sm:$0xff] %v26285_v9 }
 0x927   :  { %19005 = vmatmul.mubr.f32.gmra.mrb[58].mxu1 %v25863_v0 }
 0x928   :  { %19007 = vmatprep.mubr.f32.mxu1 %v29283_v42 }
 0x92b   :  { %19008 = vmatmul.mubr.f32.gmra.mrb[60].mxu1 %v29263_v63  ;;  %v29290_v63 = vld [vmem:[#allocation62_spill] sm:$0xff] }
 0x92c   :  { %19010 = vmatprep.mubr.f32.mxu1 %v29264_v52  ;;  %v8452_v42 = vmax.f32 %v29290_v63, 0.0  ;;  %v29291_v52 = vld [vmem:[#allocation105_spill] sm:$0xff]  ;;  %v29300_v63 = vld [vmem:[#allocation111_spill] sm:$0xff] }
 0x92d   :  { %v26291_v0 = vmul.f32 %v8450_v31, %v29291_v52  ;;  %v29305_v52 = vld [vmem:[#allocation116_spill] sm:$0xff] }
 0x92e   :  { %v26301_v23 = vmul.f32 %v8452_v42, %v29297_v6  ;;  %v29320_v6 = vld [vmem:[#allocation108_spill] sm:$0xff] }
 0x92f   :  { %19011 = vmatmul.mubr.f32.gmra.mrb[62].mxu1 %v29266_v12  ;;  %29292 = vst [vmem:[#allocation79_spill] sm:$0xff] %v26291_v0  ;;  %v8453_v12 = vmax.f32 %v29293_v8, 0.0  ;;  %v29303_v8 = vld [vmem:[#allocation115_spill] sm:$0xff] }
 0x930   :  { %19013 = vmatprep.mubr.f32.mxu1 %v29285_v45  ;;  %v26295_v45 = vmul.f32 %v8451_v29, %v29294_v58  ;;  %29298 = vst [vmem:[#allocation82_spill] sm:$0xff] %v26301_v23  ;;  %v29302_v29 = vld [vmem:[#allocation123_spill] sm:$0xff]  ;;  %v26311_v58 = vmul.f32 %v8454_v19, %v29303_v8  ;;  %v29318_v8 = vld [vmem:[#allocation104_spill] sm:$0xff] }
 0x931   :  { %v26305_v36 = vmul.f32 %v8453_v12, %v29300_v63  ;;  %v8456_v31 = vmax.f32 %v29302_v29, 0.0  ;;  %v15667_v12 = vld [vmem:[%s28300_s5 + $0x290] sm:$0xff]  ;;  %v15669_v19 = vld [vmem:[%s28300_s5 + $0x2a0] sm:$0xff]  ;;  %v15670_v29 = vld [vmem:[%s28300_s5 + $0x2a8] sm:$0xff] }
 0x932   :  { %29295 = vst [vmem:[#allocation78_spill] sm:$0xff] %v26295_v45  ;;  %29304 = vst [vmem:[#allocation55_spill] sm:$0xff] %v26311_v58  ;;  %v29319_v63 = vld [vmem:[#allocation103_spill] sm:$0xff] }
 0x933   :  { %19014 = vmatmul.mubr.f32.gmra.mrb[64].mxu1 %v26155_v44  ;;  %29301 = vst [vmem:[#allocation86_spill] sm:$0xff] %v26305_v36 }
 0x934   :  { %19016 = vmatprep.mubr.f32.mxu1 %v26285_v9  ;;  %v29299_v9 = vld [vmem:[#allocation70_spill] sm:$0xff] }
 0x935   :  { %v8455_v44 = vmax.f32 %v29299_v9, 0.0  ;;  %v29307_v9 = vld [vmem:[#allocation119_spill] sm:$0xff] }
 0x936   :  { %v26319_v42 = vmul.f32 %v8456_v31, %v29307_v9  ;;  %v19956_v31 = vpack.c.bf16 %v15670_v29, %v15669_v19  ;;  %v15674_v19 = vld [vmem:[%s28300_s5 + $0x2c8] sm:$0xff] }
 0x937   :  { %19017 = vmatmul.mubr.f32.gmra.mrb[66].mxu1 %v26291_v0  ;;  %v29316_v9 = vld [vmem:[#allocation100_spill] sm:$0xff] }
 0x938   :  { %19019 = vmatprep.mubr.f32.mxu1 %v26295_v45  ;;  %v26314_v45 = vmul.f32 %v8455_v44, %v29305_v52  ;;  %29308 = vst [vmem:[#allocation60_spill] sm:$0xff] %v26319_v42  ;;  %v19952_v44 = vpack.c.bf16 %v15668_v3, %v15667_v12  ;;  %v15672_v12 = vld [vmem:[%s28300_s5 + $0x2b8] sm:$0xff]  ;;  %v29317_v52 = vld [vmem:[#allocation99_spill] sm:$0xff] }
 0x93a   :  { %29306 = vst [vmem:[#allocation58_spill] sm:$0xff] %v26314_v45 }
 0x93b   :  { %19020 = vmatmul.mubr.f32.gmra.mrb[68].mxu1 %v26301_v23 }
 0x93c   :  { %19022 = vmatprep.mubr.f32.mxu1 %v26305_v36 }
 0x93f   :  { %19023 = vmatmul.mubr.f32.gmra.mrb[70].mxu1 %v26311_v58 }
 0x940   :  { %19025 = vmatprep.mubr.f32.mxu1 %v26314_v45 }
 0x943   :  { %19026 = vmatmul.mubr.f32.gmra.mrb[72].mxu1 %v26319_v42 }
 0x944   :  { %19060 = vmatprep.mubr.f32.mxu1 %v25511_v20  ;;  %v15671_v20 = vld [vmem:[%s28300_s5 + $0x2b0] sm:$0xff] }
 0x945   :  { %v19960_v3 = vpack.c.bf16 %v15672_v12, %v15671_v20  ;;  %v15676_v20 = vld [vmem:[%s28300_s5 + $0x2d8] sm:$0xff] }
 0x947   :  { %19061 = vmatmul.mubr.f32.vlgmr.msra.gmra.mrb[74].mxu1 %v25515_v11 }
 0x948   :  { %19063 = vmatprep.mubr.f32.mxu1 %v25519_v40  ;;  %19951 = vmatpush3.bf16.msra.mxu1 %v26226_v53  ;;  %v15673_v53 = vld [vmem:[%s28300_s5 + $0x2c0] sm:$0xff] }
 0x949   :  { %19953 = vmatprep.subr.bf16.mxu1 %v19952_v44  ;;  %v19964_v29 = vpack.c.bf16 %v15674_v19, %v15673_v53  ;;  %v15678_v53 = vld [vmem:[%s28300_s5 + $0x2e8] sm:$0xff] }
 0x94b   :  { %19064 = vmatmul.mubr.f32.gmra.mrb[76].mxu1 %v25526_v18 }
 0x94c   :  { %19066 = vmatprep.mubr.f32.mxu1 %v25530_v61  ;;  %19955 = vmatpush3.bf16.msra.mxu1 %v19952_v44  ;;  %v15675_v44 = vld [vmem:[%s28300_s5 + $0x2d0] sm:$0xff] }
 0x94d   :  { %19957 = vmatprep.subr.bf16.mxu1 %v19956_v31  ;;  %v19968_v12 = vpack.c.bf16 %v15676_v20, %v15675_v44  ;;  %v15680_v44 = vld [vmem:[%s28300_s5 + $0x2f8] sm:$0xff] }
 0x94f   :  { %19067 = vmatmul.mubr.f32.gmra.mrb[78].mxu1 %v25536_v43 }
 0x950   :  { %19069 = vmatprep.mubr.f32.mxu1 %v25540_v48  ;;  %19959 = vmatpush3.bf16.msra.mxu1 %v19956_v31  ;;  %v15677_v31 = vld [vmem:[%s28300_s5 + $0x2e0] sm:$0xff] }
 0x951   :  { %19961 = vmatprep.subr.bf16.mxu1 %v19960_v3  ;;  %v19972_v19 = vpack.c.bf16 %v15678_v53, %v15677_v31  ;;  %v29309_v53 = vld [vmem:[#allocation84_spill] sm:$0xff] }
 0x953   :  { %19070 = vmatmul.mubr.f32.gmra.mrb[0].mxu1 %v25546_v10 }
 0x954   :  { %19072 = vmatprep.mubr.f32.mxu1 %v25550_v35  ;;  %19963 = vmatpush3.bf16.msra.mxu1 %v19960_v3  ;;  %v15679_v3 = vld [vmem:[%s28300_s5 + $0x2f0] sm:$0xff] }
 0x955   :  { %19965 = vmatprep.subr.bf16.mxu1 %v19964_v29  ;;  %v19976_v20 = vpack.c.bf16 %v15680_v44, %v15679_v3  ;;  %v29311_v3 = vld [vmem:[#allocation87_spill] sm:$0xff]  ;;  %v29312_v44 = vld [vmem:[#allocation92_spill] sm:$0xff] }
 0x957   :  { %19073 = vmatmul.mubr.f32.gmra.mrb[2].mxu1 %v25556_v16 }
 0x958   :  { %19075 = vmatprep.mubr.f32.mxu1 %v25566_v34  ;;  %19967 = vmatpush3.bf16.msra.mxu1 %v19964_v29  ;;  %v15681_v29 = vld [vmem:[%s28300_s5 + $0x300] sm:$0xff] }
 0x959   :  { %19969 = vmatprep.subr.bf16.mxu1 %v19968_v12 }
 0x95b   :  { %19076 = vmatmul.mubr.f32.gmra.mrb[4].mxu1 %v25578_v50 }
 0x95c   :  { %19078 = vmatprep.mubr.f32.mxu1 %v25582_v24  ;;  %19971 = vmatpush3.bf16.msra.mxu1 %v19968_v12  ;;  %v15682_v12 = vld [vmem:[%s28300_s5 + $0x308] sm:$0xff] }
 0x95d   :  { %19973 = vmatprep.subr.bf16.mxu1 %v19972_v19  ;;  %v26390_v31 = vpack.c.bf16 %v15682_v12, %v15681_v29  ;;  %v29314_v29 = vld [vmem:[#allocation96_spill] sm:$0xff]  ;;  %v29315_v12 = vld [vmem:[#allocation95_spill] sm:$0xff] }
 0x95f   :  { %19079 = vmatmul.mubr.f32.gmra.mrb[6].mxu1 %v25594_v22 }
 0x960   :  { %19081 = vmatprep.mubr.f32.mxu1 %v25598_v60  ;;  %19975 = vmatpush3.bf16.msra.mxu1 %v19972_v19  ;;  %v29310_v19 = vld [vmem:[#allocation88_spill] sm:$0xff] }
 0x961   :  { %19977 = vmatprep.subr.bf16.mxu1 %v19976_v20 }
 0x963   :  { %19082 = vmatmul.mubr.f32.gmra.mrb[8].mxu1 %v25610_v21 }
 0x964   :  { %19084 = vmatprep.mubr.f32.mxu1 %v25614_v46  ;;  %19979 = vmatpush3.bf16.msra.mxu1 %v19976_v20  ;;  %v29313_v20 = vld [vmem:[#allocation91_spill] sm:$0xff] }
 0x965   :  { %19981 = vmatprep.subr.bf16.mxu1 %v26390_v31 }
 0x967   :  { %19085 = vmatmul.mubr.f32.gmra.mrb[10].mxu1 %v25626_v32 }
 0x968   :  { %19087 = vmatprep.mubr.f32.mxu1 %v25632_v57 }
 0x96b   :  { %19088 = vmatmul.mubr.f32.gmra.mrb[12].mxu1 %v25638_v17 }
 0x96c   :  { %19090 = vmatprep.mubr.f32.mxu1 %v25643_v4 }
 0x96f   :  { %19091 = vmatmul.mubr.f32.gmra.mrb[14].mxu1 %v25649_v5 }
 0x970   :  { %19093 = vmatprep.mubr.f32.mxu1 %v25653_v41 }
 0x973   :  { %19094 = vmatmul.mubr.f32.gmra.mrb[16].mxu1 %v25659_v30 }
 0x974   :  { %19096 = vmatprep.mubr.f32.mxu1 %v25663_v26 }
 0x977   :  { %19097 = vmatmul.mubr.f32.gmra.mrb[18].mxu1 %v25669_v56 }
 0x978   :  { %19099 = vmatprep.mubr.f32.mxu1 %v25673_v62 }
 0x97b   :  { %19100 = vmatmul.mubr.f32.gmra.mrb[20].mxu1 %v25679_v49 }
 0x97c   :  { %19102 = vmatprep.mubr.f32.mxu1 %v25683_v13 }
 0x97f   :  { %19103 = vmatmul.mubr.f32.gmra.mrb[22].mxu1 %v25689_v51 }
 0x980   :  { %19105 = vmatprep.mubr.f32.mxu1 %v25693_v14 }
 0x983   :  { %19106 = vmatmul.mubr.f32.gmra.mrb[24].mxu1 %v25699_v37 }
 0x984   :  { %19108 = vmatprep.mubr.f32.mxu1 %v25703_v25 }
 0x987   :  { %19109 = vmatmul.mubr.f32.gmra.mrb[26].mxu1 %v25709_v15 }
 0x988   :  { %19111 = vmatprep.mubr.f32.mxu1 %v25713_v2 }
 0x98b   :  { %19112 = vmatmul.mubr.f32.gmra.mrb[28].mxu1 %v25719_v54 }
 0x98c   :  { %19114 = vmatprep.mubr.f32.mxu1 %v25723_v59 }
 0x98f   :  { %19115 = vmatmul.mubr.f32.gmra.mrb[30].mxu1 %v25729_v7 }
 0x990   :  { %19117 = vmatprep.mubr.f32.mxu1 %v25733_v47 }
 0x993   :  { %19118 = vmatmul.mubr.f32.gmra.mrb[32].mxu1 %v29234_v33 }
 0x994   :  { %19120 = vmatprep.mubr.f32.mxu1 %v29235_v28 }
 0x997   :  { %19121 = vmatmul.mubr.f32.gmra.mrb[34].mxu1 %v25749_v39 }
 0x998   :  { %19123 = vmatprep.mubr.f32.mxu1 %v29236_v27 }
 0x99b   :  { %19124 = vmatmul.mubr.f32.gmra.mrb[36].mxu1 %v29252_v55 }
 0x99c   :  { %19126 = vmatprep.mubr.f32.mxu1 %v29253_v1 }
 0x99f   :  { %19127 = vmatmul.mubr.f32.gmra.mrb[38].mxu1 %v29254_v38 }
 0x9a0   :  { %19129 = vmatprep.mubr.f32.mxu1 %v29309_v53 }
 0x9a3   :  { %19130 = vmatmul.mubr.f32.gmra.mrb[40].mxu1 %v29310_v19  ;;  %v29321_v19 = vld [vmem:[#allocation107_spill] sm:$0xff] }
 0x9a4   :  { %19132 = vmatprep.mubr.f32.mxu1 %v29311_v3  ;;  %v29322_v3 = vld [vmem:[#allocation112_spill] sm:$0xff] }
 0x9a7   :  { %19133 = vmatmul.mubr.f32.gmra.mrb[42].mxu1 %v29312_v44  ;;  %v29323_v44 = vld [vmem:[#allocation110_spill] sm:$0xff] }
 0x9a8   :  { %19135 = vmatprep.mubr.f32.mxu1 %v29313_v20  ;;  %v29324_v20 = vld [vmem:[#allocation114_spill] sm:$0xff] }
 0x9ab   :  { %19136 = vmatmul.mubr.f32.gmra.mrb[44].mxu1 %v29314_v29  ;;  %v29325_v29 = vld [vmem:[#allocation113_spill] sm:$0xff] }
 0x9ac   :  { %19138 = vmatprep.mubr.f32.mxu1 %v29315_v12  ;;  %v29326_v12 = vld [vmem:[#allocation118_spill] sm:$0xff] }
 0x9af   :  { %19139 = vmatmul.mubr.f32.gmra.mrb[46].mxu1 %v29316_v9  ;;  %v29327_v9 = vld [vmem:[#allocation117_spill] sm:$0xff] }
 0x9b0   :  { %19141 = vmatprep.mubr.f32.mxu1 %v29317_v52  ;;  %v29328_v52 = vld [vmem:[#allocation120_spill] sm:$0xff] }
 0x9b3   :  { %19142 = vmatmul.mubr.f32.gmra.mrb[48].mxu1 %v29318_v8  ;;  %v29329_v8 = vld [vmem:[#allocation50_spill] sm:$0xff] }
 0x9b4   :  { %19144 = vmatprep.mubr.f32.mxu1 %v29319_v63  ;;  %v29330_v63 = vld [vmem:[#allocation49_spill] sm:$0xff] }
 0x9b7   :  { %19145 = vmatmul.mubr.f32.gmra.mrb[50].mxu1 %v29320_v6  ;;  %v29331_v6 = vld [vmem:[#allocation54_spill] sm:$0xff] }
 0x9b8   :  { %19147 = vmatprep.mubr.f32.mxu1 %v29321_v19  ;;  %v29332_v19 = vld [vmem:[#allocation52_spill] sm:$0xff] }
 0x9bb   :  { %19148 = vmatmul.mubr.f32.gmra.mrb[52].mxu1 %v29322_v3  ;;  %v29333_v3 = vld [vmem:[#allocation73_spill] sm:$0xff] }
 0x9bc   :  { %19150 = vmatprep.mubr.f32.mxu1 %v29323_v44  ;;  %v29334_v44 = vld [vmem:[#allocation76_spill] sm:$0xff] }
 0x9bf   :  { %19151 = vmatmul.mubr.f32.gmra.mrb[54].mxu1 %v29324_v20 }
 0x9c0   :  { %19153 = vmatprep.mubr.f32.mxu1 %v29325_v29  ;;  %v29335_v29 = vld [vmem:[#allocation78_spill] sm:$0xff] }
 0x9c3   :  { %19154 = vmatmul.mubr.f32.gmra.mrb[56].mxu1 %v29326_v12 }
 0x9c4   :  { %19156 = vmatprep.mubr.f32.mxu1 %v29327_v9 }
 0x9c7   :  { %19157 = vmatmul.mubr.f32.gmra.mrb[58].mxu1 %v29328_v52 }
 0x9c8   :  { %19159 = vmatprep.mubr.f32.mxu1 %v29329_v8  ;;  %v29336_v8 = vld [vmem:[#allocation74_spill] sm:$0xff] }
 0x9cb   :  { %19160 = vmatmul.mubr.f32.gmra.mrb[60].mxu1 %v29330_v63  ;;  %v8457_v63 = vmax.f32 %v29336_v8, 0.0 }
 0x9cc   :  { %19162 = vmatprep.mubr.f32.mxu1 %v29331_v6 }
 0x9cf   :  { %19163 = vmatmul.mubr.f32.gmra.mrb[62].mxu1 %v29332_v19  ;;  %v29337_v19 = vld [vmem:[#allocation121_spill] sm:$0xff] }
 0x9d0   :  { %19165 = vmatprep.mubr.f32.mxu1 %v29333_v3  ;;  %v26455_v3 = vmul.f32 %v8457_v63, %v29337_v19  ;;  %v15686_v63 = vld [vmem:[%s28300_s5 + $0x328] sm:$0xff] }
 0x9d2   :  { %29338 = vst [vmem:[#allocation63_spill] sm:$0xff] %v26455_v3 }
 0x9d3   :  { %19166 = vmatmul.mubr.f32.gmra.mrb[64].mxu1 %v29334_v44 }
 0x9d4   :  { %19168 = vmatprep.mubr.f32.mxu1 %v26291_v0  ;;  %v15683_v0 = vld [vmem:[%s28300_s5 + $0x310] sm:$0xff] }
 0x9d7   :  { %19169 = vmatmul.mubr.f32.gmra.mrb[66].mxu1 %v29335_v29 }
 0x9d8   :  { %19171 = vmatprep.mubr.f32.mxu1 %v26301_v23  ;;  %v15684_v23 = vld [vmem:[%s28300_s5 + $0x318] sm:$0xff] }
 0x9d9   :  { %v19984_v8 = vpack.c.bf16 %v15684_v23, %v15683_v0  ;;  %v15688_v0 = vld [vmem:[%s28300_s5 + $0x338] sm:$0xff]  ;;  %v15690_v23 = vld [vmem:[%s28300_s5 + $0x348] sm:$0xff] }
 0x9db   :  { %19172 = vmatmul.mubr.f32.gmra.mrb[68].mxu1 %v26305_v36 }
 0x9dc   :  { %19174 = vmatprep.mubr.f32.mxu1 %v26311_v58 }
 0x9df   :  { %19175 = vmatmul.mubr.f32.gmra.mrb[70].mxu1 %v26314_v45 }
 0x9e0   :  { %19177 = vmatprep.mubr.f32.mxu1 %v26319_v42  ;;  %v15685_v42 = vld [vmem:[%s28300_s5 + $0x320] sm:$0xff] }
 0x9e1   :  { %v19988_v19 = vpack.c.bf16 %v15686_v63, %v15685_v42  ;;  %v15692_v42 = vld [vmem:[%s28300_s5 + $0x358] sm:$0xff] }
 0x9e3   :  { %19178 = vmatmul.mubr.f32.gmra.mrb[72].mxu1 %v26455_v3 }
 0x9e4   :  { %19212 = vmatprep.mubr.f32.mxu1 %v25515_v11  ;;  %v15687_v11 = vld [vmem:[%s28300_s5 + $0x330] sm:$0xff] }
 0x9e7   :  { %19213 = vmatmul.mubr.f32.vlgmr.msra.gmra.mrb[74].mxu1 %v25519_v40  ;;  %v19992_v40 = vpack.c.bf16 %v15688_v0, %v15687_v11  ;;  %v15697_v11 = vld [vmem:[%s28300_s5 + $0x380] sm:$0xff]  ;;  %v15698_v0 = vld [vmem:[%s28300_s5 + $0x388] sm:$0xff] }
 0x9e8   :  { %19215 = vmatprep.mubr.f32.mxu1 %v25526_v18  ;;  %19983 = vmatpush3.bf16.msra.mxu1 %v26390_v31  ;;  %v15689_v18 = vld [vmem:[%s28300_s5 + $0x340] sm:$0xff]  ;;  %v15694_v31 = vld [vmem:[%s28300_s5 + $0x368] sm:$0xff] }
 0x9e9   :  { %19985 = vmatprep.subr.bf16.mxu1 %v19984_v8 }
 0x9eb   :  { %19216 = vmatmul.mubr.f32.gmra.mrb[76].mxu1 %v25530_v61  ;;  %v19996_v61 = vpack.c.bf16 %v15690_v23, %v15689_v18  ;;  %v29339_v18 = vld [vmem:[#allocation88_spill] sm:$0xff]  ;;  %v29340_v23 = vld [vmem:[#allocation87_spill] sm:$0xff] }
 0x9ec   :  { %19218 = vmatprep.mubr.f32.mxu1 %v25536_v43  ;;  %19987 = vmatpush3.bf16.msra.mxu1 %v19984_v8  ;;  %v15691_v43 = vld [vmem:[%s28300_s5 + $0x350] sm:$0xff]  ;;  %v15696_v8 = vld [vmem:[%s28300_s5 + $0x378] sm:$0xff] }
 0x9ed   :  { %19989 = vmatprep.subr.bf16.mxu1 %v19988_v19 }
 0x9ef   :  { %19219 = vmatmul.mubr.f32.gmra.mrb[78].mxu1 %v25540_v48  ;;  %v20000_v48 = vpack.c.bf16 %v15692_v42, %v15691_v43  ;;  %v29342_v43 = vld [vmem:[#allocation91_spill] sm:$0xff]  ;;  %v29343_v42 = vld [vmem:[#allocation96_spill] sm:$0xff] }
 0x9f0   :  { %19221 = vmatprep.mubr.f32.mxu1 %v25546_v10  ;;  %19991 = vmatpush3.bf16.msra.mxu1 %v19988_v19  ;;  %v15693_v10 = vld [vmem:[%s28300_s5 + $0x360] sm:$0xff]  ;;  %v15695_v19 = vld [vmem:[%s28300_s5 + $0x370] sm:$0xff] }
 0x9f1   :  { %19993 = vmatprep.subr.bf16.mxu1 %v19992_v40  ;;  %v20008_v63 = vpack.c.bf16 %v15696_v8, %v15695_v19  ;;  %v29348_v19 = vld [vmem:[#allocation103_spill] sm:$0xff]  ;;  %v29349_v8 = vld [vmem:[#allocation108_spill] sm:$0xff] }
 0x9f3   :  { %19222 = vmatmul.mubr.f32.gmra.mrb[0].mxu1 %v25550_v35  ;;  %v20004_v35 = vpack.c.bf16 %v15694_v31, %v15693_v10  ;;  %v29345_v10 = vld [vmem:[#allocation100_spill] sm:$0xff]  ;;  %v29346_v31 = vld [vmem:[#allocation99_spill] sm:$0xff] }
 0x9f4   :  { %19224 = vmatprep.mubr.f32.mxu1 %v25556_v16  ;;  %19995 = vmatpush3.bf16.msra.mxu1 %v19992_v40  ;;  %v26526_v40 = vpack.c.bf16 %v15698_v0, %v15697_v11  ;;  %v29351_v11 = vld [vmem:[#allocation112_spill] sm:$0xff]  ;;  %v29352_v0 = vld [vmem:[#allocation110_spill] sm:$0xff] }
 0x9f5   :  { %19997 = vmatprep.subr.bf16.mxu1 %v19996_v61 }
 0x9f7   :  { %19225 = vmatmul.mubr.f32.gmra.mrb[2].mxu1 %v25566_v34 }
 0x9f8   :  { %19227 = vmatprep.mubr.f32.mxu1 %v25578_v50  ;;  %19999 = vmatpush3.bf16.msra.mxu1 %v19996_v61  ;;  %v29341_v61 = vld [vmem:[#allocation92_spill] sm:$0xff] }
 0x9f9   :  { %20001 = vmatprep.subr.bf16.mxu1 %v20000_v48 }
 0x9fb   :  { %19228 = vmatmul.mubr.f32.gmra.mrb[4].mxu1 %v25582_v24 }
 0x9fc   :  { %19230 = vmatprep.mubr.f32.mxu1 %v25594_v22  ;;  %20003 = vmatpush3.bf16.msra.mxu1 %v20000_v48  ;;  %v29344_v48 = vld [vmem:[#allocation95_spill] sm:$0xff] }
 0x9fd   :  { %20005 = vmatprep.subr.bf16.mxu1 %v20004_v35 }
 0x9ff   :  { %19231 = vmatmul.mubr.f32.gmra.mrb[6].mxu1 %v25598_v60 }
 0xa00   :  { %19233 = vmatprep.mubr.f32.mxu1 %v25610_v21  ;;  %20007 = vmatpush3.bf16.msra.mxu1 %v20004_v35  ;;  %v29347_v35 = vld [vmem:[#allocation104_spill] sm:$0xff] }
 0xa01   :  { %20009 = vmatprep.subr.bf16.mxu1 %v20008_v63 }
 0xa03   :  { %19234 = vmatmul.mubr.f32.gmra.mrb[8].mxu1 %v25614_v46 }
 0xa04   :  { %19236 = vmatprep.mubr.f32.mxu1 %v25626_v32  ;;  %20011 = vmatpush3.bf16.msra.mxu1 %v20008_v63  ;;  %v29350_v63 = vld [vmem:[#allocation107_spill] sm:$0xff] }
 0xa05   :  { %20013 = vmatprep.subr.bf16.mxu1 %v26526_v40 }
 0xa07   :  { %19237 = vmatmul.mubr.f32.gmra.mrb[10].mxu1 %v25632_v57 }
 0xa08   :  { %19239 = vmatprep.mubr.f32.mxu1 %v25638_v17 }
 0xa0b   :  { %19240 = vmatmul.mubr.f32.gmra.mrb[12].mxu1 %v25643_v4 }
 0xa0c   :  { %19242 = vmatprep.mubr.f32.mxu1 %v25649_v5 }
 0xa0f   :  { %19243 = vmatmul.mubr.f32.gmra.mrb[14].mxu1 %v25653_v41 }
 0xa10   :  { %19245 = vmatprep.mubr.f32.mxu1 %v25659_v30 }
 0xa13   :  { %19246 = vmatmul.mubr.f32.gmra.mrb[16].mxu1 %v25663_v26 }
 0xa14   :  { %19248 = vmatprep.mubr.f32.mxu1 %v25669_v56 }
 0xa17   :  { %19249 = vmatmul.mubr.f32.gmra.mrb[18].mxu1 %v25673_v62 }
 0xa18   :  { %19251 = vmatprep.mubr.f32.mxu1 %v25679_v49 }
 0xa1b   :  { %19252 = vmatmul.mubr.f32.gmra.mrb[20].mxu1 %v25683_v13 }
 0xa1c   :  { %19254 = vmatprep.mubr.f32.mxu1 %v25689_v51 }
 0xa1f   :  { %19255 = vmatmul.mubr.f32.gmra.mrb[22].mxu1 %v25693_v14 }
 0xa20   :  { %19257 = vmatprep.mubr.f32.mxu1 %v25699_v37 }
 0xa23   :  { %19258 = vmatmul.mubr.f32.gmra.mrb[24].mxu1 %v25703_v25 }
 0xa24   :  { %19260 = vmatprep.mubr.f32.mxu1 %v25709_v15 }
 0xa27   :  { %19261 = vmatmul.mubr.f32.gmra.mrb[26].mxu1 %v25713_v2 }
 0xa28   :  { %19263 = vmatprep.mubr.f32.mxu1 %v25719_v54 }
 0xa2b   :  { %19264 = vmatmul.mubr.f32.gmra.mrb[28].mxu1 %v25723_v59 }
 0xa2c   :  { %19266 = vmatprep.mubr.f32.mxu1 %v25729_v7 }
 0xa2f   :  { %19267 = vmatmul.mubr.f32.gmra.mrb[30].mxu1 %v25733_v47 }
 0xa30   :  { %19269 = vmatprep.mubr.f32.mxu1 %v29234_v33 }
 0xa33   :  { %19270 = vmatmul.mubr.f32.gmra.mrb[32].mxu1 %v29235_v28 }
 0xa34   :  { %19272 = vmatprep.mubr.f32.mxu1 %v25749_v39 }
 0xa37   :  { %19273 = vmatmul.mubr.f32.gmra.mrb[34].mxu1 %v29236_v27 }
 0xa38   :  { %19275 = vmatprep.mubr.f32.mxu1 %v29252_v55 }
 0xa3b   :  { %19276 = vmatmul.mubr.f32.gmra.mrb[36].mxu1 %v29253_v1 }
 0xa3c   :  { %19278 = vmatprep.mubr.f32.mxu1 %v29254_v38 }
 0xa3f   :  { %19279 = vmatmul.mubr.f32.gmra.mrb[38].mxu1 %v29309_v53 }
 0xa40   :  { %19281 = vmatprep.mubr.f32.mxu1 %v29339_v18 }
 0xa43   :  { %19282 = vmatmul.mubr.f32.gmra.mrb[40].mxu1 %v29340_v23 }
 0xa44   :  { %19284 = vmatprep.mubr.f32.mxu1 %v29341_v61 }
 0xa47   :  { %19285 = vmatmul.mubr.f32.gmra.mrb[42].mxu1 %v29342_v43 }
 0xa48   :  { %19287 = vmatprep.mubr.f32.mxu1 %v29343_v42  ;;  %v29353_v42 = vld [vmem:[#allocation113_spill] sm:$0xff] }
 0xa4b   :  { %19288 = vmatmul.mubr.f32.gmra.mrb[44].mxu1 %v29344_v48 }
 0xa4c   :  { %19290 = vmatprep.mubr.f32.mxu1 %v29345_v10 }
 0xa4f   :  { %19291 = vmatmul.mubr.f32.gmra.mrb[46].mxu1 %v29346_v31 }
 0xa50   :  { %19293 = vmatprep.mubr.f32.mxu1 %v29347_v35  ;;  %v29354_v35 = vld [vmem:[#allocation50_spill] sm:$0xff] }
 0xa53   :  { %19294 = vmatmul.mubr.f32.gmra.mrb[48].mxu1 %v29348_v19  ;;  %v29355_v19 = vld [vmem:[#allocation49_spill] sm:$0xff] }
 0xa54   :  { %19296 = vmatprep.mubr.f32.mxu1 %v29349_v8 }
 0xa57   :  { %19297 = vmatmul.mubr.f32.gmra.mrb[50].mxu1 %v29350_v63  ;;  %v29356_v63 = vld [vmem:[#allocation52_spill] sm:$0xff] }
 0xa58   :  { %19299 = vmatprep.mubr.f32.mxu1 %v29351_v11  ;;  %v29357_v11 = vld [vmem:[#allocation73_spill] sm:$0xff] }
 0xa5b   :  { %19300 = vmatmul.mubr.f32.gmra.mrb[52].mxu1 %v29352_v0 }
 0xa5c   :  { %19302 = vmatprep.mubr.f32.mxu1 %v29324_v20  ;;  %v29358_v20 = vld [vmem:[#allocation79_spill] sm:$0xff] }
 0xa5f   :  { %19303 = vmatmul.mubr.f32.gmra.mrb[54].mxu1 %v29353_v42 }
 0xa60   :  { %19305 = vmatprep.mubr.f32.mxu1 %v29326_v12  ;;  %v29359_v12 = vld [vmem:[#allocation82_spill] sm:$0xff] }
 0xa63   :  { %19306 = vmatmul.mubr.f32.gmra.mrb[56].mxu1 %v29327_v9 }
 0xa64   :  { %19308 = vmatprep.mubr.f32.mxu1 %v29328_v52 }
 0xa67   :  { %19309 = vmatmul.mubr.f32.gmra.mrb[58].mxu1 %v29354_v35 }
 0xa68   :  { %19311 = vmatprep.mubr.f32.mxu1 %v29355_v19  ;;  %v29360_v19 = vld [vmem:[#allocation60_spill] sm:$0xff] }
 0xa6b   :  { %19312 = vmatmul.mubr.f32.gmra.mrb[60].mxu1 %v29331_v6 }
 0xa6c   :  { %19314 = vmatprep.mubr.f32.mxu1 %v29356_v63 }
 0xa6f   :  { %19315 = vmatmul.mubr.f32.gmra.mrb[62].mxu1 %v29357_v11 }
 0xa70   :  { %19317 = vmatprep.mubr.f32.mxu1 %v29334_v44  ;;  %v15699_v44 = vld [vmem:[%s28300_s5 + $0x390] sm:$0xff] }
 0xa73   :  { %19318 = vmatmul.mubr.f32.gmra.mrb[64].mxu1 %v29358_v20  ;;  %v29361_v20 = vmov 0.0  }
 0xa74   :  { %19320 = vmatprep.mubr.f32.mxu1 %v29335_v29  ;;  %v15700_v29 = vld [vmem:[%s28300_s5 + $0x398] sm:$0xff] }
 0xa77   :  { %19321 = vmatmul.mubr.f32.gmra.mrb[66].mxu1 %v29359_v12 }
 0xa78   :  { %19323 = vmatprep.mubr.f32.mxu1 %v26305_v36  ;;  %v20016_v36 = vpack.c.bf16 %v15700_v29, %v15699_v44  ;;  %v15704_v44 = vld [vmem:[%s28300_s5 + $0x3b8] sm:$0xff] }
 0xa7b   :  { %19324 = vmatmul.mubr.f32.gmra.mrb[68].mxu1 %v26311_v58 }
 0xa7c   :  { %19326 = vmatprep.mubr.f32.mxu1 %v26314_v45  ;;  %v15701_v45 = vld [vmem:[%s28300_s5 + $0x3a0] sm:$0xff] }
 0xa7f   :  { %19327 = vmatmul.mubr.f32.gmra.mrb[70].mxu1 %v29360_v19 }
 0xa80   :  { %19329 = vmatprep.mubr.f32.mxu1 %v26455_v3  ;;  %v15702_v3 = vld [vmem:[%s28300_s5 + $0x3a8] sm:$0xff] }
 0xa81   :  { %v20020_v19 = vpack.c.bf16 %v15702_v3, %v15701_v45  ;;  %v15706_v45 = vld [vmem:[%s28300_s5 + $0x3c8] sm:$0xff] }
 0xa83   :  { %19330 = vmatmul.mubr.f32.gmra.mrb[72].mxu1 %v29361_v20 }
 0xa84   :  { %19364 = vmatprep.mubr.f32.mxu1 %v25556_v16  ;;  %v15703_v16 = vld [vmem:[%s28300_s5 + $0x3b0] sm:$0xff] }
 0xa85   :  { %v20024_v29 = vpack.c.bf16 %v15704_v44, %v15703_v16  ;;  %v15708_v16 = vld [vmem:[%s28300_s5 + $0x3d8] sm:$0xff] }
 0xa87   :  { %19365 = vmatmul.mubr.f32.vlgmr.msra.gmra.mrb[74].mxu1 %v25566_v34 }
 0xa88   :  { %19367 = vmatprep.mubr.f32.mxu1 %v25578_v50  ;;  %20015 = vmatpush3.bf16.msra.mxu1 %v26526_v40  ;;  %v15705_v40 = vld [vmem:[%s28300_s5 + $0x3c0] sm:$0xff] }
 0xa89   :  { %20017 = vmatprep.subr.bf16.mxu1 %v20016_v36  ;;  %v20028_v3 = vpack.c.bf16 %v15706_v45, %v15705_v40  ;;  %v15710_v40 = vld [vmem:[%s28300_s5 + $0x3e8] sm:$0xff] }
 0xa8b   :  { %19368 = vmatmul.mubr.f32.gmra.mrb[76].mxu1 %v25582_v24 }
 0xa8c   :  { %19370 = vmatprep.mubr.f32.mxu1 %v25594_v22  ;;  %20019 = vmatpush3.bf16.msra.mxu1 %v20016_v36  ;;  %v15707_v36 = vld [vmem:[%s28300_s5 + $0x3d0] sm:$0xff] }
 0xa8d   :  { %20021 = vmatprep.subr.bf16.mxu1 %v20020_v19  ;;  %v20032_v44 = vpack.c.bf16 %v15708_v16, %v15707_v36  ;;  %v15712_v36 = vld [vmem:[%s28300_s5 + $0x3f8] sm:$0xff] }
 0xa8f   :  { %19371 = vmatmul.mubr.f32.gmra.mrb[78].mxu1 %v25598_v60 }
 0xa90   :  { %19373 = vmatprep.mubr.f32.mxu1 %v25610_v21  ;;  %20023 = vmatpush3.bf16.msra.mxu1 %v20020_v19  ;;  %v15709_v19 = vld [vmem:[%s28300_s5 + $0x3e0] sm:$0xff] }
 0xa91   :  { %20025 = vmatprep.subr.bf16.mxu1 %v20024_v29  ;;  %v20036_v45 = vpack.c.bf16 %v15710_v40, %v15709_v19  ;;  %v29362_v40 = vld [vmem:[#allocation96_spill] sm:$0xff] }
 0xa93   :  { %19374 = vmatmul.mubr.f32.gmra.mrb[0].mxu1 %v25614_v46 }
 0xa94   :  { %19376 = vmatprep.mubr.f32.mxu1 %v25626_v32  ;;  %20027 = vmatpush3.bf16.msra.mxu1 %v20024_v29  ;;  %v15711_v29 = vld [vmem:[%s28300_s5 + $0x3f0] sm:$0xff] }
 0xa95   :  { %20029 = vmatprep.subr.bf16.mxu1 %v20028_v3  ;;  %v20040_v16 = vpack.c.bf16 %v15712_v36, %v15711_v29  ;;  %v29364_v29 = vld [vmem:[#allocation103_spill] sm:$0xff] }
 0xa96   :  { %v29365_v36 = vld [vmem:[#allocation107_spill] sm:$0xff] }
 0xa97   :  { %19377 = vmatmul.mubr.f32.gmra.mrb[2].mxu1 %v25632_v57 }
 0xa98   :  { %19379 = vmatprep.mubr.f32.mxu1 %v25638_v17  ;;  %20031 = vmatpush3.bf16.msra.mxu1 %v20028_v3  ;;  %v15713_v3 = vld [vmem:[%s28300_s5 + $0x400] sm:$0xff] }
 0xa99   :  { %20033 = vmatprep.subr.bf16.mxu1 %v20032_v44 }
 0xa9b   :  { %19380 = vmatmul.mubr.f32.gmra.mrb[4].mxu1 %v25643_v4 }
 0xa9c   :  { %19382 = vmatprep.mubr.f32.mxu1 %v25649_v5  ;;  %20035 = vmatpush3.bf16.msra.mxu1 %v20032_v44  ;;  %v15714_v44 = vld [vmem:[%s28300_s5 + $0x408] sm:$0xff] }
 0xa9d   :  { %20037 = vmatprep.subr.bf16.mxu1 %v20036_v45  ;;  %v26658_v19 = vpack.c.bf16 %v15714_v44, %v15713_v3  ;;  %v29367_v3 = vld [vmem:[#allocation114_spill] sm:$0xff] }
 0xa9e   :  { %v29368_v44 = vld [vmem:[#allocation118_spill] sm:$0xff] }
 0xa9f   :  { %19383 = vmatmul.mubr.f32.gmra.mrb[6].mxu1 %v25653_v41 }
 0xaa0   :  { %19385 = vmatprep.mubr.f32.mxu1 %v25659_v30  ;;  %20039 = vmatpush3.bf16.msra.mxu1 %v20036_v45  ;;  %v29363_v45 = vld [vmem:[#allocation104_spill] sm:$0xff] }
 0xaa1   :  { %20041 = vmatprep.subr.bf16.mxu1 %v20040_v16 }
 0xaa3   :  { %19386 = vmatmul.mubr.f32.gmra.mrb[8].mxu1 %v25663_v26 }
 0xaa4   :  { %19388 = vmatprep.mubr.f32.mxu1 %v25669_v56  ;;  %20043 = vmatpush3.bf16.msra.mxu1 %v20040_v16  ;;  %v29366_v16 = vld [vmem:[#allocation112_spill] sm:$0xff] }
 0xaa5   :  { %20045 = vmatprep.subr.bf16.mxu1 %v26658_v19 }
 0xaa7   :  { %19389 = vmatmul.mubr.f32.gmra.mrb[10].mxu1 %v25673_v62 }
 0xaa8   :  { %19391 = vmatprep.mubr.f32.mxu1 %v25679_v49 }
 0xaab   :  { %19392 = vmatmul.mubr.f32.gmra.mrb[12].mxu1 %v25683_v13 }
 0xaac   :  { %19394 = vmatprep.mubr.f32.mxu1 %v25689_v51 }
 0xaaf   :  { %19395 = vmatmul.mubr.f32.gmra.mrb[14].mxu1 %v25693_v14 }
 0xab0   :  { %19397 = vmatprep.mubr.f32.mxu1 %v25699_v37 }
 0xab3   :  { %19398 = vmatmul.mubr.f32.gmra.mrb[16].mxu1 %v25703_v25 }
 0xab4   :  { %19400 = vmatprep.mubr.f32.mxu1 %v25709_v15 }
 0xab7   :  { %19401 = vmatmul.mubr.f32.gmra.mrb[18].mxu1 %v25713_v2 }
 0xab8   :  { %19403 = vmatprep.mubr.f32.mxu1 %v25719_v54 }
 0xabb   :  { %19404 = vmatmul.mubr.f32.gmra.mrb[20].mxu1 %v25723_v59 }
 0xabc   :  { %19406 = vmatprep.mubr.f32.mxu1 %v25729_v7 }
 0xabf   :  { %19407 = vmatmul.mubr.f32.gmra.mrb[22].mxu1 %v25733_v47 }
 0xac0   :  { %19409 = vmatprep.mubr.f32.mxu1 %v29234_v33 }
 0xac3   :  { %19410 = vmatmul.mubr.f32.gmra.mrb[24].mxu1 %v29235_v28 }
 0xac4   :  { %19412 = vmatprep.mubr.f32.mxu1 %v25749_v39 }
 0xac7   :  { %19413 = vmatmul.mubr.f32.gmra.mrb[26].mxu1 %v29236_v27 }
 0xac8   :  { %19415 = vmatprep.mubr.f32.mxu1 %v29252_v55 }
 0xacb   :  { %19416 = vmatmul.mubr.f32.gmra.mrb[28].mxu1 %v29253_v1 }
 0xacc   :  { %19418 = vmatprep.mubr.f32.mxu1 %v29254_v38 }
 0xacf   :  { %19419 = vmatmul.mubr.f32.gmra.mrb[30].mxu1 %v29309_v53 }
 0xad0   :  { %19421 = vmatprep.mubr.f32.mxu1 %v29339_v18 }
 0xad3   :  { %19422 = vmatmul.mubr.f32.gmra.mrb[32].mxu1 %v29340_v23 }
 0xad4   :  { %19424 = vmatprep.mubr.f32.mxu1 %v29341_v61 }
 0xad7   :  { %19425 = vmatmul.mubr.f32.gmra.mrb[34].mxu1 %v29342_v43 }
 0xad8   :  { %19427 = vmatprep.mubr.f32.mxu1 %v29362_v40 }
 0xadb   :  { %19428 = vmatmul.mubr.f32.gmra.mrb[36].mxu1 %v29344_v48 }
 0xadc   :  { %19430 = vmatprep.mubr.f32.mxu1 %v29345_v10 }
 0xadf   :  { %19431 = vmatmul.mubr.f32.gmra.mrb[38].mxu1 %v29346_v31 }
 0xae0   :  { %19433 = vmatprep.mubr.f32.mxu1 %v29363_v45 }
 0xae3   :  { %19434 = vmatmul.mubr.f32.gmra.mrb[40].mxu1 %v29364_v29  ;;  %v29369_v29 = vld [vmem:[#allocation49_spill] sm:$0xff] }
 0xae4   :  { %19436 = vmatprep.mubr.f32.mxu1 %v29349_v8 }
 0xae7   :  { %19437 = vmatmul.mubr.f32.gmra.mrb[42].mxu1 %v29365_v36 }
 0xae8   :  { %19439 = vmatprep.mubr.f32.mxu1 %v29366_v16 }
 0xaeb   :  { %19440 = vmatmul.mubr.f32.gmra.mrb[44].mxu1 %v29352_v0  ;;  %v29370_v0 = vld [vmem:[#allocation76_spill] sm:$0xff] }
 0xaec   :  { %19442 = vmatprep.mubr.f32.mxu1 %v29367_v3  ;;  %v29371_v3 = vld [vmem:[#allocation79_spill] sm:$0xff] }
 0xaef   :  { %19443 = vmatmul.mubr.f32.gmra.mrb[46].mxu1 %v29353_v42  ;;  %v29372_v42 = vld [vmem:[#allocation78_spill] sm:$0xff] }
 0xaf0   :  { %19445 = vmatprep.mubr.f32.mxu1 %v29368_v44 }
 0xaf3   :  { %19446 = vmatmul.mubr.f32.gmra.mrb[48].mxu1 %v29327_v9  ;;  %v29373_v9 = vld [vmem:[#allocation86_spill] sm:$0xff] }
 0xaf4   :  { %19448 = vmatprep.mubr.f32.mxu1 %v29328_v52 }
 0xaf7   :  { %19449 = vmatmul.mubr.f32.gmra.mrb[50].mxu1 %v29354_v35  ;;  %v29374_v35 = vld [vmem:[#allocation58_spill] sm:$0xff] }
 0xaf8   :  { %19451 = vmatprep.mubr.f32.mxu1 %v29369_v29  ;;  %v29375_v29 = vld [vmem:[#allocation60_spill] sm:$0xff] }
 0xafb   :  { %19452 = vmatmul.mubr.f32.gmra.mrb[52].mxu1 %v29331_v6  ;;  %v29376_v6 = vld [vmem:[#allocation63_spill] sm:$0xff] }
 0xafc   :  { %19454 = vmatprep.mubr.f32.mxu1 %v29356_v63 }
 0xaff   :  { %19455 = vmatmul.mubr.f32.gmra.mrb[54].mxu1 %v29357_v11 }
 0xb00   :  { %19457 = vmatprep.mubr.f32.mxu1 %v29370_v0 }
 0xb03   :  { %19458 = vmatmul.mubr.f32.gmra.mrb[56].mxu1 %v29371_v3 }
 0xb04   :  { %19460 = vmatprep.mubr.f32.mxu1 %v29372_v42 }
 0xb07   :  { %19461 = vmatmul.mubr.f32.gmra.mrb[58].mxu1 %v29359_v12 }
 0xb08   :  { %19463 = vmatprep.mubr.f32.mxu1 %v29373_v9  ;;  %v15718_v9 = vld [vmem:[%s28300_s5 + $0x428] sm:$0xff] }
 0xb0b   :  { %19464 = vmatmul.mubr.f32.gmra.mrb[60].mxu1 %v26311_v58  ;;  %v15717_v58 = vld [vmem:[%s28300_s5 + $0x420] sm:$0xff] }
 0xb0c   :  { %19466 = vmatprep.mubr.f32.mxu1 %v29374_v35  ;;  %v20052_v12 = vpack.c.bf16 %v15718_v9, %v15717_v58  ;;  %v15722_v58 = vld [vmem:[%s28300_s5 + $0x448] sm:$0xff] }
 0xb0f   :  { %19467 = vmatmul.mubr.f32.gmra.mrb[62].mxu1 %v29375_v29  ;;  %v15716_v29 = vld [vmem:[%s28300_s5 + $0x418] sm:$0xff] }
 0xb10   :  { %19469 = vmatprep.mubr.f32.mxu1 %v29376_v6  ;;  %v15715_v6 = vld [vmem:[%s28300_s5 + $0x410] sm:$0xff] }
 0xb11   :  { %v20048_v35 = vpack.c.bf16 %v15716_v29, %v15715_v6  ;;  %v15720_v6 = vld [vmem:[%s28300_s5 + $0x438] sm:$0xff] }
 0xb13   :  { %19470 = vmatmul.mubr.f32.gmra.mrb[64].mxu1 %v29361_v20 }
 0xb14   :  { %19472 = vmatprep.mubr.f32.mxu1 %v29361_v20 }
 0xb17   :  { %19473 = vmatmul.mubr.f32.gmra.mrb[66].mxu1 %v29361_v20 }
 0xb18   :  { %19475 = vmatprep.mubr.f32.mxu1 %v29361_v20 }
 0xb1b   :  { %19476 = vmatmul.mubr.f32.gmra.mrb[68].mxu1 %v29361_v20 }
 0xb1c   :  { %19478 = vmatprep.mubr.f32.mxu1 %v29361_v20 }
 0xb1f   :  { %19479 = vmatmul.mubr.f32.gmra.mrb[70].mxu1 %v29361_v20 }
 0xb20   :  { %19481 = vmatprep.mubr.f32.mxu1 %v29361_v20 }
 0xb23   :  { %19482 = vmatmul.mubr.f32.gmra.mrb[72].mxu1 %v29361_v20 }
 0xb24   :  { %19516 = vmatprep.mubr.f32.mxu1 %v25566_v34  ;;  %v15719_v34 = vld [vmem:[%s28300_s5 + $0x430] sm:$0xff] }
 0xb25   :  { %v20056_v29 = vpack.c.bf16 %v15720_v6, %v15719_v34  ;;  %v15724_v34 = vld [vmem:[%s28300_s5 + $0x458] sm:$0xff] }
 0xb27   :  { %19517 = vmatmul.mubr.f32.vlgmr.msra.gmra.mrb[74].mxu1 %v25578_v50 }
 0xb28   :  { %19519 = vmatprep.mubr.f32.mxu1 %v25582_v24  ;;  %20047 = vmatpush3.bf16.msra.mxu1 %v26658_v19  ;;  %v15721_v19 = vld [vmem:[%s28300_s5 + $0x440] sm:$0xff] }
 0xb29   :  { %20049 = vmatprep.subr.bf16.mxu1 %v20048_v35  ;;  %v20060_v9 = vpack.c.bf16 %v15722_v58, %v15721_v19  ;;  %v15726_v19 = vld [vmem:[%s28300_s5 + $0x468] sm:$0xff] }
 0xb2b   :  { %19520 = vmatmul.mubr.f32.gmra.mrb[76].mxu1 %v25594_v22 }
 0xb2c   :  { %19522 = vmatprep.mubr.f32.mxu1 %v25598_v60  ;;  %20051 = vmatpush3.bf16.msra.mxu1 %v20048_v35  ;;  %v15723_v35 = vld [vmem:[%s28300_s5 + $0x450] sm:$0xff] }
 0xb2d   :  { %20053 = vmatprep.subr.bf16.mxu1 %v20052_v12  ;;  %v20064_v6 = vpack.c.bf16 %v15724_v34, %v15723_v35  ;;  %v15728_v35 = vld [vmem:[%s28300_s5 + $0x478] sm:$0xff] }
 0xb2f   :  { %19523 = vmatmul.mubr.f32.gmra.mrb[78].mxu1 %v25610_v21 }
 0xb30   :  { %19525 = vmatprep.mubr.f32.mxu1 %v25614_v46  ;;  %20055 = vmatpush3.bf16.msra.mxu1 %v20052_v12  ;;  %v15725_v12 = vld [vmem:[%s28300_s5 + $0x460] sm:$0xff] }
 0xb31   :  { %20057 = vmatprep.subr.bf16.mxu1 %v20056_v29  ;;  %v20068_v58 = vpack.c.bf16 %v15726_v19, %v15725_v12  ;;  %v29379_v12 = vld [vmem:[#allocation114_spill] sm:$0xff]  ;;  %v29380_v19 = vld [vmem:[#allocation113_spill] sm:$0xff] }
 0xb33   :  { %19526 = vmatmul.mubr.f32.gmra.mrb[0].mxu1 %v25626_v32 }
 0xb34   :  { %19528 = vmatprep.mubr.f32.mxu1 %v25632_v57  ;;  %20059 = vmatpush3.bf16.msra.mxu1 %v20056_v29  ;;  %v15727_v29 = vld [vmem:[%s28300_s5 + $0x470] sm:$0xff] }
 0xb35   :  { %20061 = vmatprep.subr.bf16.mxu1 %v20060_v9  ;;  %v20072_v34 = vpack.c.bf16 %v15728_v35, %v15727_v29  ;;  %v29382_v29 = vld [vmem:[#allocation50_spill] sm:$0xff]  ;;  %v29383_v35 = vld [vmem:[#allocation49_spill] sm:$0xff] }
 0xb37   :  { %19529 = vmatmul.mubr.f32.gmra.mrb[2].mxu1 %v25638_v17 }
 0xb38   :  { %19531 = vmatprep.mubr.f32.mxu1 %v25643_v4  ;;  %20063 = vmatpush3.bf16.msra.mxu1 %v20060_v9  ;;  %v29377_v9 = vld [vmem:[#allocation103_spill] sm:$0xff] }
 0xb39   :  { %20065 = vmatprep.subr.bf16.mxu1 %v20064_v6 }
 0xb3b   :  { %19532 = vmatmul.mubr.f32.gmra.mrb[4].mxu1 %v25649_v5 }
 0xb3c   :  { %19534 = vmatprep.mubr.f32.mxu1 %v25653_v41  ;;  %20067 = vmatpush3.bf16.msra.mxu1 %v20064_v6  ;;  %v29378_v6 = vld [vmem:[#allocation110_spill] sm:$0xff] }
 0xb3d   :  { %20069 = vmatprep.subr.bf16.mxu1 %v20068_v58 }
 0xb3f   :  { %19535 = vmatmul.mubr.f32.gmra.mrb[6].mxu1 %v25659_v30 }
 0xb40   :  { %19537 = vmatprep.mubr.f32.mxu1 %v25663_v26  ;;  %20071 = vmatpush3.bf16.msra.mxu1 %v20068_v58  ;;  %v29381_v58 = vld [vmem:[#allocation117_spill] sm:$0xff] }
 0xb41   :  { %20073 = vmatprep.subr.bf16.mxu1 %v20072_v34 }
 0xb43   :  { %19538 = vmatmul.mubr.f32.gmra.mrb[8].mxu1 %v25669_v56 }
 0xb44   :  { %19540 = vmatprep.mubr.f32.mxu1 %v25673_v62  ;;  %20075 = vmatpush3.bf16.msra.mxu1 %v20072_v34  ;;  %v29384_v34 = vld [vmem:[#allocation54_spill] sm:$0xff] }
 0xb47   :  { %19541 = vmatmul.mubr.f32.gmra.mrb[10].mxu1 %v25679_v49 }
 0xb48   :  { %19543 = vmatprep.mubr.f32.mxu1 %v25683_v13 }
 0xb4b   :  { %19544 = vmatmul.mubr.f32.gmra.mrb[12].mxu1 %v25689_v51 }
 0xb4c   :  { %19546 = vmatprep.mubr.f32.mxu1 %v25693_v14 }
 0xb4f   :  { %19547 = vmatmul.mubr.f32.gmra.mrb[14].mxu1 %v25699_v37 }
 0xb50   :  { %19549 = vmatprep.mubr.f32.mxu1 %v25703_v25 }
 0xb53   :  { %19550 = vmatmul.mubr.f32.gmra.mrb[16].mxu1 %v25709_v15 }
 0xb54   :  { %19552 = vmatprep.mubr.f32.mxu1 %v25713_v2 }
 0xb57   :  { %19553 = vmatmul.mubr.f32.gmra.mrb[18].mxu1 %v25719_v54 }
 0xb58   :  { %19555 = vmatprep.mubr.f32.mxu1 %v25723_v59 }
 0xb5b   :  { %19556 = vmatmul.mubr.f32.gmra.mrb[20].mxu1 %v25729_v7 }
 0xb5c   :  { %19558 = vmatprep.mubr.f32.mxu1 %v25733_v47 }
 0xb5f   :  { %19559 = vmatmul.mubr.f32.gmra.mrb[22].mxu1 %v29234_v33 }
 0xb60   :  { %19561 = vmatprep.mubr.f32.mxu1 %v29235_v28 }
 0xb63   :  { %19562 = vmatmul.mubr.f32.gmra.mrb[24].mxu1 %v25749_v39 }
 0xb64   :  { %19564 = vmatprep.mubr.f32.mxu1 %v29236_v27 }
 0xb67   :  { %19565 = vmatmul.mubr.f32.gmra.mrb[26].mxu1 %v29252_v55 }
 0xb68   :  { %19567 = vmatprep.mubr.f32.mxu1 %v29253_v1 }
 0xb6b   :  { %19568 = vmatmul.mubr.f32.gmra.mrb[28].mxu1 %v29254_v38 }
 0xb6c   :  { %19570 = vmatprep.mubr.f32.mxu1 %v29309_v53 }
 0xb6f   :  { %19571 = vmatmul.mubr.f32.gmra.mrb[30].mxu1 %v29339_v18 }
 0xb70   :  { %19573 = vmatprep.mubr.f32.mxu1 %v29340_v23 }
 0xb73   :  { %19574 = vmatmul.mubr.f32.gmra.mrb[32].mxu1 %v29341_v61 }
 0xb74   :  { %19576 = vmatprep.mubr.f32.mxu1 %v29342_v43 }
 0xb77   :  { %19577 = vmatmul.mubr.f32.gmra.mrb[34].mxu1 %v29362_v40 }
 0xb78   :  { %19579 = vmatprep.mubr.f32.mxu1 %v29344_v48 }
 0xb7b   :  { %19580 = vmatmul.mubr.f32.gmra.mrb[36].mxu1 %v29345_v10 }
 0xb7c   :  { %19582 = vmatprep.mubr.f32.mxu1 %v29346_v31 }
 0xb7f   :  { %19583 = vmatmul.mubr.f32.gmra.mrb[38].mxu1 %v29363_v45 }
 0xb80   :  { %19585 = vmatprep.mubr.f32.mxu1 %v29377_v9 }
 0xb83   :  { %19586 = vmatmul.mubr.f32.gmra.mrb[40].mxu1 %v29349_v8 }
 0xb84   :  { %19588 = vmatprep.mubr.f32.mxu1 %v29365_v36 }
 0xb87   :  { %19589 = vmatmul.mubr.f32.gmra.mrb[42].mxu1 %v29366_v16 }
 0xb88   :  { %19591 = vmatprep.mubr.f32.mxu1 %v29378_v6 }
 0xb8b   :  { %19592 = vmatmul.mubr.f32.gmra.mrb[44].mxu1 %v29379_v12 }
 0xb8c   :  { %19594 = vmatprep.mubr.f32.mxu1 %v29380_v19 }
 0xb8f   :  { %19595 = vmatmul.mubr.f32.gmra.mrb[46].mxu1 %v29368_v44  ;;  %v29385_v44 = vld [vmem:[#allocation82_spill] sm:$0xff] }
 0xb90   :  { %19597 = vmatprep.mubr.f32.mxu1 %v29381_v58  ;;  %v29386_v58 = vld [vmem:[#allocation86_spill] sm:$0xff] }
 0xb93   :  { %19598 = vmatmul.mubr.f32.gmra.mrb[48].mxu1 %v29328_v52  ;;  %v29387_v52 = vld [vmem:[#allocation55_spill] sm:$0xff] }
 0xb94   :  { %19600 = vmatprep.mubr.f32.mxu1 %v29382_v29  ;;  %v29388_v29 = vld [vmem:[#allocation58_spill] sm:$0xff] }
 0xb97   :  { %19601 = vmatmul.mubr.f32.gmra.mrb[50].mxu1 %v29383_v35  ;;  %v29389_v35 = vld [vmem:[#allocation60_spill] sm:$0xff] }
 0xb98   :  { %19603 = vmatprep.mubr.f32.mxu1 %v29384_v34  ;;  %v29390_v34 = vld [vmem:[#allocation63_spill] sm:$0xff] }
 0xb9b   :  { %19604 = vmatmul.mubr.f32.gmra.mrb[52].mxu1 %v29356_v63 }
 0xb9c   :  { %19606 = vmatprep.mubr.f32.mxu1 %v29357_v11 }
 0xb9f   :  { %19607 = vmatmul.mubr.f32.gmra.mrb[54].mxu1 %v29370_v0 }
 0xba0   :  { %19609 = vmatprep.mubr.f32.mxu1 %v29371_v3 }
 0xba3   :  { %19610 = vmatmul.mubr.f32.gmra.mrb[56].mxu1 %v29372_v42 }
 0xba4   :  { %19612 = vmatprep.mubr.f32.mxu1 %v29385_v44 }
 0xba7   :  { %19613 = vmatmul.mubr.f32.gmra.mrb[58].mxu1 %v29386_v58 }
 0xba8   :  { %19615 = vmatprep.mubr.f32.mxu1 %v29387_v52 }
 0xbab   :  { %19616 = vmatmul.mubr.f32.gmra.mrb[60].mxu1 %v29388_v29 }
 0xbac   :  { %19618 = vmatprep.mubr.f32.mxu1 %v29389_v35 }
 0xbaf   :  { %19619 = vmatmul.mubr.f32.gmra.mrb[62].mxu1 %v29390_v34 }
 0xbb0   :  { %19621 = vmatprep.mubr.f32.mxu1 %v29361_v20 }
 0xbb3   :  { %19622 = vmatmul.mubr.f32.gmra.mrb[64].mxu1 %v29361_v20 }
 0xbb4   :  { %19624 = vmatprep.mubr.f32.mxu1 %v29361_v20 }
 0xbb7   :  { %19625 = vmatmul.mubr.f32.gmra.mrb[66].mxu1 %v29361_v20 }
 0xbb8   :  { %19627 = vmatprep.mubr.f32.mxu1 %v29361_v20 }
 0xbbb   :  { %19628 = vmatmul.mubr.f32.gmra.mrb[68].mxu1 %v29361_v20 }
 0xbbc   :  { %19630 = vmatprep.mubr.f32.mxu1 %v29361_v20 }
 0xbbf   :  { %19631 = vmatmul.mubr.f32.gmra.mrb[70].mxu1 %v29361_v20 }
 0xbc0   :  { %19633 = vmatprep.mubr.f32.mxu1 %v29361_v20 }
 0xbc3   :  { %19634 = vmatmul.mubr.f32.gmra.mrb[72].mxu1 %v29361_v20 }
 0xbc4   :  { %19668 = vmatprep.mubr.f32.mxu1 %v25578_v50 }
 0xbc7   :  { %19669 = vmatmul.mubr.f32.vlgmr.msra.gmra.mrb[74].mxu1 %v25582_v24  ;;  %v26861_v24 = vpop.f32.mrb[80].mxu0 }
 0xbc8   :  { %19671 = vmatprep.mubr.f32.mxu1 %v25594_v22  ;;  %v8828_v50 = vpop.f32.mrb[81].mxu0 }
 0xbc9   :  { %v18457_v22 = vpop.f32.mrb[82].mxu0 }
 0xbcb   :  { %19672 = vmatmul.mubr.f32.gmra.mrb[76].mxu1 %v25598_v60 }
 0xbcc   :  { %19674 = vmatprep.mubr.f32.mxu1 %v25610_v21  ;;  %v29391_v21 = vld [vmem:[#allocation118_spill] sm:$0xff] }
 0xbcf   :  { %19675 = vmatmul.mubr.f32.gmra.mrb[78].mxu1 %v25614_v46  ;;  %v8838_v46 = vpop.f32.mrb[83].mxu0 }
 0xbd0   :  { %19677 = vmatprep.mubr.f32.mxu1 %v25626_v32  ;;  %v18460_v60 = vpop.f32.mrb[84].mxu0  ;;  %v29394_v32 = vld [vmem:[#allocation50_spill] sm:$0xff] }
 0xbd3   :  { %19678 = vmatmul.mubr.f32.gmra.mrb[0].mxu1 %v25632_v57  ;;  %v29392_v57 = vld [vmem:[#allocation117_spill] sm:$0xff] }
 0xbd4   :  { %19680 = vmatprep.mubr.f32.mxu1 %v25638_v17  ;;  %v29395_v17 = vld [vmem:[#allocation49_spill] sm:$0xff] }
 0xbd7   :  { %19681 = vmatmul.mubr.f32.gmra.mrb[2].mxu1 %v25643_v4 }
 0xbd8   :  { %19683 = vmatprep.mubr.f32.mxu1 %v25649_v5 }
 0xbdb   :  { %19684 = vmatmul.mubr.f32.gmra.mrb[4].mxu1 %v25653_v41  ;;  %v8848_v41 = vpop.f32.mrb[85].mxu0 }
 0xbdc   :  { %19686 = vmatprep.mubr.f32.mxu1 %v25659_v30  ;;  %v29396_v30 = vld [vmem:[#allocation54_spill] sm:$0xff] }
 0xbdf   :  { %19687 = vmatmul.mubr.f32.gmra.mrb[6].mxu1 %v25663_v26  ;;  %v29393_v26 = vld [vmem:[#allocation120_spill] sm:$0xff] }
 0xbe0   :  { %19689 = vmatprep.mubr.f32.mxu1 %v25669_v56 }
 0xbe3   :  { %19690 = vmatmul.mubr.f32.gmra.mrb[8].mxu1 %v25673_v62 }
 0xbe4   :  { %19692 = vmatprep.mubr.f32.mxu1 %v25679_v49 }
 0xbe7   :  { %19693 = vmatmul.mubr.f32.gmra.mrb[10].mxu1 %v25683_v13 }
 0xbe8   :  { %19695 = vmatprep.mubr.f32.mxu1 %v25689_v51 }
 0xbeb   :  { %19696 = vmatmul.mubr.f32.gmra.mrb[12].mxu1 %v25693_v14  ;;  %v29397_v14 = vld [vmem:[#allocation4_spill] sm:$0xff] }
 0xbec   :  { %19698 = vmatprep.mubr.f32.mxu1 %v25699_v37 }
 0xbef   :  { %19699 = vmatmul.mubr.f32.gmra.mrb[14].mxu1 %v25703_v25  ;;  %v29398_v25 = vld [vmem:[#allocation17_spill] sm:$0xff] }
 0xbf0   :  { %19701 = vmatprep.mubr.f32.mxu1 %v25709_v15 }
 0xbf3   :  { %19702 = vmatmul.mubr.f32.gmra.mrb[16].mxu1 %v25713_v2 }
 0xbf4   :  { %19704 = vmatprep.mubr.f32.mxu1 %v25719_v54  ;;  %v29401_v54 = vld [vmem:[#allocation5_spill] sm:$0xff] }
 0xbf7   :  { %19705 = vmatmul.mubr.f32.gmra.mrb[18].mxu1 %v25723_v59 }
 0xbf8   :  { %19707 = vmatprep.mubr.f32.mxu1 %v25729_v7 }
 0xbfb   :  { %19708 = vmatmul.mubr.f32.gmra.mrb[20].mxu1 %v25733_v47 }
 0xbfc   :  { %19710 = vmatprep.mubr.f32.mxu1 %v29234_v33  ;;  %v29402_v33 = vld [vmem:[#allocation3_spill] sm:$0xff] }
 0xbff   :  { %19711 = vmatmul.mubr.f32.gmra.mrb[22].mxu1 %v29235_v28 }
 0xc00   :  { %19713 = vmatprep.mubr.f32.mxu1 %v25749_v39 }
 0xc03   :  { %19714 = vmatmul.mubr.f32.gmra.mrb[24].mxu1 %v29236_v27 }
 0xc04   :  { %19716 = vmatprep.mubr.f32.mxu1 %v29252_v55 }
 0xc07   :  { %19717 = vmatmul.mubr.f32.gmra.mrb[26].mxu1 %v29253_v1 }
 0xc08   :  { %19719 = vmatprep.mubr.f32.mxu1 %v29254_v38 }
 0xc0b   :  { %19720 = vmatmul.mubr.f32.gmra.mrb[28].mxu1 %v29309_v53 }
 0xc0c   :  { %19722 = vmatprep.mubr.f32.mxu1 %v29339_v18 }
 0xc0f   :  { %19723 = vmatmul.mubr.f32.gmra.mrb[30].mxu1 %v29340_v23 }
 0xc10   :  { %19725 = vmatprep.mubr.f32.mxu1 %v29341_v61 }
 0xc13   :  { %19726 = vmatmul.mubr.f32.gmra.mrb[32].mxu1 %v29342_v43  ;;  %v29405_v43 = vld [vmem:[#allocation18_spill] sm:$0xff] }
 0xc14   :  { %19728 = vmatprep.mubr.f32.mxu1 %v29362_v40  ;;  %v29407_v40 = vld [vmem:[#allocation11_spill] sm:$0xff] }
 0xc17   :  { %19729 = vmatmul.mubr.f32.gmra.mrb[34].mxu1 %v29344_v48  ;;  %v29406_v48 = vld [vmem:[#allocation6_spill] sm:$0xff] }
 0xc18   :  { %19731 = vmatprep.mubr.f32.mxu1 %v29345_v10 }
 0xc1b   :  { %19732 = vmatmul.mubr.f32.gmra.mrb[36].mxu1 %v29346_v31 }
 0xc1c   :  { %19734 = vmatprep.mubr.f32.mxu1 %v29363_v45 }
 0xc1f   :  { %19735 = vmatmul.mubr.f32.gmra.mrb[38].mxu1 %v29377_v9 }
 0xc20   :  { %19737 = vmatprep.mubr.f32.mxu1 %v29349_v8 }
 0xc23   :  { %19738 = vmatmul.mubr.f32.gmra.mrb[40].mxu1 %v29365_v36 }
 0xc24   :  { %19740 = vmatprep.mubr.f32.mxu1 %v29366_v16 }
 0xc27   :  { %19741 = vmatmul.mubr.f32.gmra.mrb[42].mxu1 %v29378_v6 }
 0xc28   :  { %19743 = vmatprep.mubr.f32.mxu1 %v29379_v12 }
 0xc2b   :  { %19744 = vmatmul.mubr.f32.gmra.mrb[44].mxu1 %v29380_v19 }
 0xc2c   :  { %19746 = vmatprep.mubr.f32.mxu1 %v29391_v21 }
 0xc2f   :  { %19747 = vmatmul.mubr.f32.gmra.mrb[46].mxu1 %v29392_v57 }
 0xc30   :  { %19749 = vmatprep.mubr.f32.mxu1 %v29393_v26 }
 0xc33   :  { %19750 = vmatmul.mubr.f32.gmra.mrb[48].mxu1 %v29394_v32 }
 0xc34   :  { %19752 = vmatprep.mubr.f32.mxu1 %v29395_v17  ;;  %v29411_v17 = vld [vmem:[#allocation15_spill] sm:$0xff] }
 0xc37   :  { %19753 = vmatmul.mubr.f32.gmra.mrb[50].mxu1 %v29396_v30 }
 0xc38   :  { %19755 = vmatprep.mubr.f32.mxu1 %v29356_v63 }
 0xc3b   :  { %19756 = vmatmul.mubr.f32.gmra.mrb[52].mxu1 %v29357_v11 }
 0xc3c   :  { %19758 = vmatprep.mubr.f32.mxu1 %v29370_v0 }
 0xc3f   :  { %19759 = vmatmul.mubr.f32.gmra.mrb[54].mxu1 %v29371_v3 }
 0xc40   :  { %19761 = vmatprep.mubr.f32.mxu1 %v29372_v42 }
 0xc43   :  { %19762 = vmatmul.mubr.f32.gmra.mrb[56].mxu1 %v29385_v44  ;;  %v29408_v44 = vld [vmem:[#allocation12_spill] sm:$0xff] }
 0xc44   :  { %19764 = vmatprep.mubr.f32.mxu1 %v29386_v58 }
 0xc47   :  { %19765 = vmatmul.mubr.f32.gmra.mrb[58].mxu1 %v29387_v52 }
 0xc48   :  { %19767 = vmatprep.mubr.f32.mxu1 %v29388_v29 }
 0xc4b   :  { %19768 = vmatmul.mubr.f32.gmra.mrb[60].mxu1 %v29389_v35  ;;  %v29409_v35 = vld [vmem:[#allocation13_spill] sm:$0xff] }
 0xc4c   :  { %19770 = vmatprep.mubr.f32.mxu1 %v29390_v34 }
 0xc4f   :  { %19771 = vmatmul.mubr.f32.gmra.mrb[62].mxu1 %v29361_v20 }
 0xc50   :  { %19773 = vmatprep.mubr.f32.mxu1 %v29361_v20 }
 0xc53   :  { %19774 = vmatmul.mubr.f32.gmra.mrb[64].mxu1 %v29361_v20 }
 0xc54   :  { %19776 = vmatprep.mubr.f32.mxu1 %v29361_v20 }
 0xc57   :  { %19777 = vmatmul.mubr.f32.gmra.mrb[66].mxu1 %v29361_v20 }
 0xc58   :  { %19779 = vmatprep.mubr.f32.mxu1 %v29361_v20 }
 0xc5b   :  { %19780 = vmatmul.mubr.f32.gmra.mrb[68].mxu1 %v29361_v20 }
 0xc5c   :  { %19782 = vmatprep.mubr.f32.mxu1 %v29361_v20 }
 0xc5f   :  { %19783 = vmatmul.mubr.f32.gmra.mrb[70].mxu1 %v29361_v20 }
 0xc60   :  { %19785 = vmatprep.mubr.f32.mxu1 %v29361_v20 }
 0xc63   :  { %19786 = vmatmul.mubr.f32.gmra.mrb[72].mxu1 %v29361_v20 }
 0xc9a   :  { %v19670_v4 = vpop.f32.mrb[74].mxu1 }
 0xc9b   :  { %v26928_v62 = vadd.f32 %v19670_v4, %v26861_v24  ;;  %v13707_v5 = vpop.f32.mrb[75].mxu1 }
 0xc9c   :  { %v26930_v13 = vadd.f32 %v13707_v5, %v8828_v50 }
 0xc9d   :  { %v14187_v56 = vmul.f32 %v26928_v62, %v29397_v14 }
 0xc9e   :  { %v14186_v49 = vmul.f32 %v26930_v13, %v29398_v25  ;;  %v19673_v2 = vpop.f32.mrb[76].mxu1 }
 0xc9f   :  { %v26936_v51 = vadd.f32 %v19673_v2, %v18457_v22  ;;  %v13717_v59 = vpop.f32.mrb[77].mxu1  ;;  %v14352_v37 = vmul.f32 %v26928_v62, %v14187_v56 }
 0xca0   :  { %v14351_v47 = vmul.f32 %v26930_v13, %v14186_v49  ;;  %v26940_v15 = vadd.f32 %v13717_v59, %v8838_v46  ;;  %v14266_v39 = vadd.f32 %v14187_v56, %v14186_v49  ;;  %v29410_v46 = vld [vmem:[#allocation14_spill] sm:$0xff] }
 0xca1   :  { %29399 = vst [vmem:[#allocation62_spill] sm:$0xff] %v26936_v51  ;;  %v14189_v7 = vmul.f32 %v26936_v51, %v29401_v54  ;;  %v29412_v56 = vld [vmem:[#allocation26_spill] sm:$0xff]  ;;  %v29413_v54 = vld [vmem:[#allocation19_spill] sm:$0xff] }
 0xca2   :  { %29400 = vst [vmem:[#allocation66_spill] sm:$0xff] %v26940_v15  ;;  %v14188_v28 = vmul.f32 %v26940_v15, %v29402_v33  ;;  %v19676_v27 = vpop.f32.mrb[78].mxu1  ;;  %v14431_v1 = vadd.f32 %v14352_v37, %v14351_v47 }
 0xca3   :  { %v26946_v52 = vadd.f32 %v19676_v27, %v18460_v60  ;;  %v13727_v55 = vpop.f32.mrb[79].mxu1  ;;  %v14354_v18 = vmul.f32 %v26936_v51, %v14189_v7  ;;  %v29414_v27 = vld [vmem:[#allocation21_spill] sm:$0xff] }
 0xca4   :  { %v14267_v38 = vadd.f32 %v14266_v39, %v14188_v28  ;;  %v14353_v53 = vmul.f32 %v26940_v15, %v14188_v28  ;;  %v26949_v20 = vadd.f32 %v13727_v55, %v8848_v41  ;;  %v29458_v15 = vld [vmem:[#allocation57_spill] sm:$0xff] }
 0xca5   :  { %29403 = vst [vmem:[#allocation69_spill] sm:$0xff] %v26946_v52  ;;  %v14191_v42 = vmul.f32 %v26946_v52, %v29405_v43 }
 0xca6   :  { %29404 = vst [vmem:[#allocation70_spill] sm:$0xff] %v26949_v20  ;;  %v14268_v23 = vadd.f32 %v14267_v38, %v14189_v7  ;;  %v14432_v61 = vadd.f32 %v14431_v1, %v14353_v53  ;;  %v14190_v10 = vmul.f32 %v26949_v20, %v29406_v48  ;;  %v26956_v31 = vpop.f32.mrb[0].mxu1 }
 0xca7   :  { %v26958_v8 = vpop.f32.mrb[1].mxu1  ;;  %v14356_v36 = vmul.f32 %v26946_v52, %v14191_v42  ;;  %v14193_v9 = vmul.f32 %v26956_v31, %v29408_v44 }
 0xca8   :  { %v14433_v63 = vadd.f32 %v14432_v61, %v14354_v18  ;;  %v14269_v11 = vadd.f32 %v14268_v23, %v14190_v10  ;;  %v14355_v0 = vmul.f32 %v26949_v20, %v14190_v10  ;;  %v14192_v45 = vmul.f32 %v26958_v8, %v29407_v40  ;;  %v29415_v61 = vld [vmem:[#allocation23_spill] sm:$0xff]  ;;  %v29454_v20 = vld [vmem:[#allocation53_spill] sm:$0xff] }
 0xca9   :  { %v14358_v24 = vmul.f32 %v26956_v31, %v14193_v9 }
 0xcaa   :  { %v14270_v16 = vadd.f32 %v14269_v11, %v14191_v42  ;;  %v14434_v3 = vadd.f32 %v14433_v63, %v14355_v0  ;;  %v26966_v6 = vpop.f32.mrb[2].mxu1  ;;  %v14357_v29 = vmul.f32 %v14192_v45, %v26958_v8  ;;  %v29416_v63 = vld [vmem:[#allocation24_spill] sm:$0xff] }
 0xcab   :  { %v26968_v12 = vpop.f32.mrb[3].mxu1  ;;  %v14195_v60 = vmul.f32 %v26966_v6, %v29410_v46 }
 0xcac   :  { %v14435_v19 = vadd.f32 %v14434_v3, %v14356_v36  ;;  %v14271_v58 = vadd.f32 %v14270_v16, %v14192_v45  ;;  %v14194_v34 = vmul.f32 %v26968_v12, %v29409_v35  ;;  %v29417_v3 = vld [vmem:[#allocation25_spill] sm:$0xff] }
 0xcad   :  { %v14360_v4 = vmul.f32 %v26966_v6, %v14195_v60 }
 0xcae   :  { %v14272_v50 = vadd.f32 %v14271_v58, %v14193_v9  ;;  %v14436_v22 = vadd.f32 %v14435_v19, %v14357_v29  ;;  %v26976_v41 = vpop.f32.mrb[4].mxu1  ;;  %v14359_v32 = vmul.f32 %v14194_v34, %v26968_v12  ;;  %v29418_v29 = vld [vmem:[#allocation10_spill] sm:$0xff] }
 0xcaf   :  { %v26978_v21 = vpop.f32.mrb[5].mxu1  ;;  %v14197_v25 = vmul.f32 %v26976_v41, %v29412_v56 }
 0xcb0   :  { %v14437_v57 = vadd.f32 %v14436_v22, %v14358_v24  ;;  %v14273_v26 = vadd.f32 %v14272_v50, %v14194_v34  ;;  %v14196_v30 = vmul.f32 %v26978_v21, %v29411_v17 }
 0xcb1   :  { %v14362_v39 = vmul.f32 %v26976_v41, %v14197_v25 }
 0xcb2   :  { %v14274_v5 = vadd.f32 %v14273_v26, %v14195_v60  ;;  %v14438_v14 = vadd.f32 %v14437_v57, %v14359_v32  ;;  %v26986_v49 = vpop.f32.mrb[6].mxu1  ;;  %v14361_v47 = vmul.f32 %v14196_v30, %v26978_v21  ;;  %v29419_v60 = vld [vmem:[#allocation16_spill] sm:$0xff] }
 0xcb3   :  { %v26988_v2 = vpop.f32.mrb[7].mxu1  ;;  %v14199_v55 = vmul.f32 %v26986_v49, %v29414_v27 }
 0xcb4   :  { %v14439_v59 = vadd.f32 %v14438_v14, %v14360_v4  ;;  %v14275_v37 = vadd.f32 %v14274_v5, %v14196_v30  ;;  %v14198_v7 = vmul.f32 %v26988_v2, %v29413_v54  ;;  %v29420_v30 = vld [vmem:[#allocation7_spill] sm:$0xff] }
 0xcb5   :  { %v14364_v42 = vmul.f32 %v26986_v49, %v14199_v55 }
 0xcb6   :  { %v14276_v33 = vadd.f32 %v14275_v37, %v14197_v25  ;;  %v14440_v28 = vadd.f32 %v14439_v59, %v14361_v47  ;;  %v26996_v1 = vpop.f32.mrb[8].mxu1  ;;  %v14363_v23 = vmul.f32 %v14198_v7, %v26988_v2  ;;  %v29421_v37 = vld [vmem:[#allocation8_spill] sm:$0xff] }
 0xcb7   :  { %v26998_v38 = vpop.f32.mrb[9].mxu1  ;;  %v14201_v11 = vmul.f32 %v26996_v1, %v29416_v63  ;;  %v29424_v63 = vld [vmem:[#allocation22_spill] sm:$0xff] }
 0xcb8   :  { %v14441_v53 = vadd.f32 %v14440_v28, %v14362_v39  ;;  %v14277_v18 = vadd.f32 %v14276_v33, %v14198_v7  ;;  %v14200_v43 = vmul.f32 %v26998_v38, %v29415_v61  ;;  %v29422_v33 = vld [vmem:[#allocation9_spill] sm:$0xff]  ;;  %v29423_v61 = vld [vmem:[#allocation20_spill] sm:$0xff] }
 0xcb9   :  { %v14366_v9 = vmul.f32 %v26996_v1, %v14201_v11 }
 0xcba   :  { %v14278_v48 = vadd.f32 %v14277_v18, %v14199_v55  ;;  %v14442_v10 = vadd.f32 %v14441_v53, %v14363_v23  ;;  %v27006_v0 = vpop.f32.mrb[10].mxu1  ;;  %v14365_v16 = vmul.f32 %v14200_v43, %v26998_v38 }
 0xcbb   :  { %v27008_v40 = vpop.f32.mrb[11].mxu1  ;;  %v14203_v35 = vmul.f32 %v27006_v0, %v29418_v29 }
 0xcbc   :  { %v14443_v45 = vadd.f32 %v14442_v10, %v14364_v42  ;;  %v14279_v36 = vadd.f32 %v14278_v48, %v14200_v43  ;;  %v14202_v44 = vmul.f32 %v27008_v40, %v29417_v3 }
 0xcbd   :  { %v14368_v26 = vmul.f32 %v27006_v0, %v14203_v35 }
 0xcbe   :  { %v14280_v19 = vadd.f32 %v14279_v36, %v14201_v11  ;;  %v14444_v58 = vadd.f32 %v14443_v45, %v14365_v16  ;;  %v27016_v34 = vpop.f32.mrb[12].mxu1  ;;  %v14367_v46 = vmul.f32 %v14202_v44, %v27008_v40 }
 0xcbf   :  { %v27018_v24 = vpop.f32.mrb[13].mxu1  ;;  %v14205_v4 = vmul.f32 %v27016_v34, %v29420_v30 }
 0xcc0   :  { %v14445_v50 = vadd.f32 %v14444_v58, %v14366_v9  ;;  %v14281_v22 = vadd.f32 %v14280_v19, %v14202_v44  ;;  %v14204_v57 = vmul.f32 %v27018_v24, %v29419_v60  ;;  %v29425_v9 = vld [vmem:[#allocation27_spill] sm:$0xff] }
 0xcc1   :  { %v14370_v54 = vmul.f32 %v27016_v34, %v14205_v4 }
 0xcc2   :  { %v14282_v32 = vadd.f32 %v14281_v22, %v14203_v35  ;;  %v14446_v17 = vadd.f32 %v14445_v50, %v14367_v46  ;;  %v27026_v5 = vpop.f32.mrb[14].mxu1  ;;  %v14369_v59 = vmul.f32 %v14204_v57, %v27018_v24  ;;  %v29426_v35 = vld [vmem:[#allocation28_spill] sm:$0xff] }
 0xcc3   :  { %v27028_v14 = vpop.f32.mrb[15].mxu1  ;;  %v14207_v28 = vmul.f32 %v27026_v5, %v29422_v33 }
 0xcc4   :  { %v14447_v56 = vadd.f32 %v14446_v17, %v14368_v26  ;;  %v14283_v25 = vadd.f32 %v14282_v32, %v14204_v57  ;;  %v14206_v47 = vmul.f32 %v27028_v14, %v29421_v37  ;;  %v29427_v17 = vld [vmem:[#allocation29_spill] sm:$0xff] }
 0xcc5   :  { %v14372_v42 = vmul.f32 %v27026_v5, %v14207_v28 }
 0xcc6   :  { %v14284_v7 = vadd.f32 %v14283_v25, %v14205_v4  ;;  %v14448_v39 = vadd.f32 %v14447_v56, %v14369_v59  ;;  %v27036_v27 = vpop.f32.mrb[16].mxu1  ;;  %v14371_v23 = vmul.f32 %v14206_v47, %v27028_v14  ;;  %v29428_v25 = vld [vmem:[#allocation30_spill] sm:$0xff] }
 0xcc7   :  { %v27038_v55 = vpop.f32.mrb[17].mxu1  ;;  %v14209_v11 = vmul.f32 %v27036_v27, %v29424_v63 }
 0xcc8   :  { %v14449_v53 = vadd.f32 %v14448_v39, %v14370_v54  ;;  %v14285_v18 = vadd.f32 %v14284_v7, %v14206_v47  ;;  %v14208_v43 = vmul.f32 %v27038_v55, %v29423_v61  ;;  %v29430_v61 = vld [vmem:[#allocation32_spill] sm:$0xff] }
 0xcc9   :  { %v14374_v58 = vmul.f32 %v27036_v27, %v14209_v11 }
 0xcca   :  { %v14286_v48 = vadd.f32 %v14285_v18, %v14207_v28  ;;  %v14450_v10 = vadd.f32 %v14449_v53, %v14371_v23  ;;  %v27046_v45 = vpop.f32.mrb[18].mxu1  ;;  %v14373_v3 = vmul.f32 %v14208_v43, %v27038_v55  ;;  %v29429_v28 = vld [vmem:[#allocation31_spill] sm:$0xff] }
 0xccb   :  { %v27048_v36 = vpop.f32.mrb[19].mxu1  ;;  %v14211_v50 = vmul.f32 %v27046_v45, %v29426_v35 }
 0xccc   :  { %v14287_v16 = vadd.f32 %v14286_v48, %v14208_v43  ;;  %v14451_v44 = vadd.f32 %v14450_v10, %v14372_v42  ;;  %v14210_v19 = vmul.f32 %v27048_v36, %v29425_v9 }
 0xccd   :  { %v14376_v4 = vmul.f32 %v27046_v45, %v14211_v50 }
 0xcce   :  { %v14452_v29 = vadd.f32 %v14451_v44, %v14373_v3  ;;  %v14288_v22 = vadd.f32 %v14287_v16, %v14209_v11  ;;  %v27056_v46 = vpop.f32.mrb[20].mxu1  ;;  %v14375_v26 = vmul.f32 %v14210_v19, %v27048_v36  ;;  %v29431_v3 = vld [vmem:[#allocation33_spill] sm:$0xff] }
 0xccf   :  { %v27058_v60 = vpop.f32.mrb[21].mxu1  ;;  %v14213_v59 = vmul.f32 %v27056_v46, %v29428_v25  ;;  %v29434_v25 = vld [vmem:[#allocation36_spill] sm:$0xff] }
 0xcd0   :  { %v14289_v57 = vadd.f32 %v14288_v22, %v14210_v19  ;;  %v14453_v32 = vadd.f32 %v14452_v29, %v14374_v58  ;;  %v14212_v30 = vmul.f32 %v27058_v60, %v29427_v17  ;;  %v29432_v58 = vld [vmem:[#allocation34_spill] sm:$0xff]  ;;  %v29433_v17 = vld [vmem:[#allocation35_spill] sm:$0xff] }
 0xcd1   :  { %v14378_v18 = vmul.f32 %v27056_v46, %v14213_v59 }
 0xcd2   :  { %v14454_v56 = vadd.f32 %v14453_v32, %v14375_v26  ;;  %v14290_v37 = vadd.f32 %v14289_v57, %v14211_v50  ;;  %v27066_v47 = vpop.f32.mrb[22].mxu1  ;;  %v14377_v39 = vmul.f32 %v14212_v30, %v27058_v60 }
 0xcd3   :  { %v27068_v54 = vpop.f32.mrb[23].mxu1  ;;  %v14215_v43 = vmul.f32 %v27066_v47, %v29430_v61 }
 0xcd4   :  { %v14291_v7 = vadd.f32 %v14290_v37, %v14212_v30  ;;  %v14455_v33 = vadd.f32 %v14454_v56, %v14376_v4  ;;  %v14214_v53 = vmul.f32 %v27068_v54, %v29429_v28 }
 0xcd5   :  { %v14380_v9 = vmul.f32 %v27066_v47, %v14215_v43 }
 0xcd6   :  { %v14456_v23 = vadd.f32 %v14455_v33, %v14377_v39  ;;  %v14292_v42 = vadd.f32 %v14291_v7, %v14213_v59  ;;  %v27076_v48 = vpop.f32.mrb[24].mxu1  ;;  %v14379_v11 = vmul.f32 %v14214_v53, %v27068_v54 }
 0xcd7   :  { %v27078_v10 = vpop.f32.mrb[25].mxu1  ;;  %v14217_v29 = vmul.f32 %v27076_v48, %v29432_v58  ;;  %v29437_v58 = vld [vmem:[#allocation39_spill] sm:$0xff] }
 0xcd8   :  { %v14293_v63 = vadd.f32 %v14292_v42, %v14214_v53  ;;  %v14457_v16 = vadd.f32 %v14456_v23, %v14378_v18  ;;  %v14216_v44 = vmul.f32 %v27078_v10, %v29431_v3  ;;  %v29435_v18 = vld [vmem:[#allocation37_spill] sm:$0xff]  ;;  %v29436_v42 = vld [vmem:[#allocation38_spill] sm:$0xff] }
 0xcd9   :  { %v14382_v4 = vmul.f32 %v27076_v48, %v14217_v29 }
 0xcda   :  { %v14458_v19 = vadd.f32 %v14457_v16, %v14379_v11  ;;  %v14294_v35 = vadd.f32 %v14293_v63, %v14215_v43  ;;  %v27086_v50 = vpop.f32.mrb[26].mxu1  ;;  %v14381_v26 = vmul.f32 %v14216_v44, %v27078_v10 }
 0xcdb   :  { %v27088_v22 = vpop.f32.mrb[27].mxu1  ;;  %v14219_v59 = vmul.f32 %v27086_v50, %v29434_v25 }
 0xcdc   :  { %v14295_v57 = vadd.f32 %v14294_v35, %v14216_v44  ;;  %v14459_v32 = vadd.f32 %v14458_v19, %v14380_v9  ;;  %v14218_v30 = vmul.f32 %v27088_v22, %v29433_v17 }
 0xcdd   :  { %v14384_v61 = vmul.f32 %v27086_v50, %v14219_v59 }
 0xcde   :  { %v14460_v56 = vadd.f32 %v14459_v32, %v14381_v26  ;;  %v14296_v37 = vadd.f32 %v14295_v57, %v14217_v29  ;;  %v27096_v7 = vpop.f32.mrb[28].mxu1  ;;  %v14383_v28 = vmul.f32 %v14218_v30, %v27088_v22  ;;  %v29438_v26 = vld [vmem:[#allocation40_spill] sm:$0xff] }
 0xcdf   :  { %v27098_v39 = vpop.f32.mrb[29].mxu1  ;;  %v14221_v63 = vmul.f32 %v27096_v7, %v29436_v42 }
 0xce0   :  { %v14297_v33 = vadd.f32 %v14296_v37, %v14218_v30  ;;  %v14461_v53 = vadd.f32 %v14460_v56, %v14382_v4  ;;  %v14220_v23 = vmul.f32 %v27098_v39, %v29435_v18  ;;  %v29439_v37 = vld [vmem:[#allocation41_spill] sm:$0xff]  ;;  %v29440_v18 = vld [vmem:[#allocation42_spill] sm:$0xff] }
 0xce1   :  { %v14386_v35 = vmul.f32 %v27096_v7, %v14221_v63 }
 0xce2   :  { %v14462_v43 = vadd.f32 %v14461_v53, %v14383_v28  ;;  %v14298_v11 = vadd.f32 %v14297_v33, %v14219_v59  ;;  %v27106_v16 = vpop.f32.mrb[30].mxu1  ;;  %v14385_v9 = vmul.f32 %v14220_v23, %v27098_v39 }
 0xce3   :  { %v27108_v3 = vpop.f32.mrb[31].mxu1  ;;  %v14223_v32 = vmul.f32 %v27106_v16, %v29438_v26 }
 0xce4   :  { %v14299_v44 = vadd.f32 %v14298_v11, %v14220_v23  ;;  %v14463_v19 = vadd.f32 %v14462_v43, %v14384_v61  ;;  %v14222_v29 = vmul.f32 %v27108_v3, %v29437_v58 }
 0xce5   :  { %v14388_v28 = vmul.f32 %v27106_v16, %v14223_v32 }
 0xce6   :  { %v14464_v57 = vadd.f32 %v14463_v19, %v14385_v9  ;;  %v14300_v17 = vadd.f32 %v14299_v44, %v14221_v63  ;;  %v27116_v30 = vpop.f32.mrb[32].mxu1  ;;  %v14387_v25 = vmul.f32 %v14222_v29, %v27108_v3  ;;  %v29441_v9 = vld [vmem:[#allocation43_spill] sm:$0xff] }
 0xce7   :  { %v27118_v4 = vpop.f32.mrb[33].mxu1  ;;  %v14225_v23 = vmul.f32 %v27116_v30, %v29440_v18  ;;  %v29446_v18 = vld [vmem:[#allocation46_spill] sm:$0xff] }
 0xce8   :  { %v14301_v56 = vadd.f32 %v14300_v17, %v14222_v29  ;;  %v14465_v59 = vadd.f32 %v14464_v57, %v14386_v35  ;;  %v14224_v33 = vmul.f32 %v27118_v4, %v29439_v37  ;;  %v29442_v35 = vld [vmem:[#allocation44_spill] sm:$0xff]  ;;  %v29445_v37 = vld [vmem:[#allocation45_spill] sm:$0xff] }
 0xce9   :  { %v14390_v58 = vmul.f32 %v27116_v30, %v14225_v23 }
 0xcea   :  { %v14466_v53 = vadd.f32 %v14465_v59, %v14387_v25  ;;  %v14302_v61 = vadd.f32 %v14301_v56, %v14223_v32  ;;  %v27126_v43 = vpop.f32.mrb[34].mxu1  ;;  %v14389_v11 = vmul.f32 %v14224_v33, %v27118_v4 }
 0xceb   :  { %v27128_v42 = vpop.f32.mrb[35].mxu1  ;;  %v14227_v57 = vmul.f32 %v27126_v43, %v29442_v35 }
 0xcec   :  { %v14303_v63 = vadd.f32 %v14302_v61, %v14224_v33  ;;  %v14467_v44 = vadd.f32 %v14466_v53, %v14388_v28  ;;  %v14226_v19 = vmul.f32 %v27128_v42, %v29441_v9 }
 0xced   :  { %v14392_v28 = vmul.f32 %v27126_v43, %v14227_v57 }
 0xcee   :  { %v14468_v29 = vadd.f32 %v14467_v44, %v14389_v11  ;;  %v14304_v26 = vadd.f32 %v14303_v63, %v14225_v23  ;;  %v27136_v17 = vpop.f32.mrb[36].mxu1  ;;  %v14391_v25 = vmul.f32 %v14226_v19, %v27128_v42 }
 0xcef   :  { %29443 = vst [vmem:[#allocation123_spill] sm:$0xff] %v27136_v17  ;;  %v27138_v32 = vpop.f32.mrb[37].mxu1  ;;  %v14229_v61 = vmul.f32 %v27136_v17, %v29446_v18 }
 0xcf0   :  { %29444 = vst [vmem:[#allocation84_spill] sm:$0xff] %v27138_v32  ;;  %v14305_v56 = vadd.f32 %v14304_v26, %v14226_v19  ;;  %v14469_v59 = vadd.f32 %v14468_v29, %v14390_v58  ;;  %v14228_v33 = vmul.f32 %v27138_v32, %v29445_v37  ;;  %v29449_v19 = vld [vmem:[#allocation47_spill] sm:$0xff]  ;;  %v29450_v37 = vld [vmem:[#allocation48_spill] sm:$0xff] }
 0xcf1   :  { %v14394_v29 = vmul.f32 %v27136_v17, %v14229_v61 }
 0xcf2   :  { %v14470_v53 = vadd.f32 %v14469_v59, %v14391_v25  ;;  %v14306_v11 = vadd.f32 %v14305_v56, %v14227_v57  ;;  %v27146_v44 = vpop.f32.mrb[38].mxu1  ;;  %v14393_v9 = vmul.f32 %v14228_v33, %v27138_v32 }
 0xcf3   :  { %29447 = vst [vmem:[#allocation74_spill] sm:$0xff] %v27146_v44  ;;  %v27148_v23 = vpop.f32.mrb[39].mxu1  ;;  %v14231_v25 = vmul.f32 %v27146_v44, %v29450_v37 }
 0xcf4   :  { %29448 = vst [vmem:[#allocation88_spill] sm:$0xff] %v27148_v23  ;;  %v14307_v63 = vadd.f32 %v14306_v11, %v14228_v33  ;;  %v14471_v35 = vadd.f32 %v14470_v53, %v14392_v28  ;;  %v14230_v58 = vmul.f32 %v27148_v23, %v29449_v19  ;;  %v29453_v33 = vld [vmem:[#allocation51_spill] sm:$0xff] }
 0xcf5   :  { %v14396_v53 = vmul.f32 %v27146_v44, %v14231_v25 }
 0xcf6   :  { %v14472_v26 = vadd.f32 %v14471_v35, %v14393_v9  ;;  %v14308_v59 = vadd.f32 %v14307_v63, %v14229_v61  ;;  %v27156_v18 = vpop.f32.mrb[40].mxu1  ;;  %v14395_v11 = vmul.f32 %v14230_v58, %v27148_v23 }
 0xcf7   :  { %29451 = vst [vmem:[#allocation87_spill] sm:$0xff] %v27156_v18  ;;  %v27158_v57 = vpop.f32.mrb[41].mxu1  ;;  %v14233_v9 = vmul.f32 %v27156_v18, %v29454_v20 }
 0xcf8   :  { %29452 = vst [vmem:[#allocation92_spill] sm:$0xff] %v27158_v57  ;;  %v14309_v56 = vadd.f32 %v14308_v59, %v14230_v58  ;;  %v14473_v52 = vadd.f32 %v14472_v26, %v14394_v29  ;;  %v14232_v28 = vmul.f32 %v27158_v57, %v29453_v33  ;;  %v29457_v58 = vld [vmem:[#allocation56_spill] sm:$0xff] }
 0xcf9   :  { %v14398_v26 = vmul.f32 %v27156_v18, %v14233_v9  ;;  %v29462_v18 = vld [vmem:[#allocation61_spill] sm:$0xff] }
 0xcfa   :  { %v14474_v19 = vadd.f32 %v14473_v52, %v14395_v11  ;;  %v14310_v35 = vadd.f32 %v14309_v56, %v14231_v25  ;;  %v27166_v37 = vpop.f32.mrb[42].mxu1  ;;  %v14397_v59 = vmul.f32 %v14232_v28, %v27158_v57 }
 0xcfb   :  { %29455 = vst [vmem:[#allocation91_spill] sm:$0xff] %v27166_v37  ;;  %v27168_v61 = vpop.f32.mrb[43].mxu1  ;;  %v14235_v52 = vmul.f32 %v27166_v37, %v29458_v15 }
 0xcfc   :  { %29456 = vst [vmem:[#allocation95_spill] sm:$0xff] %v27168_v61  ;;  %v14311_v63 = vadd.f32 %v14310_v35, %v14232_v28  ;;  %v14475_v51 = vadd.f32 %v14474_v19, %v14396_v53  ;;  %v14234_v29 = vmul.f32 %v27168_v61, %v29457_v58  ;;  %v29461_v28 = vld [vmem:[#allocation59_spill] sm:$0xff] }
 0xcfd   :  { %v14400_v19 = vmul.f32 %v27166_v37, %v14235_v52  ;;  %v29466_v37 = vld [vmem:[#allocation65_spill] sm:$0xff] }
 0xcfe   :  { %v14476_v33 = vadd.f32 %v14475_v51, %v14397_v59  ;;  %v14312_v11 = vadd.f32 %v14311_v63, %v14233_v9  ;;  %v27176_v20 = vpop.f32.mrb[44].mxu1  ;;  %v14399_v35 = vmul.f32 %v14234_v29, %v27168_v61 }
 0xcff   :  { %29459 = vst [vmem:[#allocation100_spill] sm:$0xff] %v27176_v20  ;;  %v27178_v25 = vpop.f32.mrb[45].mxu1  ;;  %v14237_v51 = vmul.f32 %v27176_v20, %v29462_v18 }
 0xd00   :  { %29460 = vst [vmem:[#allocation99_spill] sm:$0xff] %v27178_v25  ;;  %v14313_v56 = vadd.f32 %v14312_v11, %v14234_v29  ;;  %v14477_v44 = vadd.f32 %v14476_v33, %v14398_v26  ;;  %v14236_v53 = vmul.f32 %v27178_v25, %v29461_v28  ;;  %v29465_v29 = vld [vmem:[#allocation64_spill] sm:$0xff] }
 0xd01   :  { %v14402_v33 = vmul.f32 %v27176_v20, %v14237_v51  ;;  %v29470_v20 = vld [vmem:[#allocation68_spill] sm:$0xff] }
 0xd02   :  { %v14478_v58 = vadd.f32 %v14477_v44, %v14399_v35  ;;  %v14314_v59 = vadd.f32 %v14313_v56, %v14235_v52  ;;  %v27186_v15 = vpop.f32.mrb[46].mxu1  ;;  %v14401_v11 = vmul.f32 %v14236_v53, %v27178_v25 }
 0xd03   :  { %29463 = vst [vmem:[#allocation108_spill] sm:$0xff] %v27186_v15  ;;  %v27188_v9 = vpop.f32.mrb[47].mxu1  ;;  %v14239_v44 = vmul.f32 %v27186_v15, %v29466_v37 }
 0xd04   :  { %29464 = vst [vmem:[#allocation52_spill] sm:$0xff] %v27188_v9  ;;  %v14315_v63 = vadd.f32 %v14314_v59, %v14236_v53  ;;  %v14479_v57 = vadd.f32 %v14478_v58, %v14400_v19  ;;  %v14238_v26 = vmul.f32 %v27188_v9, %v29465_v29  ;;  %v29469_v53 = vld [vmem:[#allocation67_spill] sm:$0xff] }
 0xd05   :  { %v14404_v58 = vmul.f32 %v27186_v15, %v14239_v44  ;;  %v29474_v15 = vld [vmem:[#allocation72_spill] sm:$0xff] }
 0xd06   :  { %v14480_v28 = vadd.f32 %v14479_v57, %v14401_v11  ;;  %v14316_v35 = vadd.f32 %v14315_v63, %v14237_v51  ;;  %v27196_v18 = vpop.f32.mrb[48].mxu1  ;;  %v14403_v59 = vmul.f32 %v14238_v26, %v27188_v9 }
 0xd07   :  { %29467 = vst [vmem:[#allocation73_spill] sm:$0xff] %v27196_v18  ;;  %v27198_v52 = vpop.f32.mrb[49].mxu1  ;;  %v14241_v57 = vmul.f32 %v27196_v18, %v29470_v20 }
 0xd08   :  { %29468 = vst [vmem:[#allocation96_spill] sm:$0xff] %v27198_v52  ;;  %v14317_v56 = vadd.f32 %v14316_v35, %v14238_v26  ;;  %v14481_v61 = vadd.f32 %v14480_v28, %v14402_v33  ;;  %v14240_v19 = vmul.f32 %v27198_v52, %v29469_v53  ;;  %v29473_v26 = vld [vmem:[#allocation71_spill] sm:$0xff] }
 0xd09   :  { %v14406_v28 = vmul.f32 %v27196_v18, %v14241_v57  ;;  %v29478_v18 = vld [vmem:[#allocation77_spill] sm:$0xff] }
 0xd0a   :  { %v14482_v29 = vadd.f32 %v14481_v61, %v14403_v59  ;;  %v14318_v11 = vadd.f32 %v14317_v56, %v14239_v44  ;;  %v27206_v37 = vpop.f32.mrb[50].mxu1  ;;  %v14405_v35 = vmul.f32 %v14240_v19, %v27198_v52 }
 0xd0b   :  { %29471 = vst [vmem:[#allocation104_spill] sm:$0xff] %v27206_v37  ;;  %v27208_v51 = vpop.f32.mrb[51].mxu1  ;;  %v14243_v61 = vmul.f32 %v27206_v37, %v29474_v15 }
 0xd0c   :  { %29472 = vst [vmem:[#allocation107_spill] sm:$0xff] %v27208_v51  ;;  %v14319_v63 = vadd.f32 %v14318_v11, %v14240_v19  ;;  %v14483_v25 = vadd.f32 %v14482_v29, %v14404_v58  ;;  %v14242_v33 = vmul.f32 %v27208_v51, %v29473_v26  ;;  %v29477_v19 = vld [vmem:[#allocation75_spill] sm:$0xff] }
 0xd0d   :  { %v14408_v29 = vmul.f32 %v27206_v37, %v14243_v61  ;;  %v29482_v37 = vld [vmem:[#allocation81_spill] sm:$0xff] }
 0xd0e   :  { %v14484_v53 = vadd.f32 %v14483_v25, %v14405_v35  ;;  %v14320_v59 = vadd.f32 %v14319_v63, %v14241_v57  ;;  %v27216_v20 = vpop.f32.mrb[52].mxu1  ;;  %v14407_v11 = vmul.f32 %v14242_v33, %v27208_v51 }
 0xd0f   :  { %29475 = vst [vmem:[#allocation112_spill] sm:$0xff] %v27216_v20  ;;  %v27218_v44 = vpop.f32.mrb[53].mxu1  ;;  %v14245_v25 = vmul.f32 %v27216_v20, %v29478_v18 }
 0xd10   :  { %29476 = vst [vmem:[#allocation76_spill] sm:$0xff] %v27218_v44  ;;  %v14321_v56 = vadd.f32 %v14320_v59, %v14242_v33  ;;  %v14485_v9 = vadd.f32 %v14484_v53, %v14406_v28  ;;  %v14244_v58 = vmul.f32 %v27218_v44, %v29477_v19  ;;  %v29481_v33 = vld [vmem:[#allocation80_spill] sm:$0xff] }
 0xd11   :  { %v14410_v53 = vmul.f32 %v27216_v20, %v14245_v25  ;;  %v29486_v20 = vld [vmem:[#allocation85_spill] sm:$0xff] }
 0xd12   :  { %v14486_v26 = vadd.f32 %v14485_v9, %v14407_v11  ;;  %v14322_v35 = vadd.f32 %v14321_v56, %v14243_v61  ;;  %v27226_v15 = vpop.f32.mrb[54].mxu1  ;;  %v14409_v59 = vmul.f32 %v14244_v58, %v27218_v44 }
 0xd13   :  { %29479 = vst [vmem:[#allocation79_spill] sm:$0xff] %v27226_v15  ;;  %v27228_v57 = vpop.f32.mrb[55].mxu1  ;;  %v14247_v9 = vmul.f32 %v27226_v15, %v29482_v37 }
 0xd14   :  { %29480 = vst [vmem:[#allocation78_spill] sm:$0xff] %v27228_v57  ;;  %v14323_v63 = vadd.f32 %v14322_v35, %v14244_v58  ;;  %v14487_v52 = vadd.f32 %v14486_v26, %v14408_v29  ;;  %v14246_v28 = vmul.f32 %v27228_v57, %v29481_v33  ;;  %v29485_v58 = vld [vmem:[#allocation83_spill] sm:$0xff] }
 0xd15   :  { %v14412_v26 = vmul.f32 %v27226_v15, %v14247_v9  ;;  %v29490_v15 = vld [vmem:[#allocation90_spill] sm:$0xff] }
 0xd16   :  { %v14488_v19 = vadd.f32 %v14487_v52, %v14409_v59  ;;  %v14324_v11 = vadd.f32 %v14323_v63, %v14245_v25  ;;  %v27236_v18 = vpop.f32.mrb[56].mxu1  ;;  %v14411_v35 = vmul.f32 %v14246_v28, %v27228_v57 }
 0xd17   :  { %29483 = vst [vmem:[#allocation103_spill] sm:$0xff] %v27236_v18  ;;  %v27238_v61 = vpop.f32.mrb[57].mxu1  ;;  %v14249_v52 = vmul.f32 %v27236_v18, %v29486_v20 }
 0xd18   :  { %29484 = vst [vmem:[#allocation110_spill] sm:$0xff] %v27238_v61  ;;  %v14325_v56 = vadd.f32 %v14324_v11, %v14246_v28  ;;  %v14489_v51 = vadd.f32 %v14488_v19, %v14410_v53  ;;  %v14248_v29 = vmul.f32 %v27238_v61, %v29485_v58  ;;  %v29489_v28 = vld [vmem:[#allocation89_spill] sm:$0xff] }
 0xd19   :  { %v14414_v19 = vmul.f32 %v27236_v18, %v14249_v52  ;;  %v29494_v18 = vld [vmem:[#allocation94_spill] sm:$0xff] }
 0xd1a   :  { %v14490_v33 = vadd.f32 %v14489_v51, %v14411_v35  ;;  %v14326_v59 = vadd.f32 %v14325_v56, %v14247_v9  ;;  %v27246_v37 = vpop.f32.mrb[58].mxu1  ;;  %v14413_v11 = vmul.f32 %v14248_v29, %v27238_v61 }
 0xd1b   :  { %29487 = vst [vmem:[#allocation114_spill] sm:$0xff] %v27246_v37  ;;  %v27248_v25 = vpop.f32.mrb[59].mxu1  ;;  %v14251_v51 = vmul.f32 %v27246_v37, %v29490_v15 }
 0xd1c   :  { %29488 = vst [vmem:[#allocation113_spill] sm:$0xff] %v27248_v25  ;;  %v14327_v63 = vadd.f32 %v14326_v59, %v14248_v29  ;;  %v14491_v44 = vadd.f32 %v14490_v33, %v14412_v26  ;;  %v14250_v53 = vmul.f32 %v27248_v25, %v29489_v28  ;;  %v29493_v29 = vld [vmem:[#allocation93_spill] sm:$0xff] }
 0xd1d   :  { %v14416_v33 = vmul.f32 %v27246_v37, %v14251_v51  ;;  %v29498_v37 = vld [vmem:[#allocation98_spill] sm:$0xff] }
 0xd1e   :  { %v14492_v58 = vadd.f32 %v14491_v44, %v14413_v11  ;;  %v14328_v35 = vadd.f32 %v14327_v63, %v14249_v52  ;;  %v27256_v20 = vpop.f32.mrb[60].mxu1  ;;  %v14415_v59 = vmul.f32 %v14250_v53, %v27248_v25 }
 0xd1f   :  { %29491 = vst [vmem:[#allocation82_spill] sm:$0xff] %v27256_v20  ;;  %v27258_v9 = vpop.f32.mrb[61].mxu1  ;;  %v14253_v44 = vmul.f32 %v27256_v20, %v29494_v18 }
 0xd20   :  { %29492 = vst [vmem:[#allocation86_spill] sm:$0xff] %v27258_v9  ;;  %v14329_v56 = vadd.f32 %v14328_v35, %v14250_v53  ;;  %v14493_v57 = vadd.f32 %v14492_v58, %v14414_v19  ;;  %v14252_v26 = vmul.f32 %v27258_v9, %v29493_v29  ;;  %v29497_v53 = vld [vmem:[#allocation97_spill] sm:$0xff] }
 0xd21   :  { %v14418_v58 = vmul.f32 %v27256_v20, %v14253_v44  ;;  %v29502_v20 = vld [vmem:[#allocation102_spill] sm:$0xff] }
 0xd22   :  { %v14494_v28 = vadd.f32 %v14493_v57, %v14415_v59  ;;  %v14330_v11 = vadd.f32 %v14329_v56, %v14251_v51  ;;  %v27266_v15 = vpop.f32.mrb[62].mxu1  ;;  %v14417_v35 = vmul.f32 %v14252_v26, %v27258_v9 }
 0xd23   :  { %29495 = vst [vmem:[#allocation55_spill] sm:$0xff] %v27266_v15  ;;  %v27268_v52 = vpop.f32.mrb[63].mxu1  ;;  %v14255_v57 = vmul.f32 %v27266_v15, %v29498_v37 }
 0xd24   :  { %29496 = vst [vmem:[#allocation58_spill] sm:$0xff] %v27268_v52  ;;  %v14331_v63 = vadd.f32 %v14330_v11, %v14252_v26  ;;  %v14495_v61 = vadd.f32 %v14494_v28, %v14416_v33  ;;  %v14254_v19 = vmul.f32 %v27268_v52, %v29497_v53  ;;  %v29501_v26 = vld [vmem:[#allocation101_spill] sm:$0xff] }
 0xd25   :  { %v14420_v28 = vmul.f32 %v27266_v15, %v14255_v57  ;;  %v29506_v15 = vld [vmem:[#allocation106_spill] sm:$0xff] }
 0xd26   :  { %v14496_v29 = vadd.f32 %v14495_v61, %v14417_v35  ;;  %v14332_v59 = vadd.f32 %v14331_v63, %v14253_v44  ;;  %v27276_v18 = vpop.f32.mrb[64].mxu1  ;;  %v14419_v11 = vmul.f32 %v14254_v19, %v27268_v52 }
 0xd27   :  { %29499 = vst [vmem:[#allocation60_spill] sm:$0xff] %v27276_v18  ;;  %v27278_v51 = vpop.f32.mrb[65].mxu1  ;;  %v14257_v61 = vmul.f32 %v27276_v18, %v29502_v20 }
 0xd28   :  { %29500 = vst [vmem:[#allocation63_spill] sm:$0xff] %v27278_v51  ;;  %v14333_v56 = vadd.f32 %v14332_v59, %v14254_v19  ;;  %v14497_v25 = vadd.f32 %v14496_v29, %v14418_v58  ;;  %v14256_v33 = vmul.f32 %v27278_v51, %v29501_v26  ;;  %v29505_v19 = vld [vmem:[#allocation105_spill] sm:$0xff] }
 0xd29   :  { %v14422_v29 = vmul.f32 %v27276_v18, %v14257_v61  ;;  %v29510_v18 = vld [vmem:[#allocation111_spill] sm:$0xff] }
 0xd2a   :  { %v14498_v53 = vadd.f32 %v14497_v25, %v14419_v11  ;;  %v14334_v35 = vadd.f32 %v14333_v56, %v14255_v57  ;;  %v27286_v37 = vpop.f32.mrb[66].mxu1  ;;  %v14421_v59 = vmul.f32 %v14256_v33, %v27278_v51 }
 0xd2b   :  { %29503 = vst [vmem:[#allocation118_spill] sm:$0xff] %v27286_v37  ;;  %v27288_v44 = vpop.f32.mrb[67].mxu1  ;;  %v14259_v25 = vmul.f32 %v27286_v37, %v29506_v15 }
 0xd2c   :  { %29504 = vst [vmem:[#allocation117_spill] sm:$0xff] %v27288_v44  ;;  %v14335_v63 = vadd.f32 %v14334_v35, %v14256_v33  ;;  %v14499_v9 = vadd.f32 %v14498_v53, %v14420_v28  ;;  %v14258_v58 = vmul.f32 %v27288_v44, %v29505_v19  ;;  %v29509_v33 = vld [vmem:[#allocation109_spill] sm:$0xff] }
 0xd2d   :  { %v14424_v53 = vmul.f32 %v27286_v37, %v14259_v25  ;;  %v29514_v37 = vld [vmem:[#allocation116_spill] sm:$0xff] }
 0xd2e   :  { %v14500_v26 = vadd.f32 %v14499_v9, %v14421_v59  ;;  %v14336_v11 = vadd.f32 %v14335_v63, %v14257_v61  ;;  %v27296_v20 = vpop.f32.mrb[68].mxu1  ;;  %v14423_v35 = vmul.f32 %v14258_v58, %v27288_v44 }
 0xd2f   :  { %29507 = vst [vmem:[#allocation120_spill] sm:$0xff] %v27296_v20  ;;  %v27298_v57 = vpop.f32.mrb[69].mxu1  ;;  %v14261_v9 = vmul.f32 %v27296_v20, %v29510_v18 }
 0xd30   :  { %29508 = vst [vmem:[#allocation50_spill] sm:$0xff] %v27298_v57  ;;  %v14337_v56 = vadd.f32 %v14336_v11, %v14258_v58  ;;  %v14501_v52 = vadd.f32 %v14500_v26, %v14422_v29  ;;  %v14260_v28 = vmul.f32 %v27298_v57, %v29509_v33  ;;  %v29513_v58 = vld [vmem:[#allocation115_spill] sm:$0xff] }
 0xd31   :  { %v14426_v26 = vmul.f32 %v27296_v20, %v14261_v9  ;;  %v29517_v20 = vld [vmem:[#allocation121_spill] sm:$0xff] }
 0xd32   :  { %v14502_v19 = vadd.f32 %v14501_v52, %v14423_v35  ;;  %v14338_v59 = vadd.f32 %v14337_v56, %v14259_v25  ;;  %v27306_v15 = vpop.f32.mrb[70].mxu1  ;;  %v14425_v11 = vmul.f32 %v14260_v28, %v27298_v57 }
 0xd33   :  { %29511 = vst [vmem:[#allocation49_spill] sm:$0xff] %v27306_v15  ;;  %v27308_v61 = vpop.f32.mrb[71].mxu1  ;;  %v14263_v52 = vmul.f32 %v27306_v15, %v29514_v37 }
 0xd34   :  { %29512 = vst [vmem:[#allocation54_spill] sm:$0xff] %v27308_v61  ;;  %v14339_v63 = vadd.f32 %v14338_v59, %v14260_v28  ;;  %v14503_v51 = vadd.f32 %v14502_v19, %v14424_v53  ;;  %v14262_v29 = vmul.f32 %v27308_v61, %v29513_v58  ;;  %v29516_v28 = vld [vmem:[#allocation119_spill] sm:$0xff] }
 0xd35   :  { %v14428_v19 = vmul.f32 %v27306_v15, %v14263_v52 }
 0xd36   :  { %v14504_v33 = vadd.f32 %v14503_v51, %v14425_v11  ;;  %v14340_v35 = vadd.f32 %v14339_v63, %v14261_v9  ;;  %v27316_v18 = vpop.f32.mrb[72].mxu1  ;;  %v14427_v59 = vmul.f32 %v14262_v29, %v27308_v61 }
 0xd37   :  { %29515 = vst [vmem:[#allocation4_spill] sm:$0xff] %v27316_v18  ;;  %v27318_v25 = vpop.f32.mrb[73].mxu1  ;;  %v14265_v51 = vmul.f32 %v27316_v18, %v29517_v20 }
 0xd38   :  { %v14341_v56 = vadd.f32 %v14340_v35, %v14262_v29  ;;  %v14505_v44 = vadd.f32 %v14504_v33, %v14426_v26  ;;  %v14264_v53 = vmul.f32 %v27318_v25, %v29516_v28 }
 0xd39   :  { %v14430_v57 = vmul.f32 %v27316_v18, %v14265_v51 }
 0xd3a   :  { %v14506_v58 = vadd.f32 %v14505_v44, %v14427_v59  ;;  %v14342_v11 = vadd.f32 %v14341_v56, %v14263_v52  ;;  %v14429_v9 = vmul.f32 %v14264_v53, %v27318_v25 }
 0xd3c   :  { %v14343_v37 = vadd.f32 %v14342_v11, %v14264_v53  ;;  %v14507_v63 = vadd.f32 %v14506_v58, %v14428_v19 }
 0xd3e   :  { %v14344_v35 = vadd.f32 %v14343_v37, %v14265_v51  ;;  %v14508_v23 = vadd.f32 %v14507_v63, %v14429_v9 }
 0xd40   :  { %v14345_v29 = vrot.slane %v14344_v35, 4  ;;  %v14509_v26 = vadd.f32 %v14508_v23, %v14430_v57  ;;  %v14521_v23 = vld [vmem:[%s28303_s6] sm:$0x1] }
 0xd42   :  { %v14346_v33 = vadd.f32 %v14345_v29, %v14344_v35  ;;  %v14510_v61 = vrot.slane %v14509_v26, 4 }
 0xd44   :  { %v14347_v28 = vrot.slane %v14346_v33, 2  ;;  %v14511_v17 = vadd.f32 %v14510_v61, %v14509_v26 }
 0xd46   :  { %v14348_v15 = vadd.f32 %v14347_v28, %v14346_v33  ;;  %v14512_v44 = vrot.slane %v14511_v17, 2  ;;  %v29519_v33 = vld [vmem:[#allocation84_spill] sm:$0xff]  ;;  %v29520_v28 = vld [vmem:[#allocation123_spill] sm:$0xff] }
 0xd48   :  { %v14349_v59 = vrot.slane %v14348_v15, 1  ;;  %v14513_v32 = vadd.f32 %v14512_v44, %v14511_v17  ;;  %v27334_v17 = vld [vmem:[%s28304_s7] sm:$0x1]  ;;  %v29521_v44 = vld [vmem:[#allocation88_spill] sm:$0xff] }
 0xd4a   :  { %v14350_v20 = vadd.f32 %v14349_v59, %v14348_v15  ;;  %v14514_v52 = vrot.slane %v14513_v32, 1  ;;  %v29522_v59 = vld [vmem:[#allocation74_spill] sm:$0xff] }
 0xd4c   :  { %v14515_v56 = vadd.f32 %v14514_v52, %v14513_v32  ;;  %v14516_v11 = vmul.f32 0.0078125, %v14350_v20  ;;  %v29518_v32 = vld [vmem:[#allocation122_spill] sm:$0xff]  ;;  %v29523_v20 = vld [vmem:[#allocation92_spill] sm:$0xff]  ;;  %v29524_v52 = vld [vmem:[#allocation87_spill] sm:$0xff] }
 0xd4e   :  { %v14517_v53 = vmul.f32 0.0078125, %v14515_v56  ;;  %v14518_v19 = vmul.f32 %v14516_v11, %v14516_v11 }
 0xd50   :  { %v14519_v58 = vsub.f32 %v14517_v53, %v14518_v19  ;;  %v29526_v19 = vld [vmem:[#allocation91_spill] sm:$0xff] }
 0xd52   :  { %v14520_v18 = vmax.f32 %v14519_v58, 0.0 }
 0xd54   :  { %v14522_v51 = vadd.f32 1e-05, %v14520_v18  ;;  %v29539_v18 = vld [vmem:[#allocation104_spill] sm:$0xff] }
 0xd56   :  { %21378 = vrsqrt.f32 %v14522_v51  ;;  %v29527_v51 = vld [vmem:[#allocation99_spill] sm:$0xff] }
 0xd60   :  { %v21379_v57 = vpop.eup %21378 }
 0xd61   :  { %v14524_v61 = vmul.f32 %v21379_v57, %v14521_v23  ;;  %v29528_v57 = vld [vmem:[#allocation100_spill] sm:$0xff] }
 0xd63   :  { %v27336_v15 = vmul.f32 %v14524_v61, %v14516_v11  ;;  %v27339_v37 = vrot.slane %v14524_v61, %v29518_v32  ;;  %v29525_v11 = vld [vmem:[#allocation95_spill] sm:$0xff] }
 0xd65   :  { %v27345_v9 = vmul.f32 %v26930_v13, %v27339_v37  ;;  %v27349_v63 = vmul.f32 %v26928_v62, %v27339_v37  ;;  %v27353_v35 = vmul.f32 %v27339_v37, %v26958_v8  ;;  %v27357_v29 = vmul.f32 %v26956_v31, %v27339_v37 }
 0xd66   :  { %v27361_v26 = vmul.f32 %v27339_v37, %v26968_v12  ;;  %v27365_v13 = vmul.f32 %v26966_v6, %v27339_v37  ;;  %v27369_v62 = vmul.f32 %v27339_v37, %v26978_v21  ;;  %v27373_v8 = vmul.f32 %v26976_v41, %v27339_v37 }
 0xd67   :  { %v27377_v31 = vmul.f32 %v27339_v37, %v26988_v2  ;;  %v27381_v12 = vmul.f32 %v26986_v49, %v27339_v37  ;;  %v27385_v6 = vmul.f32 %v27339_v37, %v26998_v38  ;;  %v27389_v21 = vmul.f32 %v26996_v1, %v27339_v37 }
 0xd68   :  { %v27393_v41 = vmul.f32 %v27339_v37, %v27008_v40  ;;  %v27397_v2 = vmul.f32 %v27006_v0, %v27339_v37  ;;  %v27401_v49 = vmul.f32 %v27339_v37, %v27018_v24  ;;  %v27405_v38 = vmul.f32 %v27016_v34, %v27339_v37 }
 0xd69   :  { %v27409_v1 = vmul.f32 %v27339_v37, %v27028_v14  ;;  %v27413_v40 = vmul.f32 %v27026_v5, %v27339_v37  ;;  %v27417_v0 = vmul.f32 %v27339_v37, %v27038_v55  ;;  %v27421_v24 = vmul.f32 %v27036_v27, %v27339_v37 }
 0xd6a   :  { %v27425_v34 = vmul.f32 %v27339_v37, %v27048_v36  ;;  %v27429_v14 = vmul.f32 %v27046_v45, %v27339_v37  ;;  %v27433_v5 = vmul.f32 %v27339_v37, %v27058_v60  ;;  %v27437_v55 = vmul.f32 %v27056_v46, %v27339_v37 }
 0xd6b   :  { %v27441_v27 = vmul.f32 %v27339_v37, %v27068_v54  ;;  %v27445_v36 = vmul.f32 %v27066_v47, %v27339_v37  ;;  %v27449_v45 = vmul.f32 %v27339_v37, %v27078_v10  ;;  %v27453_v60 = vmul.f32 %v27076_v48, %v27339_v37 }
 0xd6c   :  { %v27457_v46 = vmul.f32 %v27339_v37, %v27088_v22  ;;  %v27461_v54 = vmul.f32 %v27086_v50, %v27339_v37  ;;  %v27465_v47 = vmul.f32 %v27339_v37, %v27098_v39  ;;  %v27469_v10 = vmul.f32 %v27096_v7, %v27339_v37 }
 0xd6d   :  { %v27473_v48 = vmul.f32 %v27339_v37, %v27108_v3  ;;  %v27477_v22 = vmul.f32 %v27106_v16, %v27339_v37  ;;  %v27481_v50 = vmul.f32 %v27339_v37, %v27118_v4  ;;  %v27485_v39 = vmul.f32 %v27116_v30, %v27339_v37 }
 0xd6e   :  { %v27489_v7 = vmul.f32 %v27339_v37, %v27128_v42  ;;  %v27493_v3 = vmul.f32 %v27126_v43, %v27339_v37  ;;  %v27497_v16 = vmul.f32 %v27339_v37, %v29519_v33  ;;  %v27501_v4 = vmul.f32 %v29520_v28, %v27339_v37  ;;  %v29529_v33 = vld [vmem:[#allocation52_spill] sm:$0xff] }
 0xd6f   :  { %v27505_v30 = vmul.f32 %v27339_v37, %v29521_v44  ;;  %v27509_v42 = vmul.f32 %v29522_v59, %v27339_v37  ;;  %v27513_v43 = vmul.f32 %v27339_v37, %v29523_v20  ;;  %v27517_v56 = vmul.f32 %v29524_v52, %v27339_v37  ;;  %v29531_v44 = vld [vmem:[#allocation108_spill] sm:$0xff] }
 0xd70   :  { %v27521_v53 = vmul.f32 %v27339_v37, %v29525_v11  ;;  %v27525_v58 = vmul.f32 %v29526_v19, %v27339_v37  ;;  %v27529_v23 = vmul.f32 %v27339_v37, %v29527_v51  ;;  %v27533_v61 = vmul.f32 %v29528_v57, %v27339_v37  ;;  %v29533_v20 = vld [vmem:[#allocation96_spill] sm:$0xff]  ;;  %v29535_v11 = vld [vmem:[#allocation73_spill] sm:$0xff]  ;;  %v29537_v51 = vld [vmem:[#allocation107_spill] sm:$0xff] }
 0xd71   :  { %v27537_v28 = vmul.f32 %v27339_v37, %v29529_v33  ;;  %v27541_v59 = vmul.f32 %v29531_v44, %v27339_v37  ;;  %v27545_v52 = vmul.f32 %v27339_v37, %v29533_v20  ;;  %v27549_v19 = vmul.f32 %v29535_v11, %v27339_v37 }
 0xd72   :  { %v27553_v57 = vmul.f32 %v27339_v37, %v29537_v51  ;;  %v27557_v33 = vmul.f32 %v29539_v18, %v27339_v37 }
 0xd73   :  { %29530 = vst [vmem:[#allocation17_spill] sm:$0xff] %v27537_v28  ;;  %29532 = vst [vmem:[#allocation5_spill] sm:$0xff] %v27541_v59  ;;  %v29541_v28 = vld [vmem:[#allocation76_spill] sm:$0xff] }
 0xd74   :  { %29534 = vst [vmem:[#allocation3_spill] sm:$0xff] %v27545_v52  ;;  %29536 = vst [vmem:[#allocation18_spill] sm:$0xff] %v27549_v19  ;;  %v27561_v44 = vmul.f32 %v27339_v37, %v29541_v28  ;;  %v29543_v59 = vld [vmem:[#allocation112_spill] sm:$0xff]  ;;  %v29545_v52 = vld [vmem:[#allocation78_spill] sm:$0xff] }
 0xd75   :  { %29538 = vst [vmem:[#allocation6_spill] sm:$0xff] %v27553_v57  ;;  %29540 = vst [vmem:[#allocation11_spill] sm:$0xff] %v27557_v33  ;;  %v27565_v20 = vmul.f32 %v29543_v59, %v27339_v37  ;;  %v27569_v11 = vmul.f32 %v27339_v37, %v29545_v52  ;;  %v29547_v19 = vld [vmem:[#allocation79_spill] sm:$0xff]  ;;  %v29549_v57 = vld [vmem:[#allocation110_spill] sm:$0xff] }
 0xd76   :  { %29542 = vst [vmem:[#allocation12_spill] sm:$0xff] %v27561_v44  ;;  %v27573_v51 = vmul.f32 %v29547_v19, %v27339_v37  ;;  %v27577_v18 = vmul.f32 %v27339_v37, %v29549_v57  ;;  %v29551_v33 = vld [vmem:[#allocation103_spill] sm:$0xff]  ;;  %v29553_v44 = vld [vmem:[#allocation113_spill] sm:$0xff] }
 0xd77   :  { %29544 = vst [vmem:[#allocation13_spill] sm:$0xff] %v27565_v20  ;;  %29546 = vst [vmem:[#allocation14_spill] sm:$0xff] %v27569_v11  ;;  %v27581_v28 = vmul.f32 %v29551_v33, %v27339_v37  ;;  %v27585_v59 = vmul.f32 %v27339_v37, %v29553_v44  ;;  %v29555_v20 = vld [vmem:[#allocation114_spill] sm:$0xff] }
 0xd78   :  { %29548 = vst [vmem:[#allocation15_spill] sm:$0xff] %v27573_v51  ;;  %29550 = vst [vmem:[#allocation26_spill] sm:$0xff] %v27577_v18  ;;  %v27589_v52 = vmul.f32 %v29555_v20, %v27339_v37  ;;  %v29557_v11 = vld [vmem:[#allocation86_spill] sm:$0xff] }
 0xd79   :  { %29552 = vst [vmem:[#allocation19_spill] sm:$0xff] %v27581_v28  ;;  %29554 = vst [vmem:[#allocation21_spill] sm:$0xff] %v27585_v59  ;;  %v27593_v19 = vmul.f32 %v27339_v37, %v29557_v11  ;;  %v29559_v51 = vld [vmem:[#allocation82_spill] sm:$0xff]  ;;  %v29563_v28 = vld [vmem:[#allocation55_spill] sm:$0xff] }
 0xd7a   :  { %29556 = vst [vmem:[#allocation23_spill] sm:$0xff] %v27589_v52  ;;  %v27597_v57 = vmul.f32 %v29559_v51, %v27339_v37  ;;  %v29561_v18 = vld [vmem:[#allocation58_spill] sm:$0xff]  ;;  %v27605_v44 = vmul.f32 %v29563_v28, %v27339_v37  ;;  %v29565_v59 = vld [vmem:[#allocation63_spill] sm:$0xff]  ;;  %v29567_v52 = vld [vmem:[#allocation60_spill] sm:$0xff] }
 0xd7b   :  { %29558 = vst [vmem:[#allocation24_spill] sm:$0xff] %v27593_v19  ;;  %v27601_v33 = vmul.f32 %v27339_v37, %v29561_v18  ;;  %v27609_v20 = vmul.f32 %v27339_v37, %v29565_v59  ;;  %v27613_v11 = vmul.f32 %v29567_v52, %v27339_v37  ;;  %v29569_v19 = vld [vmem:[#allocation117_spill] sm:$0xff] }
 0xd7c   :  { %29560 = vst [vmem:[#allocation25_spill] sm:$0xff] %v27597_v57  ;;  %29564 = vst [vmem:[#allocation16_spill] sm:$0xff] %v27605_v44  ;;  %v27617_v51 = vmul.f32 %v27339_v37, %v29569_v19  ;;  %v29571_v57 = vld [vmem:[#allocation118_spill] sm:$0xff]  ;;  %v29575_v44 = vld [vmem:[#allocation120_spill] sm:$0xff] }
 0xd7d   :  { %29562 = vst [vmem:[#allocation10_spill] sm:$0xff] %v27601_v33  ;;  %29566 = vst [vmem:[#allocation7_spill] sm:$0xff] %v27609_v20  ;;  %v27621_v18 = vmul.f32 %v29571_v57, %v27339_v37  ;;  %v29573_v33 = vld [vmem:[#allocation50_spill] sm:$0xff]  ;;  %v27629_v59 = vmul.f32 %v29575_v44, %v27339_v37  ;;  %v27641_v57 = vmul.f32 %v27339_v37, %v27318_v25  ;;  %v29584_v44 = vld [vmem:[#allocation4_spill] sm:$0xff] }
 0xd7e   :  { %29568 = vst [vmem:[#allocation8_spill] sm:$0xff] %v27613_v11  ;;  %29570 = vst [vmem:[#allocation9_spill] sm:$0xff] %v27617_v51  ;;  %v27625_v28 = vmul.f32 %v27339_v37, %v29573_v33  ;;  %v29577_v20 = vld [vmem:[#allocation54_spill] sm:$0xff]  ;;  %v29579_v11 = vld [vmem:[#allocation49_spill] sm:$0xff] }
 0xd7f   :  { %29572 = vst [vmem:[#allocation20_spill] sm:$0xff] %v27621_v18  ;;  %29576 = vst [vmem:[#allocation27_spill] sm:$0xff] %v27629_v59  ;;  %v27633_v52 = vmul.f32 %v27339_v37, %v29577_v20  ;;  %v27637_v19 = vmul.f32 %v29579_v11, %v27339_v37  ;;  %v29582_v18 = vld [vmem:[#allocation66_spill] sm:$0xff]  ;;  %v27649_v59 = vmul.f32 %v29584_v44, %v27339_v37 }
 0xd80   :  { %29574 = vst [vmem:[#allocation22_spill] sm:$0xff] %v27625_v28  ;;  %29581 = vst [vmem:[#allocation30_spill] sm:$0xff] %v27641_v57  ;;  %v14536_v33 = vmul.f32 %v29582_v18, %v27339_v37  ;;  %v29583_v28 = vld [vmem:[#allocation62_spill] sm:$0xff]  ;;  %v29585_v20 = vsub.f32 %v27334_v17, %v27336_v15  ;;  %v29587_v57 = vld [vmem:[#allocation69_spill] sm:$0xff] }
 0xd81   :  { %29578 = vst [vmem:[#allocation28_spill] sm:$0xff] %v27633_v52  ;;  %29580 = vst [vmem:[#allocation29_spill] sm:$0xff] %v27637_v19  ;;  %v14537_v51 = vmul.f32 %v29583_v28, %v27339_v37  ;;  %v29586_v19 = vld [vmem:[#allocation70_spill] sm:$0xff]  ;;  %v14539_v52 = vmul.f32 %v29587_v57, %v27339_v37  ;;  %v29591_v57 = vld [vmem:[#allocation5_spill] sm:$0xff] }
 0xd82   :  { %v27655_v11 = vrot.slane %v29585_v20, %v29518_v32  ;;  %v14538_v25 = vmul.f32 %v29586_v19, %v27339_v37  ;;  %v29589_v19 = vld [vmem:[#allocation17_spill] sm:$0xff]  ;;  %v29595_v20 = vld [vmem:[#allocation18_spill] sm:$0xff] }
 0xd84   :  { %v27663_v18 = vadd.f32 %v27655_v11, %v27345_v9  ;;  %v27667_v28 = vadd.f32 %v27655_v11, %v27349_v63  ;;  %v27670_v44 = vadd.f32 %v27655_v11, %v14536_v33  ;;  %v27673_v17 = vadd.f32 %v27655_v11, %v14537_v51  ;;  %v29593_v33 = vld [vmem:[#allocation3_spill] sm:$0xff] }
 0xd85   :  { %v27676_v15 = vadd.f32 %v27655_v11, %v14538_v25  ;;  %v27679_v32 = vadd.f32 %v27655_v11, %v14539_v52  ;;  %v27683_v37 = vadd.f32 %v27655_v11, %v27353_v35  ;;  %v27687_v9 = vadd.f32 %v27655_v11, %v27357_v29  ;;  %v29597_v25 = vld [vmem:[#allocation6_spill] sm:$0xff] }
 0xd86   :  { %v27691_v63 = vadd.f32 %v27655_v11, %v27361_v26  ;;  %v27695_v51 = vadd.f32 %v27655_v11, %v27365_v13  ;;  %v27699_v52 = vadd.f32 %v27655_v11, %v27369_v62  ;;  %v27703_v35 = vadd.f32 %v27655_v11, %v27373_v8 }
 0xd87   :  { %v27707_v29 = vadd.f32 %v27655_v11, %v27377_v31  ;;  %v27711_v26 = vadd.f32 %v27655_v11, %v27381_v12  ;;  %v27715_v13 = vadd.f32 %v27655_v11, %v27385_v6  ;;  %v27719_v62 = vadd.f32 %v27655_v11, %v27389_v21 }
 0xd88   :  { %v27723_v8 = vadd.f32 %v27655_v11, %v27393_v41  ;;  %v27727_v31 = vadd.f32 %v27655_v11, %v27397_v2  ;;  %v27731_v12 = vadd.f32 %v27655_v11, %v27401_v49  ;;  %v27735_v6 = vadd.f32 %v27655_v11, %v27405_v38 }
 0xd89   :  { %v27739_v21 = vadd.f32 %v27655_v11, %v27409_v1  ;;  %v27743_v41 = vadd.f32 %v27655_v11, %v27413_v40  ;;  %v27747_v2 = vadd.f32 %v27655_v11, %v27417_v0  ;;  %v27751_v49 = vadd.f32 %v27655_v11, %v27421_v24 }
 0xd8a   :  { %v27755_v38 = vadd.f32 %v27655_v11, %v27425_v34  ;;  %v27759_v1 = vadd.f32 %v27655_v11, %v27429_v14  ;;  %v27763_v40 = vadd.f32 %v27655_v11, %v27433_v5  ;;  %v27767_v0 = vadd.f32 %v27655_v11, %v27437_v55 }
 0xd8b   :  { %v27771_v24 = vadd.f32 %v27655_v11, %v27441_v27  ;;  %v27775_v34 = vadd.f32 %v27655_v11, %v27445_v36  ;;  %v27779_v14 = vadd.f32 %v27655_v11, %v27449_v45  ;;  %v27783_v5 = vadd.f32 %v27655_v11, %v27453_v60 }
 0xd8c   :  { %v27787_v55 = vadd.f32 %v27655_v11, %v27457_v46  ;;  %v27791_v27 = vadd.f32 %v27655_v11, %v27461_v54  ;;  %v27795_v36 = vadd.f32 %v27655_v11, %v27465_v47  ;;  %v27799_v45 = vadd.f32 %v27655_v11, %v27469_v10 }
 0xd8d   :  { %v27803_v60 = vadd.f32 %v27655_v11, %v27473_v48  ;;  %v27807_v46 = vadd.f32 %v27655_v11, %v27477_v22  ;;  %v27811_v54 = vadd.f32 %v27655_v11, %v27481_v50  ;;  %v27815_v47 = vadd.f32 %v27655_v11, %v27485_v39 }
 0xd8e   :  { %v27819_v10 = vadd.f32 %v27655_v11, %v27489_v7  ;;  %v27823_v48 = vadd.f32 %v27655_v11, %v27493_v3  ;;  %v27827_v22 = vadd.f32 %v27655_v11, %v27497_v16  ;;  %v27831_v50 = vadd.f32 %v27655_v11, %v27501_v4 }
 0xd8f   :  { %v27835_v39 = vadd.f32 %v27655_v11, %v27505_v30  ;;  %v27839_v7 = vadd.f32 %v27655_v11, %v27509_v42  ;;  %v27843_v3 = vadd.f32 %v27655_v11, %v27513_v43  ;;  %v27847_v16 = vadd.f32 %v27655_v11, %v27517_v56 }
 0xd90   :  { %v27851_v4 = vadd.f32 %v27655_v11, %v27521_v53  ;;  %v27855_v30 = vadd.f32 %v27655_v11, %v27525_v58  ;;  %v27859_v42 = vadd.f32 %v27655_v11, %v27529_v23  ;;  %v27863_v43 = vadd.f32 %v27655_v11, %v27533_v61 }
 0xd91   :  { %v27867_v56 = vadd.f32 %v27655_v11, %v29589_v19  ;;  %v27871_v53 = vadd.f32 %v27655_v11, %v29591_v57  ;;  %v27875_v58 = vadd.f32 %v27655_v11, %v29593_v33  ;;  %v27879_v23 = vadd.f32 %v27655_v11, %v29595_v20 }
 0xd92   :  { %29588 = vst [vmem:[#allocation31_spill] sm:$0xff] %v27863_v43  ;;  %v27883_v61 = vadd.f32 %v27655_v11, %v29597_v25  ;;  %v29599_v43 = vld [vmem:[#allocation11_spill] sm:$0xff] }
 0xd93   :  { %29590 = vst [vmem:[#allocation32_spill] sm:$0xff] %v27867_v56  ;;  %29592 = vst [vmem:[#allocation33_spill] sm:$0xff] %v27871_v53  ;;  %v27887_v19 = vadd.f32 %v27655_v11, %v29599_v43  ;;  %v29601_v56 = vld [vmem:[#allocation12_spill] sm:$0xff]  ;;  %v29603_v53 = vld [vmem:[#allocation13_spill] sm:$0xff] }
 0xd94   :  { %29594 = vst [vmem:[#allocation34_spill] sm:$0xff] %v27875_v58  ;;  %29596 = vst [vmem:[#allocation35_spill] sm:$0xff] %v27879_v23  ;;  %v27891_v57 = vadd.f32 %v27655_v11, %v29601_v56  ;;  %v27895_v33 = vadd.f32 %v27655_v11, %v29603_v53  ;;  %v29605_v58 = vld [vmem:[#allocation14_spill] sm:$0xff]  ;;  %v29607_v23 = vld [vmem:[#allocation15_spill] sm:$0xff] }
 0xd95   :  { %29598 = vst [vmem:[#allocation36_spill] sm:$0xff] %v27883_v61  ;;  %29600 = vst [vmem:[#allocation37_spill] sm:$0xff] %v27887_v19  ;;  %v27899_v20 = vadd.f32 %v27655_v11, %v29605_v58  ;;  %v27903_v25 = vadd.f32 %v27655_v11, %v29607_v23  ;;  %v29609_v61 = vld [vmem:[#allocation26_spill] sm:$0xff]  ;;  %v29611_v19 = vld [vmem:[#allocation19_spill] sm:$0xff] }
 0xd96   :  { %29602 = vst [vmem:[#allocation38_spill] sm:$0xff] %v27891_v57  ;;  %29604 = vst [vmem:[#allocation39_spill] sm:$0xff] %v27895_v33  ;;  %v27907_v43 = vadd.f32 %v27655_v11, %v29609_v61  ;;  %v27911_v56 = vadd.f32 %v27655_v11, %v29611_v19  ;;  %v29613_v57 = vld [vmem:[#allocation21_spill] sm:$0xff]  ;;  %v29615_v33 = vld [vmem:[#allocation23_spill] sm:$0xff] }
 0xd97   :  { %29606 = vst [vmem:[#allocation40_spill] sm:$0xff] %v27899_v20  ;;  %29608 = vst [vmem:[#allocation41_spill] sm:$0xff] %v27903_v25  ;;  %v27915_v53 = vadd.f32 %v27655_v11, %v29613_v57  ;;  %v27919_v58 = vadd.f32 %v27655_v11, %v29615_v33  ;;  %v29617_v20 = vld [vmem:[#allocation24_spill] sm:$0xff]  ;;  %v29619_v25 = vld [vmem:[#allocation25_spill] sm:$0xff] }
 0xd98   :  { %29610 = vst [vmem:[#allocation42_spill] sm:$0xff] %v27907_v43  ;;  %29612 = vst [vmem:[#allocation43_spill] sm:$0xff] %v27911_v56  ;;  %v27923_v23 = vadd.f32 %v27655_v11, %v29617_v20  ;;  %v27927_v61 = vadd.f32 %v27655_v11, %v29619_v25  ;;  %v29621_v43 = vld [vmem:[#allocation10_spill] sm:$0xff]  ;;  %v29623_v56 = vld [vmem:[#allocation16_spill] sm:$0xff] }
 0xd99   :  { %29614 = vst [vmem:[#allocation44_spill] sm:$0xff] %v27915_v53  ;;  %29616 = vst [vmem:[#allocation45_spill] sm:$0xff] %v27919_v58  ;;  %v27931_v19 = vadd.f32 %v27655_v11, %v29621_v43  ;;  %v27935_v57 = vadd.f32 %v27655_v11, %v29623_v56  ;;  %v29625_v53 = vld [vmem:[#allocation7_spill] sm:$0xff]  ;;  %v29627_v58 = vld [vmem:[#allocation8_spill] sm:$0xff] }
 0xd9a   :  { %29618 = vst [vmem:[#allocation46_spill] sm:$0xff] %v27923_v23  ;;  %29620 = vst [vmem:[#allocation47_spill] sm:$0xff] %v27927_v61  ;;  %v27939_v33 = vadd.f32 %v27655_v11, %v29625_v53  ;;  %v27943_v20 = vadd.f32 %v27655_v11, %v29627_v58  ;;  %v29629_v23 = vld [vmem:[#allocation9_spill] sm:$0xff]  ;;  %v29631_v61 = vld [vmem:[#allocation20_spill] sm:$0xff] }
 0xd9b   :  { %29622 = vst [vmem:[#allocation48_spill] sm:$0xff] %v27931_v19  ;;  %29624 = vst [vmem:[#allocation51_spill] sm:$0xff] %v27935_v57  ;;  %v27947_v25 = vadd.f32 %v27655_v11, %v29629_v23  ;;  %v27951_v43 = vadd.f32 %v27655_v11, %v29631_v61  ;;  %v29632_v19 = vld [vmem:[#allocation22_spill] sm:$0xff]  ;;  %v29634_v57 = vld [vmem:[#allocation27_spill] sm:$0xff] }
 0xd9c   :  { %29626 = vst [vmem:[#allocation53_spill] sm:$0xff] %v27939_v33  ;;  %29628 = vst [vmem:[#allocation56_spill] sm:$0xff] %v27943_v20  ;;  %v27955_v56 = vadd.f32 %v27655_v11, %v29632_v19  ;;  %v27959_v53 = vadd.f32 %v27655_v11, %v29634_v57  ;;  %v29636_v33 = vld [vmem:[#allocation28_spill] sm:$0xff]  ;;  %v29638_v20 = vld [vmem:[#allocation29_spill] sm:$0xff]  ;;  %v27975_v19 = vadd.f32 %v27655_v11, %v27649_v59  ;;  %v14701_v57 = vmax.f32 %v27667_v28, 0.0 }
 0xd9d   :  { %29630 = vst [vmem:[#allocation57_spill] sm:$0xff] %v27947_v25  ;;  %v27963_v58 = vadd.f32 %v27655_v11, %v29636_v33  ;;  %v27967_v23 = vadd.f32 %v27655_v11, %v29638_v20  ;;  %v29640_v25 = vld [vmem:[#allocation30_spill] sm:$0xff]  ;;  %v14703_v33 = vmax.f32 %v27673_v17, 0.0  ;;  %v14705_v20 = vmax.f32 %v27679_v32, 0.0 }
 0xd9e   :  { %29633 = vst [vmem:[#allocation59_spill] sm:$0xff] %v27955_v56  ;;  %29635 = vst [vmem:[#allocation61_spill] sm:$0xff] %v27959_v53  ;;  %v27971_v61 = vadd.f32 %v27655_v11, %v29640_v25  ;;  %v14700_v56 = vmax.f32 %v27663_v18, 0.0  ;;  %v14702_v53 = vmax.f32 %v27670_v44, 0.0  ;;  %v14707_v25 = vmax.f32 %v27687_v9, 0.0 }
 0xd9f   :  { %29637 = vst [vmem:[#allocation64_spill] sm:$0xff] %v27963_v58  ;;  %29639 = vst [vmem:[#allocation65_spill] sm:$0xff] %v27967_v23  ;;  %v14704_v58 = vmax.f32 %v27676_v15, 0.0  ;;  %v14706_v23 = vmax.f32 %v27683_v37, 0.0  ;;  %v14709_v59 = vmax.f32 %v27695_v51, 0.0  ;;  %v14710_v11 = vmax.f32 %v27699_v52, 0.0 }
 0xda0   :  { %29641 = vst [vmem:[#allocation67_spill] sm:$0xff] %v27971_v61  ;;  %v14708_v61 = vmax.f32 %v27691_v63, 0.0  ;;  %v14711_v18 = vmax.f32 %v27703_v35, 0.0  ;;  %14780 = vst [vmem:[%s28305_s8] sm:$0xff] %v14700_v56  ;;  %v14712_v28 = vmax.f32 %v27707_v29, 0.0  ;;  %v14713_v44 = vmax.f32 %v27711_v26, 0.0 }
 0xda1   :  { %14781 = vst [vmem:[%s28305_s8 + $0x8] sm:$0xff] %v14701_v57  ;;  %14782 = vst [vmem:[%s28305_s8 + $0x10] sm:$0xff] %v14702_v53  ;;  %v14714_v17 = vmax.f32 %v27715_v13, 0.0  ;;  %v14715_v15 = vmax.f32 %v27719_v62, 0.0  ;;  %v14716_v32 = vmax.f32 %v27723_v8, 0.0  ;;  %v14717_v37 = vmax.f32 %v27727_v31, 0.0 }
 0xda2   :  { %14783 = vst [vmem:[%s28305_s8 + $0x18] sm:$0xff] %v14703_v33  ;;  %14784 = vst [vmem:[%s28305_s8 + $0x20] sm:$0xff] %v14704_v58  ;;  %v14718_v9 = vmax.f32 %v27731_v12, 0.0  ;;  %v14719_v63 = vmax.f32 %v27735_v6, 0.0  ;;  %v14720_v51 = vmax.f32 %v27739_v21, 0.0  ;;  %v14721_v52 = vmax.f32 %v27743_v41, 0.0 }
 0xda3   :  { %14785 = vst [vmem:[%s28305_s8 + $0x28] sm:$0xff] %v14705_v20  ;;  %14786 = vst [vmem:[%s28305_s8 + $0x30] sm:$0xff] %v14706_v23  ;;  %v14722_v35 = vmax.f32 %v27747_v2, 0.0  ;;  %v14723_v29 = vmax.f32 %v27751_v49, 0.0  ;;  %v14724_v26 = vmax.f32 %v27755_v38, 0.0  ;;  %v14725_v13 = vmax.f32 %v27759_v1, 0.0 }
 0xda4   :  { %14787 = vst [vmem:[%s28305_s8 + $0x38] sm:$0xff] %v14707_v25  ;;  %14788 = vst [vmem:[%s28305_s8 + $0x40] sm:$0xff] %v14708_v61  ;;  %v14726_v62 = vmax.f32 %v27763_v40, 0.0  ;;  %v14727_v8 = vmax.f32 %v27767_v0, 0.0  ;;  %v14728_v31 = vmax.f32 %v27771_v24, 0.0  ;;  %v14729_v12 = vmax.f32 %v27775_v34, 0.0 }
 0xda5   :  { %14789 = vst [vmem:[%s28305_s8 + $0x48] sm:$0xff] %v14709_v59  ;;  %14790 = vst [vmem:[%s28305_s8 + $0x50] sm:$0xff] %v14710_v11  ;;  %v14730_v6 = vmax.f32 %v27779_v14, 0.0  ;;  %v14731_v21 = vmax.f32 %v27783_v5, 0.0  ;;  %v14732_v41 = vmax.f32 %v27787_v55, 0.0  ;;  %v14733_v2 = vmax.f32 %v27791_v27, 0.0 }
 0xda6   :  { %14791 = vst [vmem:[%s28305_s8 + $0x58] sm:$0xff] %v14711_v18  ;;  %14792 = vst [vmem:[%s28305_s8 + $0x60] sm:$0xff] %v14712_v28  ;;  %v14734_v49 = vmax.f32 %v27795_v36, 0.0  ;;  %v14735_v38 = vmax.f32 %v27799_v45, 0.0  ;;  %v14736_v1 = vmax.f32 %v27803_v60, 0.0  ;;  %v14737_v40 = vmax.f32 %v27807_v46, 0.0 }
 0xda7   :  { %14793 = vst [vmem:[%s28305_s8 + $0x68] sm:$0xff] %v14713_v44  ;;  %14794 = vst [vmem:[%s28305_s8 + $0x70] sm:$0xff] %v14714_v17  ;;  %v14738_v0 = vmax.f32 %v27811_v54, 0.0  ;;  %v14739_v24 = vmax.f32 %v27815_v47, 0.0  ;;  %v14740_v34 = vmax.f32 %v27819_v10, 0.0  ;;  %v14741_v14 = vmax.f32 %v27823_v48, 0.0 }
 0xda8   :  { %14795 = vst [vmem:[%s28305_s8 + $0x78] sm:$0xff] %v14715_v15  ;;  %14796 = vst [vmem:[%s28305_s8 + $0x80] sm:$0xff] %v14716_v32  ;;  %v14742_v5 = vmax.f32 %v27827_v22, 0.0  ;;  %v14743_v55 = vmax.f32 %v27831_v50, 0.0  ;;  %v14744_v27 = vmax.f32 %v27835_v39, 0.0  ;;  %v14745_v36 = vmax.f32 %v27839_v7, 0.0 }
 0xda9   :  { %14797 = vst [vmem:[%s28305_s8 + $0x88] sm:$0xff] %v14717_v37  ;;  %14798 = vst [vmem:[%s28305_s8 + $0x90] sm:$0xff] %v14718_v9  ;;  %v14746_v45 = vmax.f32 %v27843_v3, 0.0  ;;  %v14747_v60 = vmax.f32 %v27847_v16, 0.0  ;;  %v14748_v46 = vmax.f32 %v27851_v4, 0.0  ;;  %v14749_v54 = vmax.f32 %v27855_v30, 0.0 }
 0xdaa   :  { %14799 = vst [vmem:[%s28305_s8 + $0x98] sm:$0xff] %v14719_v63  ;;  %14800 = vst [vmem:[%s28305_s8 + $0xa0] sm:$0xff] %v14720_v51  ;;  %v14750_v47 = vmax.f32 %v27859_v42, 0.0  ;;  %v29642_v10 = vld [vmem:[#allocation31_spill] sm:$0xff]  ;;  %v29643_v22 = vld [vmem:[#allocation32_spill] sm:$0xff] }
 0xdab   :  { %14801 = vst [vmem:[%s28305_s8 + $0xa8] sm:$0xff] %v14721_v52  ;;  %14802 = vst [vmem:[%s28305_s8 + $0xb0] sm:$0xff] %v14722_v35  ;;  %v14751_v48 = vmax.f32 %v29642_v10, 0.0  ;;  %v14752_v50 = vmax.f32 %v29643_v22, 0.0  ;;  %v29644_v39 = vld [vmem:[#allocation33_spill] sm:$0xff]  ;;  %v29645_v3 = vld [vmem:[#allocation34_spill] sm:$0xff] }
 0xdac   :  { %14803 = vst [vmem:[%s28305_s8 + $0xb8] sm:$0xff] %v14723_v29  ;;  %14804 = vst [vmem:[%s28305_s8 + $0xc0] sm:$0xff] %v14724_v26  ;;  %v14753_v7 = vmax.f32 %v29644_v39, 0.0  ;;  %v14754_v16 = vmax.f32 %v29645_v3, 0.0  ;;  %v29646_v4 = vld [vmem:[#allocation35_spill] sm:$0xff]  ;;  %v29647_v42 = vld [vmem:[#allocation36_spill] sm:$0xff] }
 0xdad   :  { %14805 = vst [vmem:[%s28305_s8 + $0xc8] sm:$0xff] %v14725_v13  ;;  %14806 = vst [vmem:[%s28305_s8 + $0xd0] sm:$0xff] %v14726_v62  ;;  %v14755_v30 = vmax.f32 %v29646_v4, 0.0  ;;  %v14756_v56 = vmax.f32 %v29647_v42, 0.0  ;;  %v29648_v53 = vld [vmem:[#allocation37_spill] sm:$0xff]  ;;  %v29649_v23 = vld [vmem:[#allocation38_spill] sm:$0xff] }
 0xdae   :  { %14807 = vst [vmem:[%s28305_s8 + $0xd8] sm:$0xff] %v14727_v8  ;;  %14808 = vst [vmem:[%s28305_s8 + $0xe0] sm:$0xff] %v14728_v31  ;;  %v14757_v58 = vmax.f32 %v29648_v53, 0.0  ;;  %v14758_v61 = vmax.f32 %v29649_v23, 0.0  ;;  %v29650_v57 = vld [vmem:[#allocation39_spill] sm:$0xff]  ;;  %v29651_v20 = vld [vmem:[#allocation40_spill] sm:$0xff] }
 0xdaf   :  { %14809 = vst [vmem:[%s28305_s8 + $0xe8] sm:$0xff] %v14729_v12  ;;  %14810 = vst [vmem:[%s28305_s8 + $0xf0] sm:$0xff] %v14730_v6  ;;  %v14759_v33 = vmax.f32 %v29650_v57, 0.0  ;;  %v14760_v25 = vmax.f32 %v29651_v20, 0.0  ;;  %v29652_v59 = vld [vmem:[#allocation41_spill] sm:$0xff]  ;;  %v29653_v18 = vld [vmem:[#allocation42_spill] sm:$0xff] }
 0xdb0   :  { %14811 = vst [vmem:[%s28305_s8 + $0xf8] sm:$0xff] %v14731_v21  ;;  %14812 = vst [vmem:[%s28305_s8 + $0x100] sm:$0xff] %v14732_v41  ;;  %v14761_v11 = vmax.f32 %v29652_v59, 0.0  ;;  %v14762_v28 = vmax.f32 %v29653_v18, 0.0  ;;  %v29654_v44 = vld [vmem:[#allocation43_spill] sm:$0xff]  ;;  %v29655_v15 = vld [vmem:[#allocation44_spill] sm:$0xff] }
 0xdb1   :  { %14813 = vst [vmem:[%s28305_s8 + $0x108] sm:$0xff] %v14733_v2  ;;  %14814 = vst [vmem:[%s28305_s8 + $0x110] sm:$0xff] %v14734_v49  ;;  %v14763_v17 = vmax.f32 %v29654_v44, 0.0  ;;  %v14764_v32 = vmax.f32 %v29655_v15, 0.0  ;;  %v29656_v37 = vld [vmem:[#allocation45_spill] sm:$0xff]  ;;  %v29657_v63 = vld [vmem:[#allocation46_spill] sm:$0xff] }
 0xdb2   :  { %14815 = vst [vmem:[%s28305_s8 + $0x118] sm:$0xff] %v14735_v38  ;;  %14816 = vst [vmem:[%s28305_s8 + $0x120] sm:$0xff] %v14736_v1  ;;  %v14765_v9 = vmax.f32 %v29656_v37, 0.0  ;;  %v14766_v51 = vmax.f32 %v29657_v63, 0.0  ;;  %v29658_v52 = vld [vmem:[#allocation47_spill] sm:$0xff]  ;;  %v29659_v29 = vld [vmem:[#allocation48_spill] sm:$0xff] }
 0xdb3   :  { %14817 = vst [vmem:[%s28305_s8 + $0x128] sm:$0xff] %v14737_v40  ;;  %14818 = vst [vmem:[%s28305_s8 + $0x130] sm:$0xff] %v14738_v0  ;;  %v14767_v35 = vmax.f32 %v29658_v52, 0.0  ;;  %v14768_v26 = vmax.f32 %v29659_v29, 0.0  ;;  %v29660_v13 = vld [vmem:[#allocation51_spill] sm:$0xff]  ;;  %v29661_v8 = vld [vmem:[#allocation53_spill] sm:$0xff] }
 0xdb4   :  { %14819 = vst [vmem:[%s28305_s8 + $0x138] sm:$0xff] %v14739_v24  ;;  %14820 = vst [vmem:[%s28305_s8 + $0x140] sm:$0xff] %v14740_v34  ;;  %v14769_v62 = vmax.f32 %v29660_v13, 0.0  ;;  %v14770_v31 = vmax.f32 %v29661_v8, 0.0  ;;  %v29662_v12 = vld [vmem:[#allocation56_spill] sm:$0xff]  ;;  %v29663_v21 = vld [vmem:[#allocation57_spill] sm:$0xff] }
 0xdb5   :  { %14821 = vst [vmem:[%s28305_s8 + $0x148] sm:$0xff] %v14741_v14  ;;  %14822 = vst [vmem:[%s28305_s8 + $0x150] sm:$0xff] %v14742_v5  ;;  %v14771_v6 = vmax.f32 %v29662_v12, 0.0  ;;  %v14772_v41 = vmax.f32 %v29663_v21, 0.0  ;;  %v14773_v2 = vmax.f32 %v27951_v43, 0.0  ;;  %v29664_v49 = vld [vmem:[#allocation59_spill] sm:$0xff] }
 0xdb6   :  { %14823 = vst [vmem:[%s28305_s8 + $0x158] sm:$0xff] %v14743_v55  ;;  %14824 = vst [vmem:[%s28305_s8 + $0x160] sm:$0xff] %v14744_v27  ;;  %v14774_v38 = vmax.f32 %v29664_v49, 0.0  ;;  %v29665_v1 = vld [vmem:[#allocation61_spill] sm:$0xff]  ;;  %v29666_v43 = vld [vmem:[#allocation64_spill] sm:$0xff]  ;;  %v14779_v55 = vmax.f32 %v27975_v19, 0.0 }
 0xdb7   :  { %14825 = vst [vmem:[%s28305_s8 + $0x168] sm:$0xff] %v14745_v36  ;;  %14826 = vst [vmem:[%s28305_s8 + $0x170] sm:$0xff] %v14746_v45  ;;  %v14775_v40 = vmax.f32 %v29665_v1, 0.0  ;;  %v14776_v0 = vmax.f32 %v29666_v43, 0.0  ;;  %v29667_v24 = vld [vmem:[#allocation65_spill] sm:$0xff]  ;;  %v29668_v14 = vld [vmem:[#allocation67_spill] sm:$0xff] }
 0xdb8   :  { %14827 = vst [vmem:[%s28305_s8 + $0x178] sm:$0xff] %v14747_v60  ;;  %14828 = vst [vmem:[%s28305_s8 + $0x180] sm:$0xff] %v14748_v46  ;;  %v14777_v34 = vmax.f32 %v29667_v24, 0.0  ;;  %v14778_v5 = vmax.f32 %v29668_v14, 0.0 }
 0xdb9   :  { %14829 = vst [vmem:[%s28305_s8 + $0x188] sm:$0xff] %v14749_v54  ;;  %14830 = vst [vmem:[%s28305_s8 + $0x190] sm:$0xff] %v14750_v47 }
 0xdba   :  { %14831 = vst [vmem:[%s28305_s8 + $0x198] sm:$0xff] %v14751_v48  ;;  %14832 = vst [vmem:[%s28305_s8 + $0x1a0] sm:$0xff] %v14752_v50 }
 0xdbb   :  { %14833 = vst [vmem:[%s28305_s8 + $0x1a8] sm:$0xff] %v14753_v7  ;;  %14834 = vst [vmem:[%s28305_s8 + $0x1b0] sm:$0xff] %v14754_v16 }
 0xdbc   :  { %14835 = vst [vmem:[%s28305_s8 + $0x1b8] sm:$0xff] %v14755_v30  ;;  %14836 = vst [vmem:[%s28305_s8 + $0x1c0] sm:$0xff] %v14756_v56 }
 0xdbd   :  { %14837 = vst [vmem:[%s28305_s8 + $0x1c8] sm:$0xff] %v14757_v58  ;;  %14838 = vst [vmem:[%s28305_s8 + $0x1d0] sm:$0xff] %v14758_v61 }
 0xdbe   :  { %14839 = vst [vmem:[%s28305_s8 + $0x1d8] sm:$0xff] %v14759_v33  ;;  %14840 = vst [vmem:[%s28305_s8 + $0x1e0] sm:$0xff] %v14760_v25 }
 0xdbf   :  { %14841 = vst [vmem:[%s28305_s8 + $0x1e8] sm:$0xff] %v14761_v11  ;;  %14842 = vst [vmem:[%s28305_s8 + $0x1f0] sm:$0xff] %v14762_v28 }
 0xdc0   :  { %14843 = vst [vmem:[%s28305_s8 + $0x1f8] sm:$0xff] %v14763_v17  ;;  %14844 = vst [vmem:[%s28305_s8 + $0x200] sm:$0xff] %v14764_v32 }
 0xdc1   :  { %14845 = vst [vmem:[%s28305_s8 + $0x208] sm:$0xff] %v14765_v9  ;;  %14846 = vst [vmem:[%s28305_s8 + $0x210] sm:$0xff] %v14766_v51 }
 0xdc2   :  { %14847 = vst [vmem:[%s28305_s8 + $0x218] sm:$0xff] %v14767_v35  ;;  %14848 = vst [vmem:[%s28305_s8 + $0x220] sm:$0xff] %v14768_v26 }
 0xdc3   :  { %14849 = vst [vmem:[%s28305_s8 + $0x228] sm:$0xff] %v14769_v62  ;;  %14850 = vst [vmem:[%s28305_s8 + $0x230] sm:$0xff] %v14770_v31 }
 0xdc4   :  { %14851 = vst [vmem:[%s28305_s8 + $0x238] sm:$0xff] %v14771_v6  ;;  %14852 = vst [vmem:[%s28305_s8 + $0x240] sm:$0xff] %v14772_v41 }
 0xdc5   :  { %14853 = vst [vmem:[%s28305_s8 + $0x248] sm:$0xff] %v14773_v2  ;;  %14854 = vst [vmem:[%s28305_s8 + $0x250] sm:$0xff] %v14774_v38 }
 0xdc6   :  { %14855 = vst [vmem:[%s28305_s8 + $0x258] sm:$0xff] %v14775_v40  ;;  %14856 = vst [vmem:[%s28305_s8 + $0x260] sm:$0xff] %v14776_v0 }
 0xdc7   :  { %14857 = vst [vmem:[%s28305_s8 + $0x268] sm:$0xff] %v14777_v34  ;;  %14858 = vst [vmem:[%s28305_s8 + $0x270] sm:$0xff] %v14778_v5 }
 0xdc8   :  { %14859 = vst [vmem:[%s28305_s8 + $0x278] sm:$0xff] %v14779_v55 }

</bundles_post_ra>
